<compile_context>
chip_gen: v7x
topology: tpu7x:2x2x1
jax: 0.10.0
libtpu: 0.0.40
codegen_flags: <defaults>
</compile_context>

<pallas_src>
import numpy as np
import jax
import jax.numpy as jnp
from jax import lax
from jax.experimental import pallas as pl
from jax.experimental.pallas import tpu as pltpu


# ----------------------------------------------------------------------------
# 1-D bilinear 2x upsample stencils (align_corners=False, PyTorch semantics)
# ----------------------------------------------------------------------------
def _up_matrix(L):
    U = np.zeros((2 * L, L), np.float32)
    for o in range(2 * L):
        src = max((o + 0.5) * 0.5 - 0.5, 0.0)
        i0 = min(int(np.floor(src)), L - 1)
        i1 = min(i0 + 1, L - 1)
        w1 = src - i0
        U[o, i0] += 1.0 - w1
        U[o, i1] += w1
    return U


def _h_taps(L):
    """Per-output-row (h0, h1, w1) taps of the 1-D 2x bilinear stencil."""
    U = _up_matrix(L)
    taps = []
    for r in range(2 * L):
        nz = np.nonzero(U[r] > 0.0)[0]
        if len(nz) == 1:
            taps.append((int(nz[0]), int(nz[0]), 0.0))
        else:
            taps.append((int(nz[0]), int(nz[1]), float(U[r, int(nz[1])])))
    return taps


# ----------------------------------------------------------------------------
# Module structure (mirrors SemanticFPNWrapper.__init__)
# ----------------------------------------------------------------------------
def _level_plan(i, in_ch, feat_ch, end_level, upsample_times):
    """[(cin, cout, upsample_after), ...] for level i."""
    if i == 0:
        assert upsample_times == end_level - i, \
            "TODO(synk): stride-2 level-0 branch not implemented"
        return [(in_ch, feat_ch, False)]
    plan = []
    for j in range(i):
        cin = in_ch if j == 0 else feat_ch
        up = j < upsample_times - (end_level - i)
        plan.append((cin, feat_ch, up))
    return plan


def init_params(key, in_channels, feat_channels, out_channels,
                end_level=3, upsample_times=3):
    keys = jax.random.split(key, 64)
    k = 0
    levels = []
    for i in range(0, end_level + 1):
        convs = []
        for (cin, cout, up) in _level_plan(i, in_channels, feat_channels,
                                           end_level, upsample_times):
            w = 0.1 * jax.random.normal(keys[k], (3, 3, cin, cout), jnp.float32)
            k += 1
            b = 0.1 * jax.random.normal(keys[k], (cout,), jnp.float32)
            k += 1
            convs.append((w, b, up))
        levels.append(convs)
    pred_w = 0.1 * jax.random.normal(keys[k], (feat_channels, out_channels),
                                     jnp.float32)
    k += 1
    pred_b = 0.1 * jax.random.normal(keys[k], (out_channels,), jnp.float32)
    return {"levels": levels, "pred_w": pred_w, "pred_b": pred_b}


# ----------------------------------------------------------------------------
# Fused forward: one pallas_call for conv chains + upsamples + fuse + pred
# ----------------------------------------------------------------------------
def semantic_fpn_forward(params, inputs_nchw):
    """inputs_nchw: list of (N, C_in, H_i, W_i). Returns (N, C_out, H_0, W_0)."""
    levels = params["levels"]
    n_levels = len(levels)
    assert len(inputs_nchw) == n_levels
    N, c_in, H0, W0 = (int(s) for s in inputs_nchw[0].shape)
    feat, c_out = (int(s) for s in params["pred_w"].shape)
    P0 = H0 * W0
    cout_pad = ((c_out + 127) // 128) * 128          # lane-dense output store
    stg_lanes = max(c_in, feat)

    sizes = [(int(x.shape[2]), int(x.shape[3])) for x in inputs_nchw]
    plans = [[bool(up) for (_, _, up) in levels[i]] for i in range(n_levels)]

    # ---- static planning ----------------------------------------------------
    conv_sizes, up_in_W, up_in_H = [], [], []
    for i in range(n_levels):
        H, W = sizes[i]
        for j, up in enumerate(plans[i]):
            if (H, W) not in conv_sizes:
                conv_sizes.append((H, W))
            if up:
                if W not in up_in_W:
                    up_in_W.append(W)
                if H not in up_in_H:
                    up_in_H.append(H)
                H, W = 2 * H, 2 * W
        assert (H, W) == (H0, W0), "every level must end at level-0 resolution"

    stg_off, total_rows = {}, 0
    for (H, W) in conv_sizes:                        # interior + top/bottom halo
        stg_off[(H, W)] = total_rows
        total_rows += H * W + 2 * (W + 1)

    h_taps_tbl = {H: _h_taps(H) for H in up_in_H}
    n_up = len(up_in_W)

    # ---- small one-time host-side prep (layout + parameter packing) --------
    xs = []
    for i in range(n_levels):
        H, W = sizes[i]
        x = jnp.transpose(inputs_nchw[i].astype(jnp.float32), (0, 2, 3, 1))
        xs.append(x.reshape(N, H * W, c_in))         # native channel count

    wf_rows, wr_rows, b_rows = [], [], []
    for i in range(n_levels):
        for j, (w, b, _up) in enumerate(levels[i]):
            w9 = jnp.asarray(w, jnp.float32).reshape(9, int(w.shape[2]), feat)
            (wf_rows if j == 0 else wr_rows).append(w9.astype(jnp.bfloat16))
            b_rows.append(jnp.asarray(b, jnp.float32).reshape(1, feat))
    w_first = jnp.concatenate(wf_rows, axis=0)       # (n_first*9, c_in, feat) bf16
    has_rest = len(wr_rows) > 0
    w_rest = jnp.concatenate(wr_rows, axis=0) if has_rest else None
    b_all = jnp.stack(b_rows, axis=0)                # (n_convs, 1, feat) f32

    # W-direction 2x stencils; weights are multiples of 0.25 -> exact in bf16.
    uw_list = [jnp.asarray(_up_matrix(W)).astype(jnp.bfloat16) for W in up_in_W]

    pred_w = jnp.zeros((feat, cout_pad), jnp.bfloat16)
    pred_w = pred_w.at[:, :c_out].set(params["pred_w"].astype(jnp.bfloat16))
    pred_b = jnp.zeros((1, cout_pad), jnp.float32)
    pred_b = pred_b.at[:, :c_out].set(
        params["pred_b"].reshape(1, c_out).astype(jnp.float32))

    # ---- the fused kernel ---------------------------------------------------
    def kernel(*args):
        p = 0
        x_refs = args[p:p + n_levels]; p += n_levels
        wf_ref = args[p]; p += 1
        if has_rest:
            wr_ref = args[p]; p += 1
        else:
            wr_ref = None
        b_ref = args[p]; p += 1
        uw_refs = args[p:p + n_up]; p += n_up
        pw_ref = args[p]; p += 1
        pb_ref = args[p]; p += 1
        o_ref = args[p]; p += 1
        stg_ref = args[p]; p += 1
        fused_ref = args[p]; p += 1

        # Zero the staging scratch once per invocation: halo rows stay zero for
        # the whole invocation, interiors are fully rewritten before every read.
        # TODO(synk): at production sizes zero only the per-size halo strips.
        stg_ref[...] = jnp.zeros(stg_ref.shape, jnp.float32)
        fused_ref[...] = jnp.zeros(fused_ref.shape, jnp.float32)

        # hoisted loads of the small grid-invariant operands
        uw_vals = {up_in_W[j]: uw_refs[j][...] for j in range(n_up)}

        mask_cache = {}

        def col_masks(W, P):
            # W-boundary validity masks for the dx = -1 / +1 conv taps.
            if (W, P) not in mask_cache:
                pidx = lax.broadcasted_iota(jnp.int32, (P, 1), 0)
                if W & (W - 1) == 0:                 # power-of-two width
                    col = pidx & (W - 1)
                    ml = (col > 0).astype(jnp.float32)
                    mr = (col < W - 1).astype(jnp.float32)
                else:                                # generic width fallback
                    pf = pidx.astype(jnp.float32)
                    row = jnp.floor((pf + 0.5) / float(W))
                    colf = pf - row * float(W)
                    ml = (colf > 0.5).astype(jnp.float32)
                    mr = (colf < float(W) - 1.5).astype(jnp.float32)
                mask_cache[(W, P)] = (ml, mr)
            return mask_cache[(W, P)]

        def conv3x3_relu(H, W, cin, w_ref_, wbase, bias_idx):
            """3x3 zero-pad conv + bias + ReLU on the (H, W) staging region.
            9 MXU matmuls (bf16 x bf16 -> f32) over shifted sublane slices."""
            P = H * W
            base = stg_off[(H, W)] + (W + 1)
            ml, mr = col_masks(W, P)
            acc = None
            t = 0
            for dy in (-1, 0, 1):
                for dx in (-1, 0, 1):
                    xt = stg_ref[pl.ds(base + dy * W + dx, P), pl.ds(0, cin)]
                    if dx == -1:
                        xt = xt * ml
                    elif dx == 1:
                        xt = xt * mr
                    d = jnp.dot(xt.astype(jnp.bfloat16), w_ref_[wbase + t],
                                preferred_element_type=jnp.float32)
                    acc = d if acc is None else acc + d
                    t += 1
            return jnp.maximum(acc + b_ref[bias_idx], 0.0)   # (P, feat) f32

        def upsample_rows(H, W, emit):
            """Separable 2x bilinear upsample of the (H, W) staging interior.
            H direction: 2-tap VPU stencil per output row; W direction +
            pixel interleave: one (2W, W) MXU matmul per output row, emitting
            contiguous output-row blocks (no O(P^2) kron matrix)."""
            base = stg_off[(H, W)] + (W + 1)
            uw = uw_vals[W]
            for r, (h0, h1, wt) in enumerate(h_taps_tbl[H]):
                r0 = stg_ref[pl.ds(base + h0 * W, W), pl.ds(0, feat)]
                if wt == 0.0:
                    row = r0
                else:
                    r1 = stg_ref[pl.ds(base + h1 * W, W), pl.ds(0, feat)]
                    row = (1.0 - wt) * r0 + wt * r1
                blk = jnp.dot(uw, row.astype(jnp.bfloat16),
                              preferred_element_type=jnp.float32)
                emit(r, blk)                                  # (2W, feat) f32

        def emit_fused(r, blk):          # final upsample of a level -> level sum
            sl = pl.ds(r * W0, W0)
            fused_ref[sl, :] = fused_ref[sl, :] + blk

        def make_emit_stage(dst, wout):  # intermediate upsample -> next conv input
            def emit(r, blk):
                stg_ref[pl.ds(dst + r * wout, wout), pl.ds(0, feat)] = blk
            return emit

        k = kf = kr = 0
        for lvl in range(n_levels):
            H, W = sizes[lvl]
            # stage the level input at its native channel count
            base = stg_off[(H, W)] + (W + 1)
            stg_ref[pl.ds(base, H * W), pl.ds(0, c_in)] = x_refs[lvl][0]
            plan = plans[lvl]
            for j, up in enumerate(plan):
                base = stg_off[(H, W)] + (W + 1)
                if j == 0:
                    y = conv3x3_relu(H, W, c_in, wf_ref, 9 * kf, k); kf += 1
                else:
                    y = conv3x3_relu(H, W, feat, wr_ref, 9 * kr, k); kr += 1
                k += 1
                last = (j == len(plan) - 1)
                if up:
                    # stage the conv output so the upsample reads static row slices
                    stg_ref[pl.ds(base, H * W), pl.ds(0, feat)] = y
                    if last:
                        upsample_rows(H, W, emit_fused)
                    else:
                        dst = stg_off[(2 * H, 2 * W)] + (2 * W + 1)
                        upsample_rows(H, W, make_emit_stage(dst, 2 * W))
                    H, W = 2 * H, 2 * W
                else:
                    if last:
                        fused_ref[...] = fused_ref[...] + y
                    else:
                        stg_ref[pl.ds(base, H * W), pl.ds(0, feat)] = y

        # fuse (sum) + 1x1 conv_pred + bias + ReLU; lane-dense padded channels
        fused = fused_ref[...].astype(jnp.bfloat16)
        out = jnp.dot(fused, pw_ref[...], preferred_element_type=jnp.float32)
        out = jnp.maximum(out + pb_ref[...], 0.0)
        o_ref[...] = out[None]

    # ---- pallas_call --------------------------------------------------------
    in_specs = [pl.BlockSpec((1, H * W, c_in), lambda n: (n, 0, 0))
                for (H, W) in sizes]
    # grid-invariant operands: full-block, constant block index.
    in_specs.append(pl.BlockSpec(w_first.shape, lambda n: (0, 0, 0)))
    if has_rest:
        in_specs.append(pl.BlockSpec(w_rest.shape, lambda n: (0, 0, 0)))
    in_specs.append(pl.BlockSpec(b_all.shape, lambda n: (0, 0, 0)))
    in_specs += [pl.BlockSpec(u.shape, lambda n: (0, 0)) for u in uw_list]
    in_specs.append(pl.BlockSpec(pred_w.shape, lambda n: (0, 0)))
    in_specs.append(pl.BlockSpec(pred_b.shape, lambda n: (0, 0)))

    # per-chip VMEM budget (review: do not hard-cap at 32 MiB)
    try:
        vmem_cap = int(pltpu.get_tpu_info().vmem_capacity_bytes)
        vmem_limit = max(32 * 1024 * 1024,
                         min(3 * vmem_cap // 4, 110 * 1024 * 1024))
    except Exception:
        vmem_limit = 48 * 1024 * 1024

    operands = list(xs) + [w_first]
    if has_rest:
        operands.append(w_rest)
    operands += [b_all] + uw_list + [pred_w, pred_b]

    out_flat = pl.pallas_call(
        kernel,
        out_shape=jax.ShapeDtypeStruct((N, P0, cout_pad), jnp.float32),
        grid=(N,),
        in_specs=in_specs,
        out_specs=pl.BlockSpec((1, P0, cout_pad), lambda n: (n, 0, 0)),
        scratch_shapes=[pltpu.VMEM((total_rows, stg_lanes), jnp.float32),
                        pltpu.VMEM((P0, feat), jnp.float32)],
        compiler_params=pltpu.CompilerParams(
            dimension_semantics=("parallel",),
            vmem_limit_bytes=vmem_limit),
    )(*operands)

    # boundary glue to match the PyTorch module's NCHW output.  NHWC consumers
    # can use out_flat[..., :c_out] directly and skip this transpose.
    out = out_flat[:, :, :c_out]
    return jnp.transpose(out, (0, 2, 1)).reshape(N, c_out, H0, W0)


# ----------------------------------------------------------------------------
# Pure-JAX reference (correctness check only)
# ----------------------------------------------------------------------------
def reference_forward(params, inputs_nchw):
    hp = lax.Precision.HIGHEST
    mlvl = []
    for i, convs in enumerate(params["levels"]):
        x = jnp.transpose(inputs_nchw[i], (0, 2, 3, 1))
        for (w, b, up) in convs:
            x = lax.conv_general_dilated(
                x, w, (1, 1), ((1, 1), (1, 1)),
                dimension_numbers=("NHWC", "HWIO", "NHWC"), precision=hp)
            x = jnp.maximum(x + b[None, None, None, :], 0.0)
            if up:
                _, H, W, _ = x.shape
                x = jnp.einsum("ph,nhwc->npwc", jnp.asarray(_up_matrix(H)), x,
                               precision=hp)
                x = jnp.einsum("qw,npwc->npqc", jnp.asarray(_up_matrix(W)), x,
                               precision=hp)
        mlvl.append(x)
    s = sum(mlvl)
    out = jnp.einsum("nhwf,fo->nhwo", s, params["pred_w"], precision=hp)
    out = jnp.maximum(out + params["pred_b"][None, None, None, :], 0.0)
    return jnp.transpose(out, (0, 3, 1, 2))


# ----------------------------------------------------------------------------
if __name__ == "__main__":
    key = jax.random.PRNGKey(0)
    k_par, k0, k1, k2, k3 = jax.random.split(key, 5)

    N, C_IN, FEAT, C_OUT = 2, 4, 8, 8
    params = init_params(k_par, C_IN, FEAT, C_OUT, end_level=3,
                         upsample_times=3)

    # FPN pyramid inputs (NCHW, like PyTorch): level i has spatial 16 / 2^i.
    inputs = [
        jax.random.normal(k0, (N, C_IN, 16, 16), jnp.float32),
        jax.random.normal(k1, (N, C_IN, 8, 8), jnp.float32),
        jax.random.normal(k2, (N, C_IN, 4, 4), jnp.float32),
        jax.random.normal(k3, (N, C_IN, 2, 2), jnp.float32),
    ]

    out = jax.block_until_ready(semantic_fpn_forward(params, inputs))
    assert out.shape == (N, C_OUT, 16, 16), out.shape

    ref = jax.block_until_ready(reference_forward(params, inputs))
    # bf16 MXU operands (f32 accumulation) -> loosened tolerance vs f32 ref.
    np.testing.assert_allclose(np.asarray(out), np.asarray(ref),
                               rtol=2e-2, atol=2e-2)

    print("KERNEL_OK")
</pallas_src>

<mosaic_0001>
module attributes {stable_mosaic.version = 11 : i64} {
  func.func @kernel(%arg0: i32, %arg1: memref<1x256x4xf32, #tpu.memory_space<vmem>>, %arg2: memref<1x64x4xf32, #tpu.memory_space<vmem>>, %arg3: memref<1x16x4xf32, #tpu.memory_space<vmem>>, %arg4: memref<1x4x4xf32, #tpu.memory_space<vmem>>, %arg5: memref<36x4x8xbf16, #tpu.memory_space<vmem>>, %arg6: memref<27x8x8xbf16, #tpu.memory_space<vmem>>, %arg7: memref<7x1x8xf32, #tpu.memory_space<vmem>>, %arg8: memref<16x8xbf16, #tpu.memory_space<vmem>>, %arg9: memref<8x4xbf16, #tpu.memory_space<vmem>>, %arg10: memref<4x2xbf16, #tpu.memory_space<vmem>>, %arg11: memref<8x128xbf16, #tpu.memory_space<vmem>>, %arg12: memref<1x128xf32, #tpu.memory_space<vmem>>, %arg13: memref<1x256x128xf32, #tpu.memory_space<vmem>>, %arg14: memref<408x8xf32, #tpu.memory_space<vmem>>, %arg15: memref<256x8xf32, #tpu.memory_space<vmem>>) attributes {dimension_semantics = [#tpu.dimension_semantics<parallel>], iteration_bounds = array<i64: 2>, scalar_prefetch = 0 : i64, scratch_operands = 2 : i64, tpu.core_type = #tpu.core_type<tc>, window_params = [{transform_indices = @transform_0, window_bounds = array<i64: 1, 256, 4>}, {transform_indices = @transform_1, window_bounds = array<i64: 1, 64, 4>}, {transform_indices = @transform_2, window_bounds = array<i64: 1, 16, 4>}, {transform_indices = @transform_3, window_bounds = array<i64: 1, 4, 4>}, {pipeline_mode = #tpu.pipeline_mode<synchronous>, transform_indices = @transform_4, window_bounds = array<i64: 36, 4, 8>}, {pipeline_mode = #tpu.pipeline_mode<synchronous>, transform_indices = @transform_5, window_bounds = array<i64: 27, 8, 8>}, {pipeline_mode = #tpu.pipeline_mode<synchronous>, transform_indices = @transform_6, window_bounds = array<i64: 7, 1, 8>}, {pipeline_mode = #tpu.pipeline_mode<synchronous>, transform_indices = @transform_7, window_bounds = array<i64: 16, 8>}, {pipeline_mode = #tpu.pipeline_mode<synchronous>, transform_indices = @transform_8, window_bounds = array<i64: 8, 4>}, {pipeline_mode = #tpu.pipeline_mode<synchronous>, transform_indices = @transform_9, window_bounds = array<i64: 4, 2>}, {pipeline_mode = #tpu.pipeline_mode<synchronous>, transform_indices = @transform_10, window_bounds = array<i64: 8, 128>}, {pipeline_mode = #tpu.pipeline_mode<synchronous>, transform_indices = @transform_11, window_bounds = array<i64: 1, 128>}, {transform_indices = @transform_12, window_bounds = array<i64: 1, 256, 128>}]} {
    %cst = arith.constant 0.000000e+00 : f32
    %0 = vector.broadcast %cst : f32 to vector<408x8xf32>
    %c0 = arith.constant 0 : index
    %c0_0 = arith.constant 0 : index
    %1 = vector.load %arg14[%c0, %c0_0] : memref<408x8xf32, #tpu.memory_space<vmem>>, vector<408x8xf32>
    tpu.vector_store %arg14[%c0, %c0_0], %0 {strides = array<i32>} : memref<408x8xf32, #tpu.memory_space<vmem>>, vector<408x8xf32>,
    %cst_1 = arith.constant 0.000000e+00 : f32
    %2 = vector.broadcast %cst_1 : f32 to vector<256x8xf32>
    %c0_2 = arith.constant 0 : index
    %c0_3 = arith.constant 0 : index
    %3 = vector.load %arg15[%c0_2, %c0_3] : memref<256x8xf32, #tpu.memory_space<vmem>>, vector<256x8xf32>
    tpu.vector_store %arg15[%c0_2, %c0_3], %2 {strides = array<i32>} : memref<256x8xf32, #tpu.memory_space<vmem>>, vector<256x8xf32>,
    %c0_4 = arith.constant 0 : index
    %c0_5 = arith.constant 0 : index
    %4 = vector.load %arg8[%c0_4, %c0_5] : memref<16x8xbf16, #tpu.memory_space<vmem>>, vector<16x8xbf16>
    %c0_6 = arith.constant 0 : index
    %c0_7 = arith.constant 0 : index
    %5 = vector.load %arg9[%c0_6, %c0_7] : memref<8x4xbf16, #tpu.memory_space<vmem>>, vector<8x4xbf16>
    %c0_8 = arith.constant 0 : index
    %c0_9 = arith.constant 0 : index
    %6 = vector.load %arg10[%c0_8, %c0_9] : memref<4x2xbf16, #tpu.memory_space<vmem>>, vector<4x2xbf16>
    %c0_10 = arith.constant 0 : index
    %c0_11 = arith.constant 0 : index
    %c0_12 = arith.constant 0 : index
    %7 = vector.load %arg1[%c0_10, %c0_11, %c0_12] : memref<1x256x4xf32, #tpu.memory_space<vmem>>, vector<1x256x4xf32>
    %8 = vector.shape_cast %7 : vector<1x256x4xf32> to vector<256x4xf32>
    %c17 = arith.constant 17 : index
    %c0_13 = arith.constant 0 : index
    %9 = vector.load %arg14[%c17, %c0_13] : memref<408x8xf32, #tpu.memory_space<vmem>>, vector<256x4xf32>
    tpu.vector_store %arg14[%c17, %c0_13], %8 {strides = array<i32>} : memref<408x8xf32, #tpu.memory_space<vmem>>, vector<256x4xf32>,
    %10 = tpu.iota {dimensions = array<i32: 0>} : vector<256x1xi32>
    %c15_i32 = arith.constant 15 : i32
    %11 = vector.broadcast %c15_i32 : i32 to vector<256x1xi32>
    %12 = arith.andi %10, %11 : vector<256x1xi32>
    %c0_i32 = arith.constant 0 : i32
    %13 = vector.broadcast %c0_i32 : i32 to vector<256x1xi32>
    %14 = arith.cmpi sgt, %12, %13 : vector<256x1xi32>
    %15 = arith.extui %14 : vector<256x1xi1> to vector<256x1xi32>
    %16 = arith.sitofp %15 : vector<256x1xi32> to vector<256x1xf32>
    %c15_i32_14 = arith.constant 15 : i32
    %17 = vector.broadcast %c15_i32_14 : i32 to vector<256x1xi32>
    %18 = arith.cmpi slt, %12, %17 : vector<256x1xi32>
    %19 = arith.extui %18 : vector<256x1xi1> to vector<256x1xi32>
    %20 = arith.sitofp %19 : vector<256x1xi32> to vector<256x1xf32>
    %c0_15 = arith.constant 0 : index
    %c0_16 = arith.constant 0 : index
    %21 = vector.load %arg14[%c0_15, %c0_16] : memref<408x8xf32, #tpu.memory_space<vmem>>, vector<256x4xf32>
    %22 = vector.broadcast %16 : vector<256x1xf32> to vector<256x4xf32>
    %23 = arith.mulf %21, %22 : vector<256x4xf32>
    %24 = arith.truncf %23 : vector<256x4xf32> to vector<256x4xbf16>
    %c0_17 = arith.constant 0 : index
    %c0_18 = arith.constant 0 : index
    %c0_19 = arith.constant 0 : index
    %25 = vector.load %arg5[%c0_17, %c0_18, %c0_19] : memref<36x4x8xbf16, #tpu.memory_space<vmem>>, vector<1x4x8xbf16>
    %26 = vector.shape_cast %25 : vector<1x4x8xbf16> to vector<4x8xbf16>
    %cst_20 = arith.constant dense<0.000000e+00> : vector<256x8xf32>
    %27 = tpu.matmul %24, %26, %cst_20 {dimension_numbers = #tpu.dot_dimension_numbers<[1], [0], [0], [1], [0, 0, 1, 1], [], []>} : vector<256x4xbf16>, vector<4x8xbf16>, vector<256x8xf32> -> vector<256x8xf32>
    %c1 = arith.constant 1 : index
    %c0_21 = arith.constant 0 : index
    %28 = vector.load %arg14[%c1, %c0_21] : memref<408x8xf32, #tpu.memory_space<vmem>>, vector<256x4xf32>
    %29 = arith.truncf %28 : vector<256x4xf32> to vector<256x4xbf16>
    %c1_22 = arith.constant 1 : index
    %c0_23 = arith.constant 0 : index
    %c0_24 = arith.constant 0 : index
    %30 = vector.load %arg5[%c1_22, %c0_23, %c0_24] : memref<36x4x8xbf16, #tpu.memory_space<vmem>>, vector<1x4x8xbf16>
    %31 = vector.shape_cast %30 : vector<1x4x8xbf16> to vector<4x8xbf16>
    %cst_25 = arith.constant dense<0.000000e+00> : vector<256x8xf32>
    %32 = tpu.matmul %29, %31, %cst_25 {dimension_numbers = #tpu.dot_dimension_numbers<[1], [0], [0], [1], [0, 0, 1, 1], [], []>} : vector<256x4xbf16>, vector<4x8xbf16>, vector<256x8xf32> -> vector<256x8xf32>
    %33 = arith.addf %27, %32 : vector<256x8xf32>
    %c2 = arith.constant 2 : index
    %c0_26 = arith.constant 0 : index
    %34 = vector.load %arg14[%c2, %c0_26] : memref<408x8xf32, #tpu.memory_space<vmem>>, vector<256x4xf32>
    %35 = vector.broadcast %20 : vector<256x1xf32> to vector<256x4xf32>
    %36 = arith.mulf %34, %35 : vector<256x4xf32>
    %37 = arith.truncf %36 : vector<256x4xf32> to vector<256x4xbf16>
    %c2_27 = arith.constant 2 : index
    %c0_28 = arith.constant 0 : index
    %c0_29 = arith.constant 0 : index
    %38 = vector.load %arg5[%c2_27, %c0_28, %c0_29] : memref<36x4x8xbf16, #tpu.memory_space<vmem>>, vector<1x4x8xbf16>
    %39 = vector.shape_cast %38 : vector<1x4x8xbf16> to vector<4x8xbf16>
    %cst_30 = arith.constant dense<0.000000e+00> : vector<256x8xf32>
    %40 = tpu.matmul %37, %39, %cst_30 {dimension_numbers = #tpu.dot_dimension_numbers<[1], [0], [0], [1], [0, 0, 1, 1], [], []>} : vector<256x4xbf16>, vector<4x8xbf16>, vector<256x8xf32> -> vector<256x8xf32>
    %41 = arith.addf %33, %40 : vector<256x8xf32>
    %c16 = arith.constant 16 : index
    %c0_31 = arith.constant 0 : index
    %42 = vector.load %arg14[%c16, %c0_31] : memref<408x8xf32, #tpu.memory_space<vmem>>, vector<256x4xf32>
    %43 = vector.broadcast %16 : vector<256x1xf32> to vector<256x4xf32>
    %44 = arith.mulf %42, %43 : vector<256x4xf32>
    %45 = arith.truncf %44 : vector<256x4xf32> to vector<256x4xbf16>
    %c3 = arith.constant 3 : index
    %c0_32 = arith.constant 0 : index
    %c0_33 = arith.constant 0 : index
    %46 = vector.load %arg5[%c3, %c0_32, %c0_33] : memref<36x4x8xbf16, #tpu.memory_space<vmem>>, vector<1x4x8xbf16>
    %47 = vector.shape_cast %46 : vector<1x4x8xbf16> to vector<4x8xbf16>
    %cst_34 = arith.constant dense<0.000000e+00> : vector<256x8xf32>
    %48 = tpu.matmul %45, %47, %cst_34 {dimension_numbers = #tpu.dot_dimension_numbers<[1], [0], [0], [1], [0, 0, 1, 1], [], []>} : vector<256x4xbf16>, vector<4x8xbf16>, vector<256x8xf32> -> vector<256x8xf32>
    %49 = arith.addf %41, %48 : vector<256x8xf32>
    %c17_35 = arith.constant 17 : index
    %c0_36 = arith.constant 0 : index
    %50 = vector.load %arg14[%c17_35, %c0_36] : memref<408x8xf32, #tpu.memory_space<vmem>>, vector<256x4xf32>
    %51 = arith.truncf %50 : vector<256x4xf32> to vector<256x4xbf16>
    %c4 = arith.constant 4 : index
    %c0_37 = arith.constant 0 : index
    %c0_38 = arith.constant 0 : index
    %52 = vector.load %arg5[%c4, %c0_37, %c0_38] : memref<36x4x8xbf16, #tpu.memory_space<vmem>>, vector<1x4x8xbf16>
    %53 = vector.shape_cast %52 : vector<1x4x8xbf16> to vector<4x8xbf16>
    %cst_39 = arith.constant dense<0.000000e+00> : vector<256x8xf32>
    %54 = tpu.matmul %51, %53, %cst_39 {dimension_numbers = #tpu.dot_dimension_numbers<[1], [0], [0], [1], [0, 0, 1, 1], [], []>} : vector<256x4xbf16>, vector<4x8xbf16>, vector<256x8xf32> -> vector<256x8xf32>
    %55 = arith.addf %49, %54 : vector<256x8xf32>
    %c18 = arith.constant 18 : index
    %c0_40 = arith.constant 0 : index
    %56 = vector.load %arg14[%c18, %c0_40] : memref<408x8xf32, #tpu.memory_space<vmem>>, vector<256x4xf32>
    %57 = vector.broadcast %20 : vector<256x1xf32> to vector<256x4xf32>
    %58 = arith.mulf %56, %57 : vector<256x4xf32>
    %59 = arith.truncf %58 : vector<256x4xf32> to vector<256x4xbf16>
    %c5 = arith.constant 5 : index
    %c0_41 = arith.constant 0 : index
    %c0_42 = arith.constant 0 : index
    %60 = vector.load %arg5[%c5, %c0_41, %c0_42] : memref<36x4x8xbf16, #tpu.memory_space<vmem>>, vector<1x4x8xbf16>
    %61 = vector.shape_cast %60 : vector<1x4x8xbf16> to vector<4x8xbf16>
    %cst_43 = arith.constant dense<0.000000e+00> : vector<256x8xf32>
    %62 = tpu.matmul %59, %61, %cst_43 {dimension_numbers = #tpu.dot_dimension_numbers<[1], [0], [0], [1], [0, 0, 1, 1], [], []>} : vector<256x4xbf16>, vector<4x8xbf16>, vector<256x8xf32> -> vector<256x8xf32>
    %63 = arith.addf %55, %62 : vector<256x8xf32>
    %c32 = arith.constant 32 : index
    %c0_44 = arith.constant 0 : index
    %64 = vector.load %arg14[%c32, %c0_44] : memref<408x8xf32, #tpu.memory_space<vmem>>, vector<256x4xf32>
    %65 = vector.broadcast %16 : vector<256x1xf32> to vector<256x4xf32>
    %66 = arith.mulf %64, %65 : vector<256x4xf32>
    %67 = arith.truncf %66 : vector<256x4xf32> to vector<256x4xbf16>
    %c6 = arith.constant 6 : index
    %c0_45 = arith.constant 0 : index
    %c0_46 = arith.constant 0 : index
    %68 = vector.load %arg5[%c6, %c0_45, %c0_46] : memref<36x4x8xbf16, #tpu.memory_space<vmem>>, vector<1x4x8xbf16>
    %69 = vector.shape_cast %68 : vector<1x4x8xbf16> to vector<4x8xbf16>
    %cst_47 = arith.constant dense<0.000000e+00> : vector<256x8xf32>
    %70 = tpu.matmul %67, %69, %cst_47 {dimension_numbers = #tpu.dot_dimension_numbers<[1], [0], [0], [1], [0, 0, 1, 1], [], []>} : vector<256x4xbf16>, vector<4x8xbf16>, vector<256x8xf32> -> vector<256x8xf32>
    %71 = arith.addf %63, %70 : vector<256x8xf32>
    %c33 = arith.constant 33 : index
    %c0_48 = arith.constant 0 : index
    %72 = vector.load %arg14[%c33, %c0_48] : memref<408x8xf32, #tpu.memory_space<vmem>>, vector<256x4xf32>
    %73 = arith.truncf %72 : vector<256x4xf32> to vector<256x4xbf16>
    %c7 = arith.constant 7 : index
    %c0_49 = arith.constant 0 : index
    %c0_50 = arith.constant 0 : index
    %74 = vector.load %arg5[%c7, %c0_49, %c0_50] : memref<36x4x8xbf16, #tpu.memory_space<vmem>>, vector<1x4x8xbf16>
    %75 = vector.shape_cast %74 : vector<1x4x8xbf16> to vector<4x8xbf16>
    %cst_51 = arith.constant dense<0.000000e+00> : vector<256x8xf32>
    %76 = tpu.matmul %73, %75, %cst_51 {dimension_numbers = #tpu.dot_dimension_numbers<[1], [0], [0], [1], [0, 0, 1, 1], [], []>} : vector<256x4xbf16>, vector<4x8xbf16>, vector<256x8xf32> -> vector<256x8xf32>
    %77 = arith.addf %71, %76 : vector<256x8xf32>
    %c34 = arith.constant 34 : index
    %c0_52 = arith.constant 0 : index
    %78 = vector.load %arg14[%c34, %c0_52] : memref<408x8xf32, #tpu.memory_space<vmem>>, vector<256x4xf32>
    %79 = vector.broadcast %20 : vector<256x1xf32> to vector<256x4xf32>
    %80 = arith.mulf %78, %79 : vector<256x4xf32>
    %81 = arith.truncf %80 : vector<256x4xf32> to vector<256x4xbf16>
    %c8 = arith.constant 8 : index
    %c0_53 = arith.constant 0 : index
    %c0_54 = arith.constant 0 : index
    %82 = vector.load %arg5[%c8, %c0_53, %c0_54] : memref<36x4x8xbf16, #tpu.memory_space<vmem>>, vector<1x4x8xbf16>
    %83 = vector.shape_cast %82 : vector<1x4x8xbf16> to vector<4x8xbf16>
    %cst_55 = arith.constant dense<0.000000e+00> : vector<256x8xf32>
    %84 = tpu.matmul %81, %83, %cst_55 {dimension_numbers = #tpu.dot_dimension_numbers<[1], [0], [0], [1], [0, 0, 1, 1], [], []>} : vector<256x4xbf16>, vector<4x8xbf16>, vector<256x8xf32> -> vector<256x8xf32>
    %85 = arith.addf %77, %84 : vector<256x8xf32>
    %c0_56 = arith.constant 0 : index
    %c0_57 = arith.constant 0 : index
    %c0_58 = arith.constant 0 : index
    %86 = vector.load %arg7[%c0_56, %c0_57, %c0_58] : memref<7x1x8xf32, #tpu.memory_space<vmem>>, vector<1x1x8xf32>
    %87 = vector.shape_cast %86 : vector<1x1x8xf32> to vector<1x8xf32>
    %88 = vector.broadcast %87 : vector<1x8xf32> to vector<256x8xf32>
    %89 = arith.addf %85, %88 : vector<256x8xf32>
    %cst_59 = arith.constant 0.000000e+00 : f32
    %90 = vector.broadcast %cst_59 : f32 to vector<256x8xf32>
    %91 = arith.maximumf %89, %90 : vector<256x8xf32>
    %c0_60 = arith.constant 0 : index
    %c0_61 = arith.constant 0 : index
    %92 = vector.load %arg15[%c0_60, %c0_61] : memref<256x8xf32, #tpu.memory_space<vmem>>, vector<256x8xf32>
    %93 = arith.addf %92, %91 : vector<256x8xf32>
    %c0_62 = arith.constant 0 : index
    %c0_63 = arith.constant 0 : index
    %94 = vector.load %arg15[%c0_62, %c0_63] : memref<256x8xf32, #tpu.memory_space<vmem>>, vector<256x8xf32>
    tpu.vector_store %arg15[%c0_62, %c0_63], %93 {strides = array<i32>} : memref<256x8xf32, #tpu.memory_space<vmem>>, vector<256x8xf32>,
    %c0_64 = arith.constant 0 : index
    %c0_65 = arith.constant 0 : index
    %c0_66 = arith.constant 0 : index
    %95 = vector.load %arg2[%c0_64, %c0_65, %c0_66] : memref<1x64x4xf32, #tpu.memory_space<vmem>>, vector<1x64x4xf32>
    %96 = vector.shape_cast %95 : vector<1x64x4xf32> to vector<64x4xf32>
    %c299 = arith.constant 299 : index
    %c0_67 = arith.constant 0 : index
    %97 = vector.load %arg14[%c299, %c0_67] : memref<408x8xf32, #tpu.memory_space<vmem>>, vector<64x4xf32>
    tpu.vector_store %arg14[%c299, %c0_67], %96 {strides = array<i32>} : memref<408x8xf32, #tpu.memory_space<vmem>>, vector<64x4xf32>,
    %98 = tpu.iota {dimensions = array<i32: 0>} : vector<64x1xi32>
    %c7_i32 = arith.constant 7 : i32
    %99 = vector.broadcast %c7_i32 : i32 to vector<64x1xi32>
    %100 = arith.andi %98, %99 : vector<64x1xi32>
    %c0_i32_68 = arith.constant 0 : i32
    %101 = vector.broadcast %c0_i32_68 : i32 to vector<64x1xi32>
    %102 = arith.cmpi sgt, %100, %101 : vector<64x1xi32>
    %103 = arith.extui %102 : vector<64x1xi1> to vector<64x1xi32>
    %104 = arith.sitofp %103 : vector<64x1xi32> to vector<64x1xf32>
    %c7_i32_69 = arith.constant 7 : i32
    %105 = vector.broadcast %c7_i32_69 : i32 to vector<64x1xi32>
    %106 = arith.cmpi slt, %100, %105 : vector<64x1xi32>
    %107 = arith.extui %106 : vector<64x1xi1> to vector<64x1xi32>
    %108 = arith.sitofp %107 : vector<64x1xi32> to vector<64x1xf32>
    %c290 = arith.constant 290 : index
    %c0_70 = arith.constant 0 : index
    %109 = vector.load %arg14[%c290, %c0_70] : memref<408x8xf32, #tpu.memory_space<vmem>>, vector<64x4xf32>
    %110 = vector.broadcast %104 : vector<64x1xf32> to vector<64x4xf32>
    %111 = arith.mulf %109, %110 : vector<64x4xf32>
    %112 = arith.truncf %111 : vector<64x4xf32> to vector<64x4xbf16>
    %c9 = arith.constant 9 : index
    %c0_71 = arith.constant 0 : index
    %c0_72 = arith.constant 0 : index
    %113 = vector.load %arg5[%c9, %c0_71, %c0_72] : memref<36x4x8xbf16, #tpu.memory_space<vmem>>, vector<1x4x8xbf16>
    %114 = vector.shape_cast %113 : vector<1x4x8xbf16> to vector<4x8xbf16>
    %cst_73 = arith.constant dense<0.000000e+00> : vector<64x8xf32>
    %115 = tpu.matmul %112, %114, %cst_73 {dimension_numbers = #tpu.dot_dimension_numbers<[1], [0], [0], [1], [0, 0, 1, 1], [], []>} : vector<64x4xbf16>, vector<4x8xbf16>, vector<64x8xf32> -> vector<64x8xf32>
    %c291 = arith.constant 291 : index
    %c0_74 = arith.constant 0 : index
    %116 = vector.load %arg14[%c291, %c0_74] : memref<408x8xf32, #tpu.memory_space<vmem>>, vector<64x4xf32>
    %117 = arith.truncf %116 : vector<64x4xf32> to vector<64x4xbf16>
    %c10 = arith.constant 10 : index
    %c0_75 = arith.constant 0 : index
    %c0_76 = arith.constant 0 : index
    %118 = vector.load %arg5[%c10, %c0_75, %c0_76] : memref<36x4x8xbf16, #tpu.memory_space<vmem>>, vector<1x4x8xbf16>
    %119 = vector.shape_cast %118 : vector<1x4x8xbf16> to vector<4x8xbf16>
    %cst_77 = arith.constant dense<0.000000e+00> : vector<64x8xf32>
    %120 = tpu.matmul %117, %119, %cst_77 {dimension_numbers = #tpu.dot_dimension_numbers<[1], [0], [0], [1], [0, 0, 1, 1], [], []>} : vector<64x4xbf16>, vector<4x8xbf16>, vector<64x8xf32> -> vector<64x8xf32>
    %121 = arith.addf %115, %120 : vector<64x8xf32>
    %c292 = arith.constant 292 : index
    %c0_78 = arith.constant 0 : index
    %122 = vector.load %arg14[%c292, %c0_78] : memref<408x8xf32, #tpu.memory_space<vmem>>, vector<64x4xf32>
    %123 = vector.broadcast %108 : vector<64x1xf32> to vector<64x4xf32>
    %124 = arith.mulf %122, %123 : vector<64x4xf32>
    %125 = arith.truncf %124 : vector<64x4xf32> to vector<64x4xbf16>
    %c11 = arith.constant 11 : index
    %c0_79 = arith.constant 0 : index
    %c0_80 = arith.constant 0 : index
    %126 = vector.load %arg5[%c11, %c0_79, %c0_80] : memref<36x4x8xbf16, #tpu.memory_space<vmem>>, vector<1x4x8xbf16>
    %127 = vector.shape_cast %126 : vector<1x4x8xbf16> to vector<4x8xbf16>
    %cst_81 = arith.constant dense<0.000000e+00> : vector<64x8xf32>
    %128 = tpu.matmul %125, %127, %cst_81 {dimension_numbers = #tpu.dot_dimension_numbers<[1], [0], [0], [1], [0, 0, 1, 1], [], []>} : vector<64x4xbf16>, vector<4x8xbf16>, vector<64x8xf32> -> vector<64x8xf32>
    %129 = arith.addf %121, %128 : vector<64x8xf32>
    %c298 = arith.constant 298 : index
    %c0_82 = arith.constant 0 : index
    %130 = vector.load %arg14[%c298, %c0_82] : memref<408x8xf32, #tpu.memory_space<vmem>>, vector<64x4xf32>
    %131 = vector.broadcast %104 : vector<64x1xf32> to vector<64x4xf32>
    %132 = arith.mulf %130, %131 : vector<64x4xf32>
    %133 = arith.truncf %132 : vector<64x4xf32> to vector<64x4xbf16>
    %c12 = arith.constant 12 : index
    %c0_83 = arith.constant 0 : index
    %c0_84 = arith.constant 0 : index
    %134 = vector.load %arg5[%c12, %c0_83, %c0_84] : memref<36x4x8xbf16, #tpu.memory_space<vmem>>, vector<1x4x8xbf16>
    %135 = vector.shape_cast %134 : vector<1x4x8xbf16> to vector<4x8xbf16>
    %cst_85 = arith.constant dense<0.000000e+00> : vector<64x8xf32>
    %136 = tpu.matmul %133, %135, %cst_85 {dimension_numbers = #tpu.dot_dimension_numbers<[1], [0], [0], [1], [0, 0, 1, 1], [], []>} : vector<64x4xbf16>, vector<4x8xbf16>, vector<64x8xf32> -> vector<64x8xf32>
    %137 = arith.addf %129, %136 : vector<64x8xf32>
    %c299_86 = arith.constant 299 : index
    %c0_87 = arith.constant 0 : index
    %138 = vector.load %arg14[%c299_86, %c0_87] : memref<408x8xf32, #tpu.memory_space<vmem>>, vector<64x4xf32>
    %139 = arith.truncf %138 : vector<64x4xf32> to vector<64x4xbf16>
    %c13 = arith.constant 13 : index
    %c0_88 = arith.constant 0 : index
    %c0_89 = arith.constant 0 : index
    %140 = vector.load %arg5[%c13, %c0_88, %c0_89] : memref<36x4x8xbf16, #tpu.memory_space<vmem>>, vector<1x4x8xbf16>
    %141 = vector.shape_cast %140 : vector<1x4x8xbf16> to vector<4x8xbf16>
    %cst_90 = arith.constant dense<0.000000e+00> : vector<64x8xf32>
    %142 = tpu.matmul %139, %141, %cst_90 {dimension_numbers = #tpu.dot_dimension_numbers<[1], [0], [0], [1], [0, 0, 1, 1], [], []>} : vector<64x4xbf16>, vector<4x8xbf16>, vector<64x8xf32> -> vector<64x8xf32>
    %143 = arith.addf %137, %142 : vector<64x8xf32>
    %c300 = arith.constant 300 : index
    %c0_91 = arith.constant 0 : index
    %144 = vector.load %arg14[%c300, %c0_91] : memref<408x8xf32, #tpu.memory_space<vmem>>, vector<64x4xf32>
    %145 = vector.broadcast %108 : vector<64x1xf32> to vector<64x4xf32>
    %146 = arith.mulf %144, %145 : vector<64x4xf32>
    %147 = arith.truncf %146 : vector<64x4xf32> to vector<64x4xbf16>
    %c14 = arith.constant 14 : index
    %c0_92 = arith.constant 0 : index
    %c0_93 = arith.constant 0 : index
    %148 = vector.load %arg5[%c14, %c0_92, %c0_93] : memref<36x4x8xbf16, #tpu.memory_space<vmem>>, vector<1x4x8xbf16>
    %149 = vector.shape_cast %148 : vector<1x4x8xbf16> to vector<4x8xbf16>
    %cst_94 = arith.constant dense<0.000000e+00> : vector<64x8xf32>
    %150 = tpu.matmul %147, %149, %cst_94 {dimension_numbers = #tpu.dot_dimension_numbers<[1], [0], [0], [1], [0, 0, 1, 1], [], []>} : vector<64x4xbf16>, vector<4x8xbf16>, vector<64x8xf32> -> vector<64x8xf32>
    %151 = arith.addf %143, %150 : vector<64x8xf32>
    %c306 = arith.constant 306 : index
    %c0_95 = arith.constant 0 : index
    %152 = vector.load %arg14[%c306, %c0_95] : memref<408x8xf32, #tpu.memory_space<vmem>>, vector<64x4xf32>
    %153 = vector.broadcast %104 : vector<64x1xf32> to vector<64x4xf32>
    %154 = arith.mulf %152, %153 : vector<64x4xf32>
    %155 = arith.truncf %154 : vector<64x4xf32> to vector<64x4xbf16>
    %c15 = arith.constant 15 : index
    %c0_96 = arith.constant 0 : index
    %c0_97 = arith.constant 0 : index
    %156 = vector.load %arg5[%c15, %c0_96, %c0_97] : memref<36x4x8xbf16, #tpu.memory_space<vmem>>, vector<1x4x8xbf16>
    %157 = vector.shape_cast %156 : vector<1x4x8xbf16> to vector<4x8xbf16>
    %cst_98 = arith.constant dense<0.000000e+00> : vector<64x8xf32>
    %158 = tpu.matmul %155, %157, %cst_98 {dimension_numbers = #tpu.dot_dimension_numbers<[1], [0], [0], [1], [0, 0, 1, 1], [], []>} : vector<64x4xbf16>, vector<4x8xbf16>, vector<64x8xf32> -> vector<64x8xf32>
    %159 = arith.addf %151, %158 : vector<64x8xf32>
    %c307 = arith.constant 307 : index
    %c0_99 = arith.constant 0 : index
    %160 = vector.load %arg14[%c307, %c0_99] : memref<408x8xf32, #tpu.memory_space<vmem>>, vector<64x4xf32>
    %161 = arith.truncf %160 : vector<64x4xf32> to vector<64x4xbf16>
    %c16_100 = arith.constant 16 : index
    %c0_101 = arith.constant 0 : index
    %c0_102 = arith.constant 0 : index
    %162 = vector.load %arg5[%c16_100, %c0_101, %c0_102] : memref<36x4x8xbf16, #tpu.memory_space<vmem>>, vector<1x4x8xbf16>
    %163 = vector.shape_cast %162 : vector<1x4x8xbf16> to vector<4x8xbf16>
    %cst_103 = arith.constant dense<0.000000e+00> : vector<64x8xf32>
    %164 = tpu.matmul %161, %163, %cst_103 {dimension_numbers = #tpu.dot_dimension_numbers<[1], [0], [0], [1], [0, 0, 1, 1], [], []>} : vector<64x4xbf16>, vector<4x8xbf16>, vector<64x8xf32> -> vector<64x8xf32>
    %165 = arith.addf %159, %164 : vector<64x8xf32>
    %c308 = arith.constant 308 : index
    %c0_104 = arith.constant 0 : index
    %166 = vector.load %arg14[%c308, %c0_104] : memref<408x8xf32, #tpu.memory_space<vmem>>, vector<64x4xf32>
    %167 = vector.broadcast %108 : vector<64x1xf32> to vector<64x4xf32>
    %168 = arith.mulf %166, %167 : vector<64x4xf32>
    %169 = arith.truncf %168 : vector<64x4xf32> to vector<64x4xbf16>
    %c17_105 = arith.constant 17 : index
    %c0_106 = arith.constant 0 : index
    %c0_107 = arith.constant 0 : index
    %170 = vector.load %arg5[%c17_105, %c0_106, %c0_107] : memref<36x4x8xbf16, #tpu.memory_space<vmem>>, vector<1x4x8xbf16>
    %171 = vector.shape_cast %170 : vector<1x4x8xbf16> to vector<4x8xbf16>
    %cst_108 = arith.constant dense<0.000000e+00> : vector<64x8xf32>
    %172 = tpu.matmul %169, %171, %cst_108 {dimension_numbers = #tpu.dot_dimension_numbers<[1], [0], [0], [1], [0, 0, 1, 1], [], []>} : vector<64x4xbf16>, vector<4x8xbf16>, vector<64x8xf32> -> vector<64x8xf32>
    %173 = arith.addf %165, %172 : vector<64x8xf32>
    %c1_109 = arith.constant 1 : index
    %c0_110 = arith.constant 0 : index
    %c0_111 = arith.constant 0 : index
    %174 = vector.load %arg7[%c1_109, %c0_110, %c0_111] : memref<7x1x8xf32, #tpu.memory_space<vmem>>, vector<1x1x8xf32>
    %175 = vector.shape_cast %174 : vector<1x1x8xf32> to vector<1x8xf32>
    %176 = vector.broadcast %175 : vector<1x8xf32> to vector<64x8xf32>
    %177 = arith.addf %173, %176 : vector<64x8xf32>
    %cst_112 = arith.constant 0.000000e+00 : f32
    %178 = vector.broadcast %cst_112 : f32 to vector<64x8xf32>
    %179 = arith.maximumf %177, %178 : vector<64x8xf32>
    %c299_113 = arith.constant 299 : index
    %c0_114 = arith.constant 0 : index
    %180 = vector.load %arg14[%c299_113, %c0_114] : memref<408x8xf32, #tpu.memory_space<vmem>>, vector<64x8xf32>
    tpu.vector_store %arg14[%c299_113, %c0_114], %179 {strides = array<i32>} : memref<408x8xf32, #tpu.memory_space<vmem>>, vector<64x8xf32>,
    %c299_115 = arith.constant 299 : index
    %c0_116 = arith.constant 0 : index
    %181 = vector.load %arg14[%c299_115, %c0_116] : memref<408x8xf32, #tpu.memory_space<vmem>>, vector<8x8xf32>
    %182 = arith.truncf %181 : vector<8x8xf32> to vector<8x8xbf16>
    %cst_117 = arith.constant dense<0.000000e+00> : vector<16x8xf32>
    %183 = tpu.matmul %4, %182, %cst_117 {dimension_numbers = #tpu.dot_dimension_numbers<[1], [0], [0], [1], [0, 0, 1, 1], [], []>} : vector<16x8xbf16>, vector<8x8xbf16>, vector<16x8xf32> -> vector<16x8xf32>
    %c0_118 = arith.constant 0 : index
    %c0_119 = arith.constant 0 : index
    %184 = vector.load %arg15[%c0_118, %c0_119] : memref<256x8xf32, #tpu.memory_space<vmem>>, vector<16x8xf32>
    %185 = arith.addf %184, %183 : vector<16x8xf32>
    %c0_120 = arith.constant 0 : index
    %c0_121 = arith.constant 0 : index
    %186 = vector.load %arg15[%c0_120, %c0_121] : memref<256x8xf32, #tpu.memory_space<vmem>>, vector<16x8xf32>
    tpu.vector_store %arg15[%c0_120, %c0_121], %185 {strides = array<i32>} : memref<256x8xf32, #tpu.memory_space<vmem>>, vector<16x8xf32>,
    %c299_122 = arith.constant 299 : index
    %c0_123 = arith.constant 0 : index
    %187 = vector.load %arg14[%c299_122, %c0_123] : memref<408x8xf32, #tpu.memory_space<vmem>>, vector<8x8xf32>
    %c307_124 = arith.constant 307 : index
    %c0_125 = arith.constant 0 : index
    %188 = vector.load %arg14[%c307_124, %c0_125] : memref<408x8xf32, #tpu.memory_space<vmem>>, vector<8x8xf32>
    %cst_126 = arith.constant 7.500000e-01 : f32
    %189 = vector.broadcast %cst_126 : f32 to vector<8x8xf32>
    %190 = arith.mulf %189, %187 : vector<8x8xf32>
    %cst_127 = arith.constant 2.500000e-01 : f32
    %191 = vector.broadcast %cst_127 : f32 to vector<8x8xf32>
    %192 = arith.mulf %191, %188 : vector<8x8xf32>
    %193 = arith.addf %190, %192 : vector<8x8xf32>
    %194 = arith.truncf %193 : vector<8x8xf32> to vector<8x8xbf16>
    %cst_128 = arith.constant dense<0.000000e+00> : vector<16x8xf32>
    %195 = tpu.matmul %4, %194, %cst_128 {dimension_numbers = #tpu.dot_dimension_numbers<[1], [0], [0], [1], [0, 0, 1, 1], [], []>} : vector<16x8xbf16>, vector<8x8xbf16>, vector<16x8xf32> -> vector<16x8xf32>
    %c16_129 = arith.constant 16 : index
    %c0_130 = arith.constant 0 : index
    %196 = vector.load %arg15[%c16_129, %c0_130] : memref<256x8xf32, #tpu.memory_space<vmem>>, vector<16x8xf32>
    %197 = arith.addf %196, %195 : vector<16x8xf32>
    %c16_131 = arith.constant 16 : index
    %c0_132 = arith.constant 0 : index
    %198 = vector.load %arg15[%c16_131, %c0_132] : memref<256x8xf32, #tpu.memory_space<vmem>>, vector<16x8xf32>
    tpu.vector_store %arg15[%c16_131, %c0_132], %197 {strides = array<i32>} : memref<256x8xf32, #tpu.memory_space<vmem>>, vector<16x8xf32>,
    %c299_133 = arith.constant 299 : index
    %c0_134 = arith.constant 0 : index
    %199 = vector.load %arg14[%c299_133, %c0_134] : memref<408x8xf32, #tpu.memory_space<vmem>>, vector<8x8xf32>
    %c307_135 = arith.constant 307 : index
    %c0_136 = arith.constant 0 : index
    %200 = vector.load %arg14[%c307_135, %c0_136] : memref<408x8xf32, #tpu.memory_space<vmem>>, vector<8x8xf32>
    %cst_137 = arith.constant 2.500000e-01 : f32
    %201 = vector.broadcast %cst_137 : f32 to vector<8x8xf32>
    %202 = arith.mulf %201, %199 : vector<8x8xf32>
    %cst_138 = arith.constant 7.500000e-01 : f32
    %203 = vector.broadcast %cst_138 : f32 to vector<8x8xf32>
    %204 = arith.mulf %203, %200 : vector<8x8xf32>
    %205 = arith.addf %202, %204 : vector<8x8xf32>
    %206 = arith.truncf %205 : vector<8x8xf32> to vector<8x8xbf16>
    %cst_139 = arith.constant dense<0.000000e+00> : vector<16x8xf32>
    %207 = tpu.matmul %4, %206, %cst_139 {dimension_numbers = #tpu.dot_dimension_numbers<[1], [0], [0], [1], [0, 0, 1, 1], [], []>} : vector<16x8xbf16>, vector<8x8xbf16>, vector<16x8xf32> -> vector<16x8xf32>
    %c32_140 = arith.constant 32 : index
    %c0_141 = arith.constant 0 : index
    %208 = vector.load %arg15[%c32_140, %c0_141] : memref<256x8xf32, #tpu.memory_space<vmem>>, vector<16x8xf32>
    %209 = arith.addf %208, %207 : vector<16x8xf32>
    %c32_142 = arith.constant 32 : index
    %c0_143 = arith.constant 0 : index
    %210 = vector.load %arg15[%c32_142, %c0_143] : memref<256x8xf32, #tpu.memory_space<vmem>>, vector<16x8xf32>
    tpu.vector_store %arg15[%c32_142, %c0_143], %209 {strides = array<i32>} : memref<256x8xf32, #tpu.memory_space<vmem>>, vector<16x8xf32>,
    %c307_144 = arith.constant 307 : index
    %c0_145 = arith.constant 0 : index
    %211 = vector.load %arg14[%c307_144, %c0_145] : memref<408x8xf32, #tpu.memory_space<vmem>>, vector<8x8xf32>
    %c315 = arith.constant 315 : index
    %c0_146 = arith.constant 0 : index
    %212 = vector.load %arg14[%c315, %c0_146] : memref<408x8xf32, #tpu.memory_space<vmem>>, vector<8x8xf32>
    %cst_147 = arith.constant 7.500000e-01 : f32
    %213 = vector.broadcast %cst_147 : f32 to vector<8x8xf32>
    %214 = arith.mulf %213, %211 : vector<8x8xf32>
    %cst_148 = arith.constant 2.500000e-01 : f32
    %215 = vector.broadcast %cst_148 : f32 to vector<8x8xf32>
    %216 = arith.mulf %215, %212 : vector<8x8xf32>
    %217 = arith.addf %214, %216 : vector<8x8xf32>
    %218 = arith.truncf %217 : vector<8x8xf32> to vector<8x8xbf16>
    %cst_149 = arith.constant dense<0.000000e+00> : vector<16x8xf32>
    %219 = tpu.matmul %4, %218, %cst_149 {dimension_numbers = #tpu.dot_dimension_numbers<[1], [0], [0], [1], [0, 0, 1, 1], [], []>} : vector<16x8xbf16>, vector<8x8xbf16>, vector<16x8xf32> -> vector<16x8xf32>
    %c48 = arith.constant 48 : index
    %c0_150 = arith.constant 0 : index
    %220 = vector.load %arg15[%c48, %c0_150] : memref<256x8xf32, #tpu.memory_space<vmem>>, vector<16x8xf32>
    %221 = arith.addf %220, %219 : vector<16x8xf32>
    %c48_151 = arith.constant 48 : index
    %c0_152 = arith.constant 0 : index
    %222 = vector.load %arg15[%c48_151, %c0_152] : memref<256x8xf32, #tpu.memory_space<vmem>>, vector<16x8xf32>
    tpu.vector_store %arg15[%c48_151, %c0_152], %221 {strides = array<i32>} : memref<256x8xf32, #tpu.memory_space<vmem>>, vector<16x8xf32>,
    %c307_153 = arith.constant 307 : index
    %c0_154 = arith.constant 0 : index
    %223 = vector.load %arg14[%c307_153, %c0_154] : memref<408x8xf32, #tpu.memory_space<vmem>>, vector<8x8xf32>
    %c315_155 = arith.constant 315 : index
    %c0_156 = arith.constant 0 : index
    %224 = vector.load %arg14[%c315_155, %c0_156] : memref<408x8xf32, #tpu.memory_space<vmem>>, vector<8x8xf32>
    %cst_157 = arith.constant 2.500000e-01 : f32
    %225 = vector.broadcast %cst_157 : f32 to vector<8x8xf32>
    %226 = arith.mulf %225, %223 : vector<8x8xf32>
    %cst_158 = arith.constant 7.500000e-01 : f32
    %227 = vector.broadcast %cst_158 : f32 to vector<8x8xf32>
    %228 = arith.mulf %227, %224 : vector<8x8xf32>
    %229 = arith.addf %226, %228 : vector<8x8xf32>
    %230 = arith.truncf %229 : vector<8x8xf32> to vector<8x8xbf16>
    %cst_159 = arith.constant dense<0.000000e+00> : vector<16x8xf32>
    %231 = tpu.matmul %4, %230, %cst_159 {dimension_numbers = #tpu.dot_dimension_numbers<[1], [0], [0], [1], [0, 0, 1, 1], [], []>} : vector<16x8xbf16>, vector<8x8xbf16>, vector<16x8xf32> -> vector<16x8xf32>
    %c64 = arith.constant 64 : index
    %c0_160 = arith.constant 0 : index
    %232 = vector.load %arg15[%c64, %c0_160] : memref<256x8xf32, #tpu.memory_space<vmem>>, vector<16x8xf32>
    %233 = arith.addf %232, %231 : vector<16x8xf32>
    %c64_161 = arith.constant 64 : index
    %c0_162 = arith.constant 0 : index
    %234 = vector.load %arg15[%c64_161, %c0_162] : memref<256x8xf32, #tpu.memory_space<vmem>>, vector<16x8xf32>
    tpu.vector_store %arg15[%c64_161, %c0_162], %233 {strides = array<i32>} : memref<256x8xf32, #tpu.memory_space<vmem>>, vector<16x8xf32>,
    %c315_163 = arith.constant 315 : index
    %c0_164 = arith.constant 0 : index
    %235 = vector.load %arg14[%c315_163, %c0_164] : memref<408x8xf32, #tpu.memory_space<vmem>>, vector<8x8xf32>
    %c323 = arith.constant 323 : index
    %c0_165 = arith.constant 0 : index
    %236 = vector.load %arg14[%c323, %c0_165] : memref<408x8xf32, #tpu.memory_space<vmem>>, vector<8x8xf32>
    %cst_166 = arith.constant 7.500000e-01 : f32
    %237 = vector.broadcast %cst_166 : f32 to vector<8x8xf32>
    %238 = arith.mulf %237, %235 : vector<8x8xf32>
    %cst_167 = arith.constant 2.500000e-01 : f32
    %239 = vector.broadcast %cst_167 : f32 to vector<8x8xf32>
    %240 = arith.mulf %239, %236 : vector<8x8xf32>
    %241 = arith.addf %238, %240 : vector<8x8xf32>
    %242 = arith.truncf %241 : vector<8x8xf32> to vector<8x8xbf16>
    %cst_168 = arith.constant dense<0.000000e+00> : vector<16x8xf32>
    %243 = tpu.matmul %4, %242, %cst_168 {dimension_numbers = #tpu.dot_dimension_numbers<[1], [0], [0], [1], [0, 0, 1, 1], [], []>} : vector<16x8xbf16>, vector<8x8xbf16>, vector<16x8xf32> -> vector<16x8xf32>
    %c80 = arith.constant 80 : index
    %c0_169 = arith.constant 0 : index
    %244 = vector.load %arg15[%c80, %c0_169] : memref<256x8xf32, #tpu.memory_space<vmem>>, vector<16x8xf32>
    %245 = arith.addf %244, %243 : vector<16x8xf32>
    %c80_170 = arith.constant 80 : index
    %c0_171 = arith.constant 0 : index
    %246 = vector.load %arg15[%c80_170, %c0_171] : memref<256x8xf32, #tpu.memory_space<vmem>>, vector<16x8xf32>
    tpu.vector_store %arg15[%c80_170, %c0_171], %245 {strides = array<i32>} : memref<256x8xf32, #tpu.memory_space<vmem>>, vector<16x8xf32>,
    %c315_172 = arith.constant 315 : index
    %c0_173 = arith.constant 0 : index
    %247 = vector.load %arg14[%c315_172, %c0_173] : memref<408x8xf32, #tpu.memory_space<vmem>>, vector<8x8xf32>
    %c323_174 = arith.constant 323 : index
    %c0_175 = arith.constant 0 : index
    %248 = vector.load %arg14[%c323_174, %c0_175] : memref<408x8xf32, #tpu.memory_space<vmem>>, vector<8x8xf32>
    %cst_176 = arith.constant 2.500000e-01 : f32
    %249 = vector.broadcast %cst_176 : f32 to vector<8x8xf32>
    %250 = arith.mulf %249, %247 : vector<8x8xf32>
    %cst_177 = arith.constant 7.500000e-01 : f32
    %251 = vector.broadcast %cst_177 : f32 to vector<8x8xf32>
    %252 = arith.mulf %251, %248 : vector<8x8xf32>
    %253 = arith.addf %250, %252 : vector<8x8xf32>
    %254 = arith.truncf %253 : vector<8x8xf32> to vector<8x8xbf16>
    %cst_178 = arith.constant dense<0.000000e+00> : vector<16x8xf32>
    %255 = tpu.matmul %4, %254, %cst_178 {dimension_numbers = #tpu.dot_dimension_numbers<[1], [0], [0], [1], [0, 0, 1, 1], [], []>} : vector<16x8xbf16>, vector<8x8xbf16>, vector<16x8xf32> -> vector<16x8xf32>
    %c96 = arith.constant 96 : index
    %c0_179 = arith.constant 0 : index
    %256 = vector.load %arg15[%c96, %c0_179] : memref<256x8xf32, #tpu.memory_space<vmem>>, vector<16x8xf32>
    %257 = arith.addf %256, %255 : vector<16x8xf32>
    %c96_180 = arith.constant 96 : index
    %c0_181 = arith.constant 0 : index
    %258 = vector.load %arg15[%c96_180, %c0_181] : memref<256x8xf32, #tpu.memory_space<vmem>>, vector<16x8xf32>
    tpu.vector_store %arg15[%c96_180, %c0_181], %257 {strides = array<i32>} : memref<256x8xf32, #tpu.memory_space<vmem>>, vector<16x8xf32>,
    %c323_182 = arith.constant 323 : index
    %c0_183 = arith.constant 0 : index
    %259 = vector.load %arg14[%c323_182, %c0_183] : memref<408x8xf32, #tpu.memory_space<vmem>>, vector<8x8xf32>
    %c331 = arith.constant 331 : index
    %c0_184 = arith.constant 0 : index
    %260 = vector.load %arg14[%c331, %c0_184] : memref<408x8xf32, #tpu.memory_space<vmem>>, vector<8x8xf32>
    %cst_185 = arith.constant 7.500000e-01 : f32
    %261 = vector.broadcast %cst_185 : f32 to vector<8x8xf32>
    %262 = arith.mulf %261, %259 : vector<8x8xf32>
    %cst_186 = arith.constant 2.500000e-01 : f32
    %263 = vector.broadcast %cst_186 : f32 to vector<8x8xf32>
    %264 = arith.mulf %263, %260 : vector<8x8xf32>
    %265 = arith.addf %262, %264 : vector<8x8xf32>
    %266 = arith.truncf %265 : vector<8x8xf32> to vector<8x8xbf16>
    %cst_187 = arith.constant dense<0.000000e+00> : vector<16x8xf32>
    %267 = tpu.matmul %4, %266, %cst_187 {dimension_numbers = #tpu.dot_dimension_numbers<[1], [0], [0], [1], [0, 0, 1, 1], [], []>} : vector<16x8xbf16>, vector<8x8xbf16>, vector<16x8xf32> -> vector<16x8xf32>
    %c112 = arith.constant 112 : index
    %c0_188 = arith.constant 0 : index
    %268 = vector.load %arg15[%c112, %c0_188] : memref<256x8xf32, #tpu.memory_space<vmem>>, vector<16x8xf32>
    %269 = arith.addf %268, %267 : vector<16x8xf32>
    %c112_189 = arith.constant 112 : index
    %c0_190 = arith.constant 0 : index
    %270 = vector.load %arg15[%c112_189, %c0_190] : memref<256x8xf32, #tpu.memory_space<vmem>>, vector<16x8xf32>
    tpu.vector_store %arg15[%c112_189, %c0_190], %269 {strides = array<i32>} : memref<256x8xf32, #tpu.memory_space<vmem>>, vector<16x8xf32>,
    %c323_191 = arith.constant 323 : index
    %c0_192 = arith.constant 0 : index
    %271 = vector.load %arg14[%c323_191, %c0_192] : memref<408x8xf32, #tpu.memory_space<vmem>>, vector<8x8xf32>
    %c331_193 = arith.constant 331 : index
    %c0_194 = arith.constant 0 : index
    %272 = vector.load %arg14[%c331_193, %c0_194] : memref<408x8xf32, #tpu.memory_space<vmem>>, vector<8x8xf32>
    %cst_195 = arith.constant 2.500000e-01 : f32
    %273 = vector.broadcast %cst_195 : f32 to vector<8x8xf32>
    %274 = arith.mulf %273, %271 : vector<8x8xf32>
    %cst_196 = arith.constant 7.500000e-01 : f32
    %275 = vector.broadcast %cst_196 : f32 to vector<8x8xf32>
    %276 = arith.mulf %275, %272 : vector<8x8xf32>
    %277 = arith.addf %274, %276 : vector<8x8xf32>
    %278 = arith.truncf %277 : vector<8x8xf32> to vector<8x8xbf16>
    %cst_197 = arith.constant dense<0.000000e+00> : vector<16x8xf32>
    %279 = tpu.matmul %4, %278, %cst_197 {dimension_numbers = #tpu.dot_dimension_numbers<[1], [0], [0], [1], [0, 0, 1, 1], [], []>} : vector<16x8xbf16>, vector<8x8xbf16>, vector<16x8xf32> -> vector<16x8xf32>
    %c128 = arith.constant 128 : index
    %c0_198 = arith.constant 0 : index
    %280 = vector.load %arg15[%c128, %c0_198] : memref<256x8xf32, #tpu.memory_space<vmem>>, vector<16x8xf32>
    %281 = arith.addf %280, %279 : vector<16x8xf32>
    %c128_199 = arith.constant 128 : index
    %c0_200 = arith.constant 0 : index
    %282 = vector.load %arg15[%c128_199, %c0_200] : memref<256x8xf32, #tpu.memory_space<vmem>>, vector<16x8xf32>
    tpu.vector_store %arg15[%c128_199, %c0_200], %281 {strides = array<i32>} : memref<256x8xf32, #tpu.memory_space<vmem>>, vector<16x8xf32>,
    %c331_201 = arith.constant 331 : index
    %c0_202 = arith.constant 0 : index
    %283 = vector.load %arg14[%c331_201, %c0_202] : memref<408x8xf32, #tpu.memory_space<vmem>>, vector<8x8xf32>
    %c339 = arith.constant 339 : index
    %c0_203 = arith.constant 0 : index
    %284 = vector.load %arg14[%c339, %c0_203] : memref<408x8xf32, #tpu.memory_space<vmem>>, vector<8x8xf32>
    %cst_204 = arith.constant 7.500000e-01 : f32
    %285 = vector.broadcast %cst_204 : f32 to vector<8x8xf32>
    %286 = arith.mulf %285, %283 : vector<8x8xf32>
    %cst_205 = arith.constant 2.500000e-01 : f32
    %287 = vector.broadcast %cst_205 : f32 to vector<8x8xf32>
    %288 = arith.mulf %287, %284 : vector<8x8xf32>
    %289 = arith.addf %286, %288 : vector<8x8xf32>
    %290 = arith.truncf %289 : vector<8x8xf32> to vector<8x8xbf16>
    %cst_206 = arith.constant dense<0.000000e+00> : vector<16x8xf32>
    %291 = tpu.matmul %4, %290, %cst_206 {dimension_numbers = #tpu.dot_dimension_numbers<[1], [0], [0], [1], [0, 0, 1, 1], [], []>} : vector<16x8xbf16>, vector<8x8xbf16>, vector<16x8xf32> -> vector<16x8xf32>
    %c144 = arith.constant 144 : index
    %c0_207 = arith.constant 0 : index
    %292 = vector.load %arg15[%c144, %c0_207] : memref<256x8xf32, #tpu.memory_space<vmem>>, vector<16x8xf32>
    %293 = arith.addf %292, %291 : vector<16x8xf32>
    %c144_208 = arith.constant 144 : index
    %c0_209 = arith.constant 0 : index
    %294 = vector.load %arg15[%c144_208, %c0_209] : memref<256x8xf32, #tpu.memory_space<vmem>>, vector<16x8xf32>
    tpu.vector_store %arg15[%c144_208, %c0_209], %293 {strides = array<i32>} : memref<256x8xf32, #tpu.memory_space<vmem>>, vector<16x8xf32>,
    %c331_210 = arith.constant 331 : index
    %c0_211 = arith.constant 0 : index
    %295 = vector.load %arg14[%c331_210, %c0_211] : memref<408x8xf32, #tpu.memory_space<vmem>>, vector<8x8xf32>
    %c339_212 = arith.constant 339 : index
    %c0_213 = arith.constant 0 : index
    %296 = vector.load %arg14[%c339_212, %c0_213] : memref<408x8xf32, #tpu.memory_space<vmem>>, vector<8x8xf32>
    %cst_214 = arith.constant 2.500000e-01 : f32
    %297 = vector.broadcast %cst_214 : f32 to vector<8x8xf32>
    %298 = arith.mulf %297, %295 : vector<8x8xf32>
    %cst_215 = arith.constant 7.500000e-01 : f32
    %299 = vector.broadcast %cst_215 : f32 to vector<8x8xf32>
    %300 = arith.mulf %299, %296 : vector<8x8xf32>
    %301 = arith.addf %298, %300 : vector<8x8xf32>
    %302 = arith.truncf %301 : vector<8x8xf32> to vector<8x8xbf16>
    %cst_216 = arith.constant dense<0.000000e+00> : vector<16x8xf32>
    %303 = tpu.matmul %4, %302, %cst_216 {dimension_numbers = #tpu.dot_dimension_numbers<[1], [0], [0], [1], [0, 0, 1, 1], [], []>} : vector<16x8xbf16>, vector<8x8xbf16>, vector<16x8xf32> -> vector<16x8xf32>
    %c160 = arith.constant 160 : index
    %c0_217 = arith.constant 0 : index
    %304 = vector.load %arg15[%c160, %c0_217] : memref<256x8xf32, #tpu.memory_space<vmem>>, vector<16x8xf32>
    %305 = arith.addf %304, %303 : vector<16x8xf32>
    %c160_218 = arith.constant 160 : index
    %c0_219 = arith.constant 0 : index
    %306 = vector.load %arg15[%c160_218, %c0_219] : memref<256x8xf32, #tpu.memory_space<vmem>>, vector<16x8xf32>
    tpu.vector_store %arg15[%c160_218, %c0_219], %305 {strides = array<i32>} : memref<256x8xf32, #tpu.memory_space<vmem>>, vector<16x8xf32>,
    %c339_220 = arith.constant 339 : index
    %c0_221 = arith.constant 0 : index
    %307 = vector.load %arg14[%c339_220, %c0_221] : memref<408x8xf32, #tpu.memory_space<vmem>>, vector<8x8xf32>
    %c347 = arith.constant 347 : index
    %c0_222 = arith.constant 0 : index
    %308 = vector.load %arg14[%c347, %c0_222] : memref<408x8xf32, #tpu.memory_space<vmem>>, vector<8x8xf32>
    %cst_223 = arith.constant 7.500000e-01 : f32
    %309 = vector.broadcast %cst_223 : f32 to vector<8x8xf32>
    %310 = arith.mulf %309, %307 : vector<8x8xf32>
    %cst_224 = arith.constant 2.500000e-01 : f32
    %311 = vector.broadcast %cst_224 : f32 to vector<8x8xf32>
    %312 = arith.mulf %311, %308 : vector<8x8xf32>
    %313 = arith.addf %310, %312 : vector<8x8xf32>
    %314 = arith.truncf %313 : vector<8x8xf32> to vector<8x8xbf16>
    %cst_225 = arith.constant dense<0.000000e+00> : vector<16x8xf32>
    %315 = tpu.matmul %4, %314, %cst_225 {dimension_numbers = #tpu.dot_dimension_numbers<[1], [0], [0], [1], [0, 0, 1, 1], [], []>} : vector<16x8xbf16>, vector<8x8xbf16>, vector<16x8xf32> -> vector<16x8xf32>
    %c176 = arith.constant 176 : index
    %c0_226 = arith.constant 0 : index
    %316 = vector.load %arg15[%c176, %c0_226] : memref<256x8xf32, #tpu.memory_space<vmem>>, vector<16x8xf32>
    %317 = arith.addf %316, %315 : vector<16x8xf32>
    %c176_227 = arith.constant 176 : index
    %c0_228 = arith.constant 0 : index
    %318 = vector.load %arg15[%c176_227, %c0_228] : memref<256x8xf32, #tpu.memory_space<vmem>>, vector<16x8xf32>
    tpu.vector_store %arg15[%c176_227, %c0_228], %317 {strides = array<i32>} : memref<256x8xf32, #tpu.memory_space<vmem>>, vector<16x8xf32>,
    %c339_229 = arith.constant 339 : index
    %c0_230 = arith.constant 0 : index
    %319 = vector.load %arg14[%c339_229, %c0_230] : memref<408x8xf32, #tpu.memory_space<vmem>>, vector<8x8xf32>
    %c347_231 = arith.constant 347 : index
    %c0_232 = arith.constant 0 : index
    %320 = vector.load %arg14[%c347_231, %c0_232] : memref<408x8xf32, #tpu.memory_space<vmem>>, vector<8x8xf32>
    %cst_233 = arith.constant 2.500000e-01 : f32
    %321 = vector.broadcast %cst_233 : f32 to vector<8x8xf32>
    %322 = arith.mulf %321, %319 : vector<8x8xf32>
    %cst_234 = arith.constant 7.500000e-01 : f32
    %323 = vector.broadcast %cst_234 : f32 to vector<8x8xf32>
    %324 = arith.mulf %323, %320 : vector<8x8xf32>
    %325 = arith.addf %322, %324 : vector<8x8xf32>
    %326 = arith.truncf %325 : vector<8x8xf32> to vector<8x8xbf16>
    %cst_235 = arith.constant dense<0.000000e+00> : vector<16x8xf32>
    %327 = tpu.matmul %4, %326, %cst_235 {dimension_numbers = #tpu.dot_dimension_numbers<[1], [0], [0], [1], [0, 0, 1, 1], [], []>} : vector<16x8xbf16>, vector<8x8xbf16>, vector<16x8xf32> -> vector<16x8xf32>
    %c192 = arith.constant 192 : index
    %c0_236 = arith.constant 0 : index
    %328 = vector.load %arg15[%c192, %c0_236] : memref<256x8xf32, #tpu.memory_space<vmem>>, vector<16x8xf32>
    %329 = arith.addf %328, %327 : vector<16x8xf32>
    %c192_237 = arith.constant 192 : index
    %c0_238 = arith.constant 0 : index
    %330 = vector.load %arg15[%c192_237, %c0_238] : memref<256x8xf32, #tpu.memory_space<vmem>>, vector<16x8xf32>
    tpu.vector_store %arg15[%c192_237, %c0_238], %329 {strides = array<i32>} : memref<256x8xf32, #tpu.memory_space<vmem>>, vector<16x8xf32>,
    %c347_239 = arith.constant 347 : index
    %c0_240 = arith.constant 0 : index
    %331 = vector.load %arg14[%c347_239, %c0_240] : memref<408x8xf32, #tpu.memory_space<vmem>>, vector<8x8xf32>
    %c355 = arith.constant 355 : index
    %c0_241 = arith.constant 0 : index
    %332 = vector.load %arg14[%c355, %c0_241] : memref<408x8xf32, #tpu.memory_space<vmem>>, vector<8x8xf32>
    %cst_242 = arith.constant 7.500000e-01 : f32
    %333 = vector.broadcast %cst_242 : f32 to vector<8x8xf32>
    %334 = arith.mulf %333, %331 : vector<8x8xf32>
    %cst_243 = arith.constant 2.500000e-01 : f32
    %335 = vector.broadcast %cst_243 : f32 to vector<8x8xf32>
    %336 = arith.mulf %335, %332 : vector<8x8xf32>
    %337 = arith.addf %334, %336 : vector<8x8xf32>
    %338 = arith.truncf %337 : vector<8x8xf32> to vector<8x8xbf16>
    %cst_244 = arith.constant dense<0.000000e+00> : vector<16x8xf32>
    %339 = tpu.matmul %4, %338, %cst_244 {dimension_numbers = #tpu.dot_dimension_numbers<[1], [0], [0], [1], [0, 0, 1, 1], [], []>} : vector<16x8xbf16>, vector<8x8xbf16>, vector<16x8xf32> -> vector<16x8xf32>
    %c208 = arith.constant 208 : index
    %c0_245 = arith.constant 0 : index
    %340 = vector.load %arg15[%c208, %c0_245] : memref<256x8xf32, #tpu.memory_space<vmem>>, vector<16x8xf32>
    %341 = arith.addf %340, %339 : vector<16x8xf32>
    %c208_246 = arith.constant 208 : index
    %c0_247 = arith.constant 0 : index
    %342 = vector.load %arg15[%c208_246, %c0_247] : memref<256x8xf32, #tpu.memory_space<vmem>>, vector<16x8xf32>
    tpu.vector_store %arg15[%c208_246, %c0_247], %341 {strides = array<i32>} : memref<256x8xf32, #tpu.memory_space<vmem>>, vector<16x8xf32>,
    %c347_248 = arith.constant 347 : index
    %c0_249 = arith.constant 0 : index
    %343 = vector.load %arg14[%c347_248, %c0_249] : memref<408x8xf32, #tpu.memory_space<vmem>>, vector<8x8xf32>
    %c355_250 = arith.constant 355 : index
    %c0_251 = arith.constant 0 : index
    %344 = vector.load %arg14[%c355_250, %c0_251] : memref<408x8xf32, #tpu.memory_space<vmem>>, vector<8x8xf32>
    %cst_252 = arith.constant 2.500000e-01 : f32
    %345 = vector.broadcast %cst_252 : f32 to vector<8x8xf32>
    %346 = arith.mulf %345, %343 : vector<8x8xf32>
    %cst_253 = arith.constant 7.500000e-01 : f32
    %347 = vector.broadcast %cst_253 : f32 to vector<8x8xf32>
    %348 = arith.mulf %347, %344 : vector<8x8xf32>
    %349 = arith.addf %346, %348 : vector<8x8xf32>
    %350 = arith.truncf %349 : vector<8x8xf32> to vector<8x8xbf16>
    %cst_254 = arith.constant dense<0.000000e+00> : vector<16x8xf32>
    %351 = tpu.matmul %4, %350, %cst_254 {dimension_numbers = #tpu.dot_dimension_numbers<[1], [0], [0], [1], [0, 0, 1, 1], [], []>} : vector<16x8xbf16>, vector<8x8xbf16>, vector<16x8xf32> -> vector<16x8xf32>
    %c224 = arith.constant 224 : index
    %c0_255 = arith.constant 0 : index
    %352 = vector.load %arg15[%c224, %c0_255] : memref<256x8xf32, #tpu.memory_space<vmem>>, vector<16x8xf32>
    %353 = arith.addf %352, %351 : vector<16x8xf32>
    %c224_256 = arith.constant 224 : index
    %c0_257 = arith.constant 0 : index
    %354 = vector.load %arg15[%c224_256, %c0_257] : memref<256x8xf32, #tpu.memory_space<vmem>>, vector<16x8xf32>
    tpu.vector_store %arg15[%c224_256, %c0_257], %353 {strides = array<i32>} : memref<256x8xf32, #tpu.memory_space<vmem>>, vector<16x8xf32>,
    %c355_258 = arith.constant 355 : index
    %c0_259 = arith.constant 0 : index
    %355 = vector.load %arg14[%c355_258, %c0_259] : memref<408x8xf32, #tpu.memory_space<vmem>>, vector<8x8xf32>
    %356 = arith.truncf %355 : vector<8x8xf32> to vector<8x8xbf16>
    %cst_260 = arith.constant dense<0.000000e+00> : vector<16x8xf32>
    %357 = tpu.matmul %4, %356, %cst_260 {dimension_numbers = #tpu.dot_dimension_numbers<[1], [0], [0], [1], [0, 0, 1, 1], [], []>} : vector<16x8xbf16>, vector<8x8xbf16>, vector<16x8xf32> -> vector<16x8xf32>
    %c240 = arith.constant 240 : index
    %c0_261 = arith.constant 0 : index
    %358 = vector.load %arg15[%c240, %c0_261] : memref<256x8xf32, #tpu.memory_space<vmem>>, vector<16x8xf32>
    %359 = arith.addf %358, %357 : vector<16x8xf32>
    %c240_262 = arith.constant 240 : index
    %c0_263 = arith.constant 0 : index
    %360 = vector.load %arg15[%c240_262, %c0_263] : memref<256x8xf32, #tpu.memory_space<vmem>>, vector<16x8xf32>
    tpu.vector_store %arg15[%c240_262, %c0_263], %359 {strides = array<i32>} : memref<256x8xf32, #tpu.memory_space<vmem>>, vector<16x8xf32>,
    %c0_264 = arith.constant 0 : index
    %c0_265 = arith.constant 0 : index
    %c0_266 = arith.constant 0 : index
    %361 = vector.load %arg3[%c0_264, %c0_265, %c0_266] : memref<1x16x4xf32, #tpu.memory_space<vmem>>, vector<1x16x4xf32>
    %362 = vector.shape_cast %361 : vector<1x16x4xf32> to vector<16x4xf32>
    %c377 = arith.constant 377 : index
    %c0_267 = arith.constant 0 : index
    %363 = vector.load %arg14[%c377, %c0_267] : memref<408x8xf32, #tpu.memory_space<vmem>>, vector<16x4xf32>
    tpu.vector_store %arg14[%c377, %c0_267], %362 {strides = array<i32>} : memref<408x8xf32, #tpu.memory_space<vmem>>, vector<16x4xf32>,
    %364 = tpu.iota {dimensions = array<i32: 0>} : vector<16x1xi32>
    %c3_i32 = arith.constant 3 : i32
    %365 = vector.broadcast %c3_i32 : i32 to vector<16x1xi32>
    %366 = arith.andi %364, %365 : vector<16x1xi32>
    %c0_i32_268 = arith.constant 0 : i32
    %367 = vector.broadcast %c0_i32_268 : i32 to vector<16x1xi32>
    %368 = arith.cmpi sgt, %366, %367 : vector<16x1xi32>
    %369 = arith.extui %368 : vector<16x1xi1> to vector<16x1xi32>
    %370 = arith.sitofp %369 : vector<16x1xi32> to vector<16x1xf32>
    %c3_i32_269 = arith.constant 3 : i32
    %371 = vector.broadcast %c3_i32_269 : i32 to vector<16x1xi32>
    %372 = arith.cmpi slt, %366, %371 : vector<16x1xi32>
    %373 = arith.extui %372 : vector<16x1xi1> to vector<16x1xi32>
    %374 = arith.sitofp %373 : vector<16x1xi32> to vector<16x1xf32>
    %c372 = arith.constant 372 : index
    %c0_270 = arith.constant 0 : index
    %375 = vector.load %arg14[%c372, %c0_270] : memref<408x8xf32, #tpu.memory_space<vmem>>, vector<16x4xf32>
    %376 = vector.broadcast %370 : vector<16x1xf32> to vector<16x4xf32>
    %377 = arith.mulf %375, %376 : vector<16x4xf32>
    %378 = arith.truncf %377 : vector<16x4xf32> to vector<16x4xbf16>
    %c18_271 = arith.constant 18 : index
    %c0_272 = arith.constant 0 : index
    %c0_273 = arith.constant 0 : index
    %379 = vector.load %arg5[%c18_271, %c0_272, %c0_273] : memref<36x4x8xbf16, #tpu.memory_space<vmem>>, vector<1x4x8xbf16>
    %380 = vector.shape_cast %379 : vector<1x4x8xbf16> to vector<4x8xbf16>
    %cst_274 = arith.constant dense<0.000000e+00> : vector<16x8xf32>
    %381 = tpu.matmul %378, %380, %cst_274 {dimension_numbers = #tpu.dot_dimension_numbers<[1], [0], [0], [1], [0, 0, 1, 1], [], []>} : vector<16x4xbf16>, vector<4x8xbf16>, vector<16x8xf32> -> vector<16x8xf32>
    %c373 = arith.constant 373 : index
    %c0_275 = arith.constant 0 : index
    %382 = vector.load %arg14[%c373, %c0_275] : memref<408x8xf32, #tpu.memory_space<vmem>>, vector<16x4xf32>
    %383 = arith.truncf %382 : vector<16x4xf32> to vector<16x4xbf16>
    %c19 = arith.constant 19 : index
    %c0_276 = arith.constant 0 : index
    %c0_277 = arith.constant 0 : index
    %384 = vector.load %arg5[%c19, %c0_276, %c0_277] : memref<36x4x8xbf16, #tpu.memory_space<vmem>>, vector<1x4x8xbf16>
    %385 = vector.shape_cast %384 : vector<1x4x8xbf16> to vector<4x8xbf16>
    %cst_278 = arith.constant dense<0.000000e+00> : vector<16x8xf32>
    %386 = tpu.matmul %383, %385, %cst_278 {dimension_numbers = #tpu.dot_dimension_numbers<[1], [0], [0], [1], [0, 0, 1, 1], [], []>} : vector<16x4xbf16>, vector<4x8xbf16>, vector<16x8xf32> -> vector<16x8xf32>
    %387 = arith.addf %381, %386 : vector<16x8xf32>
    %c374 = arith.constant 374 : index
    %c0_279 = arith.constant 0 : index
    %388 = vector.load %arg14[%c374, %c0_279] : memref<408x8xf32, #tpu.memory_space<vmem>>, vector<16x4xf32>
    %389 = vector.broadcast %374 : vector<16x1xf32> to vector<16x4xf32>
    %390 = arith.mulf %388, %389 : vector<16x4xf32>
    %391 = arith.truncf %390 : vector<16x4xf32> to vector<16x4xbf16>
    %c20 = arith.constant 20 : index
    %c0_280 = arith.constant 0 : index
    %c0_281 = arith.constant 0 : index
    %392 = vector.load %arg5[%c20, %c0_280, %c0_281] : memref<36x4x8xbf16, #tpu.memory_space<vmem>>, vector<1x4x8xbf16>
    %393 = vector.shape_cast %392 : vector<1x4x8xbf16> to vector<4x8xbf16>
    %cst_282 = arith.constant dense<0.000000e+00> : vector<16x8xf32>
    %394 = tpu.matmul %391, %393, %cst_282 {dimension_numbers = #tpu.dot_dimension_numbers<[1], [0], [0], [1], [0, 0, 1, 1], [], []>} : vector<16x4xbf16>, vector<4x8xbf16>, vector<16x8xf32> -> vector<16x8xf32>
    %395 = arith.addf %387, %394 : vector<16x8xf32>
    %c376 = arith.constant 376 : index
    %c0_283 = arith.constant 0 : index
    %396 = vector.load %arg14[%c376, %c0_283] : memref<408x8xf32, #tpu.memory_space<vmem>>, vector<16x4xf32>
    %397 = vector.broadcast %370 : vector<16x1xf32> to vector<16x4xf32>
    %398 = arith.mulf %396, %397 : vector<16x4xf32>
    %399 = arith.truncf %398 : vector<16x4xf32> to vector<16x4xbf16>
    %c21 = arith.constant 21 : index
    %c0_284 = arith.constant 0 : index
    %c0_285 = arith.constant 0 : index
    %400 = vector.load %arg5[%c21, %c0_284, %c0_285] : memref<36x4x8xbf16, #tpu.memory_space<vmem>>, vector<1x4x8xbf16>
    %401 = vector.shape_cast %400 : vector<1x4x8xbf16> to vector<4x8xbf16>
    %cst_286 = arith.constant dense<0.000000e+00> : vector<16x8xf32>
    %402 = tpu.matmul %399, %401, %cst_286 {dimension_numbers = #tpu.dot_dimension_numbers<[1], [0], [0], [1], [0, 0, 1, 1], [], []>} : vector<16x4xbf16>, vector<4x8xbf16>, vector<16x8xf32> -> vector<16x8xf32>
    %403 = arith.addf %395, %402 : vector<16x8xf32>
    %c377_287 = arith.constant 377 : index
    %c0_288 = arith.constant 0 : index
    %404 = vector.load %arg14[%c377_287, %c0_288] : memref<408x8xf32, #tpu.memory_space<vmem>>, vector<16x4xf32>
    %405 = arith.truncf %404 : vector<16x4xf32> to vector<16x4xbf16>
    %c22 = arith.constant 22 : index
    %c0_289 = arith.constant 0 : index
    %c0_290 = arith.constant 0 : index
    %406 = vector.load %arg5[%c22, %c0_289, %c0_290] : memref<36x4x8xbf16, #tpu.memory_space<vmem>>, vector<1x4x8xbf16>
    %407 = vector.shape_cast %406 : vector<1x4x8xbf16> to vector<4x8xbf16>
    %cst_291 = arith.constant dense<0.000000e+00> : vector<16x8xf32>
    %408 = tpu.matmul %405, %407, %cst_291 {dimension_numbers = #tpu.dot_dimension_numbers<[1], [0], [0], [1], [0, 0, 1, 1], [], []>} : vector<16x4xbf16>, vector<4x8xbf16>, vector<16x8xf32> -> vector<16x8xf32>
    %409 = arith.addf %403, %408 : vector<16x8xf32>
    %c378 = arith.constant 378 : index
    %c0_292 = arith.constant 0 : index
    %410 = vector.load %arg14[%c378, %c0_292] : memref<408x8xf32, #tpu.memory_space<vmem>>, vector<16x4xf32>
    %411 = vector.broadcast %374 : vector<16x1xf32> to vector<16x4xf32>
    %412 = arith.mulf %410, %411 : vector<16x4xf32>
    %413 = arith.truncf %412 : vector<16x4xf32> to vector<16x4xbf16>
    %c23 = arith.constant 23 : index
    %c0_293 = arith.constant 0 : index
    %c0_294 = arith.constant 0 : index
    %414 = vector.load %arg5[%c23, %c0_293, %c0_294] : memref<36x4x8xbf16, #tpu.memory_space<vmem>>, vector<1x4x8xbf16>
    %415 = vector.shape_cast %414 : vector<1x4x8xbf16> to vector<4x8xbf16>
    %cst_295 = arith.constant dense<0.000000e+00> : vector<16x8xf32>
    %416 = tpu.matmul %413, %415, %cst_295 {dimension_numbers = #tpu.dot_dimension_numbers<[1], [0], [0], [1], [0, 0, 1, 1], [], []>} : vector<16x4xbf16>, vector<4x8xbf16>, vector<16x8xf32> -> vector<16x8xf32>
    %417 = arith.addf %409, %416 : vector<16x8xf32>
    %c380 = arith.constant 380 : index
    %c0_296 = arith.constant 0 : index
    %418 = vector.load %arg14[%c380, %c0_296] : memref<408x8xf32, #tpu.memory_space<vmem>>, vector<16x4xf32>
    %419 = vector.broadcast %370 : vector<16x1xf32> to vector<16x4xf32>
    %420 = arith.mulf %418, %419 : vector<16x4xf32>
    %421 = arith.truncf %420 : vector<16x4xf32> to vector<16x4xbf16>
    %c24 = arith.constant 24 : index
    %c0_297 = arith.constant 0 : index
    %c0_298 = arith.constant 0 : index
    %422 = vector.load %arg5[%c24, %c0_297, %c0_298] : memref<36x4x8xbf16, #tpu.memory_space<vmem>>, vector<1x4x8xbf16>
    %423 = vector.shape_cast %422 : vector<1x4x8xbf16> to vector<4x8xbf16>
    %cst_299 = arith.constant dense<0.000000e+00> : vector<16x8xf32>
    %424 = tpu.matmul %421, %423, %cst_299 {dimension_numbers = #tpu.dot_dimension_numbers<[1], [0], [0], [1], [0, 0, 1, 1], [], []>} : vector<16x4xbf16>, vector<4x8xbf16>, vector<16x8xf32> -> vector<16x8xf32>
    %425 = arith.addf %417, %424 : vector<16x8xf32>
    %c381 = arith.constant 381 : index
    %c0_300 = arith.constant 0 : index
    %426 = vector.load %arg14[%c381, %c0_300] : memref<408x8xf32, #tpu.memory_space<vmem>>, vector<16x4xf32>
    %427 = arith.truncf %426 : vector<16x4xf32> to vector<16x4xbf16>
    %c25 = arith.constant 25 : index
    %c0_301 = arith.constant 0 : index
    %c0_302 = arith.constant 0 : index
    %428 = vector.load %arg5[%c25, %c0_301, %c0_302] : memref<36x4x8xbf16, #tpu.memory_space<vmem>>, vector<1x4x8xbf16>
    %429 = vector.shape_cast %428 : vector<1x4x8xbf16> to vector<4x8xbf16>
    %cst_303 = arith.constant dense<0.000000e+00> : vector<16x8xf32>
    %430 = tpu.matmul %427, %429, %cst_303 {dimension_numbers = #tpu.dot_dimension_numbers<[1], [0], [0], [1], [0, 0, 1, 1], [], []>} : vector<16x4xbf16>, vector<4x8xbf16>, vector<16x8xf32> -> vector<16x8xf32>
    %431 = arith.addf %425, %430 : vector<16x8xf32>
    %c382 = arith.constant 382 : index
    %c0_304 = arith.constant 0 : index
    %432 = vector.load %arg14[%c382, %c0_304] : memref<408x8xf32, #tpu.memory_space<vmem>>, vector<16x4xf32>
    %433 = vector.broadcast %374 : vector<16x1xf32> to vector<16x4xf32>
    %434 = arith.mulf %432, %433 : vector<16x4xf32>
    %435 = arith.truncf %434 : vector<16x4xf32> to vector<16x4xbf16>
    %c26 = arith.constant 26 : index
    %c0_305 = arith.constant 0 : index
    %c0_306 = arith.constant 0 : index
    %436 = vector.load %arg5[%c26, %c0_305, %c0_306] : memref<36x4x8xbf16, #tpu.memory_space<vmem>>, vector<1x4x8xbf16>
    %437 = vector.shape_cast %436 : vector<1x4x8xbf16> to vector<4x8xbf16>
    %cst_307 = arith.constant dense<0.000000e+00> : vector<16x8xf32>
    %438 = tpu.matmul %435, %437, %cst_307 {dimension_numbers = #tpu.dot_dimension_numbers<[1], [0], [0], [1], [0, 0, 1, 1], [], []>} : vector<16x4xbf16>, vector<4x8xbf16>, vector<16x8xf32> -> vector<16x8xf32>
    %439 = arith.addf %431, %438 : vector<16x8xf32>
    %c2_308 = arith.constant 2 : index
    %c0_309 = arith.constant 0 : index
    %c0_310 = arith.constant 0 : index
    %440 = vector.load %arg7[%c2_308, %c0_309, %c0_310] : memref<7x1x8xf32, #tpu.memory_space<vmem>>, vector<1x1x8xf32>
    %441 = vector.shape_cast %440 : vector<1x1x8xf32> to vector<1x8xf32>
    %442 = vector.broadcast %441 : vector<1x8xf32> to vector<16x8xf32>
    %443 = arith.addf %439, %442 : vector<16x8xf32>
    %cst_311 = arith.constant 0.000000e+00 : f32
    %444 = vector.broadcast %cst_311 : f32 to vector<16x8xf32>
    %445 = arith.maximumf %443, %444 : vector<16x8xf32>
    %c377_312 = arith.constant 377 : index
    %c0_313 = arith.constant 0 : index
    %446 = vector.load %arg14[%c377_312, %c0_313] : memref<408x8xf32, #tpu.memory_space<vmem>>, vector<16x8xf32>
    tpu.vector_store %arg14[%c377_312, %c0_313], %445 {strides = array<i32>} : memref<408x8xf32, #tpu.memory_space<vmem>>, vector<16x8xf32>,
    %c377_314 = arith.constant 377 : index
    %c0_315 = arith.constant 0 : index
    %447 = vector.load %arg14[%c377_314, %c0_315] : memref<408x8xf32, #tpu.memory_space<vmem>>, vector<4x8xf32>
    %448 = arith.truncf %447 : vector<4x8xf32> to vector<4x8xbf16>
    %cst_316 = arith.constant dense<0.000000e+00> : vector<8x8xf32>
    %449 = tpu.matmul %5, %448, %cst_316 {dimension_numbers = #tpu.dot_dimension_numbers<[1], [0], [0], [1], [0, 0, 1, 1], [], []>} : vector<8x4xbf16>, vector<4x8xbf16>, vector<8x8xf32> -> vector<8x8xf32>
    %c299_317 = arith.constant 299 : index
    %c0_318 = arith.constant 0 : index
    %450 = vector.load %arg14[%c299_317, %c0_318] : memref<408x8xf32, #tpu.memory_space<vmem>>, vector<8x8xf32>
    tpu.vector_store %arg14[%c299_317, %c0_318], %449 {strides = array<i32>} : memref<408x8xf32, #tpu.memory_space<vmem>>, vector<8x8xf32>,
    %c377_319 = arith.constant 377 : index
    %c0_320 = arith.constant 0 : index
    %451 = vector.load %arg14[%c377_319, %c0_320] : memref<408x8xf32, #tpu.memory_space<vmem>>, vector<4x8xf32>
    %c381_321 = arith.constant 381 : index
    %c0_322 = arith.constant 0 : index
    %452 = vector.load %arg14[%c381_321, %c0_322] : memref<408x8xf32, #tpu.memory_space<vmem>>, vector<4x8xf32>
    %cst_323 = arith.constant 7.500000e-01 : f32
    %453 = vector.broadcast %cst_323 : f32 to vector<4x8xf32>
    %454 = arith.mulf %453, %451 : vector<4x8xf32>
    %cst_324 = arith.constant 2.500000e-01 : f32
    %455 = vector.broadcast %cst_324 : f32 to vector<4x8xf32>
    %456 = arith.mulf %455, %452 : vector<4x8xf32>
    %457 = arith.addf %454, %456 : vector<4x8xf32>
    %458 = arith.truncf %457 : vector<4x8xf32> to vector<4x8xbf16>
    %cst_325 = arith.constant dense<0.000000e+00> : vector<8x8xf32>
    %459 = tpu.matmul %5, %458, %cst_325 {dimension_numbers = #tpu.dot_dimension_numbers<[1], [0], [0], [1], [0, 0, 1, 1], [], []>} : vector<8x4xbf16>, vector<4x8xbf16>, vector<8x8xf32> -> vector<8x8xf32>
    %c307_326 = arith.constant 307 : index
    %c0_327 = arith.constant 0 : index
    %460 = vector.load %arg14[%c307_326, %c0_327] : memref<408x8xf32, #tpu.memory_space<vmem>>, vector<8x8xf32>
    tpu.vector_store %arg14[%c307_326, %c0_327], %459 {strides = array<i32>} : memref<408x8xf32, #tpu.memory_space<vmem>>, vector<8x8xf32>,
    %c377_328 = arith.constant 377 : index
    %c0_329 = arith.constant 0 : index
    %461 = vector.load %arg14[%c377_328, %c0_329] : memref<408x8xf32, #tpu.memory_space<vmem>>, vector<4x8xf32>
    %c381_330 = arith.constant 381 : index
    %c0_331 = arith.constant 0 : index
    %462 = vector.load %arg14[%c381_330, %c0_331] : memref<408x8xf32, #tpu.memory_space<vmem>>, vector<4x8xf32>
    %cst_332 = arith.constant 2.500000e-01 : f32
    %463 = vector.broadcast %cst_332 : f32 to vector<4x8xf32>
    %464 = arith.mulf %463, %461 : vector<4x8xf32>
    %cst_333 = arith.constant 7.500000e-01 : f32
    %465 = vector.broadcast %cst_333 : f32 to vector<4x8xf32>
    %466 = arith.mulf %465, %462 : vector<4x8xf32>
    %467 = arith.addf %464, %466 : vector<4x8xf32>
    %468 = arith.truncf %467 : vector<4x8xf32> to vector<4x8xbf16>
    %cst_334 = arith.constant dense<0.000000e+00> : vector<8x8xf32>
    %469 = tpu.matmul %5, %468, %cst_334 {dimension_numbers = #tpu.dot_dimension_numbers<[1], [0], [0], [1], [0, 0, 1, 1], [], []>} : vector<8x4xbf16>, vector<4x8xbf16>, vector<8x8xf32> -> vector<8x8xf32>
    %c315_335 = arith.constant 315 : index
    %c0_336 = arith.constant 0 : index
    %470 = vector.load %arg14[%c315_335, %c0_336] : memref<408x8xf32, #tpu.memory_space<vmem>>, vector<8x8xf32>
    tpu.vector_store %arg14[%c315_335, %c0_336], %469 {strides = array<i32>} : memref<408x8xf32, #tpu.memory_space<vmem>>, vector<8x8xf32>,
    %c381_337 = arith.constant 381 : index
    %c0_338 = arith.constant 0 : index
    %471 = vector.load %arg14[%c381_337, %c0_338] : memref<408x8xf32, #tpu.memory_space<vmem>>, vector<4x8xf32>
    %c385 = arith.constant 385 : index
    %c0_339 = arith.constant 0 : index
    %472 = vector.load %arg14[%c385, %c0_339] : memref<408x8xf32, #tpu.memory_space<vmem>>, vector<4x8xf32>
    %cst_340 = arith.constant 7.500000e-01 : f32
    %473 = vector.broadcast %cst_340 : f32 to vector<4x8xf32>
    %474 = arith.mulf %473, %471 : vector<4x8xf32>
    %cst_341 = arith.constant 2.500000e-01 : f32
    %475 = vector.broadcast %cst_341 : f32 to vector<4x8xf32>
    %476 = arith.mulf %475, %472 : vector<4x8xf32>
    %477 = arith.addf %474, %476 : vector<4x8xf32>
    %478 = arith.truncf %477 : vector<4x8xf32> to vector<4x8xbf16>
    %cst_342 = arith.constant dense<0.000000e+00> : vector<8x8xf32>
    %479 = tpu.matmul %5, %478, %cst_342 {dimension_numbers = #tpu.dot_dimension_numbers<[1], [0], [0], [1], [0, 0, 1, 1], [], []>} : vector<8x4xbf16>, vector<4x8xbf16>, vector<8x8xf32> -> vector<8x8xf32>
    %c323_343 = arith.constant 323 : index
    %c0_344 = arith.constant 0 : index
    %480 = vector.load %arg14[%c323_343, %c0_344] : memref<408x8xf32, #tpu.memory_space<vmem>>, vector<8x8xf32>
    tpu.vector_store %arg14[%c323_343, %c0_344], %479 {strides = array<i32>} : memref<408x8xf32, #tpu.memory_space<vmem>>, vector<8x8xf32>,
    %c381_345 = arith.constant 381 : index
    %c0_346 = arith.constant 0 : index
    %481 = vector.load %arg14[%c381_345, %c0_346] : memref<408x8xf32, #tpu.memory_space<vmem>>, vector<4x8xf32>
    %c385_347 = arith.constant 385 : index
    %c0_348 = arith.constant 0 : index
    %482 = vector.load %arg14[%c385_347, %c0_348] : memref<408x8xf32, #tpu.memory_space<vmem>>, vector<4x8xf32>
    %cst_349 = arith.constant 2.500000e-01 : f32
    %483 = vector.broadcast %cst_349 : f32 to vector<4x8xf32>
    %484 = arith.mulf %483, %481 : vector<4x8xf32>
    %cst_350 = arith.constant 7.500000e-01 : f32
    %485 = vector.broadcast %cst_350 : f32 to vector<4x8xf32>
    %486 = arith.mulf %485, %482 : vector<4x8xf32>
    %487 = arith.addf %484, %486 : vector<4x8xf32>
    %488 = arith.truncf %487 : vector<4x8xf32> to vector<4x8xbf16>
    %cst_351 = arith.constant dense<0.000000e+00> : vector<8x8xf32>
    %489 = tpu.matmul %5, %488, %cst_351 {dimension_numbers = #tpu.dot_dimension_numbers<[1], [0], [0], [1], [0, 0, 1, 1], [], []>} : vector<8x4xbf16>, vector<4x8xbf16>, vector<8x8xf32> -> vector<8x8xf32>
    %c331_352 = arith.constant 331 : index
    %c0_353 = arith.constant 0 : index
    %490 = vector.load %arg14[%c331_352, %c0_353] : memref<408x8xf32, #tpu.memory_space<vmem>>, vector<8x8xf32>
    tpu.vector_store %arg14[%c331_352, %c0_353], %489 {strides = array<i32>} : memref<408x8xf32, #tpu.memory_space<vmem>>, vector<8x8xf32>,
    %c385_354 = arith.constant 385 : index
    %c0_355 = arith.constant 0 : index
    %491 = vector.load %arg14[%c385_354, %c0_355] : memref<408x8xf32, #tpu.memory_space<vmem>>, vector<4x8xf32>
    %c389 = arith.constant 389 : index
    %c0_356 = arith.constant 0 : index
    %492 = vector.load %arg14[%c389, %c0_356] : memref<408x8xf32, #tpu.memory_space<vmem>>, vector<4x8xf32>
    %cst_357 = arith.constant 7.500000e-01 : f32
    %493 = vector.broadcast %cst_357 : f32 to vector<4x8xf32>
    %494 = arith.mulf %493, %491 : vector<4x8xf32>
    %cst_358 = arith.constant 2.500000e-01 : f32
    %495 = vector.broadcast %cst_358 : f32 to vector<4x8xf32>
    %496 = arith.mulf %495, %492 : vector<4x8xf32>
    %497 = arith.addf %494, %496 : vector<4x8xf32>
    %498 = arith.truncf %497 : vector<4x8xf32> to vector<4x8xbf16>
    %cst_359 = arith.constant dense<0.000000e+00> : vector<8x8xf32>
    %499 = tpu.matmul %5, %498, %cst_359 {dimension_numbers = #tpu.dot_dimension_numbers<[1], [0], [0], [1], [0, 0, 1, 1], [], []>} : vector<8x4xbf16>, vector<4x8xbf16>, vector<8x8xf32> -> vector<8x8xf32>
    %c339_360 = arith.constant 339 : index
    %c0_361 = arith.constant 0 : index
    %500 = vector.load %arg14[%c339_360, %c0_361] : memref<408x8xf32, #tpu.memory_space<vmem>>, vector<8x8xf32>
    tpu.vector_store %arg14[%c339_360, %c0_361], %499 {strides = array<i32>} : memref<408x8xf32, #tpu.memory_space<vmem>>, vector<8x8xf32>,
    %c385_362 = arith.constant 385 : index
    %c0_363 = arith.constant 0 : index
    %501 = vector.load %arg14[%c385_362, %c0_363] : memref<408x8xf32, #tpu.memory_space<vmem>>, vector<4x8xf32>
    %c389_364 = arith.constant 389 : index
    %c0_365 = arith.constant 0 : index
    %502 = vector.load %arg14[%c389_364, %c0_365] : memref<408x8xf32, #tpu.memory_space<vmem>>, vector<4x8xf32>
    %cst_366 = arith.constant 2.500000e-01 : f32
    %503 = vector.broadcast %cst_366 : f32 to vector<4x8xf32>
    %504 = arith.mulf %503, %501 : vector<4x8xf32>
    %cst_367 = arith.constant 7.500000e-01 : f32
    %505 = vector.broadcast %cst_367 : f32 to vector<4x8xf32>
    %506 = arith.mulf %505, %502 : vector<4x8xf32>
    %507 = arith.addf %504, %506 : vector<4x8xf32>
    %508 = arith.truncf %507 : vector<4x8xf32> to vector<4x8xbf16>
    %cst_368 = arith.constant dense<0.000000e+00> : vector<8x8xf32>
    %509 = tpu.matmul %5, %508, %cst_368 {dimension_numbers = #tpu.dot_dimension_numbers<[1], [0], [0], [1], [0, 0, 1, 1], [], []>} : vector<8x4xbf16>, vector<4x8xbf16>, vector<8x8xf32> -> vector<8x8xf32>
    %c347_369 = arith.constant 347 : index
    %c0_370 = arith.constant 0 : index
    %510 = vector.load %arg14[%c347_369, %c0_370] : memref<408x8xf32, #tpu.memory_space<vmem>>, vector<8x8xf32>
    tpu.vector_store %arg14[%c347_369, %c0_370], %509 {strides = array<i32>} : memref<408x8xf32, #tpu.memory_space<vmem>>, vector<8x8xf32>,
    %c389_371 = arith.constant 389 : index
    %c0_372 = arith.constant 0 : index
    %511 = vector.load %arg14[%c389_371, %c0_372] : memref<408x8xf32, #tpu.memory_space<vmem>>, vector<4x8xf32>
    %512 = arith.truncf %511 : vector<4x8xf32> to vector<4x8xbf16>
    %cst_373 = arith.constant dense<0.000000e+00> : vector<8x8xf32>
    %513 = tpu.matmul %5, %512, %cst_373 {dimension_numbers = #tpu.dot_dimension_numbers<[1], [0], [0], [1], [0, 0, 1, 1], [], []>} : vector<8x4xbf16>, vector<4x8xbf16>, vector<8x8xf32> -> vector<8x8xf32>
    %c355_374 = arith.constant 355 : index
    %c0_375 = arith.constant 0 : index
    %514 = vector.load %arg14[%c355_374, %c0_375] : memref<408x8xf32, #tpu.memory_space<vmem>>, vector<8x8xf32>
    tpu.vector_store %arg14[%c355_374, %c0_375], %513 {strides = array<i32>} : memref<408x8xf32, #tpu.memory_space<vmem>>, vector<8x8xf32>,
    %c290_376 = arith.constant 290 : index
    %c0_377 = arith.constant 0 : index
    %515 = vector.load %arg14[%c290_376, %c0_377] : memref<408x8xf32, #tpu.memory_space<vmem>>, vector<64x8xf32>
    %516 = vector.broadcast %104 : vector<64x1xf32> to vector<64x8xf32>
    %517 = arith.mulf %515, %516 : vector<64x8xf32>
    %518 = arith.truncf %517 : vector<64x8xf32> to vector<64x8xbf16>
    %c0_378 = arith.constant 0 : index
    %c0_379 = arith.constant 0 : index
    %c0_380 = arith.constant 0 : index
    %519 = vector.load %arg6[%c0_378, %c0_379, %c0_380] : memref<27x8x8xbf16, #tpu.memory_space<vmem>>, vector<1x8x8xbf16>
    %520 = vector.shape_cast %519 : vector<1x8x8xbf16> to vector<8x8xbf16>
    %cst_381 = arith.constant dense<0.000000e+00> : vector<64x8xf32>
    %521 = tpu.matmul %518, %520, %cst_381 {dimension_numbers = #tpu.dot_dimension_numbers<[1], [0], [0], [1], [0, 0, 1, 1], [], []>} : vector<64x8xbf16>, vector<8x8xbf16>, vector<64x8xf32> -> vector<64x8xf32>
    %c291_382 = arith.constant 291 : index
    %c0_383 = arith.constant 0 : index
    %522 = vector.load %arg14[%c291_382, %c0_383] : memref<408x8xf32, #tpu.memory_space<vmem>>, vector<64x8xf32>
    %523 = arith.truncf %522 : vector<64x8xf32> to vector<64x8xbf16>
    %c1_384 = arith.constant 1 : index
    %c0_385 = arith.constant 0 : index
    %c0_386 = arith.constant 0 : index
    %524 = vector.load %arg6[%c1_384, %c0_385, %c0_386] : memref<27x8x8xbf16, #tpu.memory_space<vmem>>, vector<1x8x8xbf16>
    %525 = vector.shape_cast %524 : vector<1x8x8xbf16> to vector<8x8xbf16>
    %cst_387 = arith.constant dense<0.000000e+00> : vector<64x8xf32>
    %526 = tpu.matmul %523, %525, %cst_387 {dimension_numbers = #tpu.dot_dimension_numbers<[1], [0], [0], [1], [0, 0, 1, 1], [], []>} : vector<64x8xbf16>, vector<8x8xbf16>, vector<64x8xf32> -> vector<64x8xf32>
    %527 = arith.addf %521, %526 : vector<64x8xf32>
    %c292_388 = arith.constant 292 : index
    %c0_389 = arith.constant 0 : index
    %528 = vector.load %arg14[%c292_388, %c0_389] : memref<408x8xf32, #tpu.memory_space<vmem>>, vector<64x8xf32>
    %529 = vector.broadcast %108 : vector<64x1xf32> to vector<64x8xf32>
    %530 = arith.mulf %528, %529 : vector<64x8xf32>
    %531 = arith.truncf %530 : vector<64x8xf32> to vector<64x8xbf16>
    %c2_390 = arith.constant 2 : index
    %c0_391 = arith.constant 0 : index
    %c0_392 = arith.constant 0 : index
    %532 = vector.load %arg6[%c2_390, %c0_391, %c0_392] : memref<27x8x8xbf16, #tpu.memory_space<vmem>>, vector<1x8x8xbf16>
    %533 = vector.shape_cast %532 : vector<1x8x8xbf16> to vector<8x8xbf16>
    %cst_393 = arith.constant dense<0.000000e+00> : vector<64x8xf32>
    %534 = tpu.matmul %531, %533, %cst_393 {dimension_numbers = #tpu.dot_dimension_numbers<[1], [0], [0], [1], [0, 0, 1, 1], [], []>} : vector<64x8xbf16>, vector<8x8xbf16>, vector<64x8xf32> -> vector<64x8xf32>
    %535 = arith.addf %527, %534 : vector<64x8xf32>
    %c298_394 = arith.constant 298 : index
    %c0_395 = arith.constant 0 : index
    %536 = vector.load %arg14[%c298_394, %c0_395] : memref<408x8xf32, #tpu.memory_space<vmem>>, vector<64x8xf32>
    %537 = vector.broadcast %104 : vector<64x1xf32> to vector<64x8xf32>
    %538 = arith.mulf %536, %537 : vector<64x8xf32>
    %539 = arith.truncf %538 : vector<64x8xf32> to vector<64x8xbf16>
    %c3_396 = arith.constant 3 : index
    %c0_397 = arith.constant 0 : index
    %c0_398 = arith.constant 0 : index
    %540 = vector.load %arg6[%c3_396, %c0_397, %c0_398] : memref<27x8x8xbf16, #tpu.memory_space<vmem>>, vector<1x8x8xbf16>
    %541 = vector.shape_cast %540 : vector<1x8x8xbf16> to vector<8x8xbf16>
    %cst_399 = arith.constant dense<0.000000e+00> : vector<64x8xf32>
    %542 = tpu.matmul %539, %541, %cst_399 {dimension_numbers = #tpu.dot_dimension_numbers<[1], [0], [0], [1], [0, 0, 1, 1], [], []>} : vector<64x8xbf16>, vector<8x8xbf16>, vector<64x8xf32> -> vector<64x8xf32>
    %543 = arith.addf %535, %542 : vector<64x8xf32>
    %c299_400 = arith.constant 299 : index
    %c0_401 = arith.constant 0 : index
    %544 = vector.load %arg14[%c299_400, %c0_401] : memref<408x8xf32, #tpu.memory_space<vmem>>, vector<64x8xf32>
    %545 = arith.truncf %544 : vector<64x8xf32> to vector<64x8xbf16>
    %c4_402 = arith.constant 4 : index
    %c0_403 = arith.constant 0 : index
    %c0_404 = arith.constant 0 : index
    %546 = vector.load %arg6[%c4_402, %c0_403, %c0_404] : memref<27x8x8xbf16, #tpu.memory_space<vmem>>, vector<1x8x8xbf16>
    %547 = vector.shape_cast %546 : vector<1x8x8xbf16> to vector<8x8xbf16>
    %cst_405 = arith.constant dense<0.000000e+00> : vector<64x8xf32>
    %548 = tpu.matmul %545, %547, %cst_405 {dimension_numbers = #tpu.dot_dimension_numbers<[1], [0], [0], [1], [0, 0, 1, 1], [], []>} : vector<64x8xbf16>, vector<8x8xbf16>, vector<64x8xf32> -> vector<64x8xf32>
    %549 = arith.addf %543, %548 : vector<64x8xf32>
    %c300_406 = arith.constant 300 : index
    %c0_407 = arith.constant 0 : index
    %550 = vector.load %arg14[%c300_406, %c0_407] : memref<408x8xf32, #tpu.memory_space<vmem>>, vector<64x8xf32>
    %551 = vector.broadcast %108 : vector<64x1xf32> to vector<64x8xf32>
    %552 = arith.mulf %550, %551 : vector<64x8xf32>
    %553 = arith.truncf %552 : vector<64x8xf32> to vector<64x8xbf16>
    %c5_408 = arith.constant 5 : index
    %c0_409 = arith.constant 0 : index
    %c0_410 = arith.constant 0 : index
    %554 = vector.load %arg6[%c5_408, %c0_409, %c0_410] : memref<27x8x8xbf16, #tpu.memory_space<vmem>>, vector<1x8x8xbf16>
    %555 = vector.shape_cast %554 : vector<1x8x8xbf16> to vector<8x8xbf16>
    %cst_411 = arith.constant dense<0.000000e+00> : vector<64x8xf32>
    %556 = tpu.matmul %553, %555, %cst_411 {dimension_numbers = #tpu.dot_dimension_numbers<[1], [0], [0], [1], [0, 0, 1, 1], [], []>} : vector<64x8xbf16>, vector<8x8xbf16>, vector<64x8xf32> -> vector<64x8xf32>
    %557 = arith.addf %549, %556 : vector<64x8xf32>
    %c306_412 = arith.constant 306 : index
    %c0_413 = arith.constant 0 : index
    %558 = vector.load %arg14[%c306_412, %c0_413] : memref<408x8xf32, #tpu.memory_space<vmem>>, vector<64x8xf32>
    %559 = vector.broadcast %104 : vector<64x1xf32> to vector<64x8xf32>
    %560 = arith.mulf %558, %559 : vector<64x8xf32>
    %561 = arith.truncf %560 : vector<64x8xf32> to vector<64x8xbf16>
    %c6_414 = arith.constant 6 : index
    %c0_415 = arith.constant 0 : index
    %c0_416 = arith.constant 0 : index
    %562 = vector.load %arg6[%c6_414, %c0_415, %c0_416] : memref<27x8x8xbf16, #tpu.memory_space<vmem>>, vector<1x8x8xbf16>
    %563 = vector.shape_cast %562 : vector<1x8x8xbf16> to vector<8x8xbf16>
    %cst_417 = arith.constant dense<0.000000e+00> : vector<64x8xf32>
    %564 = tpu.matmul %561, %563, %cst_417 {dimension_numbers = #tpu.dot_dimension_numbers<[1], [0], [0], [1], [0, 0, 1, 1], [], []>} : vector<64x8xbf16>, vector<8x8xbf16>, vector<64x8xf32> -> vector<64x8xf32>
    %565 = arith.addf %557, %564 : vector<64x8xf32>
    %c307_418 = arith.constant 307 : index
    %c0_419 = arith.constant 0 : index
    %566 = vector.load %arg14[%c307_418, %c0_419] : memref<408x8xf32, #tpu.memory_space<vmem>>, vector<64x8xf32>
    %567 = arith.truncf %566 : vector<64x8xf32> to vector<64x8xbf16>
    %c7_420 = arith.constant 7 : index
    %c0_421 = arith.constant 0 : index
    %c0_422 = arith.constant 0 : index
    %568 = vector.load %arg6[%c7_420, %c0_421, %c0_422] : memref<27x8x8xbf16, #tpu.memory_space<vmem>>, vector<1x8x8xbf16>
    %569 = vector.shape_cast %568 : vector<1x8x8xbf16> to vector<8x8xbf16>
    %cst_423 = arith.constant dense<0.000000e+00> : vector<64x8xf32>
    %570 = tpu.matmul %567, %569, %cst_423 {dimension_numbers = #tpu.dot_dimension_numbers<[1], [0], [0], [1], [0, 0, 1, 1], [], []>} : vector<64x8xbf16>, vector<8x8xbf16>, vector<64x8xf32> -> vector<64x8xf32>
    %571 = arith.addf %565, %570 : vector<64x8xf32>
    %c308_424 = arith.constant 308 : index
    %c0_425 = arith.constant 0 : index
    %572 = vector.load %arg14[%c308_424, %c0_425] : memref<408x8xf32, #tpu.memory_space<vmem>>, vector<64x8xf32>
    %573 = vector.broadcast %108 : vector<64x1xf32> to vector<64x8xf32>
    %574 = arith.mulf %572, %573 : vector<64x8xf32>
    %575 = arith.truncf %574 : vector<64x8xf32> to vector<64x8xbf16>
    %c8_426 = arith.constant 8 : index
    %c0_427 = arith.constant 0 : index
    %c0_428 = arith.constant 0 : index
    %576 = vector.load %arg6[%c8_426, %c0_427, %c0_428] : memref<27x8x8xbf16, #tpu.memory_space<vmem>>, vector<1x8x8xbf16>
    %577 = vector.shape_cast %576 : vector<1x8x8xbf16> to vector<8x8xbf16>
    %cst_429 = arith.constant dense<0.000000e+00> : vector<64x8xf32>
    %578 = tpu.matmul %575, %577, %cst_429 {dimension_numbers = #tpu.dot_dimension_numbers<[1], [0], [0], [1], [0, 0, 1, 1], [], []>} : vector<64x8xbf16>, vector<8x8xbf16>, vector<64x8xf32> -> vector<64x8xf32>
    %579 = arith.addf %571, %578 : vector<64x8xf32>
    %c3_430 = arith.constant 3 : index
    %c0_431 = arith.constant 0 : index
    %c0_432 = arith.constant 0 : index
    %580 = vector.load %arg7[%c3_430, %c0_431, %c0_432] : memref<7x1x8xf32, #tpu.memory_space<vmem>>, vector<1x1x8xf32>
    %581 = vector.shape_cast %580 : vector<1x1x8xf32> to vector<1x8xf32>
    %582 = vector.broadcast %581 : vector<1x8xf32> to vector<64x8xf32>
    %583 = arith.addf %579, %582 : vector<64x8xf32>
    %cst_433 = arith.constant 0.000000e+00 : f32
    %584 = vector.broadcast %cst_433 : f32 to vector<64x8xf32>
    %585 = arith.maximumf %583, %584 : vector<64x8xf32>
    %c299_434 = arith.constant 299 : index
    %c0_435 = arith.constant 0 : index
    %586 = vector.load %arg14[%c299_434, %c0_435] : memref<408x8xf32, #tpu.memory_space<vmem>>, vector<64x8xf32>
    tpu.vector_store %arg14[%c299_434, %c0_435], %585 {strides = array<i32>} : memref<408x8xf32, #tpu.memory_space<vmem>>, vector<64x8xf32>,
    %c299_436 = arith.constant 299 : index
    %c0_437 = arith.constant 0 : index
    %587 = vector.load %arg14[%c299_436, %c0_437] : memref<408x8xf32, #tpu.memory_space<vmem>>, vector<8x8xf32>
    %588 = arith.truncf %587 : vector<8x8xf32> to vector<8x8xbf16>
    %cst_438 = arith.constant dense<0.000000e+00> : vector<16x8xf32>
    %589 = tpu.matmul %4, %588, %cst_438 {dimension_numbers = #tpu.dot_dimension_numbers<[1], [0], [0], [1], [0, 0, 1, 1], [], []>} : vector<16x8xbf16>, vector<8x8xbf16>, vector<16x8xf32> -> vector<16x8xf32>
    %c0_439 = arith.constant 0 : index
    %c0_440 = arith.constant 0 : index
    %590 = vector.load %arg15[%c0_439, %c0_440] : memref<256x8xf32, #tpu.memory_space<vmem>>, vector<16x8xf32>
    %591 = arith.addf %590, %589 : vector<16x8xf32>
    %c0_441 = arith.constant 0 : index
    %c0_442 = arith.constant 0 : index
    %592 = vector.load %arg15[%c0_441, %c0_442] : memref<256x8xf32, #tpu.memory_space<vmem>>, vector<16x8xf32>
    tpu.vector_store %arg15[%c0_441, %c0_442], %591 {strides = array<i32>} : memref<256x8xf32, #tpu.memory_space<vmem>>, vector<16x8xf32>,
    %c299_443 = arith.constant 299 : index
    %c0_444 = arith.constant 0 : index
    %593 = vector.load %arg14[%c299_443, %c0_444] : memref<408x8xf32, #tpu.memory_space<vmem>>, vector<8x8xf32>
    %c307_445 = arith.constant 307 : index
    %c0_446 = arith.constant 0 : index
    %594 = vector.load %arg14[%c307_445, %c0_446] : memref<408x8xf32, #tpu.memory_space<vmem>>, vector<8x8xf32>
    %cst_447 = arith.constant 7.500000e-01 : f32
    %595 = vector.broadcast %cst_447 : f32 to vector<8x8xf32>
    %596 = arith.mulf %595, %593 : vector<8x8xf32>
    %cst_448 = arith.constant 2.500000e-01 : f32
    %597 = vector.broadcast %cst_448 : f32 to vector<8x8xf32>
    %598 = arith.mulf %597, %594 : vector<8x8xf32>
    %599 = arith.addf %596, %598 : vector<8x8xf32>
    %600 = arith.truncf %599 : vector<8x8xf32> to vector<8x8xbf16>
    %cst_449 = arith.constant dense<0.000000e+00> : vector<16x8xf32>
    %601 = tpu.matmul %4, %600, %cst_449 {dimension_numbers = #tpu.dot_dimension_numbers<[1], [0], [0], [1], [0, 0, 1, 1], [], []>} : vector<16x8xbf16>, vector<8x8xbf16>, vector<16x8xf32> -> vector<16x8xf32>
    %c16_450 = arith.constant 16 : index
    %c0_451 = arith.constant 0 : index
    %602 = vector.load %arg15[%c16_450, %c0_451] : memref<256x8xf32, #tpu.memory_space<vmem>>, vector<16x8xf32>
    %603 = arith.addf %602, %601 : vector<16x8xf32>
    %c16_452 = arith.constant 16 : index
    %c0_453 = arith.constant 0 : index
    %604 = vector.load %arg15[%c16_452, %c0_453] : memref<256x8xf32, #tpu.memory_space<vmem>>, vector<16x8xf32>
    tpu.vector_store %arg15[%c16_452, %c0_453], %603 {strides = array<i32>} : memref<256x8xf32, #tpu.memory_space<vmem>>, vector<16x8xf32>,
    %c299_454 = arith.constant 299 : index
    %c0_455 = arith.constant 0 : index
    %605 = vector.load %arg14[%c299_454, %c0_455] : memref<408x8xf32, #tpu.memory_space<vmem>>, vector<8x8xf32>
    %c307_456 = arith.constant 307 : index
    %c0_457 = arith.constant 0 : index
    %606 = vector.load %arg14[%c307_456, %c0_457] : memref<408x8xf32, #tpu.memory_space<vmem>>, vector<8x8xf32>
    %cst_458 = arith.constant 2.500000e-01 : f32
    %607 = vector.broadcast %cst_458 : f32 to vector<8x8xf32>
    %608 = arith.mulf %607, %605 : vector<8x8xf32>
    %cst_459 = arith.constant 7.500000e-01 : f32
    %609 = vector.broadcast %cst_459 : f32 to vector<8x8xf32>
    %610 = arith.mulf %609, %606 : vector<8x8xf32>
    %611 = arith.addf %608, %610 : vector<8x8xf32>
    %612 = arith.truncf %611 : vector<8x8xf32> to vector<8x8xbf16>
    %cst_460 = arith.constant dense<0.000000e+00> : vector<16x8xf32>
    %613 = tpu.matmul %4, %612, %cst_460 {dimension_numbers = #tpu.dot_dimension_numbers<[1], [0], [0], [1], [0, 0, 1, 1], [], []>} : vector<16x8xbf16>, vector<8x8xbf16>, vector<16x8xf32> -> vector<16x8xf32>
    %c32_461 = arith.constant 32 : index
    %c0_462 = arith.constant 0 : index
    %614 = vector.load %arg15[%c32_461, %c0_462] : memref<256x8xf32, #tpu.memory_space<vmem>>, vector<16x8xf32>
    %615 = arith.addf %614, %613 : vector<16x8xf32>
    %c32_463 = arith.constant 32 : index
    %c0_464 = arith.constant 0 : index
    %616 = vector.load %arg15[%c32_463, %c0_464] : memref<256x8xf32, #tpu.memory_space<vmem>>, vector<16x8xf32>
    tpu.vector_store %arg15[%c32_463, %c0_464], %615 {strides = array<i32>} : memref<256x8xf32, #tpu.memory_space<vmem>>, vector<16x8xf32>,
    %c307_465 = arith.constant 307 : index
    %c0_466 = arith.constant 0 : index
    %617 = vector.load %arg14[%c307_465, %c0_466] : memref<408x8xf32, #tpu.memory_space<vmem>>, vector<8x8xf32>
    %c315_467 = arith.constant 315 : index
    %c0_468 = arith.constant 0 : index
    %618 = vector.load %arg14[%c315_467, %c0_468] : memref<408x8xf32, #tpu.memory_space<vmem>>, vector<8x8xf32>
    %cst_469 = arith.constant 7.500000e-01 : f32
    %619 = vector.broadcast %cst_469 : f32 to vector<8x8xf32>
    %620 = arith.mulf %619, %617 : vector<8x8xf32>
    %cst_470 = arith.constant 2.500000e-01 : f32
    %621 = vector.broadcast %cst_470 : f32 to vector<8x8xf32>
    %622 = arith.mulf %621, %618 : vector<8x8xf32>
    %623 = arith.addf %620, %622 : vector<8x8xf32>
    %624 = arith.truncf %623 : vector<8x8xf32> to vector<8x8xbf16>
    %cst_471 = arith.constant dense<0.000000e+00> : vector<16x8xf32>
    %625 = tpu.matmul %4, %624, %cst_471 {dimension_numbers = #tpu.dot_dimension_numbers<[1], [0], [0], [1], [0, 0, 1, 1], [], []>} : vector<16x8xbf16>, vector<8x8xbf16>, vector<16x8xf32> -> vector<16x8xf32>
    %c48_472 = arith.constant 48 : index
    %c0_473 = arith.constant 0 : index
    %626 = vector.load %arg15[%c48_472, %c0_473] : memref<256x8xf32, #tpu.memory_space<vmem>>, vector<16x8xf32>
    %627 = arith.addf %626, %625 : vector<16x8xf32>
    %c48_474 = arith.constant 48 : index
    %c0_475 = arith.constant 0 : index
    %628 = vector.load %arg15[%c48_474, %c0_475] : memref<256x8xf32, #tpu.memory_space<vmem>>, vector<16x8xf32>
    tpu.vector_store %arg15[%c48_474, %c0_475], %627 {strides = array<i32>} : memref<256x8xf32, #tpu.memory_space<vmem>>, vector<16x8xf32>,
    %c307_476 = arith.constant 307 : index
    %c0_477 = arith.constant 0 : index
    %629 = vector.load %arg14[%c307_476, %c0_477] : memref<408x8xf32, #tpu.memory_space<vmem>>, vector<8x8xf32>
    %c315_478 = arith.constant 315 : index
    %c0_479 = arith.constant 0 : index
    %630 = vector.load %arg14[%c315_478, %c0_479] : memref<408x8xf32, #tpu.memory_space<vmem>>, vector<8x8xf32>
    %cst_480 = arith.constant 2.500000e-01 : f32
    %631 = vector.broadcast %cst_480 : f32 to vector<8x8xf32>
    %632 = arith.mulf %631, %629 : vector<8x8xf32>
    %cst_481 = arith.constant 7.500000e-01 : f32
    %633 = vector.broadcast %cst_481 : f32 to vector<8x8xf32>
    %634 = arith.mulf %633, %630 : vector<8x8xf32>
    %635 = arith.addf %632, %634 : vector<8x8xf32>
    %636 = arith.truncf %635 : vector<8x8xf32> to vector<8x8xbf16>
    %cst_482 = arith.constant dense<0.000000e+00> : vector<16x8xf32>
    %637 = tpu.matmul %4, %636, %cst_482 {dimension_numbers = #tpu.dot_dimension_numbers<[1], [0], [0], [1], [0, 0, 1, 1], [], []>} : vector<16x8xbf16>, vector<8x8xbf16>, vector<16x8xf32> -> vector<16x8xf32>
    %c64_483 = arith.constant 64 : index
    %c0_484 = arith.constant 0 : index
    %638 = vector.load %arg15[%c64_483, %c0_484] : memref<256x8xf32, #tpu.memory_space<vmem>>, vector<16x8xf32>
    %639 = arith.addf %638, %637 : vector<16x8xf32>
    %c64_485 = arith.constant 64 : index
    %c0_486 = arith.constant 0 : index
    %640 = vector.load %arg15[%c64_485, %c0_486] : memref<256x8xf32, #tpu.memory_space<vmem>>, vector<16x8xf32>
    tpu.vector_store %arg15[%c64_485, %c0_486], %639 {strides = array<i32>} : memref<256x8xf32, #tpu.memory_space<vmem>>, vector<16x8xf32>,
    %c315_487 = arith.constant 315 : index
    %c0_488 = arith.constant 0 : index
    %641 = vector.load %arg14[%c315_487, %c0_488] : memref<408x8xf32, #tpu.memory_space<vmem>>, vector<8x8xf32>
    %c323_489 = arith.constant 323 : index
    %c0_490 = arith.constant 0 : index
    %642 = vector.load %arg14[%c323_489, %c0_490] : memref<408x8xf32, #tpu.memory_space<vmem>>, vector<8x8xf32>
    %cst_491 = arith.constant 7.500000e-01 : f32
    %643 = vector.broadcast %cst_491 : f32 to vector<8x8xf32>
    %644 = arith.mulf %643, %641 : vector<8x8xf32>
    %cst_492 = arith.constant 2.500000e-01 : f32
    %645 = vector.broadcast %cst_492 : f32 to vector<8x8xf32>
    %646 = arith.mulf %645, %642 : vector<8x8xf32>
    %647 = arith.addf %644, %646 : vector<8x8xf32>
    %648 = arith.truncf %647 : vector<8x8xf32> to vector<8x8xbf16>
    %cst_493 = arith.constant dense<0.000000e+00> : vector<16x8xf32>
    %649 = tpu.matmul %4, %648, %cst_493 {dimension_numbers = #tpu.dot_dimension_numbers<[1], [0], [0], [1], [0, 0, 1, 1], [], []>} : vector<16x8xbf16>, vector<8x8xbf16>, vector<16x8xf32> -> vector<16x8xf32>
    %c80_494 = arith.constant 80 : index
    %c0_495 = arith.constant 0 : index
    %650 = vector.load %arg15[%c80_494, %c0_495] : memref<256x8xf32, #tpu.memory_space<vmem>>, vector<16x8xf32>
    %651 = arith.addf %650, %649 : vector<16x8xf32>
    %c80_496 = arith.constant 80 : index
    %c0_497 = arith.constant 0 : index
    %652 = vector.load %arg15[%c80_496, %c0_497] : memref<256x8xf32, #tpu.memory_space<vmem>>, vector<16x8xf32>
    tpu.vector_store %arg15[%c80_496, %c0_497], %651 {strides = array<i32>} : memref<256x8xf32, #tpu.memory_space<vmem>>, vector<16x8xf32>,
    %c315_498 = arith.constant 315 : index
    %c0_499 = arith.constant 0 : index
    %653 = vector.load %arg14[%c315_498, %c0_499] : memref<408x8xf32, #tpu.memory_space<vmem>>, vector<8x8xf32>
    %c323_500 = arith.constant 323 : index
    %c0_501 = arith.constant 0 : index
    %654 = vector.load %arg14[%c323_500, %c0_501] : memref<408x8xf32, #tpu.memory_space<vmem>>, vector<8x8xf32>
    %cst_502 = arith.constant 2.500000e-01 : f32
    %655 = vector.broadcast %cst_502 : f32 to vector<8x8xf32>
    %656 = arith.mulf %655, %653 : vector<8x8xf32>
    %cst_503 = arith.constant 7.500000e-01 : f32
    %657 = vector.broadcast %cst_503 : f32 to vector<8x8xf32>
    %658 = arith.mulf %657, %654 : vector<8x8xf32>
    %659 = arith.addf %656, %658 : vector<8x8xf32>
    %660 = arith.truncf %659 : vector<8x8xf32> to vector<8x8xbf16>
    %cst_504 = arith.constant dense<0.000000e+00> : vector<16x8xf32>
    %661 = tpu.matmul %4, %660, %cst_504 {dimension_numbers = #tpu.dot_dimension_numbers<[1], [0], [0], [1], [0, 0, 1, 1], [], []>} : vector<16x8xbf16>, vector<8x8xbf16>, vector<16x8xf32> -> vector<16x8xf32>
    %c96_505 = arith.constant 96 : index
    %c0_506 = arith.constant 0 : index
    %662 = vector.load %arg15[%c96_505, %c0_506] : memref<256x8xf32, #tpu.memory_space<vmem>>, vector<16x8xf32>
    %663 = arith.addf %662, %661 : vector<16x8xf32>
    %c96_507 = arith.constant 96 : index
    %c0_508 = arith.constant 0 : index
    %664 = vector.load %arg15[%c96_507, %c0_508] : memref<256x8xf32, #tpu.memory_space<vmem>>, vector<16x8xf32>
    tpu.vector_store %arg15[%c96_507, %c0_508], %663 {strides = array<i32>} : memref<256x8xf32, #tpu.memory_space<vmem>>, vector<16x8xf32>,
    %c323_509 = arith.constant 323 : index
    %c0_510 = arith.constant 0 : index
    %665 = vector.load %arg14[%c323_509, %c0_510] : memref<408x8xf32, #tpu.memory_space<vmem>>, vector<8x8xf32>
    %c331_511 = arith.constant 331 : index
    %c0_512 = arith.constant 0 : index
    %666 = vector.load %arg14[%c331_511, %c0_512] : memref<408x8xf32, #tpu.memory_space<vmem>>, vector<8x8xf32>
    %cst_513 = arith.constant 7.500000e-01 : f32
    %667 = vector.broadcast %cst_513 : f32 to vector<8x8xf32>
    %668 = arith.mulf %667, %665 : vector<8x8xf32>
    %cst_514 = arith.constant 2.500000e-01 : f32
    %669 = vector.broadcast %cst_514 : f32 to vector<8x8xf32>
    %670 = arith.mulf %669, %666 : vector<8x8xf32>
    %671 = arith.addf %668, %670 : vector<8x8xf32>
    %672 = arith.truncf %671 : vector<8x8xf32> to vector<8x8xbf16>
    %cst_515 = arith.constant dense<0.000000e+00> : vector<16x8xf32>
    %673 = tpu.matmul %4, %672, %cst_515 {dimension_numbers = #tpu.dot_dimension_numbers<[1], [0], [0], [1], [0, 0, 1, 1], [], []>} : vector<16x8xbf16>, vector<8x8xbf16>, vector<16x8xf32> -> vector<16x8xf32>
    %c112_516 = arith.constant 112 : index
    %c0_517 = arith.constant 0 : index
    %674 = vector.load %arg15[%c112_516, %c0_517] : memref<256x8xf32, #tpu.memory_space<vmem>>, vector<16x8xf32>
    %675 = arith.addf %674, %673 : vector<16x8xf32>
    %c112_518 = arith.constant 112 : index
    %c0_519 = arith.constant 0 : index
    %676 = vector.load %arg15[%c112_518, %c0_519] : memref<256x8xf32, #tpu.memory_space<vmem>>, vector<16x8xf32>
    tpu.vector_store %arg15[%c112_518, %c0_519], %675 {strides = array<i32>} : memref<256x8xf32, #tpu.memory_space<vmem>>, vector<16x8xf32>,
    %c323_520 = arith.constant 323 : index
    %c0_521 = arith.constant 0 : index
    %677 = vector.load %arg14[%c323_520, %c0_521] : memref<408x8xf32, #tpu.memory_space<vmem>>, vector<8x8xf32>
    %c331_522 = arith.constant 331 : index
    %c0_523 = arith.constant 0 : index
    %678 = vector.load %arg14[%c331_522, %c0_523] : memref<408x8xf32, #tpu.memory_space<vmem>>, vector<8x8xf32>
    %cst_524 = arith.constant 2.500000e-01 : f32
    %679 = vector.broadcast %cst_524 : f32 to vector<8x8xf32>
    %680 = arith.mulf %679, %677 : vector<8x8xf32>
    %cst_525 = arith.constant 7.500000e-01 : f32
    %681 = vector.broadcast %cst_525 : f32 to vector<8x8xf32>
    %682 = arith.mulf %681, %678 : vector<8x8xf32>
    %683 = arith.addf %680, %682 : vector<8x8xf32>
    %684 = arith.truncf %683 : vector<8x8xf32> to vector<8x8xbf16>
    %cst_526 = arith.constant dense<0.000000e+00> : vector<16x8xf32>
    %685 = tpu.matmul %4, %684, %cst_526 {dimension_numbers = #tpu.dot_dimension_numbers<[1], [0], [0], [1], [0, 0, 1, 1], [], []>} : vector<16x8xbf16>, vector<8x8xbf16>, vector<16x8xf32> -> vector<16x8xf32>
    %c128_527 = arith.constant 128 : index
    %c0_528 = arith.constant 0 : index
    %686 = vector.load %arg15[%c128_527, %c0_528] : memref<256x8xf32, #tpu.memory_space<vmem>>, vector<16x8xf32>
    %687 = arith.addf %686, %685 : vector<16x8xf32>
    %c128_529 = arith.constant 128 : index
    %c0_530 = arith.constant 0 : index
    %688 = vector.load %arg15[%c128_529, %c0_530] : memref<256x8xf32, #tpu.memory_space<vmem>>, vector<16x8xf32>
    tpu.vector_store %arg15[%c128_529, %c0_530], %687 {strides = array<i32>} : memref<256x8xf32, #tpu.memory_space<vmem>>, vector<16x8xf32>,
    %c331_531 = arith.constant 331 : index
    %c0_532 = arith.constant 0 : index
    %689 = vector.load %arg14[%c331_531, %c0_532] : memref<408x8xf32, #tpu.memory_space<vmem>>, vector<8x8xf32>
    %c339_533 = arith.constant 339 : index
    %c0_534 = arith.constant 0 : index
    %690 = vector.load %arg14[%c339_533, %c0_534] : memref<408x8xf32, #tpu.memory_space<vmem>>, vector<8x8xf32>
    %cst_535 = arith.constant 7.500000e-01 : f32
    %691 = vector.broadcast %cst_535 : f32 to vector<8x8xf32>
    %692 = arith.mulf %691, %689 : vector<8x8xf32>
    %cst_536 = arith.constant 2.500000e-01 : f32
    %693 = vector.broadcast %cst_536 : f32 to vector<8x8xf32>
    %694 = arith.mulf %693, %690 : vector<8x8xf32>
    %695 = arith.addf %692, %694 : vector<8x8xf32>
    %696 = arith.truncf %695 : vector<8x8xf32> to vector<8x8xbf16>
    %cst_537 = arith.constant dense<0.000000e+00> : vector<16x8xf32>
    %697 = tpu.matmul %4, %696, %cst_537 {dimension_numbers = #tpu.dot_dimension_numbers<[1], [0], [0], [1], [0, 0, 1, 1], [], []>} : vector<16x8xbf16>, vector<8x8xbf16>, vector<16x8xf32> -> vector<16x8xf32>
    %c144_538 = arith.constant 144 : index
    %c0_539 = arith.constant 0 : index
    %698 = vector.load %arg15[%c144_538, %c0_539] : memref<256x8xf32, #tpu.memory_space<vmem>>, vector<16x8xf32>
    %699 = arith.addf %698, %697 : vector<16x8xf32>
    %c144_540 = arith.constant 144 : index
    %c0_541 = arith.constant 0 : index
    %700 = vector.load %arg15[%c144_540, %c0_541] : memref<256x8xf32, #tpu.memory_space<vmem>>, vector<16x8xf32>
    tpu.vector_store %arg15[%c144_540, %c0_541], %699 {strides = array<i32>} : memref<256x8xf32, #tpu.memory_space<vmem>>, vector<16x8xf32>,
    %c331_542 = arith.constant 331 : index
    %c0_543 = arith.constant 0 : index
    %701 = vector.load %arg14[%c331_542, %c0_543] : memref<408x8xf32, #tpu.memory_space<vmem>>, vector<8x8xf32>
    %c339_544 = arith.constant 339 : index
    %c0_545 = arith.constant 0 : index
    %702 = vector.load %arg14[%c339_544, %c0_545] : memref<408x8xf32, #tpu.memory_space<vmem>>, vector<8x8xf32>
    %cst_546 = arith.constant 2.500000e-01 : f32
    %703 = vector.broadcast %cst_546 : f32 to vector<8x8xf32>
    %704 = arith.mulf %703, %701 : vector<8x8xf32>
    %cst_547 = arith.constant 7.500000e-01 : f32
    %705 = vector.broadcast %cst_547 : f32 to vector<8x8xf32>
    %706 = arith.mulf %705, %702 : vector<8x8xf32>
    %707 = arith.addf %704, %706 : vector<8x8xf32>
    %708 = arith.truncf %707 : vector<8x8xf32> to vector<8x8xbf16>
    %cst_548 = arith.constant dense<0.000000e+00> : vector<16x8xf32>
    %709 = tpu.matmul %4, %708, %cst_548 {dimension_numbers = #tpu.dot_dimension_numbers<[1], [0], [0], [1], [0, 0, 1, 1], [], []>} : vector<16x8xbf16>, vector<8x8xbf16>, vector<16x8xf32> -> vector<16x8xf32>
    %c160_549 = arith.constant 160 : index
    %c0_550 = arith.constant 0 : index
    %710 = vector.load %arg15[%c160_549, %c0_550] : memref<256x8xf32, #tpu.memory_space<vmem>>, vector<16x8xf32>
    %711 = arith.addf %710, %709 : vector<16x8xf32>
    %c160_551 = arith.constant 160 : index
    %c0_552 = arith.constant 0 : index
    %712 = vector.load %arg15[%c160_551, %c0_552] : memref<256x8xf32, #tpu.memory_space<vmem>>, vector<16x8xf32>
    tpu.vector_store %arg15[%c160_551, %c0_552], %711 {strides = array<i32>} : memref<256x8xf32, #tpu.memory_space<vmem>>, vector<16x8xf32>,
    %c339_553 = arith.constant 339 : index
    %c0_554 = arith.constant 0 : index
    %713 = vector.load %arg14[%c339_553, %c0_554] : memref<408x8xf32, #tpu.memory_space<vmem>>, vector<8x8xf32>
    %c347_555 = arith.constant 347 : index
    %c0_556 = arith.constant 0 : index
    %714 = vector.load %arg14[%c347_555, %c0_556] : memref<408x8xf32, #tpu.memory_space<vmem>>, vector<8x8xf32>
    %cst_557 = arith.constant 7.500000e-01 : f32
    %715 = vector.broadcast %cst_557 : f32 to vector<8x8xf32>
    %716 = arith.mulf %715, %713 : vector<8x8xf32>
    %cst_558 = arith.constant 2.500000e-01 : f32
    %717 = vector.broadcast %cst_558 : f32 to vector<8x8xf32>
    %718 = arith.mulf %717, %714 : vector<8x8xf32>
    %719 = arith.addf %716, %718 : vector<8x8xf32>
    %720 = arith.truncf %719 : vector<8x8xf32> to vector<8x8xbf16>
    %cst_559 = arith.constant dense<0.000000e+00> : vector<16x8xf32>
    %721 = tpu.matmul %4, %720, %cst_559 {dimension_numbers = #tpu.dot_dimension_numbers<[1], [0], [0], [1], [0, 0, 1, 1], [], []>} : vector<16x8xbf16>, vector<8x8xbf16>, vector<16x8xf32> -> vector<16x8xf32>
    %c176_560 = arith.constant 176 : index
    %c0_561 = arith.constant 0 : index
    %722 = vector.load %arg15[%c176_560, %c0_561] : memref<256x8xf32, #tpu.memory_space<vmem>>, vector<16x8xf32>
    %723 = arith.addf %722, %721 : vector<16x8xf32>
    %c176_562 = arith.constant 176 : index
    %c0_563 = arith.constant 0 : index
    %724 = vector.load %arg15[%c176_562, %c0_563] : memref<256x8xf32, #tpu.memory_space<vmem>>, vector<16x8xf32>
    tpu.vector_store %arg15[%c176_562, %c0_563], %723 {strides = array<i32>} : memref<256x8xf32, #tpu.memory_space<vmem>>, vector<16x8xf32>,
    %c339_564 = arith.constant 339 : index
    %c0_565 = arith.constant 0 : index
    %725 = vector.load %arg14[%c339_564, %c0_565] : memref<408x8xf32, #tpu.memory_space<vmem>>, vector<8x8xf32>
    %c347_566 = arith.constant 347 : index
    %c0_567 = arith.constant 0 : index
    %726 = vector.load %arg14[%c347_566, %c0_567] : memref<408x8xf32, #tpu.memory_space<vmem>>, vector<8x8xf32>
    %cst_568 = arith.constant 2.500000e-01 : f32
    %727 = vector.broadcast %cst_568 : f32 to vector<8x8xf32>
    %728 = arith.mulf %727, %725 : vector<8x8xf32>
    %cst_569 = arith.constant 7.500000e-01 : f32
    %729 = vector.broadcast %cst_569 : f32 to vector<8x8xf32>
    %730 = arith.mulf %729, %726 : vector<8x8xf32>
    %731 = arith.addf %728, %730 : vector<8x8xf32>
    %732 = arith.truncf %731 : vector<8x8xf32> to vector<8x8xbf16>
    %cst_570 = arith.constant dense<0.000000e+00> : vector<16x8xf32>
    %733 = tpu.matmul %4, %732, %cst_570 {dimension_numbers = #tpu.dot_dimension_numbers<[1], [0], [0], [1], [0, 0, 1, 1], [], []>} : vector<16x8xbf16>, vector<8x8xbf16>, vector<16x8xf32> -> vector<16x8xf32>
    %c192_571 = arith.constant 192 : index
    %c0_572 = arith.constant 0 : index
    %734 = vector.load %arg15[%c192_571, %c0_572] : memref<256x8xf32, #tpu.memory_space<vmem>>, vector<16x8xf32>
    %735 = arith.addf %734, %733 : vector<16x8xf32>
    %c192_573 = arith.constant 192 : index
    %c0_574 = arith.constant 0 : index
    %736 = vector.load %arg15[%c192_573, %c0_574] : memref<256x8xf32, #tpu.memory_space<vmem>>, vector<16x8xf32>
    tpu.vector_store %arg15[%c192_573, %c0_574], %735 {strides = array<i32>} : memref<256x8xf32, #tpu.memory_space<vmem>>, vector<16x8xf32>,
    %c347_575 = arith.constant 347 : index
    %c0_576 = arith.constant 0 : index
    %737 = vector.load %arg14[%c347_575, %c0_576] : memref<408x8xf32, #tpu.memory_space<vmem>>, vector<8x8xf32>
    %c355_577 = arith.constant 355 : index
    %c0_578 = arith.constant 0 : index
    %738 = vector.load %arg14[%c355_577, %c0_578] : memref<408x8xf32, #tpu.memory_space<vmem>>, vector<8x8xf32>
    %cst_579 = arith.constant 7.500000e-01 : f32
    %739 = vector.broadcast %cst_579 : f32 to vector<8x8xf32>
    %740 = arith.mulf %739, %737 : vector<8x8xf32>
    %cst_580 = arith.constant 2.500000e-01 : f32
    %741 = vector.broadcast %cst_580 : f32 to vector<8x8xf32>
    %742 = arith.mulf %741, %738 : vector<8x8xf32>
    %743 = arith.addf %740, %742 : vector<8x8xf32>
    %744 = arith.truncf %743 : vector<8x8xf32> to vector<8x8xbf16>
    %cst_581 = arith.constant dense<0.000000e+00> : vector<16x8xf32>
    %745 = tpu.matmul %4, %744, %cst_581 {dimension_numbers = #tpu.dot_dimension_numbers<[1], [0], [0], [1], [0, 0, 1, 1], [], []>} : vector<16x8xbf16>, vector<8x8xbf16>, vector<16x8xf32> -> vector<16x8xf32>
    %c208_582 = arith.constant 208 : index
    %c0_583 = arith.constant 0 : index
    %746 = vector.load %arg15[%c208_582, %c0_583] : memref<256x8xf32, #tpu.memory_space<vmem>>, vector<16x8xf32>
    %747 = arith.addf %746, %745 : vector<16x8xf32>
    %c208_584 = arith.constant 208 : index
    %c0_585 = arith.constant 0 : index
    %748 = vector.load %arg15[%c208_584, %c0_585] : memref<256x8xf32, #tpu.memory_space<vmem>>, vector<16x8xf32>
    tpu.vector_store %arg15[%c208_584, %c0_585], %747 {strides = array<i32>} : memref<256x8xf32, #tpu.memory_space<vmem>>, vector<16x8xf32>,
    %c347_586 = arith.constant 347 : index
    %c0_587 = arith.constant 0 : index
    %749 = vector.load %arg14[%c347_586, %c0_587] : memref<408x8xf32, #tpu.memory_space<vmem>>, vector<8x8xf32>
    %c355_588 = arith.constant 355 : index
    %c0_589 = arith.constant 0 : index
    %750 = vector.load %arg14[%c355_588, %c0_589] : memref<408x8xf32, #tpu.memory_space<vmem>>, vector<8x8xf32>
    %cst_590 = arith.constant 2.500000e-01 : f32
    %751 = vector.broadcast %cst_590 : f32 to vector<8x8xf32>
    %752 = arith.mulf %751, %749 : vector<8x8xf32>
    %cst_591 = arith.constant 7.500000e-01 : f32
    %753 = vector.broadcast %cst_591 : f32 to vector<8x8xf32>
    %754 = arith.mulf %753, %750 : vector<8x8xf32>
    %755 = arith.addf %752, %754 : vector<8x8xf32>
    %756 = arith.truncf %755 : vector<8x8xf32> to vector<8x8xbf16>
    %cst_592 = arith.constant dense<0.000000e+00> : vector<16x8xf32>
    %757 = tpu.matmul %4, %756, %cst_592 {dimension_numbers = #tpu.dot_dimension_numbers<[1], [0], [0], [1], [0, 0, 1, 1], [], []>} : vector<16x8xbf16>, vector<8x8xbf16>, vector<16x8xf32> -> vector<16x8xf32>
    %c224_593 = arith.constant 224 : index
    %c0_594 = arith.constant 0 : index
    %758 = vector.load %arg15[%c224_593, %c0_594] : memref<256x8xf32, #tpu.memory_space<vmem>>, vector<16x8xf32>
    %759 = arith.addf %758, %757 : vector<16x8xf32>
    %c224_595 = arith.constant 224 : index
    %c0_596 = arith.constant 0 : index
    %760 = vector.load %arg15[%c224_595, %c0_596] : memref<256x8xf32, #tpu.memory_space<vmem>>, vector<16x8xf32>
    tpu.vector_store %arg15[%c224_595, %c0_596], %759 {strides = array<i32>} : memref<256x8xf32, #tpu.memory_space<vmem>>, vector<16x8xf32>,
    %c355_597 = arith.constant 355 : index
    %c0_598 = arith.constant 0 : index
    %761 = vector.load %arg14[%c355_597, %c0_598] : memref<408x8xf32, #tpu.memory_space<vmem>>, vector<8x8xf32>
    %762 = arith.truncf %761 : vector<8x8xf32> to vector<8x8xbf16>
    %cst_599 = arith.constant dense<0.000000e+00> : vector<16x8xf32>
    %763 = tpu.matmul %4, %762, %cst_599 {dimension_numbers = #tpu.dot_dimension_numbers<[1], [0], [0], [1], [0, 0, 1, 1], [], []>} : vector<16x8xbf16>, vector<8x8xbf16>, vector<16x8xf32> -> vector<16x8xf32>
    %c240_600 = arith.constant 240 : index
    %c0_601 = arith.constant 0 : index
    %764 = vector.load %arg15[%c240_600, %c0_601] : memref<256x8xf32, #tpu.memory_space<vmem>>, vector<16x8xf32>
    %765 = arith.addf %764, %763 : vector<16x8xf32>
    %c240_602 = arith.constant 240 : index
    %c0_603 = arith.constant 0 : index
    %766 = vector.load %arg15[%c240_602, %c0_603] : memref<256x8xf32, #tpu.memory_space<vmem>>, vector<16x8xf32>
    tpu.vector_store %arg15[%c240_602, %c0_603], %765 {strides = array<i32>} : memref<256x8xf32, #tpu.memory_space<vmem>>, vector<16x8xf32>,
    %c0_604 = arith.constant 0 : index
    %c0_605 = arith.constant 0 : index
    %c0_606 = arith.constant 0 : index
    %767 = vector.load %arg4[%c0_604, %c0_605, %c0_606] : memref<1x4x4xf32, #tpu.memory_space<vmem>>, vector<1x4x4xf32>
    %768 = vector.shape_cast %767 : vector<1x4x4xf32> to vector<4x4xf32>
    %c401 = arith.constant 401 : index
    %c0_607 = arith.constant 0 : index
    %769 = vector.load %arg14[%c401, %c0_607] : memref<408x8xf32, #tpu.memory_space<vmem>>, vector<4x4xf32>
    tpu.vector_store %arg14[%c401, %c0_607], %768 {strides = array<i32>} : memref<408x8xf32, #tpu.memory_space<vmem>>, vector<4x4xf32>,
    %770 = tpu.iota {dimensions = array<i32: 0>} : vector<4x1xi32>
    %c1_i32 = arith.constant 1 : i32
    %771 = vector.broadcast %c1_i32 : i32 to vector<4x1xi32>
    %772 = arith.andi %770, %771 : vector<4x1xi32>
    %c0_i32_608 = arith.constant 0 : i32
    %773 = vector.broadcast %c0_i32_608 : i32 to vector<4x1xi32>
    %774 = arith.cmpi sgt, %772, %773 : vector<4x1xi32>
    %775 = arith.extui %774 : vector<4x1xi1> to vector<4x1xi32>
    %776 = arith.sitofp %775 : vector<4x1xi32> to vector<4x1xf32>
    %c1_i32_609 = arith.constant 1 : i32
    %777 = vector.broadcast %c1_i32_609 : i32 to vector<4x1xi32>
    %778 = arith.cmpi slt, %772, %777 : vector<4x1xi32>
    %779 = arith.extui %778 : vector<4x1xi1> to vector<4x1xi32>
    %780 = arith.sitofp %779 : vector<4x1xi32> to vector<4x1xf32>
    %c398 = arith.constant 398 : index
    %c0_610 = arith.constant 0 : index
    %781 = vector.load %arg14[%c398, %c0_610] : memref<408x8xf32, #tpu.memory_space<vmem>>, vector<4x4xf32>
    %782 = vector.broadcast %776 : vector<4x1xf32> to vector<4x4xf32>
    %783 = arith.mulf %781, %782 : vector<4x4xf32>
    %784 = arith.truncf %783 : vector<4x4xf32> to vector<4x4xbf16>
    %c27 = arith.constant 27 : index
    %c0_611 = arith.constant 0 : index
    %c0_612 = arith.constant 0 : index
    %785 = vector.load %arg5[%c27, %c0_611, %c0_612] : memref<36x4x8xbf16, #tpu.memory_space<vmem>>, vector<1x4x8xbf16>
    %786 = vector.shape_cast %785 : vector<1x4x8xbf16> to vector<4x8xbf16>
    %cst_613 = arith.constant dense<0.000000e+00> : vector<4x8xf32>
    %787 = tpu.matmul %784, %786, %cst_613 {dimension_numbers = #tpu.dot_dimension_numbers<[1], [0], [0], [1], [0, 0, 1, 1], [], []>} : vector<4x4xbf16>, vector<4x8xbf16>, vector<4x8xf32> -> vector<4x8xf32>
    %c399 = arith.constant 399 : index
    %c0_614 = arith.constant 0 : index
    %788 = vector.load %arg14[%c399, %c0_614] : memref<408x8xf32, #tpu.memory_space<vmem>>, vector<4x4xf32>
    %789 = arith.truncf %788 : vector<4x4xf32> to vector<4x4xbf16>
    %c28 = arith.constant 28 : index
    %c0_615 = arith.constant 0 : index
    %c0_616 = arith.constant 0 : index
    %790 = vector.load %arg5[%c28, %c0_615, %c0_616] : memref<36x4x8xbf16, #tpu.memory_space<vmem>>, vector<1x4x8xbf16>
    %791 = vector.shape_cast %790 : vector<1x4x8xbf16> to vector<4x8xbf16>
    %cst_617 = arith.constant dense<0.000000e+00> : vector<4x8xf32>
    %792 = tpu.matmul %789, %791, %cst_617 {dimension_numbers = #tpu.dot_dimension_numbers<[1], [0], [0], [1], [0, 0, 1, 1], [], []>} : vector<4x4xbf16>, vector<4x8xbf16>, vector<4x8xf32> -> vector<4x8xf32>
    %793 = arith.addf %787, %792 : vector<4x8xf32>
    %c400 = arith.constant 400 : index
    %c0_618 = arith.constant 0 : index
    %794 = vector.load %arg14[%c400, %c0_618] : memref<408x8xf32, #tpu.memory_space<vmem>>, vector<4x4xf32>
    %795 = vector.broadcast %780 : vector<4x1xf32> to vector<4x4xf32>
    %796 = arith.mulf %794, %795 : vector<4x4xf32>
    %797 = arith.truncf %796 : vector<4x4xf32> to vector<4x4xbf16>
    %c29 = arith.constant 29 : index
    %c0_619 = arith.constant 0 : index
    %c0_620 = arith.constant 0 : index
    %798 = vector.load %arg5[%c29, %c0_619, %c0_620] : memref<36x4x8xbf16, #tpu.memory_space<vmem>>, vector<1x4x8xbf16>
    %799 = vector.shape_cast %798 : vector<1x4x8xbf16> to vector<4x8xbf16>
    %cst_621 = arith.constant dense<0.000000e+00> : vector<4x8xf32>
    %800 = tpu.matmul %797, %799, %cst_621 {dimension_numbers = #tpu.dot_dimension_numbers<[1], [0], [0], [1], [0, 0, 1, 1], [], []>} : vector<4x4xbf16>, vector<4x8xbf16>, vector<4x8xf32> -> vector<4x8xf32>
    %801 = arith.addf %793, %800 : vector<4x8xf32>
    %c400_622 = arith.constant 400 : index
    %c0_623 = arith.constant 0 : index
    %802 = vector.load %arg14[%c400_622, %c0_623] : memref<408x8xf32, #tpu.memory_space<vmem>>, vector<4x4xf32>
    %803 = vector.broadcast %776 : vector<4x1xf32> to vector<4x4xf32>
    %804 = arith.mulf %802, %803 : vector<4x4xf32>
    %805 = arith.truncf %804 : vector<4x4xf32> to vector<4x4xbf16>
    %c30 = arith.constant 30 : index
    %c0_624 = arith.constant 0 : index
    %c0_625 = arith.constant 0 : index
    %806 = vector.load %arg5[%c30, %c0_624, %c0_625] : memref<36x4x8xbf16, #tpu.memory_space<vmem>>, vector<1x4x8xbf16>
    %807 = vector.shape_cast %806 : vector<1x4x8xbf16> to vector<4x8xbf16>
    %cst_626 = arith.constant dense<0.000000e+00> : vector<4x8xf32>
    %808 = tpu.matmul %805, %807, %cst_626 {dimension_numbers = #tpu.dot_dimension_numbers<[1], [0], [0], [1], [0, 0, 1, 1], [], []>} : vector<4x4xbf16>, vector<4x8xbf16>, vector<4x8xf32> -> vector<4x8xf32>
    %809 = arith.addf %801, %808 : vector<4x8xf32>
    %c401_627 = arith.constant 401 : index
    %c0_628 = arith.constant 0 : index
    %810 = vector.load %arg14[%c401_627, %c0_628] : memref<408x8xf32, #tpu.memory_space<vmem>>, vector<4x4xf32>
    %811 = arith.truncf %810 : vector<4x4xf32> to vector<4x4xbf16>
    %c31 = arith.constant 31 : index
    %c0_629 = arith.constant 0 : index
    %c0_630 = arith.constant 0 : index
    %812 = vector.load %arg5[%c31, %c0_629, %c0_630] : memref<36x4x8xbf16, #tpu.memory_space<vmem>>, vector<1x4x8xbf16>
    %813 = vector.shape_cast %812 : vector<1x4x8xbf16> to vector<4x8xbf16>
    %cst_631 = arith.constant dense<0.000000e+00> : vector<4x8xf32>
    %814 = tpu.matmul %811, %813, %cst_631 {dimension_numbers = #tpu.dot_dimension_numbers<[1], [0], [0], [1], [0, 0, 1, 1], [], []>} : vector<4x4xbf16>, vector<4x8xbf16>, vector<4x8xf32> -> vector<4x8xf32>
    %815 = arith.addf %809, %814 : vector<4x8xf32>
    %c402 = arith.constant 402 : index
    %c0_632 = arith.constant 0 : index
    %816 = vector.load %arg14[%c402, %c0_632] : memref<408x8xf32, #tpu.memory_space<vmem>>, vector<4x4xf32>
    %817 = vector.broadcast %780 : vector<4x1xf32> to vector<4x4xf32>
    %818 = arith.mulf %816, %817 : vector<4x4xf32>
    %819 = arith.truncf %818 : vector<4x4xf32> to vector<4x4xbf16>
    %c32_633 = arith.constant 32 : index
    %c0_634 = arith.constant 0 : index
    %c0_635 = arith.constant 0 : index
    %820 = vector.load %arg5[%c32_633, %c0_634, %c0_635] : memref<36x4x8xbf16, #tpu.memory_space<vmem>>, vector<1x4x8xbf16>
    %821 = vector.shape_cast %820 : vector<1x4x8xbf16> to vector<4x8xbf16>
    %cst_636 = arith.constant dense<0.000000e+00> : vector<4x8xf32>
    %822 = tpu.matmul %819, %821, %cst_636 {dimension_numbers = #tpu.dot_dimension_numbers<[1], [0], [0], [1], [0, 0, 1, 1], [], []>} : vector<4x4xbf16>, vector<4x8xbf16>, vector<4x8xf32> -> vector<4x8xf32>
    %823 = arith.addf %815, %822 : vector<4x8xf32>
    %c402_637 = arith.constant 402 : index
    %c0_638 = arith.constant 0 : index
    %824 = vector.load %arg14[%c402_637, %c0_638] : memref<408x8xf32, #tpu.memory_space<vmem>>, vector<4x4xf32>
    %825 = vector.broadcast %776 : vector<4x1xf32> to vector<4x4xf32>
    %826 = arith.mulf %824, %825 : vector<4x4xf32>
    %827 = arith.truncf %826 : vector<4x4xf32> to vector<4x4xbf16>
    %c33_639 = arith.constant 33 : index
    %c0_640 = arith.constant 0 : index
    %c0_641 = arith.constant 0 : index
    %828 = vector.load %arg5[%c33_639, %c0_640, %c0_641] : memref<36x4x8xbf16, #tpu.memory_space<vmem>>, vector<1x4x8xbf16>
    %829 = vector.shape_cast %828 : vector<1x4x8xbf16> to vector<4x8xbf16>
    %cst_642 = arith.constant dense<0.000000e+00> : vector<4x8xf32>
    %830 = tpu.matmul %827, %829, %cst_642 {dimension_numbers = #tpu.dot_dimension_numbers<[1], [0], [0], [1], [0, 0, 1, 1], [], []>} : vector<4x4xbf16>, vector<4x8xbf16>, vector<4x8xf32> -> vector<4x8xf32>
    %831 = arith.addf %823, %830 : vector<4x8xf32>
    %c403 = arith.constant 403 : index
    %c0_643 = arith.constant 0 : index
    %832 = vector.load %arg14[%c403, %c0_643] : memref<408x8xf32, #tpu.memory_space<vmem>>, vector<4x4xf32>
    %833 = arith.truncf %832 : vector<4x4xf32> to vector<4x4xbf16>
    %c34_644 = arith.constant 34 : index
    %c0_645 = arith.constant 0 : index
    %c0_646 = arith.constant 0 : index
    %834 = vector.load %arg5[%c34_644, %c0_645, %c0_646] : memref<36x4x8xbf16, #tpu.memory_space<vmem>>, vector<1x4x8xbf16>
    %835 = vector.shape_cast %834 : vector<1x4x8xbf16> to vector<4x8xbf16>
    %cst_647 = arith.constant dense<0.000000e+00> : vector<4x8xf32>
    %836 = tpu.matmul %833, %835, %cst_647 {dimension_numbers = #tpu.dot_dimension_numbers<[1], [0], [0], [1], [0, 0, 1, 1], [], []>} : vector<4x4xbf16>, vector<4x8xbf16>, vector<4x8xf32> -> vector<4x8xf32>
    %837 = arith.addf %831, %836 : vector<4x8xf32>
    %c404 = arith.constant 404 : index
    %c0_648 = arith.constant 0 : index
    %838 = vector.load %arg14[%c404, %c0_648] : memref<408x8xf32, #tpu.memory_space<vmem>>, vector<4x4xf32>
    %839 = vector.broadcast %780 : vector<4x1xf32> to vector<4x4xf32>
    %840 = arith.mulf %838, %839 : vector<4x4xf32>
    %841 = arith.truncf %840 : vector<4x4xf32> to vector<4x4xbf16>
    %c35 = arith.constant 35 : index
    %c0_649 = arith.constant 0 : index
    %c0_650 = arith.constant 0 : index
    %842 = vector.load %arg5[%c35, %c0_649, %c0_650] : memref<36x4x8xbf16, #tpu.memory_space<vmem>>, vector<1x4x8xbf16>
    %843 = vector.shape_cast %842 : vector<1x4x8xbf16> to vector<4x8xbf16>
    %cst_651 = arith.constant dense<0.000000e+00> : vector<4x8xf32>
    %844 = tpu.matmul %841, %843, %cst_651 {dimension_numbers = #tpu.dot_dimension_numbers<[1], [0], [0], [1], [0, 0, 1, 1], [], []>} : vector<4x4xbf16>, vector<4x8xbf16>, vector<4x8xf32> -> vector<4x8xf32>
    %845 = arith.addf %837, %844 : vector<4x8xf32>
    %c4_652 = arith.constant 4 : index
    %c0_653 = arith.constant 0 : index
    %c0_654 = arith.constant 0 : index
    %846 = vector.load %arg7[%c4_652, %c0_653, %c0_654] : memref<7x1x8xf32, #tpu.memory_space<vmem>>, vector<1x1x8xf32>
    %847 = vector.shape_cast %846 : vector<1x1x8xf32> to vector<1x8xf32>
    %848 = vector.broadcast %847 : vector<1x8xf32> to vector<4x8xf32>
    %849 = arith.addf %845, %848 : vector<4x8xf32>
    %cst_655 = arith.constant 0.000000e+00 : f32
    %850 = vector.broadcast %cst_655 : f32 to vector<4x8xf32>
    %851 = arith.maximumf %849, %850 : vector<4x8xf32>
    %c401_656 = arith.constant 401 : index
    %c0_657 = arith.constant 0 : index
    %852 = vector.load %arg14[%c401_656, %c0_657] : memref<408x8xf32, #tpu.memory_space<vmem>>, vector<4x8xf32>
    tpu.vector_store %arg14[%c401_656, %c0_657], %851 {strides = array<i32>} : memref<408x8xf32, #tpu.memory_space<vmem>>, vector<4x8xf32>,
    %c401_658 = arith.constant 401 : index
    %c0_659 = arith.constant 0 : index
    %853 = vector.load %arg14[%c401_658, %c0_659] : memref<408x8xf32, #tpu.memory_space<vmem>>, vector<2x8xf32>
    %854 = arith.truncf %853 : vector<2x8xf32> to vector<2x8xbf16>
    %cst_660 = arith.constant dense<0.000000e+00> : vector<4x8xf32>
    %855 = tpu.matmul %6, %854, %cst_660 {dimension_numbers = #tpu.dot_dimension_numbers<[1], [0], [0], [1], [0, 0, 1, 1], [], []>} : vector<4x2xbf16>, vector<2x8xbf16>, vector<4x8xf32> -> vector<4x8xf32>
    %c377_661 = arith.constant 377 : index
    %c0_662 = arith.constant 0 : index
    %856 = vector.load %arg14[%c377_661, %c0_662] : memref<408x8xf32, #tpu.memory_space<vmem>>, vector<4x8xf32>
    tpu.vector_store %arg14[%c377_661, %c0_662], %855 {strides = array<i32>} : memref<408x8xf32, #tpu.memory_space<vmem>>, vector<4x8xf32>,
    %c401_663 = arith.constant 401 : index
    %c0_664 = arith.constant 0 : index
    %857 = vector.load %arg14[%c401_663, %c0_664] : memref<408x8xf32, #tpu.memory_space<vmem>>, vector<2x8xf32>
    %c403_665 = arith.constant 403 : index
    %c0_666 = arith.constant 0 : index
    %858 = vector.load %arg14[%c403_665, %c0_666] : memref<408x8xf32, #tpu.memory_space<vmem>>, vector<2x8xf32>
    %cst_667 = arith.constant 7.500000e-01 : f32
    %859 = vector.broadcast %cst_667 : f32 to vector<2x8xf32>
    %860 = arith.mulf %859, %857 : vector<2x8xf32>
    %cst_668 = arith.constant 2.500000e-01 : f32
    %861 = vector.broadcast %cst_668 : f32 to vector<2x8xf32>
    %862 = arith.mulf %861, %858 : vector<2x8xf32>
    %863 = arith.addf %860, %862 : vector<2x8xf32>
    %864 = arith.truncf %863 : vector<2x8xf32> to vector<2x8xbf16>
    %cst_669 = arith.constant dense<0.000000e+00> : vector<4x8xf32>
    %865 = tpu.matmul %6, %864, %cst_669 {dimension_numbers = #tpu.dot_dimension_numbers<[1], [0], [0], [1], [0, 0, 1, 1], [], []>} : vector<4x2xbf16>, vector<2x8xbf16>, vector<4x8xf32> -> vector<4x8xf32>
    %c381_670 = arith.constant 381 : index
    %c0_671 = arith.constant 0 : index
    %866 = vector.load %arg14[%c381_670, %c0_671] : memref<408x8xf32, #tpu.memory_space<vmem>>, vector<4x8xf32>
    tpu.vector_store %arg14[%c381_670, %c0_671], %865 {strides = array<i32>} : memref<408x8xf32, #tpu.memory_space<vmem>>, vector<4x8xf32>,
    %c401_672 = arith.constant 401 : index
    %c0_673 = arith.constant 0 : index
    %867 = vector.load %arg14[%c401_672, %c0_673] : memref<408x8xf32, #tpu.memory_space<vmem>>, vector<2x8xf32>
    %c403_674 = arith.constant 403 : index
    %c0_675 = arith.constant 0 : index
    %868 = vector.load %arg14[%c403_674, %c0_675] : memref<408x8xf32, #tpu.memory_space<vmem>>, vector<2x8xf32>
    %cst_676 = arith.constant 2.500000e-01 : f32
    %869 = vector.broadcast %cst_676 : f32 to vector<2x8xf32>
    %870 = arith.mulf %869, %867 : vector<2x8xf32>
    %cst_677 = arith.constant 7.500000e-01 : f32
    %871 = vector.broadcast %cst_677 : f32 to vector<2x8xf32>
    %872 = arith.mulf %871, %868 : vector<2x8xf32>
    %873 = arith.addf %870, %872 : vector<2x8xf32>
    %874 = arith.truncf %873 : vector<2x8xf32> to vector<2x8xbf16>
    %cst_678 = arith.constant dense<0.000000e+00> : vector<4x8xf32>
    %875 = tpu.matmul %6, %874, %cst_678 {dimension_numbers = #tpu.dot_dimension_numbers<[1], [0], [0], [1], [0, 0, 1, 1], [], []>} : vector<4x2xbf16>, vector<2x8xbf16>, vector<4x8xf32> -> vector<4x8xf32>
    %c385_679 = arith.constant 385 : index
    %c0_680 = arith.constant 0 : index
    %876 = vector.load %arg14[%c385_679, %c0_680] : memref<408x8xf32, #tpu.memory_space<vmem>>, vector<4x8xf32>
    tpu.vector_store %arg14[%c385_679, %c0_680], %875 {strides = array<i32>} : memref<408x8xf32, #tpu.memory_space<vmem>>, vector<4x8xf32>,
    %c403_681 = arith.constant 403 : index
    %c0_682 = arith.constant 0 : index
    %877 = vector.load %arg14[%c403_681, %c0_682] : memref<408x8xf32, #tpu.memory_space<vmem>>, vector<2x8xf32>
    %878 = arith.truncf %877 : vector<2x8xf32> to vector<2x8xbf16>
    %cst_683 = arith.constant dense<0.000000e+00> : vector<4x8xf32>
    %879 = tpu.matmul %6, %878, %cst_683 {dimension_numbers = #tpu.dot_dimension_numbers<[1], [0], [0], [1], [0, 0, 1, 1], [], []>} : vector<4x2xbf16>, vector<2x8xbf16>, vector<4x8xf32> -> vector<4x8xf32>
    %c389_684 = arith.constant 389 : index
    %c0_685 = arith.constant 0 : index
    %880 = vector.load %arg14[%c389_684, %c0_685] : memref<408x8xf32, #tpu.memory_space<vmem>>, vector<4x8xf32>
    tpu.vector_store %arg14[%c389_684, %c0_685], %879 {strides = array<i32>} : memref<408x8xf32, #tpu.memory_space<vmem>>, vector<4x8xf32>,
    %c372_686 = arith.constant 372 : index
    %c0_687 = arith.constant 0 : index
    %881 = vector.load %arg14[%c372_686, %c0_687] : memref<408x8xf32, #tpu.memory_space<vmem>>, vector<16x8xf32>
    %882 = vector.broadcast %370 : vector<16x1xf32> to vector<16x8xf32>
    %883 = arith.mulf %881, %882 : vector<16x8xf32>
    %884 = arith.truncf %883 : vector<16x8xf32> to vector<16x8xbf16>
    %c9_688 = arith.constant 9 : index
    %c0_689 = arith.constant 0 : index
    %c0_690 = arith.constant 0 : index
    %885 = vector.load %arg6[%c9_688, %c0_689, %c0_690] : memref<27x8x8xbf16, #tpu.memory_space<vmem>>, vector<1x8x8xbf16>
    %886 = vector.shape_cast %885 : vector<1x8x8xbf16> to vector<8x8xbf16>
    %cst_691 = arith.constant dense<0.000000e+00> : vector<16x8xf32>
    %887 = tpu.matmul %884, %886, %cst_691 {dimension_numbers = #tpu.dot_dimension_numbers<[1], [0], [0], [1], [0, 0, 1, 1], [], []>} : vector<16x8xbf16>, vector<8x8xbf16>, vector<16x8xf32> -> vector<16x8xf32>
    %c373_692 = arith.constant 373 : index
    %c0_693 = arith.constant 0 : index
    %888 = vector.load %arg14[%c373_692, %c0_693] : memref<408x8xf32, #tpu.memory_space<vmem>>, vector<16x8xf32>
    %889 = arith.truncf %888 : vector<16x8xf32> to vector<16x8xbf16>
    %c10_694 = arith.constant 10 : index
    %c0_695 = arith.constant 0 : index
    %c0_696 = arith.constant 0 : index
    %890 = vector.load %arg6[%c10_694, %c0_695, %c0_696] : memref<27x8x8xbf16, #tpu.memory_space<vmem>>, vector<1x8x8xbf16>
    %891 = vector.shape_cast %890 : vector<1x8x8xbf16> to vector<8x8xbf16>
    %cst_697 = arith.constant dense<0.000000e+00> : vector<16x8xf32>
    %892 = tpu.matmul %889, %891, %cst_697 {dimension_numbers = #tpu.dot_dimension_numbers<[1], [0], [0], [1], [0, 0, 1, 1], [], []>} : vector<16x8xbf16>, vector<8x8xbf16>, vector<16x8xf32> -> vector<16x8xf32>
    %893 = arith.addf %887, %892 : vector<16x8xf32>
    %c374_698 = arith.constant 374 : index
    %c0_699 = arith.constant 0 : index
    %894 = vector.load %arg14[%c374_698, %c0_699] : memref<408x8xf32, #tpu.memory_space<vmem>>, vector<16x8xf32>
    %895 = vector.broadcast %374 : vector<16x1xf32> to vector<16x8xf32>
    %896 = arith.mulf %894, %895 : vector<16x8xf32>
    %897 = arith.truncf %896 : vector<16x8xf32> to vector<16x8xbf16>
    %c11_700 = arith.constant 11 : index
    %c0_701 = arith.constant 0 : index
    %c0_702 = arith.constant 0 : index
    %898 = vector.load %arg6[%c11_700, %c0_701, %c0_702] : memref<27x8x8xbf16, #tpu.memory_space<vmem>>, vector<1x8x8xbf16>
    %899 = vector.shape_cast %898 : vector<1x8x8xbf16> to vector<8x8xbf16>
    %cst_703 = arith.constant dense<0.000000e+00> : vector<16x8xf32>
    %900 = tpu.matmul %897, %899, %cst_703 {dimension_numbers = #tpu.dot_dimension_numbers<[1], [0], [0], [1], [0, 0, 1, 1], [], []>} : vector<16x8xbf16>, vector<8x8xbf16>, vector<16x8xf32> -> vector<16x8xf32>
    %901 = arith.addf %893, %900 : vector<16x8xf32>
    %c376_704 = arith.constant 376 : index
    %c0_705 = arith.constant 0 : index
    %902 = vector.load %arg14[%c376_704, %c0_705] : memref<408x8xf32, #tpu.memory_space<vmem>>, vector<16x8xf32>
    %903 = vector.broadcast %370 : vector<16x1xf32> to vector<16x8xf32>
    %904 = arith.mulf %902, %903 : vector<16x8xf32>
    %905 = arith.truncf %904 : vector<16x8xf32> to vector<16x8xbf16>
    %c12_706 = arith.constant 12 : index
    %c0_707 = arith.constant 0 : index
    %c0_708 = arith.constant 0 : index
    %906 = vector.load %arg6[%c12_706, %c0_707, %c0_708] : memref<27x8x8xbf16, #tpu.memory_space<vmem>>, vector<1x8x8xbf16>
    %907 = vector.shape_cast %906 : vector<1x8x8xbf16> to vector<8x8xbf16>
    %cst_709 = arith.constant dense<0.000000e+00> : vector<16x8xf32>
    %908 = tpu.matmul %905, %907, %cst_709 {dimension_numbers = #tpu.dot_dimension_numbers<[1], [0], [0], [1], [0, 0, 1, 1], [], []>} : vector<16x8xbf16>, vector<8x8xbf16>, vector<16x8xf32> -> vector<16x8xf32>
    %909 = arith.addf %901, %908 : vector<16x8xf32>
    %c377_710 = arith.constant 377 : index
    %c0_711 = arith.constant 0 : index
    %910 = vector.load %arg14[%c377_710, %c0_711] : memref<408x8xf32, #tpu.memory_space<vmem>>, vector<16x8xf32>
    %911 = arith.truncf %910 : vector<16x8xf32> to vector<16x8xbf16>
    %c13_712 = arith.constant 13 : index
    %c0_713 = arith.constant 0 : index
    %c0_714 = arith.constant 0 : index
    %912 = vector.load %arg6[%c13_712, %c0_713, %c0_714] : memref<27x8x8xbf16, #tpu.memory_space<vmem>>, vector<1x8x8xbf16>
    %913 = vector.shape_cast %912 : vector<1x8x8xbf16> to vector<8x8xbf16>
    %cst_715 = arith.constant dense<0.000000e+00> : vector<16x8xf32>
    %914 = tpu.matmul %911, %913, %cst_715 {dimension_numbers = #tpu.dot_dimension_numbers<[1], [0], [0], [1], [0, 0, 1, 1], [], []>} : vector<16x8xbf16>, vector<8x8xbf16>, vector<16x8xf32> -> vector<16x8xf32>
    %915 = arith.addf %909, %914 : vector<16x8xf32>
    %c378_716 = arith.constant 378 : index
    %c0_717 = arith.constant 0 : index
    %916 = vector.load %arg14[%c378_716, %c0_717] : memref<408x8xf32, #tpu.memory_space<vmem>>, vector<16x8xf32>
    %917 = vector.broadcast %374 : vector<16x1xf32> to vector<16x8xf32>
    %918 = arith.mulf %916, %917 : vector<16x8xf32>
    %919 = arith.truncf %918 : vector<16x8xf32> to vector<16x8xbf16>
    %c14_718 = arith.constant 14 : index
    %c0_719 = arith.constant 0 : index
    %c0_720 = arith.constant 0 : index
    %920 = vector.load %arg6[%c14_718, %c0_719, %c0_720] : memref<27x8x8xbf16, #tpu.memory_space<vmem>>, vector<1x8x8xbf16>
    %921 = vector.shape_cast %920 : vector<1x8x8xbf16> to vector<8x8xbf16>
    %cst_721 = arith.constant dense<0.000000e+00> : vector<16x8xf32>
    %922 = tpu.matmul %919, %921, %cst_721 {dimension_numbers = #tpu.dot_dimension_numbers<[1], [0], [0], [1], [0, 0, 1, 1], [], []>} : vector<16x8xbf16>, vector<8x8xbf16>, vector<16x8xf32> -> vector<16x8xf32>
    %923 = arith.addf %915, %922 : vector<16x8xf32>
    %c380_722 = arith.constant 380 : index
    %c0_723 = arith.constant 0 : index
    %924 = vector.load %arg14[%c380_722, %c0_723] : memref<408x8xf32, #tpu.memory_space<vmem>>, vector<16x8xf32>
    %925 = vector.broadcast %370 : vector<16x1xf32> to vector<16x8xf32>
    %926 = arith.mulf %924, %925 : vector<16x8xf32>
    %927 = arith.truncf %926 : vector<16x8xf32> to vector<16x8xbf16>
    %c15_724 = arith.constant 15 : index
    %c0_725 = arith.constant 0 : index
    %c0_726 = arith.constant 0 : index
    %928 = vector.load %arg6[%c15_724, %c0_725, %c0_726] : memref<27x8x8xbf16, #tpu.memory_space<vmem>>, vector<1x8x8xbf16>
    %929 = vector.shape_cast %928 : vector<1x8x8xbf16> to vector<8x8xbf16>
    %cst_727 = arith.constant dense<0.000000e+00> : vector<16x8xf32>
    %930 = tpu.matmul %927, %929, %cst_727 {dimension_numbers = #tpu.dot_dimension_numbers<[1], [0], [0], [1], [0, 0, 1, 1], [], []>} : vector<16x8xbf16>, vector<8x8xbf16>, vector<16x8xf32> -> vector<16x8xf32>
    %931 = arith.addf %923, %930 : vector<16x8xf32>
    %c381_728 = arith.constant 381 : index
    %c0_729 = arith.constant 0 : index
    %932 = vector.load %arg14[%c381_728, %c0_729] : memref<408x8xf32, #tpu.memory_space<vmem>>, vector<16x8xf32>
    %933 = arith.truncf %932 : vector<16x8xf32> to vector<16x8xbf16>
    %c16_730 = arith.constant 16 : index
    %c0_731 = arith.constant 0 : index
    %c0_732 = arith.constant 0 : index
    %934 = vector.load %arg6[%c16_730, %c0_731, %c0_732] : memref<27x8x8xbf16, #tpu.memory_space<vmem>>, vector<1x8x8xbf16>
    %935 = vector.shape_cast %934 : vector<1x8x8xbf16> to vector<8x8xbf16>
    %cst_733 = arith.constant dense<0.000000e+00> : vector<16x8xf32>
    %936 = tpu.matmul %933, %935, %cst_733 {dimension_numbers = #tpu.dot_dimension_numbers<[1], [0], [0], [1], [0, 0, 1, 1], [], []>} : vector<16x8xbf16>, vector<8x8xbf16>, vector<16x8xf32> -> vector<16x8xf32>
    %937 = arith.addf %931, %936 : vector<16x8xf32>
    %c382_734 = arith.constant 382 : index
    %c0_735 = arith.constant 0 : index
    %938 = vector.load %arg14[%c382_734, %c0_735] : memref<408x8xf32, #tpu.memory_space<vmem>>, vector<16x8xf32>
    %939 = vector.broadcast %374 : vector<16x1xf32> to vector<16x8xf32>
    %940 = arith.mulf %938, %939 : vector<16x8xf32>
    %941 = arith.truncf %940 : vector<16x8xf32> to vector<16x8xbf16>
    %c17_736 = arith.constant 17 : index
    %c0_737 = arith.constant 0 : index
    %c0_738 = arith.constant 0 : index
    %942 = vector.load %arg6[%c17_736, %c0_737, %c0_738] : memref<27x8x8xbf16, #tpu.memory_space<vmem>>, vector<1x8x8xbf16>
    %943 = vector.shape_cast %942 : vector<1x8x8xbf16> to vector<8x8xbf16>
    %cst_739 = arith.constant dense<0.000000e+00> : vector<16x8xf32>
    %944 = tpu.matmul %941, %943, %cst_739 {dimension_numbers = #tpu.dot_dimension_numbers<[1], [0], [0], [1], [0, 0, 1, 1], [], []>} : vector<16x8xbf16>, vector<8x8xbf16>, vector<16x8xf32> -> vector<16x8xf32>
    %945 = arith.addf %937, %944 : vector<16x8xf32>
    %c5_740 = arith.constant 5 : index
    %c0_741 = arith.constant 0 : index
    %c0_742 = arith.constant 0 : index
    %946 = vector.load %arg7[%c5_740, %c0_741, %c0_742] : memref<7x1x8xf32, #tpu.memory_space<vmem>>, vector<1x1x8xf32>
    %947 = vector.shape_cast %946 : vector<1x1x8xf32> to vector<1x8xf32>
    %948 = vector.broadcast %947 : vector<1x8xf32> to vector<16x8xf32>
    %949 = arith.addf %945, %948 : vector<16x8xf32>
    %cst_743 = arith.constant 0.000000e+00 : f32
    %950 = vector.broadcast %cst_743 : f32 to vector<16x8xf32>
    %951 = arith.maximumf %949, %950 : vector<16x8xf32>
    %c377_744 = arith.constant 377 : index
    %c0_745 = arith.constant 0 : index
    %952 = vector.load %arg14[%c377_744, %c0_745] : memref<408x8xf32, #tpu.memory_space<vmem>>, vector<16x8xf32>
    tpu.vector_store %arg14[%c377_744, %c0_745], %951 {strides = array<i32>} : memref<408x8xf32, #tpu.memory_space<vmem>>, vector<16x8xf32>,
    %c377_746 = arith.constant 377 : index
    %c0_747 = arith.constant 0 : index
    %953 = vector.load %arg14[%c377_746, %c0_747] : memref<408x8xf32, #tpu.memory_space<vmem>>, vector<4x8xf32>
    %954 = arith.truncf %953 : vector<4x8xf32> to vector<4x8xbf16>
    %cst_748 = arith.constant dense<0.000000e+00> : vector<8x8xf32>
    %955 = tpu.matmul %5, %954, %cst_748 {dimension_numbers = #tpu.dot_dimension_numbers<[1], [0], [0], [1], [0, 0, 1, 1], [], []>} : vector<8x4xbf16>, vector<4x8xbf16>, vector<8x8xf32> -> vector<8x8xf32>
    %c299_749 = arith.constant 299 : index
    %c0_750 = arith.constant 0 : index
    %956 = vector.load %arg14[%c299_749, %c0_750] : memref<408x8xf32, #tpu.memory_space<vmem>>, vector<8x8xf32>
    tpu.vector_store %arg14[%c299_749, %c0_750], %955 {strides = array<i32>} : memref<408x8xf32, #tpu.memory_space<vmem>>, vector<8x8xf32>,
    %c377_751 = arith.constant 377 : index
    %c0_752 = arith.constant 0 : index
    %957 = vector.load %arg14[%c377_751, %c0_752] : memref<408x8xf32, #tpu.memory_space<vmem>>, vector<4x8xf32>
    %c381_753 = arith.constant 381 : index
    %c0_754 = arith.constant 0 : index
    %958 = vector.load %arg14[%c381_753, %c0_754] : memref<408x8xf32, #tpu.memory_space<vmem>>, vector<4x8xf32>
    %cst_755 = arith.constant 7.500000e-01 : f32
    %959 = vector.broadcast %cst_755 : f32 to vector<4x8xf32>
    %960 = arith.mulf %959, %957 : vector<4x8xf32>
    %cst_756 = arith.constant 2.500000e-01 : f32
    %961 = vector.broadcast %cst_756 : f32 to vector<4x8xf32>
    %962 = arith.mulf %961, %958 : vector<4x8xf32>
    %963 = arith.addf %960, %962 : vector<4x8xf32>
    %964 = arith.truncf %963 : vector<4x8xf32> to vector<4x8xbf16>
    %cst_757 = arith.constant dense<0.000000e+00> : vector<8x8xf32>
    %965 = tpu.matmul %5, %964, %cst_757 {dimension_numbers = #tpu.dot_dimension_numbers<[1], [0], [0], [1], [0, 0, 1, 1], [], []>} : vector<8x4xbf16>, vector<4x8xbf16>, vector<8x8xf32> -> vector<8x8xf32>
    %c307_758 = arith.constant 307 : index
    %c0_759 = arith.constant 0 : index
    %966 = vector.load %arg14[%c307_758, %c0_759] : memref<408x8xf32, #tpu.memory_space<vmem>>, vector<8x8xf32>
    tpu.vector_store %arg14[%c307_758, %c0_759], %965 {strides = array<i32>} : memref<408x8xf32, #tpu.memory_space<vmem>>, vector<8x8xf32>,
    %c377_760 = arith.constant 377 : index
    %c0_761 = arith.constant 0 : index
    %967 = vector.load %arg14[%c377_760, %c0_761] : memref<408x8xf32, #tpu.memory_space<vmem>>, vector<4x8xf32>
    %c381_762 = arith.constant 381 : index
    %c0_763 = arith.constant 0 : index
    %968 = vector.load %arg14[%c381_762, %c0_763] : memref<408x8xf32, #tpu.memory_space<vmem>>, vector<4x8xf32>
    %cst_764 = arith.constant 2.500000e-01 : f32
    %969 = vector.broadcast %cst_764 : f32 to vector<4x8xf32>
    %970 = arith.mulf %969, %967 : vector<4x8xf32>
    %cst_765 = arith.constant 7.500000e-01 : f32
    %971 = vector.broadcast %cst_765 : f32 to vector<4x8xf32>
    %972 = arith.mulf %971, %968 : vector<4x8xf32>
    %973 = arith.addf %970, %972 : vector<4x8xf32>
    %974 = arith.truncf %973 : vector<4x8xf32> to vector<4x8xbf16>
    %cst_766 = arith.constant dense<0.000000e+00> : vector<8x8xf32>
    %975 = tpu.matmul %5, %974, %cst_766 {dimension_numbers = #tpu.dot_dimension_numbers<[1], [0], [0], [1], [0, 0, 1, 1], [], []>} : vector<8x4xbf16>, vector<4x8xbf16>, vector<8x8xf32> -> vector<8x8xf32>
    %c315_767 = arith.constant 315 : index
    %c0_768 = arith.constant 0 : index
    %976 = vector.load %arg14[%c315_767, %c0_768] : memref<408x8xf32, #tpu.memory_space<vmem>>, vector<8x8xf32>
    tpu.vector_store %arg14[%c315_767, %c0_768], %975 {strides = array<i32>} : memref<408x8xf32, #tpu.memory_space<vmem>>, vector<8x8xf32>,
    %c381_769 = arith.constant 381 : index
    %c0_770 = arith.constant 0 : index
    %977 = vector.load %arg14[%c381_769, %c0_770] : memref<408x8xf32, #tpu.memory_space<vmem>>, vector<4x8xf32>
    %c385_771 = arith.constant 385 : index
    %c0_772 = arith.constant 0 : index
    %978 = vector.load %arg14[%c385_771, %c0_772] : memref<408x8xf32, #tpu.memory_space<vmem>>, vector<4x8xf32>
    %cst_773 = arith.constant 7.500000e-01 : f32
    %979 = vector.broadcast %cst_773 : f32 to vector<4x8xf32>
    %980 = arith.mulf %979, %977 : vector<4x8xf32>
    %cst_774 = arith.constant 2.500000e-01 : f32
    %981 = vector.broadcast %cst_774 : f32 to vector<4x8xf32>
    %982 = arith.mulf %981, %978 : vector<4x8xf32>
    %983 = arith.addf %980, %982 : vector<4x8xf32>
    %984 = arith.truncf %983 : vector<4x8xf32> to vector<4x8xbf16>
    %cst_775 = arith.constant dense<0.000000e+00> : vector<8x8xf32>
    %985 = tpu.matmul %5, %984, %cst_775 {dimension_numbers = #tpu.dot_dimension_numbers<[1], [0], [0], [1], [0, 0, 1, 1], [], []>} : vector<8x4xbf16>, vector<4x8xbf16>, vector<8x8xf32> -> vector<8x8xf32>
    %c323_776 = arith.constant 323 : index
    %c0_777 = arith.constant 0 : index
    %986 = vector.load %arg14[%c323_776, %c0_777] : memref<408x8xf32, #tpu.memory_space<vmem>>, vector<8x8xf32>
    tpu.vector_store %arg14[%c323_776, %c0_777], %985 {strides = array<i32>} : memref<408x8xf32, #tpu.memory_space<vmem>>, vector<8x8xf32>,
    %c381_778 = arith.constant 381 : index
    %c0_779 = arith.constant 0 : index
    %987 = vector.load %arg14[%c381_778, %c0_779] : memref<408x8xf32, #tpu.memory_space<vmem>>, vector<4x8xf32>
    %c385_780 = arith.constant 385 : index
    %c0_781 = arith.constant 0 : index
    %988 = vector.load %arg14[%c385_780, %c0_781] : memref<408x8xf32, #tpu.memory_space<vmem>>, vector<4x8xf32>
    %cst_782 = arith.constant 2.500000e-01 : f32
    %989 = vector.broadcast %cst_782 : f32 to vector<4x8xf32>
    %990 = arith.mulf %989, %987 : vector<4x8xf32>
    %cst_783 = arith.constant 7.500000e-01 : f32
    %991 = vector.broadcast %cst_783 : f32 to vector<4x8xf32>
    %992 = arith.mulf %991, %988 : vector<4x8xf32>
    %993 = arith.addf %990, %992 : vector<4x8xf32>
    %994 = arith.truncf %993 : vector<4x8xf32> to vector<4x8xbf16>
    %cst_784 = arith.constant dense<0.000000e+00> : vector<8x8xf32>
    %995 = tpu.matmul %5, %994, %cst_784 {dimension_numbers = #tpu.dot_dimension_numbers<[1], [0], [0], [1], [0, 0, 1, 1], [], []>} : vector<8x4xbf16>, vector<4x8xbf16>, vector<8x8xf32> -> vector<8x8xf32>
    %c331_785 = arith.constant 331 : index
    %c0_786 = arith.constant 0 : index
    %996 = vector.load %arg14[%c331_785, %c0_786] : memref<408x8xf32, #tpu.memory_space<vmem>>, vector<8x8xf32>
    tpu.vector_store %arg14[%c331_785, %c0_786], %995 {strides = array<i32>} : memref<408x8xf32, #tpu.memory_space<vmem>>, vector<8x8xf32>,
    %c385_787 = arith.constant 385 : index
    %c0_788 = arith.constant 0 : index
    %997 = vector.load %arg14[%c385_787, %c0_788] : memref<408x8xf32, #tpu.memory_space<vmem>>, vector<4x8xf32>
    %c389_789 = arith.constant 389 : index
    %c0_790 = arith.constant 0 : index
    %998 = vector.load %arg14[%c389_789, %c0_790] : memref<408x8xf32, #tpu.memory_space<vmem>>, vector<4x8xf32>
    %cst_791 = arith.constant 7.500000e-01 : f32
    %999 = vector.broadcast %cst_791 : f32 to vector<4x8xf32>
    %1000 = arith.mulf %999, %997 : vector<4x8xf32>
    %cst_792 = arith.constant 2.500000e-01 : f32
    %1001 = vector.broadcast %cst_792 : f32 to vector<4x8xf32>
    %1002 = arith.mulf %1001, %998 : vector<4x8xf32>
    %1003 = arith.addf %1000, %1002 : vector<4x8xf32>
    %1004 = arith.truncf %1003 : vector<4x8xf32> to vector<4x8xbf16>
    %cst_793 = arith.constant dense<0.000000e+00> : vector<8x8xf32>
    %1005 = tpu.matmul %5, %1004, %cst_793 {dimension_numbers = #tpu.dot_dimension_numbers<[1], [0], [0], [1], [0, 0, 1, 1], [], []>} : vector<8x4xbf16>, vector<4x8xbf16>, vector<8x8xf32> -> vector<8x8xf32>
    %c339_794 = arith.constant 339 : index
    %c0_795 = arith.constant 0 : index
    %1006 = vector.load %arg14[%c339_794, %c0_795] : memref<408x8xf32, #tpu.memory_space<vmem>>, vector<8x8xf32>
    tpu.vector_store %arg14[%c339_794, %c0_795], %1005 {strides = array<i32>} : memref<408x8xf32, #tpu.memory_space<vmem>>, vector<8x8xf32>,
    %c385_796 = arith.constant 385 : index
    %c0_797 = arith.constant 0 : index
    %1007 = vector.load %arg14[%c385_796, %c0_797] : memref<408x8xf32, #tpu.memory_space<vmem>>, vector<4x8xf32>
    %c389_798 = arith.constant 389 : index
    %c0_799 = arith.constant 0 : index
    %1008 = vector.load %arg14[%c389_798, %c0_799] : memref<408x8xf32, #tpu.memory_space<vmem>>, vector<4x8xf32>
    %cst_800 = arith.constant 2.500000e-01 : f32
    %1009 = vector.broadcast %cst_800 : f32 to vector<4x8xf32>
    %1010 = arith.mulf %1009, %1007 : vector<4x8xf32>
    %cst_801 = arith.constant 7.500000e-01 : f32
    %1011 = vector.broadcast %cst_801 : f32 to vector<4x8xf32>
    %1012 = arith.mulf %1011, %1008 : vector<4x8xf32>
    %1013 = arith.addf %1010, %1012 : vector<4x8xf32>
    %1014 = arith.truncf %1013 : vector<4x8xf32> to vector<4x8xbf16>
    %cst_802 = arith.constant dense<0.000000e+00> : vector<8x8xf32>
    %1015 = tpu.matmul %5, %1014, %cst_802 {dimension_numbers = #tpu.dot_dimension_numbers<[1], [0], [0], [1], [0, 0, 1, 1], [], []>} : vector<8x4xbf16>, vector<4x8xbf16>, vector<8x8xf32> -> vector<8x8xf32>
    %c347_803 = arith.constant 347 : index
    %c0_804 = arith.constant 0 : index
    %1016 = vector.load %arg14[%c347_803, %c0_804] : memref<408x8xf32, #tpu.memory_space<vmem>>, vector<8x8xf32>
    tpu.vector_store %arg14[%c347_803, %c0_804], %1015 {strides = array<i32>} : memref<408x8xf32, #tpu.memory_space<vmem>>, vector<8x8xf32>,
    %c389_805 = arith.constant 389 : index
    %c0_806 = arith.constant 0 : index
    %1017 = vector.load %arg14[%c389_805, %c0_806] : memref<408x8xf32, #tpu.memory_space<vmem>>, vector<4x8xf32>
    %1018 = arith.truncf %1017 : vector<4x8xf32> to vector<4x8xbf16>
    %cst_807 = arith.constant dense<0.000000e+00> : vector<8x8xf32>
    %1019 = tpu.matmul %5, %1018, %cst_807 {dimension_numbers = #tpu.dot_dimension_numbers<[1], [0], [0], [1], [0, 0, 1, 1], [], []>} : vector<8x4xbf16>, vector<4x8xbf16>, vector<8x8xf32> -> vector<8x8xf32>
    %c355_808 = arith.constant 355 : index
    %c0_809 = arith.constant 0 : index
    %1020 = vector.load %arg14[%c355_808, %c0_809] : memref<408x8xf32, #tpu.memory_space<vmem>>, vector<8x8xf32>
    tpu.vector_store %arg14[%c355_808, %c0_809], %1019 {strides = array<i32>} : memref<408x8xf32, #tpu.memory_space<vmem>>, vector<8x8xf32>,
    %c290_810 = arith.constant 290 : index
    %c0_811 = arith.constant 0 : index
    %1021 = vector.load %arg14[%c290_810, %c0_811] : memref<408x8xf32, #tpu.memory_space<vmem>>, vector<64x8xf32>
    %1022 = vector.broadcast %104 : vector<64x1xf32> to vector<64x8xf32>
    %1023 = arith.mulf %1021, %1022 : vector<64x8xf32>
    %1024 = arith.truncf %1023 : vector<64x8xf32> to vector<64x8xbf16>
    %c18_812 = arith.constant 18 : index
    %c0_813 = arith.constant 0 : index
    %c0_814 = arith.constant 0 : index
    %1025 = vector.load %arg6[%c18_812, %c0_813, %c0_814] : memref<27x8x8xbf16, #tpu.memory_space<vmem>>, vector<1x8x8xbf16>
    %1026 = vector.shape_cast %1025 : vector<1x8x8xbf16> to vector<8x8xbf16>
    %cst_815 = arith.constant dense<0.000000e+00> : vector<64x8xf32>
    %1027 = tpu.matmul %1024, %1026, %cst_815 {dimension_numbers = #tpu.dot_dimension_numbers<[1], [0], [0], [1], [0, 0, 1, 1], [], []>} : vector<64x8xbf16>, vector<8x8xbf16>, vector<64x8xf32> -> vector<64x8xf32>
    %c291_816 = arith.constant 291 : index
    %c0_817 = arith.constant 0 : index
    %1028 = vector.load %arg14[%c291_816, %c0_817] : memref<408x8xf32, #tpu.memory_space<vmem>>, vector<64x8xf32>
    %1029 = arith.truncf %1028 : vector<64x8xf32> to vector<64x8xbf16>
    %c19_818 = arith.constant 19 : index
    %c0_819 = arith.constant 0 : index
    %c0_820 = arith.constant 0 : index
    %1030 = vector.load %arg6[%c19_818, %c0_819, %c0_820] : memref<27x8x8xbf16, #tpu.memory_space<vmem>>, vector<1x8x8xbf16>
    %1031 = vector.shape_cast %1030 : vector<1x8x8xbf16> to vector<8x8xbf16>
    %cst_821 = arith.constant dense<0.000000e+00> : vector<64x8xf32>
    %1032 = tpu.matmul %1029, %1031, %cst_821 {dimension_numbers = #tpu.dot_dimension_numbers<[1], [0], [0], [1], [0, 0, 1, 1], [], []>} : vector<64x8xbf16>, vector<8x8xbf16>, vector<64x8xf32> -> vector<64x8xf32>
    %1033 = arith.addf %1027, %1032 : vector<64x8xf32>
    %c292_822 = arith.constant 292 : index
    %c0_823 = arith.constant 0 : index
    %1034 = vector.load %arg14[%c292_822, %c0_823] : memref<408x8xf32, #tpu.memory_space<vmem>>, vector<64x8xf32>
    %1035 = vector.broadcast %108 : vector<64x1xf32> to vector<64x8xf32>
    %1036 = arith.mulf %1034, %1035 : vector<64x8xf32>
    %1037 = arith.truncf %1036 : vector<64x8xf32> to vector<64x8xbf16>
    %c20_824 = arith.constant 20 : index
    %c0_825 = arith.constant 0 : index
    %c0_826 = arith.constant 0 : index
    %1038 = vector.load %arg6[%c20_824, %c0_825, %c0_826] : memref<27x8x8xbf16, #tpu.memory_space<vmem>>, vector<1x8x8xbf16>
    %1039 = vector.shape_cast %1038 : vector<1x8x8xbf16> to vector<8x8xbf16>
    %cst_827 = arith.constant dense<0.000000e+00> : vector<64x8xf32>
    %1040 = tpu.matmul %1037, %1039, %cst_827 {dimension_numbers = #tpu.dot_dimension_numbers<[1], [0], [0], [1], [0, 0, 1, 1], [], []>} : vector<64x8xbf16>, vector<8x8xbf16>, vector<64x8xf32> -> vector<64x8xf32>
    %1041 = arith.addf %1033, %1040 : vector<64x8xf32>
    %c298_828 = arith.constant 298 : index
    %c0_829 = arith.constant 0 : index
    %1042 = vector.load %arg14[%c298_828, %c0_829] : memref<408x8xf32, #tpu.memory_space<vmem>>, vector<64x8xf32>
    %1043 = vector.broadcast %104 : vector<64x1xf32> to vector<64x8xf32>
    %1044 = arith.mulf %1042, %1043 : vector<64x8xf32>
    %1045 = arith.truncf %1044 : vector<64x8xf32> to vector<64x8xbf16>
    %c21_830 = arith.constant 21 : index
    %c0_831 = arith.constant 0 : index
    %c0_832 = arith.constant 0 : index
    %1046 = vector.load %arg6[%c21_830, %c0_831, %c0_832] : memref<27x8x8xbf16, #tpu.memory_space<vmem>>, vector<1x8x8xbf16>
    %1047 = vector.shape_cast %1046 : vector<1x8x8xbf16> to vector<8x8xbf16>
    %cst_833 = arith.constant dense<0.000000e+00> : vector<64x8xf32>
    %1048 = tpu.matmul %1045, %1047, %cst_833 {dimension_numbers = #tpu.dot_dimension_numbers<[1], [0], [0], [1], [0, 0, 1, 1], [], []>} : vector<64x8xbf16>, vector<8x8xbf16>, vector<64x8xf32> -> vector<64x8xf32>
    %1049 = arith.addf %1041, %1048 : vector<64x8xf32>
    %c299_834 = arith.constant 299 : index
    %c0_835 = arith.constant 0 : index
    %1050 = vector.load %arg14[%c299_834, %c0_835] : memref<408x8xf32, #tpu.memory_space<vmem>>, vector<64x8xf32>
    %1051 = arith.truncf %1050 : vector<64x8xf32> to vector<64x8xbf16>
    %c22_836 = arith.constant 22 : index
    %c0_837 = arith.constant 0 : index
    %c0_838 = arith.constant 0 : index
    %1052 = vector.load %arg6[%c22_836, %c0_837, %c0_838] : memref<27x8x8xbf16, #tpu.memory_space<vmem>>, vector<1x8x8xbf16>
    %1053 = vector.shape_cast %1052 : vector<1x8x8xbf16> to vector<8x8xbf16>
    %cst_839 = arith.constant dense<0.000000e+00> : vector<64x8xf32>
    %1054 = tpu.matmul %1051, %1053, %cst_839 {dimension_numbers = #tpu.dot_dimension_numbers<[1], [0], [0], [1], [0, 0, 1, 1], [], []>} : vector<64x8xbf16>, vector<8x8xbf16>, vector<64x8xf32> -> vector<64x8xf32>
    %1055 = arith.addf %1049, %1054 : vector<64x8xf32>
    %c300_840 = arith.constant 300 : index
    %c0_841 = arith.constant 0 : index
    %1056 = vector.load %arg14[%c300_840, %c0_841] : memref<408x8xf32, #tpu.memory_space<vmem>>, vector<64x8xf32>
    %1057 = vector.broadcast %108 : vector<64x1xf32> to vector<64x8xf32>
    %1058 = arith.mulf %1056, %1057 : vector<64x8xf32>
    %1059 = arith.truncf %1058 : vector<64x8xf32> to vector<64x8xbf16>
    %c23_842 = arith.constant 23 : index
    %c0_843 = arith.constant 0 : index
    %c0_844 = arith.constant 0 : index
    %1060 = vector.load %arg6[%c23_842, %c0_843, %c0_844] : memref<27x8x8xbf16, #tpu.memory_space<vmem>>, vector<1x8x8xbf16>
    %1061 = vector.shape_cast %1060 : vector<1x8x8xbf16> to vector<8x8xbf16>
    %cst_845 = arith.constant dense<0.000000e+00> : vector<64x8xf32>
    %1062 = tpu.matmul %1059, %1061, %cst_845 {dimension_numbers = #tpu.dot_dimension_numbers<[1], [0], [0], [1], [0, 0, 1, 1], [], []>} : vector<64x8xbf16>, vector<8x8xbf16>, vector<64x8xf32> -> vector<64x8xf32>
    %1063 = arith.addf %1055, %1062 : vector<64x8xf32>
    %c306_846 = arith.constant 306 : index
    %c0_847 = arith.constant 0 : index
    %1064 = vector.load %arg14[%c306_846, %c0_847] : memref<408x8xf32, #tpu.memory_space<vmem>>, vector<64x8xf32>
    %1065 = vector.broadcast %104 : vector<64x1xf32> to vector<64x8xf32>
    %1066 = arith.mulf %1064, %1065 : vector<64x8xf32>
    %1067 = arith.truncf %1066 : vector<64x8xf32> to vector<64x8xbf16>
    %c24_848 = arith.constant 24 : index
    %c0_849 = arith.constant 0 : index
    %c0_850 = arith.constant 0 : index
    %1068 = vector.load %arg6[%c24_848, %c0_849, %c0_850] : memref<27x8x8xbf16, #tpu.memory_space<vmem>>, vector<1x8x8xbf16>
    %1069 = vector.shape_cast %1068 : vector<1x8x8xbf16> to vector<8x8xbf16>
    %cst_851 = arith.constant dense<0.000000e+00> : vector<64x8xf32>
    %1070 = tpu.matmul %1067, %1069, %cst_851 {dimension_numbers = #tpu.dot_dimension_numbers<[1], [0], [0], [1], [0, 0, 1, 1], [], []>} : vector<64x8xbf16>, vector<8x8xbf16>, vector<64x8xf32> -> vector<64x8xf32>
    %1071 = arith.addf %1063, %1070 : vector<64x8xf32>
    %c307_852 = arith.constant 307 : index
    %c0_853 = arith.constant 0 : index
    %1072 = vector.load %arg14[%c307_852, %c0_853] : memref<408x8xf32, #tpu.memory_space<vmem>>, vector<64x8xf32>
    %1073 = arith.truncf %1072 : vector<64x8xf32> to vector<64x8xbf16>
    %c25_854 = arith.constant 25 : index
    %c0_855 = arith.constant 0 : index
    %c0_856 = arith.constant 0 : index
    %1074 = vector.load %arg6[%c25_854, %c0_855, %c0_856] : memref<27x8x8xbf16, #tpu.memory_space<vmem>>, vector<1x8x8xbf16>
    %1075 = vector.shape_cast %1074 : vector<1x8x8xbf16> to vector<8x8xbf16>
    %cst_857 = arith.constant dense<0.000000e+00> : vector<64x8xf32>
    %1076 = tpu.matmul %1073, %1075, %cst_857 {dimension_numbers = #tpu.dot_dimension_numbers<[1], [0], [0], [1], [0, 0, 1, 1], [], []>} : vector<64x8xbf16>, vector<8x8xbf16>, vector<64x8xf32> -> vector<64x8xf32>
    %1077 = arith.addf %1071, %1076 : vector<64x8xf32>
    %c308_858 = arith.constant 308 : index
    %c0_859 = arith.constant 0 : index
    %1078 = vector.load %arg14[%c308_858, %c0_859] : memref<408x8xf32, #tpu.memory_space<vmem>>, vector<64x8xf32>
    %1079 = vector.broadcast %108 : vector<64x1xf32> to vector<64x8xf32>
    %1080 = arith.mulf %1078, %1079 : vector<64x8xf32>
    %1081 = arith.truncf %1080 : vector<64x8xf32> to vector<64x8xbf16>
    %c26_860 = arith.constant 26 : index
    %c0_861 = arith.constant 0 : index
    %c0_862 = arith.constant 0 : index
    %1082 = vector.load %arg6[%c26_860, %c0_861, %c0_862] : memref<27x8x8xbf16, #tpu.memory_space<vmem>>, vector<1x8x8xbf16>
    %1083 = vector.shape_cast %1082 : vector<1x8x8xbf16> to vector<8x8xbf16>
    %cst_863 = arith.constant dense<0.000000e+00> : vector<64x8xf32>
    %1084 = tpu.matmul %1081, %1083, %cst_863 {dimension_numbers = #tpu.dot_dimension_numbers<[1], [0], [0], [1], [0, 0, 1, 1], [], []>} : vector<64x8xbf16>, vector<8x8xbf16>, vector<64x8xf32> -> vector<64x8xf32>
    %1085 = arith.addf %1077, %1084 : vector<64x8xf32>
    %c6_864 = arith.constant 6 : index
    %c0_865 = arith.constant 0 : index
    %c0_866 = arith.constant 0 : index
    %1086 = vector.load %arg7[%c6_864, %c0_865, %c0_866] : memref<7x1x8xf32, #tpu.memory_space<vmem>>, vector<1x1x8xf32>
    %1087 = vector.shape_cast %1086 : vector<1x1x8xf32> to vector<1x8xf32>
    %1088 = vector.broadcast %1087 : vector<1x8xf32> to vector<64x8xf32>
    %1089 = arith.addf %1085, %1088 : vector<64x8xf32>
    %cst_867 = arith.constant 0.000000e+00 : f32
    %1090 = vector.broadcast %cst_867 : f32 to vector<64x8xf32>
    %1091 = arith.maximumf %1089, %1090 : vector<64x8xf32>
    %c299_868 = arith.constant 299 : index
    %c0_869 = arith.constant 0 : index
    %1092 = vector.load %arg14[%c299_868, %c0_869] : memref<408x8xf32, #tpu.memory_space<vmem>>, vector<64x8xf32>
    tpu.vector_store %arg14[%c299_868, %c0_869], %1091 {strides = array<i32>} : memref<408x8xf32, #tpu.memory_space<vmem>>, vector<64x8xf32>,
    %c299_870 = arith.constant 299 : index
    %c0_871 = arith.constant 0 : index
    %1093 = vector.load %arg14[%c299_870, %c0_871] : memref<408x8xf32, #tpu.memory_space<vmem>>, vector<8x8xf32>
    %1094 = arith.truncf %1093 : vector<8x8xf32> to vector<8x8xbf16>
    %cst_872 = arith.constant dense<0.000000e+00> : vector<16x8xf32>
    %1095 = tpu.matmul %4, %1094, %cst_872 {dimension_numbers = #tpu.dot_dimension_numbers<[1], [0], [0], [1], [0, 0, 1, 1], [], []>} : vector<16x8xbf16>, vector<8x8xbf16>, vector<16x8xf32> -> vector<16x8xf32>
    %c0_873 = arith.constant 0 : index
    %c0_874 = arith.constant 0 : index
    %1096 = vector.load %arg15[%c0_873, %c0_874] : memref<256x8xf32, #tpu.memory_space<vmem>>, vector<16x8xf32>
    %1097 = arith.addf %1096, %1095 : vector<16x8xf32>
    %c0_875 = arith.constant 0 : index
    %c0_876 = arith.constant 0 : index
    %1098 = vector.load %arg15[%c0_875, %c0_876] : memref<256x8xf32, #tpu.memory_space<vmem>>, vector<16x8xf32>
    tpu.vector_store %arg15[%c0_875, %c0_876], %1097 {strides = array<i32>} : memref<256x8xf32, #tpu.memory_space<vmem>>, vector<16x8xf32>,
    %c299_877 = arith.constant 299 : index
    %c0_878 = arith.constant 0 : index
    %1099 = vector.load %arg14[%c299_877, %c0_878] : memref<408x8xf32, #tpu.memory_space<vmem>>, vector<8x8xf32>
    %c307_879 = arith.constant 307 : index
    %c0_880 = arith.constant 0 : index
    %1100 = vector.load %arg14[%c307_879, %c0_880] : memref<408x8xf32, #tpu.memory_space<vmem>>, vector<8x8xf32>
    %cst_881 = arith.constant 7.500000e-01 : f32
    %1101 = vector.broadcast %cst_881 : f32 to vector<8x8xf32>
    %1102 = arith.mulf %1101, %1099 : vector<8x8xf32>
    %cst_882 = arith.constant 2.500000e-01 : f32
    %1103 = vector.broadcast %cst_882 : f32 to vector<8x8xf32>
    %1104 = arith.mulf %1103, %1100 : vector<8x8xf32>
    %1105 = arith.addf %1102, %1104 : vector<8x8xf32>
    %1106 = arith.truncf %1105 : vector<8x8xf32> to vector<8x8xbf16>
    %cst_883 = arith.constant dense<0.000000e+00> : vector<16x8xf32>
    %1107 = tpu.matmul %4, %1106, %cst_883 {dimension_numbers = #tpu.dot_dimension_numbers<[1], [0], [0], [1], [0, 0, 1, 1], [], []>} : vector<16x8xbf16>, vector<8x8xbf16>, vector<16x8xf32> -> vector<16x8xf32>
    %c16_884 = arith.constant 16 : index
    %c0_885 = arith.constant 0 : index
    %1108 = vector.load %arg15[%c16_884, %c0_885] : memref<256x8xf32, #tpu.memory_space<vmem>>, vector<16x8xf32>
    %1109 = arith.addf %1108, %1107 : vector<16x8xf32>
    %c16_886 = arith.constant 16 : index
    %c0_887 = arith.constant 0 : index
    %1110 = vector.load %arg15[%c16_886, %c0_887] : memref<256x8xf32, #tpu.memory_space<vmem>>, vector<16x8xf32>
    tpu.vector_store %arg15[%c16_886, %c0_887], %1109 {strides = array<i32>} : memref<256x8xf32, #tpu.memory_space<vmem>>, vector<16x8xf32>,
    %c299_888 = arith.constant 299 : index
    %c0_889 = arith.constant 0 : index
    %1111 = vector.load %arg14[%c299_888, %c0_889] : memref<408x8xf32, #tpu.memory_space<vmem>>, vector<8x8xf32>
    %c307_890 = arith.constant 307 : index
    %c0_891 = arith.constant 0 : index
    %1112 = vector.load %arg14[%c307_890, %c0_891] : memref<408x8xf32, #tpu.memory_space<vmem>>, vector<8x8xf32>
    %cst_892 = arith.constant 2.500000e-01 : f32
    %1113 = vector.broadcast %cst_892 : f32 to vector<8x8xf32>
    %1114 = arith.mulf %1113, %1111 : vector<8x8xf32>
    %cst_893 = arith.constant 7.500000e-01 : f32
    %1115 = vector.broadcast %cst_893 : f32 to vector<8x8xf32>
    %1116 = arith.mulf %1115, %1112 : vector<8x8xf32>
    %1117 = arith.addf %1114, %1116 : vector<8x8xf32>
    %1118 = arith.truncf %1117 : vector<8x8xf32> to vector<8x8xbf16>
    %cst_894 = arith.constant dense<0.000000e+00> : vector<16x8xf32>
    %1119 = tpu.matmul %4, %1118, %cst_894 {dimension_numbers = #tpu.dot_dimension_numbers<[1], [0], [0], [1], [0, 0, 1, 1], [], []>} : vector<16x8xbf16>, vector<8x8xbf16>, vector<16x8xf32> -> vector<16x8xf32>
    %c32_895 = arith.constant 32 : index
    %c0_896 = arith.constant 0 : index
    %1120 = vector.load %arg15[%c32_895, %c0_896] : memref<256x8xf32, #tpu.memory_space<vmem>>, vector<16x8xf32>
    %1121 = arith.addf %1120, %1119 : vector<16x8xf32>
    %c32_897 = arith.constant 32 : index
    %c0_898 = arith.constant 0 : index
    %1122 = vector.load %arg15[%c32_897, %c0_898] : memref<256x8xf32, #tpu.memory_space<vmem>>, vector<16x8xf32>
    tpu.vector_store %arg15[%c32_897, %c0_898], %1121 {strides = array<i32>} : memref<256x8xf32, #tpu.memory_space<vmem>>, vector<16x8xf32>,
    %c307_899 = arith.constant 307 : index
    %c0_900 = arith.constant 0 : index
    %1123 = vector.load %arg14[%c307_899, %c0_900] : memref<408x8xf32, #tpu.memory_space<vmem>>, vector<8x8xf32>
    %c315_901 = arith.constant 315 : index
    %c0_902 = arith.constant 0 : index
    %1124 = vector.load %arg14[%c315_901, %c0_902] : memref<408x8xf32, #tpu.memory_space<vmem>>, vector<8x8xf32>
    %cst_903 = arith.constant 7.500000e-01 : f32
    %1125 = vector.broadcast %cst_903 : f32 to vector<8x8xf32>
    %1126 = arith.mulf %1125, %1123 : vector<8x8xf32>
    %cst_904 = arith.constant 2.500000e-01 : f32
    %1127 = vector.broadcast %cst_904 : f32 to vector<8x8xf32>
    %1128 = arith.mulf %1127, %1124 : vector<8x8xf32>
    %1129 = arith.addf %1126, %1128 : vector<8x8xf32>
    %1130 = arith.truncf %1129 : vector<8x8xf32> to vector<8x8xbf16>
    %cst_905 = arith.constant dense<0.000000e+00> : vector<16x8xf32>
    %1131 = tpu.matmul %4, %1130, %cst_905 {dimension_numbers = #tpu.dot_dimension_numbers<[1], [0], [0], [1], [0, 0, 1, 1], [], []>} : vector<16x8xbf16>, vector<8x8xbf16>, vector<16x8xf32> -> vector<16x8xf32>
    %c48_906 = arith.constant 48 : index
    %c0_907 = arith.constant 0 : index
    %1132 = vector.load %arg15[%c48_906, %c0_907] : memref<256x8xf32, #tpu.memory_space<vmem>>, vector<16x8xf32>
    %1133 = arith.addf %1132, %1131 : vector<16x8xf32>
    %c48_908 = arith.constant 48 : index
    %c0_909 = arith.constant 0 : index
    %1134 = vector.load %arg15[%c48_908, %c0_909] : memref<256x8xf32, #tpu.memory_space<vmem>>, vector<16x8xf32>
    tpu.vector_store %arg15[%c48_908, %c0_909], %1133 {strides = array<i32>} : memref<256x8xf32, #tpu.memory_space<vmem>>, vector<16x8xf32>,
    %c307_910 = arith.constant 307 : index
    %c0_911 = arith.constant 0 : index
    %1135 = vector.load %arg14[%c307_910, %c0_911] : memref<408x8xf32, #tpu.memory_space<vmem>>, vector<8x8xf32>
    %c315_912 = arith.constant 315 : index
    %c0_913 = arith.constant 0 : index
    %1136 = vector.load %arg14[%c315_912, %c0_913] : memref<408x8xf32, #tpu.memory_space<vmem>>, vector<8x8xf32>
    %cst_914 = arith.constant 2.500000e-01 : f32
    %1137 = vector.broadcast %cst_914 : f32 to vector<8x8xf32>
    %1138 = arith.mulf %1137, %1135 : vector<8x8xf32>
    %cst_915 = arith.constant 7.500000e-01 : f32
    %1139 = vector.broadcast %cst_915 : f32 to vector<8x8xf32>
    %1140 = arith.mulf %1139, %1136 : vector<8x8xf32>
    %1141 = arith.addf %1138, %1140 : vector<8x8xf32>
    %1142 = arith.truncf %1141 : vector<8x8xf32> to vector<8x8xbf16>
    %cst_916 = arith.constant dense<0.000000e+00> : vector<16x8xf32>
    %1143 = tpu.matmul %4, %1142, %cst_916 {dimension_numbers = #tpu.dot_dimension_numbers<[1], [0], [0], [1], [0, 0, 1, 1], [], []>} : vector<16x8xbf16>, vector<8x8xbf16>, vector<16x8xf32> -> vector<16x8xf32>
    %c64_917 = arith.constant 64 : index
    %c0_918 = arith.constant 0 : index
    %1144 = vector.load %arg15[%c64_917, %c0_918] : memref<256x8xf32, #tpu.memory_space<vmem>>, vector<16x8xf32>
    %1145 = arith.addf %1144, %1143 : vector<16x8xf32>
    %c64_919 = arith.constant 64 : index
    %c0_920 = arith.constant 0 : index
    %1146 = vector.load %arg15[%c64_919, %c0_920] : memref<256x8xf32, #tpu.memory_space<vmem>>, vector<16x8xf32>
    tpu.vector_store %arg15[%c64_919, %c0_920], %1145 {strides = array<i32>} : memref<256x8xf32, #tpu.memory_space<vmem>>, vector<16x8xf32>,
    %c315_921 = arith.constant 315 : index
    %c0_922 = arith.constant 0 : index
    %1147 = vector.load %arg14[%c315_921, %c0_922] : memref<408x8xf32, #tpu.memory_space<vmem>>, vector<8x8xf32>
    %c323_923 = arith.constant 323 : index
    %c0_924 = arith.constant 0 : index
    %1148 = vector.load %arg14[%c323_923, %c0_924] : memref<408x8xf32, #tpu.memory_space<vmem>>, vector<8x8xf32>
    %cst_925 = arith.constant 7.500000e-01 : f32
    %1149 = vector.broadcast %cst_925 : f32 to vector<8x8xf32>
    %1150 = arith.mulf %1149, %1147 : vector<8x8xf32>
    %cst_926 = arith.constant 2.500000e-01 : f32
    %1151 = vector.broadcast %cst_926 : f32 to vector<8x8xf32>
    %1152 = arith.mulf %1151, %1148 : vector<8x8xf32>
    %1153 = arith.addf %1150, %1152 : vector<8x8xf32>
    %1154 = arith.truncf %1153 : vector<8x8xf32> to vector<8x8xbf16>
    %cst_927 = arith.constant dense<0.000000e+00> : vector<16x8xf32>
    %1155 = tpu.matmul %4, %1154, %cst_927 {dimension_numbers = #tpu.dot_dimension_numbers<[1], [0], [0], [1], [0, 0, 1, 1], [], []>} : vector<16x8xbf16>, vector<8x8xbf16>, vector<16x8xf32> -> vector<16x8xf32>
    %c80_928 = arith.constant 80 : index
    %c0_929 = arith.constant 0 : index
    %1156 = vector.load %arg15[%c80_928, %c0_929] : memref<256x8xf32, #tpu.memory_space<vmem>>, vector<16x8xf32>
    %1157 = arith.addf %1156, %1155 : vector<16x8xf32>
    %c80_930 = arith.constant 80 : index
    %c0_931 = arith.constant 0 : index
    %1158 = vector.load %arg15[%c80_930, %c0_931] : memref<256x8xf32, #tpu.memory_space<vmem>>, vector<16x8xf32>
    tpu.vector_store %arg15[%c80_930, %c0_931], %1157 {strides = array<i32>} : memref<256x8xf32, #tpu.memory_space<vmem>>, vector<16x8xf32>,
    %c315_932 = arith.constant 315 : index
    %c0_933 = arith.constant 0 : index
    %1159 = vector.load %arg14[%c315_932, %c0_933] : memref<408x8xf32, #tpu.memory_space<vmem>>, vector<8x8xf32>
    %c323_934 = arith.constant 323 : index
    %c0_935 = arith.constant 0 : index
    %1160 = vector.load %arg14[%c323_934, %c0_935] : memref<408x8xf32, #tpu.memory_space<vmem>>, vector<8x8xf32>
    %cst_936 = arith.constant 2.500000e-01 : f32
    %1161 = vector.broadcast %cst_936 : f32 to vector<8x8xf32>
    %1162 = arith.mulf %1161, %1159 : vector<8x8xf32>
    %cst_937 = arith.constant 7.500000e-01 : f32
    %1163 = vector.broadcast %cst_937 : f32 to vector<8x8xf32>
    %1164 = arith.mulf %1163, %1160 : vector<8x8xf32>
    %1165 = arith.addf %1162, %1164 : vector<8x8xf32>
    %1166 = arith.truncf %1165 : vector<8x8xf32> to vector<8x8xbf16>
    %cst_938 = arith.constant dense<0.000000e+00> : vector<16x8xf32>
    %1167 = tpu.matmul %4, %1166, %cst_938 {dimension_numbers = #tpu.dot_dimension_numbers<[1], [0], [0], [1], [0, 0, 1, 1], [], []>} : vector<16x8xbf16>, vector<8x8xbf16>, vector<16x8xf32> -> vector<16x8xf32>
    %c96_939 = arith.constant 96 : index
    %c0_940 = arith.constant 0 : index
    %1168 = vector.load %arg15[%c96_939, %c0_940] : memref<256x8xf32, #tpu.memory_space<vmem>>, vector<16x8xf32>
    %1169 = arith.addf %1168, %1167 : vector<16x8xf32>
    %c96_941 = arith.constant 96 : index
    %c0_942 = arith.constant 0 : index
    %1170 = vector.load %arg15[%c96_941, %c0_942] : memref<256x8xf32, #tpu.memory_space<vmem>>, vector<16x8xf32>
    tpu.vector_store %arg15[%c96_941, %c0_942], %1169 {strides = array<i32>} : memref<256x8xf32, #tpu.memory_space<vmem>>, vector<16x8xf32>,
    %c323_943 = arith.constant 323 : index
    %c0_944 = arith.constant 0 : index
    %1171 = vector.load %arg14[%c323_943, %c0_944] : memref<408x8xf32, #tpu.memory_space<vmem>>, vector<8x8xf32>
    %c331_945 = arith.constant 331 : index
    %c0_946 = arith.constant 0 : index
    %1172 = vector.load %arg14[%c331_945, %c0_946] : memref<408x8xf32, #tpu.memory_space<vmem>>, vector<8x8xf32>
    %cst_947 = arith.constant 7.500000e-01 : f32
    %1173 = vector.broadcast %cst_947 : f32 to vector<8x8xf32>
    %1174 = arith.mulf %1173, %1171 : vector<8x8xf32>
    %cst_948 = arith.constant 2.500000e-01 : f32
    %1175 = vector.broadcast %cst_948 : f32 to vector<8x8xf32>
    %1176 = arith.mulf %1175, %1172 : vector<8x8xf32>
    %1177 = arith.addf %1174, %1176 : vector<8x8xf32>
    %1178 = arith.truncf %1177 : vector<8x8xf32> to vector<8x8xbf16>
    %cst_949 = arith.constant dense<0.000000e+00> : vector<16x8xf32>
    %1179 = tpu.matmul %4, %1178, %cst_949 {dimension_numbers = #tpu.dot_dimension_numbers<[1], [0], [0], [1], [0, 0, 1, 1], [], []>} : vector<16x8xbf16>, vector<8x8xbf16>, vector<16x8xf32> -> vector<16x8xf32>
    %c112_950 = arith.constant 112 : index
    %c0_951 = arith.constant 0 : index
    %1180 = vector.load %arg15[%c112_950, %c0_951] : memref<256x8xf32, #tpu.memory_space<vmem>>, vector<16x8xf32>
    %1181 = arith.addf %1180, %1179 : vector<16x8xf32>
    %c112_952 = arith.constant 112 : index
    %c0_953 = arith.constant 0 : index
    %1182 = vector.load %arg15[%c112_952, %c0_953] : memref<256x8xf32, #tpu.memory_space<vmem>>, vector<16x8xf32>
    tpu.vector_store %arg15[%c112_952, %c0_953], %1181 {strides = array<i32>} : memref<256x8xf32, #tpu.memory_space<vmem>>, vector<16x8xf32>,
    %c323_954 = arith.constant 323 : index
    %c0_955 = arith.constant 0 : index
    %1183 = vector.load %arg14[%c323_954, %c0_955] : memref<408x8xf32, #tpu.memory_space<vmem>>, vector<8x8xf32>
    %c331_956 = arith.constant 331 : index
    %c0_957 = arith.constant 0 : index
    %1184 = vector.load %arg14[%c331_956, %c0_957] : memref<408x8xf32, #tpu.memory_space<vmem>>, vector<8x8xf32>
    %cst_958 = arith.constant 2.500000e-01 : f32
    %1185 = vector.broadcast %cst_958 : f32 to vector<8x8xf32>
    %1186 = arith.mulf %1185, %1183 : vector<8x8xf32>
    %cst_959 = arith.constant 7.500000e-01 : f32
    %1187 = vector.broadcast %cst_959 : f32 to vector<8x8xf32>
    %1188 = arith.mulf %1187, %1184 : vector<8x8xf32>
    %1189 = arith.addf %1186, %1188 : vector<8x8xf32>
    %1190 = arith.truncf %1189 : vector<8x8xf32> to vector<8x8xbf16>
    %cst_960 = arith.constant dense<0.000000e+00> : vector<16x8xf32>
    %1191 = tpu.matmul %4, %1190, %cst_960 {dimension_numbers = #tpu.dot_dimension_numbers<[1], [0], [0], [1], [0, 0, 1, 1], [], []>} : vector<16x8xbf16>, vector<8x8xbf16>, vector<16x8xf32> -> vector<16x8xf32>
    %c128_961 = arith.constant 128 : index
    %c0_962 = arith.constant 0 : index
    %1192 = vector.load %arg15[%c128_961, %c0_962] : memref<256x8xf32, #tpu.memory_space<vmem>>, vector<16x8xf32>
    %1193 = arith.addf %1192, %1191 : vector<16x8xf32>
    %c128_963 = arith.constant 128 : index
    %c0_964 = arith.constant 0 : index
    %1194 = vector.load %arg15[%c128_963, %c0_964] : memref<256x8xf32, #tpu.memory_space<vmem>>, vector<16x8xf32>
    tpu.vector_store %arg15[%c128_963, %c0_964], %1193 {strides = array<i32>} : memref<256x8xf32, #tpu.memory_space<vmem>>, vector<16x8xf32>,
    %c331_965 = arith.constant 331 : index
    %c0_966 = arith.constant 0 : index
    %1195 = vector.load %arg14[%c331_965, %c0_966] : memref<408x8xf32, #tpu.memory_space<vmem>>, vector<8x8xf32>
    %c339_967 = arith.constant 339 : index
    %c0_968 = arith.constant 0 : index
    %1196 = vector.load %arg14[%c339_967, %c0_968] : memref<408x8xf32, #tpu.memory_space<vmem>>, vector<8x8xf32>
    %cst_969 = arith.constant 7.500000e-01 : f32
    %1197 = vector.broadcast %cst_969 : f32 to vector<8x8xf32>
    %1198 = arith.mulf %1197, %1195 : vector<8x8xf32>
    %cst_970 = arith.constant 2.500000e-01 : f32
    %1199 = vector.broadcast %cst_970 : f32 to vector<8x8xf32>
    %1200 = arith.mulf %1199, %1196 : vector<8x8xf32>
    %1201 = arith.addf %1198, %1200 : vector<8x8xf32>
    %1202 = arith.truncf %1201 : vector<8x8xf32> to vector<8x8xbf16>
    %cst_971 = arith.constant dense<0.000000e+00> : vector<16x8xf32>
    %1203 = tpu.matmul %4, %1202, %cst_971 {dimension_numbers = #tpu.dot_dimension_numbers<[1], [0], [0], [1], [0, 0, 1, 1], [], []>} : vector<16x8xbf16>, vector<8x8xbf16>, vector<16x8xf32> -> vector<16x8xf32>
    %c144_972 = arith.constant 144 : index
    %c0_973 = arith.constant 0 : index
    %1204 = vector.load %arg15[%c144_972, %c0_973] : memref<256x8xf32, #tpu.memory_space<vmem>>, vector<16x8xf32>
    %1205 = arith.addf %1204, %1203 : vector<16x8xf32>
    %c144_974 = arith.constant 144 : index
    %c0_975 = arith.constant 0 : index
    %1206 = vector.load %arg15[%c144_974, %c0_975] : memref<256x8xf32, #tpu.memory_space<vmem>>, vector<16x8xf32>
    tpu.vector_store %arg15[%c144_974, %c0_975], %1205 {strides = array<i32>} : memref<256x8xf32, #tpu.memory_space<vmem>>, vector<16x8xf32>,
    %c331_976 = arith.constant 331 : index
    %c0_977 = arith.constant 0 : index
    %1207 = vector.load %arg14[%c331_976, %c0_977] : memref<408x8xf32, #tpu.memory_space<vmem>>, vector<8x8xf32>
    %c339_978 = arith.constant 339 : index
    %c0_979 = arith.constant 0 : index
    %1208 = vector.load %arg14[%c339_978, %c0_979] : memref<408x8xf32, #tpu.memory_space<vmem>>, vector<8x8xf32>
    %cst_980 = arith.constant 2.500000e-01 : f32
    %1209 = vector.broadcast %cst_980 : f32 to vector<8x8xf32>
    %1210 = arith.mulf %1209, %1207 : vector<8x8xf32>
    %cst_981 = arith.constant 7.500000e-01 : f32
    %1211 = vector.broadcast %cst_981 : f32 to vector<8x8xf32>
    %1212 = arith.mulf %1211, %1208 : vector<8x8xf32>
    %1213 = arith.addf %1210, %1212 : vector<8x8xf32>
    %1214 = arith.truncf %1213 : vector<8x8xf32> to vector<8x8xbf16>
    %cst_982 = arith.constant dense<0.000000e+00> : vector<16x8xf32>
    %1215 = tpu.matmul %4, %1214, %cst_982 {dimension_numbers = #tpu.dot_dimension_numbers<[1], [0], [0], [1], [0, 0, 1, 1], [], []>} : vector<16x8xbf16>, vector<8x8xbf16>, vector<16x8xf32> -> vector<16x8xf32>
    %c160_983 = arith.constant 160 : index
    %c0_984 = arith.constant 0 : index
    %1216 = vector.load %arg15[%c160_983, %c0_984] : memref<256x8xf32, #tpu.memory_space<vmem>>, vector<16x8xf32>
    %1217 = arith.addf %1216, %1215 : vector<16x8xf32>
    %c160_985 = arith.constant 160 : index
    %c0_986 = arith.constant 0 : index
    %1218 = vector.load %arg15[%c160_985, %c0_986] : memref<256x8xf32, #tpu.memory_space<vmem>>, vector<16x8xf32>
    tpu.vector_store %arg15[%c160_985, %c0_986], %1217 {strides = array<i32>} : memref<256x8xf32, #tpu.memory_space<vmem>>, vector<16x8xf32>,
    %c339_987 = arith.constant 339 : index
    %c0_988 = arith.constant 0 : index
    %1219 = vector.load %arg14[%c339_987, %c0_988] : memref<408x8xf32, #tpu.memory_space<vmem>>, vector<8x8xf32>
    %c347_989 = arith.constant 347 : index
    %c0_990 = arith.constant 0 : index
    %1220 = vector.load %arg14[%c347_989, %c0_990] : memref<408x8xf32, #tpu.memory_space<vmem>>, vector<8x8xf32>
    %cst_991 = arith.constant 7.500000e-01 : f32
    %1221 = vector.broadcast %cst_991 : f32 to vector<8x8xf32>
    %1222 = arith.mulf %1221, %1219 : vector<8x8xf32>
    %cst_992 = arith.constant 2.500000e-01 : f32
    %1223 = vector.broadcast %cst_992 : f32 to vector<8x8xf32>
    %1224 = arith.mulf %1223, %1220 : vector<8x8xf32>
    %1225 = arith.addf %1222, %1224 : vector<8x8xf32>
    %1226 = arith.truncf %1225 : vector<8x8xf32> to vector<8x8xbf16>
    %cst_993 = arith.constant dense<0.000000e+00> : vector<16x8xf32>
    %1227 = tpu.matmul %4, %1226, %cst_993 {dimension_numbers = #tpu.dot_dimension_numbers<[1], [0], [0], [1], [0, 0, 1, 1], [], []>} : vector<16x8xbf16>, vector<8x8xbf16>, vector<16x8xf32> -> vector<16x8xf32>
    %c176_994 = arith.constant 176 : index
    %c0_995 = arith.constant 0 : index
    %1228 = vector.load %arg15[%c176_994, %c0_995] : memref<256x8xf32, #tpu.memory_space<vmem>>, vector<16x8xf32>
    %1229 = arith.addf %1228, %1227 : vector<16x8xf32>
    %c176_996 = arith.constant 176 : index
    %c0_997 = arith.constant 0 : index
    %1230 = vector.load %arg15[%c176_996, %c0_997] : memref<256x8xf32, #tpu.memory_space<vmem>>, vector<16x8xf32>
    tpu.vector_store %arg15[%c176_996, %c0_997], %1229 {strides = array<i32>} : memref<256x8xf32, #tpu.memory_space<vmem>>, vector<16x8xf32>,
    %c339_998 = arith.constant 339 : index
    %c0_999 = arith.constant 0 : index
    %1231 = vector.load %arg14[%c339_998, %c0_999] : memref<408x8xf32, #tpu.memory_space<vmem>>, vector<8x8xf32>
    %c347_1000 = arith.constant 347 : index
    %c0_1001 = arith.constant 0 : index
    %1232 = vector.load %arg14[%c347_1000, %c0_1001] : memref<408x8xf32, #tpu.memory_space<vmem>>, vector<8x8xf32>
    %cst_1002 = arith.constant 2.500000e-01 : f32
    %1233 = vector.broadcast %cst_1002 : f32 to vector<8x8xf32>
    %1234 = arith.mulf %1233, %1231 : vector<8x8xf32>
    %cst_1003 = arith.constant 7.500000e-01 : f32
    %1235 = vector.broadcast %cst_1003 : f32 to vector<8x8xf32>
    %1236 = arith.mulf %1235, %1232 : vector<8x8xf32>
    %1237 = arith.addf %1234, %1236 : vector<8x8xf32>
    %1238 = arith.truncf %1237 : vector<8x8xf32> to vector<8x8xbf16>
    %cst_1004 = arith.constant dense<0.000000e+00> : vector<16x8xf32>
    %1239 = tpu.matmul %4, %1238, %cst_1004 {dimension_numbers = #tpu.dot_dimension_numbers<[1], [0], [0], [1], [0, 0, 1, 1], [], []>} : vector<16x8xbf16>, vector<8x8xbf16>, vector<16x8xf32> -> vector<16x8xf32>
    %c192_1005 = arith.constant 192 : index
    %c0_1006 = arith.constant 0 : index
    %1240 = vector.load %arg15[%c192_1005, %c0_1006] : memref<256x8xf32, #tpu.memory_space<vmem>>, vector<16x8xf32>
    %1241 = arith.addf %1240, %1239 : vector<16x8xf32>
    %c192_1007 = arith.constant 192 : index
    %c0_1008 = arith.constant 0 : index
    %1242 = vector.load %arg15[%c192_1007, %c0_1008] : memref<256x8xf32, #tpu.memory_space<vmem>>, vector<16x8xf32>
    tpu.vector_store %arg15[%c192_1007, %c0_1008], %1241 {strides = array<i32>} : memref<256x8xf32, #tpu.memory_space<vmem>>, vector<16x8xf32>,
    %c347_1009 = arith.constant 347 : index
    %c0_1010 = arith.constant 0 : index
    %1243 = vector.load %arg14[%c347_1009, %c0_1010] : memref<408x8xf32, #tpu.memory_space<vmem>>, vector<8x8xf32>
    %c355_1011 = arith.constant 355 : index
    %c0_1012 = arith.constant 0 : index
    %1244 = vector.load %arg14[%c355_1011, %c0_1012] : memref<408x8xf32, #tpu.memory_space<vmem>>, vector<8x8xf32>
    %cst_1013 = arith.constant 7.500000e-01 : f32
    %1245 = vector.broadcast %cst_1013 : f32 to vector<8x8xf32>
    %1246 = arith.mulf %1245, %1243 : vector<8x8xf32>
    %cst_1014 = arith.constant 2.500000e-01 : f32
    %1247 = vector.broadcast %cst_1014 : f32 to vector<8x8xf32>
    %1248 = arith.mulf %1247, %1244 : vector<8x8xf32>
    %1249 = arith.addf %1246, %1248 : vector<8x8xf32>
    %1250 = arith.truncf %1249 : vector<8x8xf32> to vector<8x8xbf16>
    %cst_1015 = arith.constant dense<0.000000e+00> : vector<16x8xf32>
    %1251 = tpu.matmul %4, %1250, %cst_1015 {dimension_numbers = #tpu.dot_dimension_numbers<[1], [0], [0], [1], [0, 0, 1, 1], [], []>} : vector<16x8xbf16>, vector<8x8xbf16>, vector<16x8xf32> -> vector<16x8xf32>
    %c208_1016 = arith.constant 208 : index
    %c0_1017 = arith.constant 0 : index
    %1252 = vector.load %arg15[%c208_1016, %c0_1017] : memref<256x8xf32, #tpu.memory_space<vmem>>, vector<16x8xf32>
    %1253 = arith.addf %1252, %1251 : vector<16x8xf32>
    %c208_1018 = arith.constant 208 : index
    %c0_1019 = arith.constant 0 : index
    %1254 = vector.load %arg15[%c208_1018, %c0_1019] : memref<256x8xf32, #tpu.memory_space<vmem>>, vector<16x8xf32>
    tpu.vector_store %arg15[%c208_1018, %c0_1019], %1253 {strides = array<i32>} : memref<256x8xf32, #tpu.memory_space<vmem>>, vector<16x8xf32>,
    %c347_1020 = arith.constant 347 : index
    %c0_1021 = arith.constant 0 : index
    %1255 = vector.load %arg14[%c347_1020, %c0_1021] : memref<408x8xf32, #tpu.memory_space<vmem>>, vector<8x8xf32>
    %c355_1022 = arith.constant 355 : index
    %c0_1023 = arith.constant 0 : index
    %1256 = vector.load %arg14[%c355_1022, %c0_1023] : memref<408x8xf32, #tpu.memory_space<vmem>>, vector<8x8xf32>
    %cst_1024 = arith.constant 2.500000e-01 : f32
    %1257 = vector.broadcast %cst_1024 : f32 to vector<8x8xf32>
    %1258 = arith.mulf %1257, %1255 : vector<8x8xf32>
    %cst_1025 = arith.constant 7.500000e-01 : f32
    %1259 = vector.broadcast %cst_1025 : f32 to vector<8x8xf32>
    %1260 = arith.mulf %1259, %1256 : vector<8x8xf32>
    %1261 = arith.addf %1258, %1260 : vector<8x8xf32>
    %1262 = arith.truncf %1261 : vector<8x8xf32> to vector<8x8xbf16>
    %cst_1026 = arith.constant dense<0.000000e+00> : vector<16x8xf32>
    %1263 = tpu.matmul %4, %1262, %cst_1026 {dimension_numbers = #tpu.dot_dimension_numbers<[1], [0], [0], [1], [0, 0, 1, 1], [], []>} : vector<16x8xbf16>, vector<8x8xbf16>, vector<16x8xf32> -> vector<16x8xf32>
    %c224_1027 = arith.constant 224 : index
    %c0_1028 = arith.constant 0 : index
    %1264 = vector.load %arg15[%c224_1027, %c0_1028] : memref<256x8xf32, #tpu.memory_space<vmem>>, vector<16x8xf32>
    %1265 = arith.addf %1264, %1263 : vector<16x8xf32>
    %c224_1029 = arith.constant 224 : index
    %c0_1030 = arith.constant 0 : index
    %1266 = vector.load %arg15[%c224_1029, %c0_1030] : memref<256x8xf32, #tpu.memory_space<vmem>>, vector<16x8xf32>
    tpu.vector_store %arg15[%c224_1029, %c0_1030], %1265 {strides = array<i32>} : memref<256x8xf32, #tpu.memory_space<vmem>>, vector<16x8xf32>,
    %c355_1031 = arith.constant 355 : index
    %c0_1032 = arith.constant 0 : index
    %1267 = vector.load %arg14[%c355_1031, %c0_1032] : memref<408x8xf32, #tpu.memory_space<vmem>>, vector<8x8xf32>
    %1268 = arith.truncf %1267 : vector<8x8xf32> to vector<8x8xbf16>
    %cst_1033 = arith.constant dense<0.000000e+00> : vector<16x8xf32>
    %1269 = tpu.matmul %4, %1268, %cst_1033 {dimension_numbers = #tpu.dot_dimension_numbers<[1], [0], [0], [1], [0, 0, 1, 1], [], []>} : vector<16x8xbf16>, vector<8x8xbf16>, vector<16x8xf32> -> vector<16x8xf32>
    %c240_1034 = arith.constant 240 : index
    %c0_1035 = arith.constant 0 : index
    %1270 = vector.load %arg15[%c240_1034, %c0_1035] : memref<256x8xf32, #tpu.memory_space<vmem>>, vector<16x8xf32>
    %1271 = arith.addf %1270, %1269 : vector<16x8xf32>
    %c240_1036 = arith.constant 240 : index
    %c0_1037 = arith.constant 0 : index
    %1272 = vector.load %arg15[%c240_1036, %c0_1037] : memref<256x8xf32, #tpu.memory_space<vmem>>, vector<16x8xf32>
    tpu.vector_store %arg15[%c240_1036, %c0_1037], %1271 {strides = array<i32>} : memref<256x8xf32, #tpu.memory_space<vmem>>, vector<16x8xf32>,
    %c0_1038 = arith.constant 0 : index
    %c0_1039 = arith.constant 0 : index
    %1273 = vector.load %arg15[%c0_1038, %c0_1039] : memref<256x8xf32, #tpu.memory_space<vmem>>, vector<256x8xf32>
    %1274 = arith.truncf %1273 : vector<256x8xf32> to vector<256x8xbf16>
    %c0_1040 = arith.constant 0 : index
    %c0_1041 = arith.constant 0 : index
    %1275 = vector.load %arg11[%c0_1040, %c0_1041] : memref<8x128xbf16, #tpu.memory_space<vmem>>, vector<8x128xbf16>
    %cst_1042 = arith.constant dense<0.000000e+00> : vector<256x128xf32>
    %1276 = tpu.matmul %1274, %1275, %cst_1042 {dimension_numbers = #tpu.dot_dimension_numbers<[1], [0], [0], [1], [0, 0, 1, 1], [], []>} : vector<256x8xbf16>, vector<8x128xbf16>, vector<256x128xf32> -> vector<256x128xf32>
    %c0_1043 = arith.constant 0 : index
    %c0_1044 = arith.constant 0 : index
    %1277 = vector.load %arg12[%c0_1043, %c0_1044] : memref<1x128xf32, #tpu.memory_space<vmem>>, vector<1x128xf32>
    %1278 = vector.broadcast %1277 : vector<1x128xf32> to vector<256x128xf32>
    %1279 = arith.addf %1276, %1278 : vector<256x128xf32>
    %cst_1045 = arith.constant 0.000000e+00 : f32
    %1280 = vector.broadcast %cst_1045 : f32 to vector<256x128xf32>
    %1281 = arith.maximumf %1279, %1280 : vector<256x128xf32>
    %1282 = vector.shape_cast %1281 : vector<256x128xf32> to vector<1x256x128xf32>
    %c0_1046 = arith.constant 0 : index
    %c0_1047 = arith.constant 0 : index
    %c0_1048 = arith.constant 0 : index
    %1283 = vector.load %arg13[%c0_1046, %c0_1047, %c0_1048] : memref<1x256x128xf32, #tpu.memory_space<vmem>>, vector<1x256x128xf32>
    tpu.vector_store %arg13[%c0_1046, %c0_1047, %c0_1048], %1282 {strides = array<i32>} : memref<1x256x128xf32, #tpu.memory_space<vmem>>, vector<1x256x128xf32>,
    return
  }
  func.func @transform_0(%arg0: i32) -> (i32, i32, i32) {
    %c0_i32 = arith.constant 0 : i32
    %c0_i32_0 = arith.constant 0 : i32
    %c0_i32_1 = arith.constant 0 : i32
    return %arg0, %c0_i32, %c0_i32_0 : i32, i32, i32
  }
  func.func @transform_1(%arg0: i32) -> (i32, i32, i32) {
    %c0_i32 = arith.constant 0 : i32
    %c0_i32_0 = arith.constant 0 : i32
    %c0_i32_1 = arith.constant 0 : i32
    return %arg0, %c0_i32, %c0_i32_0 : i32, i32, i32
  }
  func.func @transform_2(%arg0: i32) -> (i32, i32, i32) {
    %c0_i32 = arith.constant 0 : i32
    %c0_i32_0 = arith.constant 0 : i32
    %c0_i32_1 = arith.constant 0 : i32
    return %arg0, %c0_i32, %c0_i32_0 : i32, i32, i32
  }
  func.func @transform_3(%arg0: i32) -> (i32, i32, i32) {
    %c0_i32 = arith.constant 0 : i32
    %c0_i32_0 = arith.constant 0 : i32
    %c0_i32_1 = arith.constant 0 : i32
    return %arg0, %c0_i32, %c0_i32_0 : i32, i32, i32
  }
  func.func @transform_4(%arg0: i32) -> (i32, i32, i32) {
    %c0_i32 = arith.constant 0 : i32
    %c0_i32_0 = arith.constant 0 : i32
    %c0_i32_1 = arith.constant 0 : i32
    %c0_i32_2 = arith.constant 0 : i32
    return %c0_i32, %c0_i32_0, %c0_i32_1 : i32, i32, i32
  }
  func.func @transform_5(%arg0: i32) -> (i32, i32, i32) {
    %c0_i32 = arith.constant 0 : i32
    %c0_i32_0 = arith.constant 0 : i32
    %c0_i32_1 = arith.constant 0 : i32
    %c0_i32_2 = arith.constant 0 : i32
    return %c0_i32, %c0_i32_0, %c0_i32_1 : i32, i32, i32
  }
  func.func @transform_6(%arg0: i32) -> (i32, i32, i32) {
    %c0_i32 = arith.constant 0 : i32
    %c0_i32_0 = arith.constant 0 : i32
    %c0_i32_1 = arith.constant 0 : i32
    %c0_i32_2 = arith.constant 0 : i32
    return %c0_i32, %c0_i32_0, %c0_i32_1 : i32, i32, i32
  }
  func.func @transform_7(%arg0: i32) -> (i32, i32) {
    %c0_i32 = arith.constant 0 : i32
    %c0_i32_0 = arith.constant 0 : i32
    %c0_i32_1 = arith.constant 0 : i32
    return %c0_i32, %c0_i32_0 : i32, i32
  }
  func.func @transform_8(%arg0: i32) -> (i32, i32) {
    %c0_i32 = arith.constant 0 : i32
    %c0_i32_0 = arith.constant 0 : i32
    %c0_i32_1 = arith.constant 0 : i32
    return %c0_i32, %c0_i32_0 : i32, i32
  }
  func.func @transform_9(%arg0: i32) -> (i32, i32) {
    %c0_i32 = arith.constant 0 : i32
    %c0_i32_0 = arith.constant 0 : i32
    %c0_i32_1 = arith.constant 0 : i32
    return %c0_i32, %c0_i32_0 : i32, i32
  }
  func.func @transform_10(%arg0: i32) -> (i32, i32) {
    %c0_i32 = arith.constant 0 : i32
    %c0_i32_0 = arith.constant 0 : i32
    %c0_i32_1 = arith.constant 0 : i32
    return %c0_i32, %c0_i32_0 : i32, i32
  }
  func.func @transform_11(%arg0: i32) -> (i32, i32) {
    %c0_i32 = arith.constant 0 : i32
    %c0_i32_0 = arith.constant 0 : i32
    %c0_i32_1 = arith.constant 0 : i32
    return %c0_i32, %c0_i32_0 : i32, i32
  }
  func.func @transform_12(%arg0: i32) -> (i32, i32, i32) {
    %c0_i32 = arith.constant 0 : i32
    %c0_i32_0 = arith.constant 0 : i32
    %c0_i32_1 = arith.constant 0 : i32
    return %arg0, %c0_i32, %c0_i32_0 : i32, i32, i32
  }
}

</mosaic_0001>

<bundles_post_ra>
// kernel: tpu_custom_call.1
= control target key start
LH: loop header
LB: loop body
LE: loop exit
PB: predicated region body
PF: predicated region fallthrough
CT: control target
= control target key end

     0   :  { %s18583_s0 = inlined_call_operand.vmem [shape: f32[2,256,4], index: 0, kind: input, shape index: {}]   ;;  %s18584_s1 = inlined_call_operand.vmem [shape: f32[2,64,4], index: 1, kind: input, shape index: {}]   ;;  %s18585_s2 = inlined_call_operand.vmem [shape: f32[2,16,4], index: 2, kind: input, shape index: {}]   ;;  %s18586_s3 = inlined_call_operand.vmem [shape: f32[2,4,4], index: 3, kind: input, shape index: {}]   ;;  %s18587_s4 = inlined_call_operand.vmem [shape: bf16[36,4,8], index: 4, kind: input, shape index: {}]   ;;  %s18588_s5 = inlined_call_operand.vmem [shape: bf16[27,8,8], index: 5, kind: input, shape index: {}]   ;;  %s18589_s6 = inlined_call_operand.vmem [shape: f32[7,1,8], index: 6, kind: input, shape index: {}]   ;;  %s18590_s7 = inlined_call_operand.vmem [shape: bf16[16,8], index: 7, kind: input, shape index: {}]   ;;  %s18591_s8 = inlined_call_operand.vmem [shape: bf16[8,4], index: 8, kind: input, shape index: {}]   ;;  %s18592_s9 = inlined_call_operand.vmem [shape: bf16[4,2], index: 9, kind: input, shape index: {}]   ;;  %s18593_s10 = inlined_call_operand.vmem [shape: bf16[8,128], index: 10, kind: input, shape index: {}]   ;;  %s18594_s11 = inlined_call_operand.vmem [shape: f32[1,128], index: 11, kind: input, shape index: {}]   ;;  %s18595_s12 = inlined_call_operand.hbm [shape: f32[2,256,128], index: 12, kind: output, shape index: {}]  }
   0x1   :  { %18733 = sst [smem:[#allocation75_spill]] %s18583_s0 }
   0x2   :  { %17 = vsyncpa [#allocation5], 0 }
   0x3   :  { %19 = vsyncpa [#allocation5 + $0x1], 0  ;;  %s15314_s21 = smov 0   ;;  %s15316_s22 = smov 0  }
   0x4   :  { %s15318_s23 = smov 0   ;;  %s15320_s24 = smov 0  }
   0x5 LB: > { %s15335_s25 = sadd.s32 4294967295, %s15242_s24   ;;  %s12456_s26 = sadd.s32 4294967294, %s15242_s24   ;;  %s15242_s24 = sphi %s15320_s24, %s18986_s24   ;;  %s15238_s23 = sphi %s15318_s23, %s18985_s23   ;;  %s15234_s22 = sphi %s15316_s22, %s18984_s22   ;;  %s15230_s21 = sphi %s15314_s21, %s18983_s21  }
   0x6   : > { %s15339_s27 = sadd.s32 1, %s15242_s24   ;;  %s304_s28 = sadd.s32 1, %s15238_s23 }
   0x7   : > { %s301_s29 = ssub.s32 %s15242_s24, %s15339_s27  ;;  %p314_p0 = scmp.ne.s32.totalorder %s15238_s23, %s15234_s22 }
   0x8   : > { %p302_p1 = scmp.eq.s32.totalorder %s301_s29, 0  ;;  %p315_p2 = scmp.eq.s32.totalorder %s15335_s25, 1 }
   0x9   : > { %p320_p3 = scmp.ne.s32.totalorder %s15234_s22, %s15230_s21  ;;  %p321_p4 = scmp.eq.s32.totalorder %s12456_s26, 1 }
   0xa   : > { %s15350_s30 = scalar_select %p302_p1, %s15238_s23, %s304_s28  }
   0xb   : > { %p15352_p5 = por %p315_p2, %p314_p0  ;;  %p15356_p6 = por %p321_p4, %p320_p3 }
   0xc   : > { %p12459_p7 = scmp.ge.s32.totalorder %s15242_s24, 1  ;;  %p394_p8 = scmp.lt.s32.totalorder %s15242_s24, 3 }
   0xe   : > { %p395_p9 = pnand %p12459_p7, %p394_p8 }
  0x10   : > { %398 = sbr.rel (%p395_p9) target bundleno = 3513 (0xdb9), region = 68 }
  0x17   : > { %v12500_v0 = vld [vmem:[%s18587_s4 + $0x2] sm:$0x3]  ;;  %vm1059_vm0 = vcmask 1041408   ;;  %vm470_vm1 = vcmask 64512   ;;  %v18599_v2 = vmov 0.0   ;;  %p450_p10 = scmp.lt.s32.totalorder %s15335_s25, 1 }
  0x18   : > { %15095 = vmatprep.subr.msk.bf16.mxu0 %vm1059_vm0, %v12500_v0  ;;  %15096 = vmatprep.subr.msk.bf16.mxu1 %vm1059_vm0, %v12500_v0  ;;  %v15368_v1 = vsel %vm1059_vm0, %v12500_v0, 0  ;;  %471 = vst.msk [vmem:[#allocation2] sm:$0xff] %vm470_vm1, %v18599_v2  ;;  %472 = vst.msk [vmem:[#allocation2 + $0x8] sm:$0xff] %vm470_vm1, %v18599_v2  ;;  %v15540_v3 = vld [vmem:[%s18587_s4 + $0x14] sm:$0x3]  ;;  %vm590_vm2 = vcmask 31744   ;;  %v623_v0 = vlaneseq }
  0x19   : > { %473 = vst.msk [vmem:[#allocation2 + $0x10] sm:$0xff] %vm470_vm1, %v18599_v2  ;;  %474 = vst.msk [vmem:[#allocation2 + $0x18] sm:$0xff] %vm470_vm1, %v18599_v2  ;;  %v15545_v4 = vld [vmem:[%s18587_s4] sm:$0x3]  ;;  %13466 = vmatpush3.bf16.msra.mxu0 %v15368_v1  ;;  %14646 = vmatpush3.bf16.msra.mxu1 %v15368_v1  ;;  %s15550_s26 = scalar_select %p450_p10, %s15335_s25, 1  ;;  %v3942_v46 = vsel %vm1059_vm0, %v15540_v3, 0 }
  0x1a   : > { %475 = vst.msk [vmem:[#allocation2 + $0x20] sm:$0xff] %vm470_vm1, %v18599_v2  ;;  %476 = vst.msk [vmem:[#allocation2 + $0x28] sm:$0xff] %vm470_vm1, %v18599_v2  ;;  %15105 = vmatprep.subr.msk.bf16.mxu1 %vm1059_vm0, %v15540_v3  ;;  %15097 = vmatprep.subr.msk.bf16.mxu0 %vm1059_vm0, %v15545_v4  ;;  %s18736_s0 = sld [smem:[#allocation75_spill]]  ;;  %v15610_v33 = vld [vmem:[%s18587_s4 + $0x4] sm:$0x3]  ;;  %v1273_v38 = vsel %vm1059_vm0, %v15545_v4, 0 }
  0x1b   : > { %477 = vst.msk [vmem:[#allocation2 + $0x30] sm:$0xff] %vm470_vm1, %v18599_v2  ;;  %478 = vst.msk [vmem:[#allocation2 + $0x38] sm:$0xff] %vm470_vm1, %v18599_v2  ;;  %s12966_s28 = sshll.u32 %s15550_s26, 8  ;;  %s12967_s19 = sshll.u32 %s15550_s26, 6  ;;  %v15625_v47 = vld [vmem:[%s18587_s4 + $0x12] sm:$0x3] }
  0x1c   : > { %479 = vst.msk [vmem:[#allocation2 + $0x40] sm:$0xff] %vm470_vm1, %v18599_v2  ;;  %480 = vst.msk [vmem:[#allocation2 + $0x48] sm:$0xff] %vm470_vm1, %v18599_v2  ;;  %s15632_s17 = scalar_lea.vmem %s18584_s1, %s12967_s19  ;;  %s12968_s29 = sshll.u32 %s15550_s26, 4 }
  0x1d   : > { %481 = vst.msk [vmem:[#allocation2 + $0x50] sm:$0xff] %vm470_vm1, %v18599_v2  ;;  %482 = vst.msk [vmem:[#allocation2 + $0x58] sm:$0xff] %vm470_vm1, %v18599_v2  ;;  %v3821_v63 = vld [vmem:[%s15632_s17] sm:$0xff]  ;;  %v3822_v3 = vld [vmem:[%s15632_s17 + $0x8] sm:$0xff]  ;;  %s464_s18 = scalar_lea.vmem %s18585_s2, %s12968_s29  ;;  %s12467_s29 = sshll.u32 %s15550_s26, 2 }
  0x1e   : > { %483 = vst.msk [vmem:[#allocation2 + $0x60] sm:$0xff] %vm470_vm1, %v18599_v2  ;;  %484 = vst.msk [vmem:[#allocation2 + $0x68] sm:$0xff] %vm470_vm1, %v18599_v2  ;;  %s447_s19 = sand.u32 1, %s15234_s22  }
  0x1f   : > { %485 = vst.msk [vmem:[#allocation2 + $0x70] sm:$0xff] %vm470_vm1, %v18599_v2  ;;  %486 = vst.msk [vmem:[#allocation2 + $0x78] sm:$0xff] %vm470_vm1, %v18599_v2  ;;  %v961_v8 = vld [vmem:[#allocation2 + $0x1] sm:$0xff] }
  0x20   : > { %487 = vst.msk [vmem:[#allocation2 + $0x80] sm:$0xff] %vm470_vm1, %v18599_v2  ;;  %488 = vst.msk [vmem:[#allocation2 + $0x88] sm:$0xff] %vm470_vm1, %v18599_v2  ;;  %s15560_s16 = scalar_lea.vmem %s18736_s0, %s12966_s28  ;;  %v962_v9 = vld [vmem:[#allocation2 + $0x9] sm:$0xff] }
  0x21   : > { %489 = vst.msk [vmem:[#allocation2 + $0x90] sm:$0xff] %vm470_vm1, %v18599_v2  ;;  %490 = vst.msk [vmem:[#allocation2 + $0x98] sm:$0xff] %vm470_vm1, %v18599_v2  ;;  %v558_v5 = vld [vmem:[%s15560_s16] sm:$0xff]  ;;  %v559_v6 = vld [vmem:[%s15560_s16 + $0x8] sm:$0xff]  ;;  %v993_v11 = vpack.c.bf16 %v962_v9, %v961_v8 }
  0x22   : > { %491 = vst.msk [vmem:[#allocation2 + $0xa0] sm:$0xff] %vm470_vm1, %v18599_v2  ;;  %492 = vst.msk [vmem:[#allocation2 + $0xa8] sm:$0xff] %vm470_vm1, %v18599_v2  ;;  %v576_v7 = vld [vmem:[%s15560_s16 + $0x90] sm:$0xff]  ;;  %v577_v10 = vld [vmem:[%s15560_s16 + $0x98] sm:$0xff] }
  0x23   : > { %493 = vst.msk [vmem:[#allocation2 + $0xb0] sm:$0xff] %vm470_vm1, %v18599_v2  ;;  %494 = vst.msk [vmem:[#allocation2 + $0xb8] sm:$0xff] %vm470_vm1, %v18599_v2  ;;  %v578_v12 = vld [vmem:[%s15560_s16 + $0xa0] sm:$0xff]  ;;  %v579_v13 = vld [vmem:[%s15560_s16 + $0xa8] sm:$0xff]  ;;  %13467 = vmatprep.mubr.msk.bf16.mxu0 %vm590_vm2, %v993_v11 }
  0x24   : > { %495 = vst.msk [vmem:[#allocation2 + $0xc0] sm:$0xff] %vm470_vm1, %v18599_v2  ;;  %496 = vst.msk [vmem:[#allocation2 + $0xc8] sm:$0xff] %vm470_vm1, %v18599_v2  ;;  %v560_v14 = vld [vmem:[%s15560_s16 + $0x10] sm:$0xff]  ;;  %v561_v15 = vld [vmem:[%s15560_s16 + $0x18] sm:$0xff] }
  0x25   : > { %497 = vst.msk [vmem:[#allocation2 + $0xd0] sm:$0xff] %vm470_vm1, %v18599_v2  ;;  %498 = vst.msk [vmem:[#allocation2 + $0xd8] sm:$0xff] %vm470_vm1, %v18599_v2  ;;  %v562_v16 = vld [vmem:[%s15560_s16 + $0x20] sm:$0xff]  ;;  %v563_v17 = vld [vmem:[%s15560_s16 + $0x28] sm:$0xff] }
  0x26   : > { %499 = vst.msk [vmem:[#allocation2 + $0xe0] sm:$0xff] %vm470_vm1, %v18599_v2  ;;  %500 = vst.msk [vmem:[#allocation2 + $0xe8] sm:$0xff] %vm470_vm1, %v18599_v2  ;;  %v580_v18 = vld [vmem:[%s15560_s16 + $0xb0] sm:$0xff]  ;;  %v581_v19 = vld [vmem:[%s15560_s16 + $0xb8] sm:$0xff] }
  0x27   : > { %501 = vst.msk [vmem:[#allocation2 + $0xf0] sm:$0xff] %vm470_vm1, %v18599_v2  ;;  %502 = vst.msk [vmem:[#allocation2 + $0xf8] sm:$0xff] %vm470_vm1, %v18599_v2  ;;  %v582_v20 = vld [vmem:[%s15560_s16 + $0xc0] sm:$0xff]  ;;  %v583_v21 = vld [vmem:[%s15560_s16 + $0xc8] sm:$0xff] }
  0x28   : > { %503 = vst.msk [vmem:[#allocation2 + $0x100] sm:$0xff] %vm470_vm1, %v18599_v2  ;;  %504 = vst.msk [vmem:[#allocation2 + $0x108] sm:$0xff] %vm470_vm1, %v18599_v2  ;;  %v564_v22 = vld [vmem:[%s15560_s16 + $0x30] sm:$0xff]  ;;  %v565_v23 = vld [vmem:[%s15560_s16 + $0x38] sm:$0xff] }
  0x29   : > { %505 = vst.msk [vmem:[#allocation2 + $0x110] sm:$0xff] %vm470_vm1, %v18599_v2  ;;  %506 = vst.msk [vmem:[#allocation2 + $0x118] sm:$0xff] %vm470_vm1, %v18599_v2  ;;  %v566_v24 = vld [vmem:[%s15560_s16 + $0x40] sm:$0xff]  ;;  %v567_v25 = vld [vmem:[%s15560_s16 + $0x48] sm:$0xff] }
  0x2a   : > { %507 = vst.msk [vmem:[#allocation2 + $0x120] sm:$0xff] %vm470_vm1, %v18599_v2  ;;  %508 = vst.msk [vmem:[#allocation2 + $0x128] sm:$0xff] %vm470_vm1, %v18599_v2  ;;  %v584_v26 = vld [vmem:[%s15560_s16 + $0xd0] sm:$0xff]  ;;  %v585_v27 = vld [vmem:[%s15560_s16 + $0xd8] sm:$0xff] }
  0x2b   : > { %509 = vst.msk [vmem:[#allocation2 + $0x130] sm:$0xff] %vm470_vm1, %v18599_v2  ;;  %510 = vst.msk [vmem:[#allocation2 + $0x138] sm:$0xff] %vm470_vm1, %v18599_v2  ;;  %v586_v28 = vld [vmem:[%s15560_s16 + $0xe0] sm:$0xff]  ;;  %v587_v29 = vld [vmem:[%s15560_s16 + $0xe8] sm:$0xff] }
  0x2c   : > { %511 = vst.msk [vmem:[#allocation2 + $0x140] sm:$0xff] %vm470_vm1, %v18599_v2  ;;  %512 = vst.msk [vmem:[#allocation2 + $0x148] sm:$0xff] %vm470_vm1, %v18599_v2  ;;  %v568_v36 = vld [vmem:[%s15560_s16 + $0x50] sm:$0xff]  ;;  %v569_v37 = vld [vmem:[%s15560_s16 + $0x58] sm:$0xff] }
  0x2d   : > { %513 = vst.msk [vmem:[#allocation2 + $0x150] sm:$0xff] %vm470_vm1, %v18599_v2  ;;  %514 = vst.msk [vmem:[#allocation2 + $0x158] sm:$0xff] %vm470_vm1, %v18599_v2  ;;  %v570_v61 = vld [vmem:[%s15560_s16 + $0x60] sm:$0xff]  ;;  %v571_v62 = vld [vmem:[%s15560_s16 + $0x68] sm:$0xff] }
  0x2e   : > { %515 = vst.msk [vmem:[#allocation2 + $0x160] sm:$0xff] %vm470_vm1, %v18599_v2  ;;  %516 = vst.msk [vmem:[#allocation2 + $0x168] sm:$0xff] %vm470_vm1, %v18599_v2  ;;  %v572_v8 = vld [vmem:[%s15560_s16 + $0x70] sm:$0xff]  ;;  %v574_v11 = vld [vmem:[%s15560_s16 + $0x80] sm:$0xff] }
  0x2f   : > { %517 = vst.msk [vmem:[#allocation2 + $0x170] sm:$0xff] %vm470_vm1, %v18599_v2  ;;  %518 = vst.msk [vmem:[#allocation2 + $0x178] sm:$0xff] %vm470_vm1, %v18599_v2 }
  0x30   : > { %519 = vst.msk [vmem:[#allocation2 + $0x180] sm:$0xff] %vm470_vm1, %v18599_v2  ;;  %520 = vst.msk [vmem:[#allocation2 + $0x188] sm:$0xff] %vm470_vm1, %v18599_v2 }
  0x31   : > { %521 = vst.msk [vmem:[#allocation2 + $0x190] sm:$0xff] %vm470_vm1, %v18599_v2  ;;  %522 = vst.msk [vmem:[#allocation3] sm:$0xff] %vm470_vm1, %v18599_v2 }
  0x32   : > { %523 = vst.msk [vmem:[#allocation3 + $0x8] sm:$0xff] %vm470_vm1, %v18599_v2  ;;  %524 = vst.msk [vmem:[#allocation3 + $0x10] sm:$0xff] %vm470_vm1, %v18599_v2 }
  0x33   : > { %525 = vst.msk [vmem:[#allocation3 + $0x18] sm:$0xff] %vm470_vm1, %v18599_v2  ;;  %526 = vst.msk [vmem:[#allocation3 + $0x20] sm:$0xff] %vm470_vm1, %v18599_v2 }
  0x34   : > { %527 = vst.msk [vmem:[#allocation3 + $0x28] sm:$0xff] %vm470_vm1, %v18599_v2  ;;  %528 = vst.msk [vmem:[#allocation3 + $0x30] sm:$0xff] %vm470_vm1, %v18599_v2 }
  0x35   : > { %529 = vst.msk [vmem:[#allocation3 + $0x38] sm:$0xff] %vm470_vm1, %v18599_v2  ;;  %530 = vst.msk [vmem:[#allocation3 + $0x40] sm:$0xff] %vm470_vm1, %v18599_v2 }
  0x36   : > { %531 = vst.msk [vmem:[#allocation3 + $0x48] sm:$0xff] %vm470_vm1, %v18599_v2  ;;  %532 = vst.msk [vmem:[#allocation3 + $0x50] sm:$0xff] %vm470_vm1, %v18599_v2 }
  0x37   : > { %533 = vst.msk [vmem:[#allocation3 + $0x58] sm:$0xff] %vm470_vm1, %v18599_v2  ;;  %534 = vst.msk [vmem:[#allocation3 + $0x60] sm:$0xff] %vm470_vm1, %v18599_v2 }
  0x38   : > { %535 = vst.msk [vmem:[#allocation3 + $0x68] sm:$0xff] %vm470_vm1, %v18599_v2  ;;  %536 = vst.msk [vmem:[#allocation3 + $0x70] sm:$0xff] %vm470_vm1, %v18599_v2 }
  0x39   : > { %537 = vst.msk [vmem:[#allocation3 + $0x78] sm:$0xff] %vm470_vm1, %v18599_v2  ;;  %538 = vst.msk [vmem:[#allocation3 + $0x80] sm:$0xff] %vm470_vm1, %v18599_v2 }
  0x3a   : > { %539 = vst.msk [vmem:[#allocation3 + $0x88] sm:$0xff] %vm470_vm1, %v18599_v2  ;;  %540 = vst.msk [vmem:[#allocation3 + $0x90] sm:$0xff] %vm470_vm1, %v18599_v2 }
  0x3b   : > { %541 = vst.msk [vmem:[#allocation3 + $0x98] sm:$0xff] %vm470_vm1, %v18599_v2  ;;  %542 = vst.msk [vmem:[#allocation3 + $0xa0] sm:$0xff] %vm470_vm1, %v18599_v2 }
  0x3c   : > { %543 = vst.msk [vmem:[#allocation3 + $0xa8] sm:$0xff] %vm470_vm1, %v18599_v2  ;;  %544 = vst.msk [vmem:[#allocation3 + $0xb0] sm:$0xff] %vm470_vm1, %v18599_v2 }
  0x3d   : > { %545 = vst.msk [vmem:[#allocation3 + $0xb8] sm:$0xff] %vm470_vm1, %v18599_v2  ;;  %546 = vst.msk [vmem:[#allocation3 + $0xc0] sm:$0xff] %vm470_vm1, %v18599_v2 }
  0x3e   : > { %547 = vst.msk [vmem:[#allocation3 + $0xc8] sm:$0xff] %vm470_vm1, %v18599_v2  ;;  %548 = vst.msk [vmem:[#allocation3 + $0xd0] sm:$0xff] %vm470_vm1, %v18599_v2 }
  0x3f   : > { %549 = vst.msk [vmem:[#allocation3 + $0xd8] sm:$0xff] %vm470_vm1, %v18599_v2  ;;  %550 = vst.msk [vmem:[#allocation3 + $0xe0] sm:$0xff] %vm470_vm1, %v18599_v2 }
  0x40   : > { %551 = vst.msk [vmem:[#allocation3 + $0xe8] sm:$0xff] %vm470_vm1, %v18599_v2  ;;  %552 = vst.msk [vmem:[#allocation3 + $0xf0] sm:$0xff] %vm470_vm1, %v18599_v2 }
  0x41   : > { %553 = vst.msk [vmem:[#allocation3 + $0xf8] sm:$0xff] %vm470_vm1, %v18599_v2 }
  0x42   : > { %591 = vst.msk [vmem:[#allocation2 + $0x11] sm:$0xff] %vm590_vm2, %v558_v5  ;;  %592 = vst.msk [vmem:[#allocation2 + $0x19] sm:$0xff] %vm590_vm2, %v559_v6 }
  0x43   : > { %609 = vst.msk [vmem:[#allocation2 + $0xa1] sm:$0xff] %vm590_vm2, %v576_v7  ;;  %610 = vst.msk [vmem:[#allocation2 + $0xa9] sm:$0xff] %vm590_vm2, %v577_v10  ;;  %v3823_v7 = vld [vmem:[%s15632_s17 + $0x10] sm:$0xff]  ;;  %v573_v10 = vld [vmem:[%s15560_s16 + $0x78] sm:$0xff] }
  0x44   : > { %611 = vst.msk [vmem:[#allocation2 + $0xb1] sm:$0xff] %vm590_vm2, %v578_v12  ;;  %612 = vst.msk [vmem:[#allocation2 + $0xb9] sm:$0xff] %vm590_vm2, %v579_v13  ;;  %v575_v12 = vld [vmem:[%s15560_s16 + $0x88] sm:$0xff]  ;;  %v3824_v13 = vld [vmem:[%s15632_s17 + $0x18] sm:$0xff] }
  0x45   : > { %593 = vst.msk [vmem:[#allocation2 + $0x21] sm:$0xff] %vm590_vm2, %v560_v14  ;;  %594 = vst.msk [vmem:[#allocation2 + $0x29] sm:$0xff] %vm590_vm2, %v561_v15  ;;  %v3825_v14 = vld [vmem:[%s15632_s17 + $0x20] sm:$0xff]  ;;  %v3826_v15 = vld [vmem:[%s15632_s17 + $0x28] sm:$0xff] }
  0x46   : > { %595 = vst.msk [vmem:[#allocation2 + $0x31] sm:$0xff] %vm590_vm2, %v562_v16  ;;  %596 = vst.msk [vmem:[#allocation2 + $0x39] sm:$0xff] %vm590_vm2, %v563_v17  ;;  %v15663_v16 = vshrl.u32 %v623_v0, 7 }
  0x47   : > { %613 = vst.msk [vmem:[#allocation2 + $0xc1] sm:$0xff] %vm590_vm2, %v580_v18  ;;  %614 = vst.msk [vmem:[#allocation2 + $0xc9] sm:$0xff] %vm590_vm2, %v581_v19  ;;  %v3827_v18 = vld [vmem:[%s15632_s17 + $0x30] sm:$0xff]  ;;  %v3828_v19 = vld [vmem:[%s15632_s17 + $0x38] sm:$0xff] }
  0x48   : > { %615 = vst.msk [vmem:[#allocation2 + $0xd1] sm:$0xff] %vm590_vm2, %v582_v20  ;;  %616 = vst.msk [vmem:[#allocation2 + $0xd9] sm:$0xff] %vm590_vm2, %v583_v21 }
  0x49   : > { %597 = vst.msk [vmem:[#allocation2 + $0x41] sm:$0xff] %vm590_vm2, %v564_v22  ;;  %598 = vst.msk [vmem:[#allocation2 + $0x49] sm:$0xff] %vm590_vm2, %v565_v23  ;;  %v963_v30 = vld [vmem:[#allocation2 + $0x11] sm:$0xff]  ;;  %v964_v31 = vld [vmem:[#allocation2 + $0x19] sm:$0xff] }
  0x4a   : > { %599 = vst.msk [vmem:[#allocation2 + $0x51] sm:$0xff] %vm590_vm2, %v566_v24  ;;  %600 = vst.msk [vmem:[#allocation2 + $0x59] sm:$0xff] %vm590_vm2, %v567_v25  ;;  %v981_v32 = vld [vmem:[#allocation2 + $0xa1] sm:$0xff]  ;;  %v994_v34 = vpack.c.bf16 %v964_v31, %v963_v30  ;;  %v982_v35 = vld [vmem:[#allocation2 + $0xa9] sm:$0xff] }
  0x4b   : > { %617 = vst.msk [vmem:[#allocation2 + $0xe1] sm:$0xff] %vm590_vm2, %v584_v26  ;;  %618 = vst.msk [vmem:[#allocation2 + $0xe9] sm:$0xff] %vm590_vm2, %v585_v27  ;;  %v1003_v39 = vpack.c.bf16 %v982_v35, %v981_v32  ;;  %v983_v40 = vld [vmem:[#allocation2 + $0xb1] sm:$0xff]  ;;  %v984_v41 = vld [vmem:[#allocation2 + $0xb9] sm:$0xff]  ;;  %v15677_v26 = vadd.s32 8, %v15663_v16  ;;  %v3837_v32 = vand.u32 7, %v15663_v16 }
  0x4c   : > { %619 = vst.msk [vmem:[#allocation2 + $0xf1] sm:$0xff] %vm590_vm2, %v586_v28  ;;  %620 = vst.msk [vmem:[#allocation2 + $0xf9] sm:$0xff] %vm590_vm2, %v587_v29  ;;  %v965_v42 = vld [vmem:[#allocation2 + $0x21] sm:$0xff]  ;;  %13468 = vmatmul.mubr.msk.bf16.vlgmr.msra.gmra.mrb[0].mxu0 %vm590_vm2, %v994_v34  ;;  %v1004_v43 = vpack.c.bf16 %v984_v41, %v983_v40  ;;  %v966_v44 = vld [vmem:[#allocation2 + $0x29] sm:$0xff]  ;;  %v656_v29 = vand.u32 15, %v15663_v16  ;;  %v15695_v40 = vadd.s32 32, %v15663_v16 }
  0x4d   : > { %601 = vst.msk [vmem:[#allocation2 + $0x61] sm:$0xff] %vm590_vm2, %v568_v36  ;;  %602 = vst.msk [vmem:[#allocation2 + $0x69] sm:$0xff] %vm590_vm2, %v569_v37  ;;  %v967_v45 = vld [vmem:[#allocation2 + $0x31] sm:$0xff]  ;;  %13487 = vmatprep.mubr.msk.bf16.mxu1 %vm590_vm2, %v1003_v39  ;;  %v995_v48 = vpack.c.bf16 %v966_v44, %v965_v42  ;;  %v968_v49 = vld [vmem:[#allocation2 + $0x39] sm:$0xff]  ;;  %13500 = vmatpush3.bf16.msra.mxu0 %v1273_v38  ;;  %v3838_v34 = vand.u32 7, %v15677_v26  ;;  %v15687_v37 = vadd.s32 16, %v15663_v16 }
  0x4e   : > { %v985_v50 = vld [vmem:[#allocation2 + $0xc1] sm:$0xff]  ;;  %v986_v51 = vld [vmem:[#allocation2 + $0xc9] sm:$0xff]  ;;  %13488 = vmatmul.mubr.msk.bf16.vlgmr.msra.gmra.mrb[0].mxu1 %vm590_vm2, %v1004_v43  ;;  %15098 = vmatprep.subr.msk.bf16.mxu0 %vm1059_vm0, %v15610_v33  ;;  %v996_v57 = vpack.c.bf16 %v968_v49, %v967_v45  ;;  %603 = vst.msk [vmem:[#allocation2 + $0x71] sm:$0xff] %vm590_vm2, %v570_v61  ;;  %604 = vst.msk [vmem:[#allocation2 + $0x79] sm:$0xff] %vm590_vm2, %v571_v62  ;;  %vm688_vm3 = vcmp.gt.s32.totalorder %v656_v29, 0  ;;  %v15702_v44 = vadd.s32 24, %v15663_v16 }
  0x4f   : > { %v1005_v52 = vpack.c.bf16 %v986_v51, %v985_v50  ;;  %13471 = vmatprep.mubr.msk.bf16.mxu0 %vm590_vm2, %v995_v48  ;;  %v987_v55 = vld [vmem:[#allocation2 + $0xd1] sm:$0xff]  ;;  %v988_v56 = vld [vmem:[#allocation2 + $0xd9] sm:$0xff]  ;;  %13772 = vmatpush3.bf16.msra.mxu1 %v3942_v46  ;;  %3829 = vst.msk [vmem:[#allocation2 + $0x12b] sm:$0xff] %vm590_vm2, %v3821_v63  ;;  %3830 = vst.msk [vmem:[#allocation2 + $0x133] sm:$0xff] %vm590_vm2, %v3822_v3  ;;  %vm3845_vm4 = vcmp.gt.s32.totalorder %v3837_v32, 0  ;;  %vm3846_vm5 = vcmp.gt.s32.totalorder %v3838_v34, 0 }
  0x50   : > { %v969_v53 = vld [vmem:[#allocation2 + $0x41] sm:$0xff]  ;;  %v970_v54 = vld [vmem:[#allocation2 + $0x49] sm:$0xff]  ;;  %15106 = vmatprep.subr.msk.bf16.mxu1 %vm1059_vm0, %v15625_v47  ;;  %v1006_v1 = vpack.c.bf16 %v988_v56, %v987_v55  ;;  %3831 = vst.msk [vmem:[#allocation2 + $0x13b] sm:$0xff] %vm590_vm2, %v3823_v7  ;;  %605 = vst.msk [vmem:[#allocation2 + $0x81] sm:$0xff] %vm590_vm2, %v572_v8  ;;  %v15709_v46 = vadd.s32 40, %v15663_v16  ;;  %v15716_v49 = vsel %vm688_vm3, 1.0, %v18599_v2 }
  0x51   : > { %13491 = vmatprep.mubr.msk.bf16.mxu1 %vm590_vm2, %v1005_v52  ;;  %v997_v60 = vpack.c.bf16 %v970_v54, %v969_v53  ;;  %v971_v4 = vld [vmem:[#allocation2 + $0x51] sm:$0xff]  ;;  %v972_v5 = vld [vmem:[#allocation2 + $0x59] sm:$0xff]  ;;  %606 = vst.msk [vmem:[#allocation2 + $0x89] sm:$0xff] %vm590_vm2, %v573_v10  ;;  %607 = vst.msk [vmem:[#allocation2 + $0x91] sm:$0xff] %vm590_vm2, %v574_v11  ;;  %v658_v51 = vand.u32 15, %v15687_v37  ;;  %v3839_v52 = vand.u32 7, %v15687_v37 }
  0x52   : > { %v989_v58 = vld [vmem:[#allocation2 + $0xe1] sm:$0xff]  ;;  %v990_v59 = vld [vmem:[#allocation2 + $0xe9] sm:$0xff]  ;;  %608 = vst.msk [vmem:[#allocation2 + $0x99] sm:$0xff] %vm590_vm2, %v575_v12  ;;  %18737 = vst [vmem:[#allocation7_spill] sm:$0xff] %v15663_v16  ;;  %v998_v22 = vpack.c.bf16 %v972_v5, %v971_v4  ;;  %v660_v54 = vand.u32 15, %v15695_v40  ;;  %v4022_v55 = vsel %vm1059_vm0, %v15625_v47, 0 }
  0x53   : > { %v1007_v6 = vpack.c.bf16 %v990_v59, %v989_v58  ;;  %3832 = vst.msk [vmem:[#allocation2 + $0x143] sm:$0xff] %vm590_vm2, %v3824_v13  ;;  %3833 = vst.msk [vmem:[#allocation2 + $0x14b] sm:$0xff] %vm590_vm2, %v3825_v14  ;;  %v991_v20 = vld [vmem:[#allocation2 + $0xf1] sm:$0xff]  ;;  %v992_v21 = vld [vmem:[#allocation2 + $0xf9] sm:$0xff]  ;;  %v15729_v56 = vsel %vm3845_vm4, 1.0, %v18599_v2  ;;  %v18602_v0 = vand.u32 7, %v15695_v40 }
  0x54   : > { %13472 = vmatmul.mubr.msk.bf16.gmra.mrb[4].mxu0 %vm590_vm2, %v996_v57  ;;  %v973_v9 = vld [vmem:[#allocation2 + $0x61] sm:$0xff]  ;;  %v974_v17 = vld [vmem:[#allocation2 + $0x69] sm:$0xff]  ;;  %3834 = vst.msk [vmem:[#allocation2 + $0x153] sm:$0xff] %vm590_vm2, %v3826_v15  ;;  %3835 = vst.msk [vmem:[#allocation2 + $0x15b] sm:$0xff] %vm590_vm2, %v3827_v18  ;;  %v1008_v27 = vpack.c.bf16 %v992_v21, %v991_v20  ;;  %v15732_v57 = vsel %vm3846_vm5, 1.0, %v18599_v2  ;;  %v18598_v47 = vand.u32 7, %v15709_v46 }
  0x55   : > { %13475 = vmatprep.mubr.msk.bf16.mxu0 %vm590_vm2, %v997_v60  ;;  %3836 = vst.msk [vmem:[#allocation2 + $0x163] sm:$0xff] %vm590_vm2, %v3828_v19  ;;  %v3915_v23 = vld [vmem:[#allocation2 + $0x123] sm:$0xff]  ;;  %v999_v24 = vpack.c.bf16 %v974_v17, %v973_v9  ;;  %18738 = vst [vmem:[#allocation8_spill] sm:$0xff] %v15677_v26  ;;  %v975_v30 = vld [vmem:[#allocation2 + $0x71] sm:$0xff]  ;;  %v18601_v60 = vand.u32 7, %v15702_v44  ;;  %vm15748_vm6 = vcmp.gt.s32.totalorder %v658_v51, 0 }
  0x56   : > { %13492 = vmatmul.mubr.msk.bf16.gmra.mrb[4].mxu1 %vm590_vm2, %v1006_v1  ;;  %v15674_v25 = vld [vmem:[#allocation2 + $0x12b] sm:$0xff]  ;;  %v976_v31 = vld [vmem:[#allocation2 + $0x79] sm:$0xff]  ;;  %18739 = vst [vmem:[#allocation9_spill] sm:$0xff] %v15709_v46  ;;  %18741 = vst [vmem:[#allocation11_spill] sm:$0xff] %v15716_v49  ;;  %vm15754_vm7 = vcmp.gt.s32.totalorder %v3839_v52, 0  ;;  %vm692_vm8 = vcmp.gt.s32.totalorder %v660_v54, 0 }
  0x57   : > { %13495 = vmatprep.mubr.msk.bf16.mxu1 %vm590_vm2, %v1007_v6  ;;  %v3923_v28 = vpack.c.bf16 %v15674_v25, %v3915_v23  ;;  %v977_v35 = vld [vmem:[#allocation2 + $0x81] sm:$0xff]  ;;  %v15690_v38 = vld [vmem:[#allocation2 + $0x133] sm:$0xff]  ;;  %v1000_v41 = vpack.c.bf16 %v976_v31, %v975_v30  ;;  %18743 = vst [vmem:[#allocation13_spill] sm:$0xff] %v15729_v56  ;;  %18744 = vst [vmem:[#allocation14_spill] sm:$0xff] %v15732_v57  ;;  %v15759_v6 = vadd.s32 48, %v15663_v16  ;;  %v632_v11 = vadd.s32 64, %v15663_v16 }
  0x58   : > { %v978_v36 = vld [vmem:[#allocation2 + $0x89] sm:$0xff]  ;;  %v15692_v39 = vld [vmem:[#allocation2 + $0x13b] sm:$0xff]  ;;  %v979_v61 = vld [vmem:[#allocation2 + $0x91] sm:$0xff]  ;;  %vm3848_vm9 = vcmp.gt.s32.totalorder %v18601_v60, 0  ;;  %v15774_v13 = vadd.s32 56, %v15663_v16  ;;  %v15781_v15 = vsel %vm15748_vm6, 1.0, %v18599_v2 }
  0x59   : > { %v1001_v45 = vpack.c.bf16 %v978_v36, %v977_v35  ;;  %v15713_v48 = vpack.c.bf16 %v15692_v39, %v15690_v38  ;;  %v880_v50 = vld [vmem:[#allocation2] sm:$0xff]  ;;  %v15734_v59 = vld [vmem:[#allocation2 + $0x12a] sm:$0xff]  ;;  %v15744_v1 = vld [vmem:[%s18587_s4 + $0x16] sm:$0x3]  ;;  %18752 = vst [vmem:[#allocation18_spill] sm:$0xff] %v15781_v15  ;;  %vm3849_vm10 = vcmp.gt.s32.totalorder %v18602_v0, 0 }
  0x5a   : > { %v15697_v42 = vld [vmem:[#allocation2 + $0x143] sm:$0xff]  ;;  %v15699_v43 = vld [vmem:[#allocation2 + $0x14b] sm:$0xff]  ;;  %v980_v62 = vld [vmem:[#allocation2 + $0x99] sm:$0xff]  ;;  %v912_v63 = vmul.f32 %v15716_v49, %v880_v50  ;;  %v3902_v10 = vmul.f32 %v15732_v57, %v15734_v59  ;;  %18751 = vst [vmem:[#allocation17_spill] sm:$0xff] %v15774_v13  ;;  %vm3850_vm11 = vcmp.gt.s32.totalorder %v18598_v47, 0  ;;  %v15794_v19 = vsel %vm15754_vm7, 1.0, %v18599_v2 }
  0x5b   : > { %18740 = vst [vmem:[#allocation10_spill] sm:$0xff] %v15713_v48  ;;  %v15722_v53 = vpack.c.bf16 %v15699_v43, %v15697_v42  ;;  %v3893_v58 = vld [vmem:[#allocation2 + $0x122] sm:$0xff]  ;;  %v15763_v7 = vld [vmem:[#allocation2 + $0x153] sm:$0xff]  ;;  %v1002_v12 = vpack.c.bf16 %v980_v62, %v979_v61  ;;  %18754 = vst [vmem:[#allocation20_spill] sm:$0xff] %v15794_v19  ;;  %v15797_v20 = vsel %vm692_vm8, 1.0, %v18599_v2  ;;  %v18597_v29 = vand.u32 7, %v15759_v6 }
  0x5c   : > { %13476 = vmatmul.mubr.msk.bf16.gmra.mrb[8].mxu0 %vm590_vm2, %v998_v22  ;;  %v881_v3 = vld [vmem:[#allocation2 + $0x8] sm:$0xff]  ;;  %18749 = vst [vmem:[#allocation15_spill] sm:$0xff] %v15763_v7  ;;  %v15765_v8 = vld [vmem:[#allocation2 + $0x15b] sm:$0xff]  ;;  %v3901_v9 = vmul.f32 %v15729_v56, %v3893_v58  ;;  %v882_v17 = vld [vmem:[#allocation2 + $0x10] sm:$0xff]  ;;  %v662_v22 = vand.u32 15, %v15759_v6  ;;  %v664_v30 = vand.u32 15, %v632_v11 }
  0x5d   : > { %13479 = vmatprep.mubr.msk.bf16.mxu0 %vm590_vm2, %v999_v24  ;;  %18742 = vst [vmem:[#allocation12_spill] sm:$0xff] %v15722_v53  ;;  %18750 = vst [vmem:[#allocation16_spill] sm:$0xff] %v15765_v8  ;;  %v944_v14 = vpack.c.bf16 %v881_v3, %v912_v63  ;;  %v15789_v18 = vpack.c.bf16 %v15765_v8, %v15763_v7  ;;  %v15799_v21 = vld [vmem:[#allocation2 + $0x20] sm:$0xff]  ;;  %v15803_v24 = vsel %vm3848_vm9, 1.0, %v18599_v2  ;;  %v15813_v35 = vsel %vm3849_vm10, 1.0, %v18599_v2  ;;  %v883_v51 = vld [vmem:[#allocation2 + $0x18] sm:$0xff] }
  0x5e   : > { %13496 = vmatmul.mubr.msk.bf16.gmra.mrb[8].mxu1 %vm590_vm2, %v1008_v27  ;;  %18755 = vst [vmem:[#allocation21_spill] sm:$0xff] %v15797_v20  ;;  %v3909_v23 = vpack.c.bf16 %v3902_v10, %v3901_v9  ;;  %18756 = vst [vmem:[#allocation22_spill] sm:$0xff] %v15803_v24  ;;  %v15805_v27 = vld [vmem:[#allocation2 + $0x132] sm:$0xff]  ;;  %v914_v31 = vmul.f32 %v15781_v15, %v882_v17  ;;  %v15816_v36 = vsel %vm3850_vm11, 1.0, %v18599_v2  ;;  %v18596_v50 = vand.u32 7, %v15774_v13  ;;  %v15832_v61 = vld [vmem:[#allocation2 + $0x28] sm:$0xff] }
  0x5f   : > { %13773 = vmatprep.mubr.msk.bf16.mxu1 %vm590_vm2, %v3923_v28  ;;  %18753 = vst [vmem:[#allocation19_spill] sm:$0xff] %v15789_v18  ;;  %18757 = vst [vmem:[#allocation23_spill] sm:$0xff] %v15805_v27  ;;  %v15807_v28 = vld [vmem:[#allocation2 + $0x13a] sm:$0xff]  ;;  %v916_v54 = vmul.f32 %v15797_v20, %v15799_v21  ;;  %vm694_vm12 = vcmp.gt.s32.totalorder %v662_v22, 0  ;;  %v634_v62 = vadd.s32 80, %v15663_v16  ;;  %vm696_vm13 = vcmp.gt.s32.totalorder %v664_v30, 0 }
  0x60   : > { %18758 = vst [vmem:[#allocation24_spill] sm:$0xff] %v15807_v28  ;;  %18759 = vst [vmem:[#allocation25_spill] sm:$0xff] %v15813_v35  ;;  %v3904_v58 = vmul.f32 %v15803_v24, %v15807_v28  ;;  %v636_v4 = vadd.s32 96, %v15663_v16  ;;  %v945_v5 = vpack.c.bf16 %v883_v51, %v914_v31  ;;  %vm3851_vm14 = vcmp.gt.s32.totalorder %v18597_v29, 0  ;;  %v15849_v11 = vld [vmem:[#allocation2 + $0x30] sm:$0xff]  ;;  %v15913_v47 = vld [vmem:[#allocation2 + $0x48] sm:$0xff] }
  0x61   : > { %18760 = vst [vmem:[#allocation26_spill] sm:$0xff] %v15816_v36  ;;  %vm3852_vm15 = vcmp.gt.s32.totalorder %v18596_v50, 0  ;;  %v946_v9 = vpack.c.bf16 %v15832_v61, %v916_v54  ;;  %v15847_v10 = vsel %vm694_vm12, 1.0, %v18599_v2  ;;  %vm15853_vm3 = vcmp.lt.s32.totalorder %v3837_v32, 7  ;;  %v15878_v50 = vld [vmem:[#allocation2 + $0x15a] sm:$0xff]  ;;  %v588_v37 = vld [vmem:[%s15560_s16 + $0xf0] sm:$0xff] }
  0x62   : > { %18763 = vst [vmem:[#allocation29_spill] sm:$0xff] %v15847_v10  ;;  %vm15859_vm4 = vcmp.lt.s32.totalorder %v3838_v34, 7  ;;  %v15864_v22 = vsel %vm696_vm13, 1.0, %v18599_v2  ;;  %v666_v30 = vand.u32 15, %v634_v62  ;;  %v1567_v31 = vsel %vm1059_vm0, %v15610_v33, 0  ;;  %v15876_v34 = vld [vmem:[#allocation2 + $0x152] sm:$0xff] }
  0x63   : > { %18768 = vst [vmem:[#allocation30_spill] sm:$0xff] %v15864_v22  ;;  %v15871_v32 = vsel %vm3851_vm14, 1.0, %v18599_v2  ;;  %v15874_v54 = vsel %vm3852_vm15, 1.0, %v18599_v2  ;;  %18771 = vst [vmem:[#allocation33_spill] sm:$0xff] %v15876_v34  ;;  %v4124_v33 = vsel %vm1059_vm0, %v15744_v1, 0  ;;  %v15888_v62 = vsel %vm15853_vm3, 1.0, %v18599_v2 }
  0x64   : > { %13480 = vmatmul.mubr.msk.bf16.gmra.mrb[12].mxu0 %vm590_vm2, %v1000_v41  ;;  %v15818_v41 = vld [vmem:[#allocation2 + $0x142] sm:$0xff]  ;;  %18769 = vst [vmem:[#allocation31_spill] sm:$0xff] %v15871_v32  ;;  %18770 = vst [vmem:[#allocation32_spill] sm:$0xff] %v15874_v54  ;;  %v638_v29 = vadd.s32 112, %v15663_v16  ;;  %vm698_vm5 = vcmp.gt.s32.totalorder %v666_v30, 0  ;;  %v640_v60 = vadd.s32 128, %v15663_v16 }
  0x65   : > { %13483 = vmatprep.mubr.msk.bf16.mxu0 %vm590_vm2, %v1001_v45  ;;  %18761 = vst [vmem:[#allocation27_spill] sm:$0xff] %v15818_v41  ;;  %v15820_v45 = vld [vmem:[#allocation2 + $0x14a] sm:$0xff]  ;;  %v3905_v63 = vmul.f32 %v15813_v35, %v15818_v41  ;;  %18772 = vst [vmem:[#allocation34_spill] sm:$0xff] %v15888_v62  ;;  %vm15926_vm7 = vcmp.lt.s32.totalorder %v3839_v52, 7  ;;  %v18779_v30 = vand.u32 7, %v15695_v40  ;;  %v18785_v49 = vmov 0.0  }
  0x66   : > { %13774 = vmatmul.mubr.msk.bf16.vlgmr.msra.gmra.mrb[12].mxu1 %vm590_vm2, %v15713_v48  ;;  %18762 = vst [vmem:[#allocation28_spill] sm:$0xff] %v15820_v45  ;;  %v3906_v3 = vmul.f32 %v15816_v36, %v15820_v45  ;;  %v15948_v40 = vsel %vm698_vm5, 1.0, %v18785_v49  ;;  %621 = vst.msk [vmem:[#allocation2 + $0x101] sm:$0xff] %vm590_vm2, %v588_v37  ;;  %v15976_v37 = vsel %vm15926_vm7, 1.0, %v18785_v49  ;;  %v672_v8 = vand.u32 15, %v640_v60 }
  0x67   : > { %13777 = vmatprep.mubr.msk.bf16.mxu1 %vm590_vm2, %v15722_v53  ;;  %13782 = vmatpush3.bf16.msra.mxu1 %v4022_v55  ;;  %v3903_v55 = vmul.f32 %v15794_v19, %v15805_v27  ;;  %vm15932_vm8 = vcmp.lt.s32.totalorder %v18779_v30, 7  ;;  %18786 = vst [vmem:[#allocation37_spill] sm:$0xff] %v15948_v40  ;;  %v15950_v30 = vld [vmem:[#allocation2 + $0x50] sm:$0xff]  ;;  %18792 = vst [vmem:[#allocation40_spill] sm:$0xff] %v15976_v37  ;;  %v18800_v60 = vand.u32 7, %v15759_v6  ;;  %v16020_v6 = vld [vmem:[#allocation2 + $0x68] sm:$0xff] }
  0x68   : > { %15107 = vmatprep.subr.msk.bf16.mxu1 %vm1059_vm0, %v15744_v1  ;;  %v3911_v51 = vpack.c.bf16 %v3906_v3, %v3905_v63  ;;  %v15893_v63 = vsel %vm15859_vm4, 1.0, %v18599_v2  ;;  %v4089_v3 = vld [vmem:[#allocation2 + $0x124] sm:$0xff]  ;;  %vm704_vm13 = vcmp.gt.s32.totalorder %v672_v8, 0 }
  0x69   : > { %v3910_v17 = vpack.c.bf16 %v3904_v58, %v3903_v55  ;;  %v668_v55 = vand.u32 15, %v636_v4  ;;  %v918_v58 = vmul.f32 %v15847_v10, %v15849_v11  ;;  %18773 = vst [vmem:[#allocation35_spill] sm:$0xff] %v15893_v63  ;;  %v15895_v4 = vld [vmem:[#allocation2 + $0x12c] sm:$0xff]  ;;  %v4097_v2 = vmul.f32 %v15888_v62, %v4089_v3 }
  0x6a   : > { %18774 = vst [vmem:[#allocation36_spill] sm:$0xff] %v15895_v4  ;;  %v16002_v3 = vld [vmem:[#allocation2 + $0x14c] sm:$0xff]  ;;  %vm16006_vm11 = vcmp.lt.s32.totalorder %v18800_v60, 7  ;;  %v642_v60 = vadd.s32 144, %v15663_v16 }
  0x6b   : > { %vm15919_vm6 = vcmp.gt.s32.totalorder %v668_v55, 0  ;;  %v18782_v55 = vand.u32 7, %v15702_v44  ;;  %18799 = vst [vmem:[#allocation47_spill] sm:$0xff] %v16002_v3 }
  0x6c   : > { %13484 = vmatmul.mubr.msk.bf16.gmra.mrb[16].mxu0 %vm590_vm2, %v1002_v12  ;;  %v15906_v12 = vld [vmem:[%s18587_s4 + $0x18] sm:$0x3]  ;;  %v15967_v48 = vsel %vm15919_vm6, 1.0, %v18785_v49 }
  0x6d   : > { %13501 = vmatprep.mubr.msk.bf16.mxu0 %vm590_vm2, %v944_v14  ;;  %v3907_v14 = vmul.f32 %v15871_v32, %v15876_v34  ;;  %vm15939_vm9 = vcmp.lt.s32.totalorder %v18782_v55, 7  ;;  %v15962_v55 = vld [vmem:[%s18587_s4 + $0x6] sm:$0x3]  ;;  %18791 = vst [vmem:[#allocation39_spill] sm:$0xff] %v15967_v48 }
  0x6e   : > { %13778 = vmatmul.mubr.msk.bf16.gmra.mrb[16].mxu1 %vm590_vm2, %v15789_v18  ;;  %v670_v18 = vand.u32 15, %v638_v29  ;;  %18790 = vst [vmem:[#allocation38_spill] sm:$0xff] %v15962_v55  ;;  %v15969_v29 = vld [vmem:[#allocation2 + $0x60] sm:$0xff] }
  0x6f   : > { %13783 = vmatprep.mubr.msk.bf16.mxu1 %vm590_vm2, %v3909_v23  ;;  %v15866_v23 = vld [vmem:[#allocation2 + $0x40] sm:$0xff] }
  0x70   : > { %v920_v1 = vmul.f32 %v15864_v22, %v15866_v23  ;;  %vm702_vm12 = vcmp.gt.s32.totalorder %v670_v18, 0 }
  0x72   : > { %v948_v52 = vpack.c.bf16 %v15913_v47, %v920_v1 }
  0x74   : > { %13502 = vmatmul.mubr.msk.bf16.vlgmr.msra.gmra.mrb[0].mxu0 %vm590_vm2, %v945_v5  ;;  %v15898_v5 = vld [vmem:[#allocation2 + $0x38] sm:$0xff] }
  0x75   : > { %13505 = vmatprep.mubr.msk.bf16.mxu0 %vm590_vm2, %v946_v9  ;;  %13534 = vmatpush3.bf16.msra.mxu0 %v1567_v31  ;;  %v3908_v9 = vmul.f32 %v15874_v54, %v15878_v50  ;;  %v4098_v31 = vmul.f32 %v15893_v63, %v15895_v4  ;;  %v924_v63 = vmul.f32 %v15967_v48, %v15969_v29 }
  0x76   : > { %13784 = vmatmul.mubr.msk.bf16.vlgmr.msra.gmra.mrb[12].mxu1 %vm590_vm2, %v3910_v17  ;;  %15099 = vmatprep.subr.msk.bf16.mxu0 %vm1059_vm0, %v15962_v55  ;;  %v15985_v17 = vld [vmem:[#allocation2 + $0x13c] sm:$0xff]  ;;  %v15990_v55 = vsel %vm15932_vm8, 1.0, %v18785_v49 }
  0x77   : > { %13787 = vmatprep.mubr.msk.bf16.mxu1 %vm590_vm2, %v3911_v51  ;;  %13792 = vmatpush3.bf16.msra.mxu1 %v4124_v33  ;;  %v947_v33 = vpack.c.bf16 %v15898_v5, %v918_v58  ;;  %v18787_v58 = vand.u32 7, %v15709_v46  ;;  %v3912_v1 = vpack.c.bf16 %v3908_v9, %v3907_v14  ;;  %v15981_v14 = vsel %vm15939_vm9, 1.0, %v18785_v49  ;;  %v15983_v9 = vld [vmem:[#allocation2 + $0x134] sm:$0xff]  ;;  %18795 = vst [vmem:[#allocation43_spill] sm:$0xff] %v15985_v17 }
  0x78   : > { %15108 = vmatprep.subr.msk.bf16.mxu1 %vm1059_vm0, %v15906_v12  ;;  %18793 = vst [vmem:[#allocation41_spill] sm:$0xff] %v15981_v14  ;;  %18794 = vst [vmem:[#allocation42_spill] sm:$0xff] %v15983_v9  ;;  %v4099_v53 = vmul.f32 %v15976_v37, %v15983_v9  ;;  %v4100_v62 = vmul.f32 %v15981_v14, %v15985_v17  ;;  %v18803_v14 = vand.u32 7, %v15774_v13  ;;  %v16034_v17 = vsel %vm702_vm12, 1.0, %v18785_v49  ;;  %v16053_v13 = vld [vmem:[#allocation2 + $0x15c] sm:$0xff] }
  0x79   : > { %vm15954_vm10 = vcmp.lt.s32.totalorder %v18787_v58, 7  ;;  %v4105_v58 = vpack.c.bf16 %v4098_v31, %v4097_v2  ;;  %18796 = vst [vmem:[#allocation44_spill] sm:$0xff] %v15990_v55  ;;  %v922_v2 = vmul.f32 %v15948_v40, %v15950_v30  ;;  %v16000_v31 = vld [vmem:[#allocation2 + $0x144] sm:$0xff]  ;;  %v950_v18 = vpack.c.bf16 %v16020_v6, %v924_v63  ;;  %18804 = vst [vmem:[#allocation48_spill] sm:$0xff] %v16034_v17 }
  0x7a   : > { %v15998_v0 = vsel %vm15954_vm10, 1.0, %v18785_v49  ;;  %18798 = vst [vmem:[#allocation46_spill] sm:$0xff] %v16000_v31  ;;  %vm3876_vm14 = vcmp.lt.s32.totalorder %v18803_v14, 7  ;;  %v4106_v8 = vpack.c.bf16 %v4100_v62, %v4099_v53  ;;  %18809 = vst [vmem:[#allocation53_spill] sm:$0xff] %v16053_v13  ;;  %v646_v51 = vadd.s32 176, %v15663_v16 }
  0x7b   : > { %18797 = vst [vmem:[#allocation45_spill] sm:$0xff] %v15998_v0  ;;  %v4102_v4 = vmul.f32 %v15998_v0, %v16002_v3  ;;  %v16044_v0 = vsel %vm704_vm13, 1.0, %v18785_v49  ;;  %v674_v3 = vand.u32 15, %v642_v60  ;;  %v16049_v63 = vsel %vm3876_vm14, 1.0, %v18785_v49 }
  0x7c   : > { %13506 = vmatmul.mubr.msk.bf16.gmra.mrb[4].mxu0 %vm590_vm2, %v947_v33  ;;  %v16011_v33 = vld [vmem:[#allocation2 + $0x58] sm:$0xff]  ;;  %18806 = vst [vmem:[#allocation50_spill] sm:$0xff] %v16044_v0  ;;  %18807 = vst [vmem:[#allocation51_spill] sm:$0xff] %v16049_v63  ;;  %v4234_v53 = vsel %vm1059_vm0, %v15906_v12, 0  ;;  %v16074_v12 = vld [vmem:[#allocation2 + $0x88] sm:$0xff]  ;;  %v4207_v46 = vmul.f32 %v15729_v56, %v15734_v59  ;;  %v678_v7 = vand.u32 15, %v646_v51 }
  0x7d   : > { %13509 = vmatprep.mubr.msk.bf16.mxu0 %vm590_vm2, %v948_v52  ;;  %v4101_v52 = vmul.f32 %v15990_v55, %v16000_v31  ;;  %v949_v37 = vpack.c.bf16 %v16011_v33, %v922_v2  ;;  %v16041_v55 = vsel %vm16006_vm11, 1.0, %v18785_v49  ;;  %v16046_v2 = vld [vmem:[#allocation2 + $0x80] sm:$0xff]  ;;  %v16051_v31 = vld [vmem:[#allocation2 + $0x154] sm:$0xff]  ;;  %vm706_vm15 = vcmp.gt.s32.totalorder %v674_v3, 0 }
  0x7e   : > { %13788 = vmatmul.mubr.msk.bf16.gmra.mrb[16].mxu1 %vm590_vm2, %v3912_v1  ;;  %v644_v1 = vadd.s32 160, %v15663_v16  ;;  %18805 = vst [vmem:[#allocation49_spill] sm:$0xff] %v16041_v55  ;;  %18808 = vst [vmem:[#allocation52_spill] sm:$0xff] %v16051_v31  ;;  %v928_v60 = vmul.f32 %v16044_v0, %v16046_v2  ;;  %v16086_v3 = vsel %vm706_vm15, 1.0, %v18785_v49  ;;  %v16093_v59 = vld [vmem:[#allocation2 + $0xa0] sm:$0xff]  ;;  %vm710_vm4 = vcmp.gt.s32.totalorder %v678_v7, 0 }
  0x7f   : > { %13793 = vmatprep.mubr.msk.bf16.mxu1 %vm590_vm2, %v4105_v58  ;;  %v16036_v58 = vld [vmem:[#allocation2 + $0x70] sm:$0xff]  ;;  %v4107_v14 = vpack.c.bf16 %v4102_v4, %v4101_v52  ;;  %v16062_v4 = vld [vmem:[#allocation2 + $0x78] sm:$0xff]  ;;  %18810 = vst [vmem:[#allocation54_spill] sm:$0xff] %v16086_v3  ;;  %v4210_v7 = vmul.f32 %v15803_v24, %v15818_v41  ;;  %v4213_v41 = vmul.f32 %v15871_v32, %v15878_v50 }
  0x80   : > { %v676_v9 = vand.u32 15, %v644_v1  ;;  %v926_v62 = vmul.f32 %v16034_v17, %v16036_v58  ;;  %v12689_v52 = vld [vmem:[%s18587_s4 + $0x1a] sm:$0x3]  ;;  %v4104_v1 = vmul.f32 %v16049_v63, %v16053_v13  ;;  %v952_v63 = vpack.c.bf16 %v16074_v12, %v928_v60  ;;  %v16088_v13 = vld [vmem:[#allocation2 + $0x90] sm:$0xff] }
  0x81   : > { %v930_v51 = vmul.f32 %v16086_v3, %v16088_v13  ;;  %v16100_v60 = vld [vmem:[#allocation2 + $0x98] sm:$0xff] }
  0x82   : > { %vm708_vm3 = vcmp.gt.s32.totalorder %v676_v9, 0  ;;  %v16231_v32 = vld [vmem:[#allocation2 + $0xd8] sm:$0xff] }
  0x83   : > { %v953_v24 = vpack.c.bf16 %v16100_v60, %v930_v51  ;;  %v654_v51 = vadd.s32 240, %v15663_v16  ;;  %18818 = vst [vmem:[#allocation60_spill] sm:$0xff] %v16231_v32 }
  0x84   : > { %13510 = vmatmul.mubr.msk.bf16.gmra.mrb[8].mxu0 %vm590_vm2, %v949_v37  ;;  %v4103_v37 = vmul.f32 %v16041_v55, %v16051_v31  ;;  %v951_v55 = vpack.c.bf16 %v16062_v4, %v926_v62  ;;  %v650_v62 = vadd.s32 208, %v15663_v16 }
  0x85   : > { %13513 = vmatprep.mubr.msk.bf16.mxu0 %vm590_vm2, %v950_v18  ;;  %v648_v18 = vadd.s32 192, %v15663_v16 }
  0x86   : > { %13794 = vmatmul.mubr.msk.bf16.vlgmr.msra.gmra.mrb[12].mxu1 %vm590_vm2, %v4106_v8  ;;  %v4208_v8 = vmul.f32 %v15732_v57, %v15805_v27 }
  0x87   : > { %13797 = vmatprep.mubr.msk.bf16.mxu1 %vm590_vm2, %v4107_v14  ;;  %13802 = vmatpush3.bf16.msra.mxu1 %v4234_v53  ;;  %v4108_v14 = vpack.c.bf16 %v4104_v1, %v4103_v37  ;;  %v16091_v53 = vsel %vm708_vm3, 1.0, %v18785_v49  ;;  %v680_v57 = vand.u32 15, %v648_v18  ;;  %v16112_v1 = vsel %vm710_vm4, 1.0, %v18785_v49  ;;  %v902_v18 = vld [vmem:[#allocation2 + $0xb0] sm:$0xff] }
  0x88   : > { %15109 = vmatprep.subr.msk.bf16.mxu1 %vm1059_vm0, %v12689_v52  ;;  %18811 = vst [vmem:[#allocation55_spill] sm:$0xff] %v16091_v53  ;;  %v4215_v9 = vpack.c.bf16 %v4208_v8, %v4207_v46  ;;  %v932_v37 = vmul.f32 %v16091_v53, %v16093_v59  ;;  %v4209_v46 = vmul.f32 %v15794_v19, %v15807_v28  ;;  %18812 = vst [vmem:[#allocation56_spill] sm:$0xff] %v16112_v1 }
  0x89   : > { %vm712_vm5 = vcmp.gt.s32.totalorder %v680_v57, 0  ;;  %v4211_v8 = vmul.f32 %v15813_v35, %v15820_v45  ;;  %v652_v19 = vadd.s32 224, %v15663_v16  ;;  %v682_v28 = vand.u32 15, %v650_v62  ;;  %v904_v45 = vld [vmem:[#allocation2 + $0xc0] sm:$0xff] }
  0x8a   : > { %v934_v57 = vmul.f32 %v16112_v1, %v902_v18  ;;  %v16130_v35 = vsel %vm712_vm5, 1.0, %v18785_v49  ;;  %v4336_v62 = vsel %vm1059_vm0, %v12689_v52, 0  ;;  %v16157_v52 = vmul.f32 %v15797_v20, %v15849_v11  ;;  %v18847_v20 = vld [vmem:[#allocation45_spill] sm:$0xff] }
  0x8b   : > { %18813 = vst [vmem:[#allocation57_spill] sm:$0xff] %v16130_v35  ;;  %v684_v31 = vand.u32 15, %v652_v19  ;;  %vm16138_vm6 = vcmp.gt.s32.totalorder %v682_v28, 0  ;;  %v16148_v19 = vld [vmem:[#allocation2 + $0xc8] sm:$0xff]  ;;  %v12694_v28 = vld [vmem:[%s18587_s4 + $0x1c] sm:$0x3]  ;;  %v16180_v11 = vmul.f32 %v15948_v40, %v15969_v29  ;;  %v16196_v29 = vmul.f32 %v16034_v17, %v16046_v2 }
  0x8c   : > { %13514 = vmatmul.mubr.msk.bf16.gmra.mrb[12].mxu0 %vm590_vm2, %v951_v55  ;;  %v16109_v55 = vld [vmem:[#allocation2 + $0xa8] sm:$0xff]  ;;  %v16215_v2 = vmul.f32 %v16112_v1, %v904_v45  ;;  %v18840_v17 = vld [vmem:[#allocation40_spill] sm:$0xff] }
  0x8d   : > { %13517 = vmatprep.mubr.msk.bf16.mxu0 %vm590_vm2, %v952_v63  ;;  %v16114_v63 = vld [vmem:[#allocation2 + $0x162] sm:$0xff]  ;;  %v954_v56 = vpack.c.bf16 %v16109_v55, %v932_v37  ;;  %v936_v37 = vmul.f32 %v16130_v35, %v904_v45  ;;  %vm716_vm7 = vcmp.gt.s32.totalorder %v684_v31, 0  ;;  %v906_v31 = vld [vmem:[#allocation2 + $0xd0] sm:$0xff] }
  0x8e   : > { %13798 = vmatmul.mubr.msk.bf16.gmra.mrb[16].mxu1 %vm590_vm2, %v4108_v14  ;;  %v4212_v14 = vmul.f32 %v15816_v36, %v15876_v34  ;;  %v4216_v36 = vpack.c.bf16 %v4210_v7, %v4209_v46  ;;  %v16132_v34 = vld [vmem:[#allocation2 + $0xb8] sm:$0xff]  ;;  %v18845_v40 = vld [vmem:[#allocation44_spill] sm:$0xff] }
  0x8f   : > { %13803 = vmatprep.mubr.msk.bf16.mxu1 %vm590_vm2, %v4215_v9  ;;  %v4214_v9 = vmul.f32 %v15874_v54, %v16114_v63  ;;  %v16144_v54 = vmul.f32 %v15781_v15, %v15799_v21  ;;  %v955_v46 = vpack.c.bf16 %v16132_v34, %v934_v57  ;;  %v686_v21 = vand.u32 15, %v654_v51 }
  0x90   : > { %v4217_v27 = vpack.c.bf16 %v4212_v14, %v4211_v8  ;;  %v16200_v14 = vmul.f32 %v16044_v0, %v16088_v13  ;;  %v16204_v57 = vmul.f32 %v16086_v3, %v16093_v59  ;;  %v657_v13 = vand.u32 15, %v15677_v26  ;;  %v16235_v8 = vld [vmem:[#allocation2 + $0xe8] sm:$0xff]  ;;  %v910_v59 = vld [vmem:[#allocation2 + $0xf0] sm:$0xff] }
  0x91   : > { %v4218_v7 = vpack.c.bf16 %v4214_v9, %v4213_v41  ;;  %v16164_v41 = vmul.f32 %v15847_v10, %v15866_v23  ;;  %v956_v23 = vpack.c.bf16 %v16148_v19, %v936_v37  ;;  %v16207_v9 = vsel %vm716_vm7, 1.0, %v18785_v49  ;;  %18819 = vst [vmem:[#allocation61_spill] sm:$0xff] %v16235_v8  ;;  %v18846_v10 = vld [vmem:[#allocation52_spill] sm:$0xff] }
  0x92   : > { %18817 = vst [vmem:[#allocation59_spill] sm:$0xff] %v16207_v9  ;;  %vm718_vm8 = vcmp.gt.s32.totalorder %v686_v21, 0  ;;  %vm785_vm9 = vcmp.lt.s32.totalorder %v657_v13, 15  ;;  %v4318_v21 = vpack.c.bf16 %v15697_v42, %v15692_v39  ;;  %v1437_v13 = vld [vmem:[#allocation2 + $0xa] sm:$0xff]  ;;  %v4446_v42 = vsel %vm1059_vm0, %v12694_v28, 0 }
  0x93   : > { %v16244_v45 = vsel %vm718_vm8, 1.0, %v18785_v49  ;;  %v4424_v15 = vmul.f32 %v18847_v20, %v18846_v10 }
  0x94   : > { %13518 = vmatmul.mubr.msk.bf16.gmra.mrb[16].mxu0 %vm590_vm2, %v953_v24  ;;  %v4317_v24 = vpack.c.bf16 %v15690_v38, %v15674_v25  ;;  %v16168_v25 = vmul.f32 %v15864_v22, %v15950_v30  ;;  %v16174_v38 = vsel %vm16138_vm6, 1.0, %v18785_v49  ;;  %v16190_v30 = vmul.f32 %v15967_v48, %v16036_v58  ;;  %v908_v58 = vld [vmem:[#allocation2 + $0xe0] sm:$0xff]  ;;  %18821 = vst [vmem:[#allocation63_spill] sm:$0xff] %v16244_v45 }
  0x95   : > { %13521 = vmatprep.mubr.msk.bf16.mxu0 %vm590_vm2, %v954_v56  ;;  %18816 = vst [vmem:[#allocation58_spill] sm:$0xff] %v16174_v38  ;;  %v938_v51 = vmul.f32 %v16174_v38, %v906_v31  ;;  %v940_v37 = vmul.f32 %v16207_v9, %v908_v58  ;;  %v18825_v56 = vld [vmem:[#allocation9_spill] sm:$0xff]  ;;  %v942_v39 = vmul.f32 %v16244_v45, %v910_v59 }
  0x96   : > { %13804 = vmatmul.mubr.msk.bf16.vlgmr.msra.gmra.mrb[12].mxu1 %vm590_vm2, %v4216_v36  ;;  %v661_v26 = vand.u32 15, %v18825_v56  ;;  %v1436_v56 = vld [vmem:[#allocation2 + $0x2] sm:$0xff] }
  0x97   : > { %13807 = vmatprep.mubr.msk.bf16.mxu1 %vm590_vm2, %v4217_v27  ;;  %13812 = vmatpush3.bf16.msra.mxu1 %v4336_v62  ;;  %v16212_v62 = vmul.f32 %v16091_v53, %v902_v18  ;;  %v16240_v18 = vmul.f32 %v16130_v35, %v906_v31  ;;  %v18824_v27 = vld [vmem:[#allocation15_spill] sm:$0xff]  ;;  %v16298_v53 = vld [vmem:[#allocation2 + $0x2a] sm:$0xff] }
  0x98   : > { %15110 = vmatprep.subr.msk.bf16.mxu1 %vm1059_vm0, %v12694_v28  ;;  %v4319_v36 = vpack.c.bf16 %v18824_v27, %v15699_v43  ;;  %v12699_v43 = vld [vmem:[%s18587_s4 + $0x1e] sm:$0x3]  ;;  %v16276_v27 = vld [vmem:[#allocation2 + $0x163] sm:$0xff]  ;;  %vm789_vm11 = vcmp.lt.s32.totalorder %v661_v26, 15  ;;  %18836 = vst [vmem:[#allocation66_spill] sm:$0xff] %v16298_v53 }
  0x99   : > { %18820 = vst [vmem:[#allocation62_spill] sm:$0xff] %v16240_v18  ;;  %v18827_v28 = vld [vmem:[#allocation36_spill] sm:$0xff]  ;;  %v16296_v26 = vsel %vm789_vm11, 1.0, %v18785_v49 }
  0x9a   : > { %v1473_v0 = vmul.f32 %v16296_v26, %v16298_v53 }
  0x9c   : > { %13522 = vmatmul.mubr.msk.bf16.gmra.mrb[20].mxu0 %vm590_vm2, %v955_v46  ;;  %v957_v46 = vpack.c.bf16 %v16231_v32, %v938_v51  ;;  %v659_v51 = vand.u32 15, %v15702_v44  ;;  %v16268_v44 = vld [vmem:[#allocation2 + $0xf8] sm:$0xff] }
  0x9d   : > { %13525 = vmatprep.mubr.msk.bf16.mxu0 %vm590_vm2, %v956_v23  ;;  %v958_v23 = vpack.c.bf16 %v16235_v8, %v940_v37  ;;  %v589_v37 = vld [vmem:[%s15560_s16 + $0xf8] sm:$0xff]  ;;  %18826 = vst [vmem:[#allocation15_spill] sm:$0xff] %v16268_v44  ;;  %v959_v35 = vpack.c.bf16 %v16268_v44, %v942_v39  ;;  %v18837_v39 = vld [vmem:[#allocation17_spill] sm:$0xff]  ;;  %v18852_v44 = vld [vmem:[#allocation38_spill] sm:$0xff]  ;;  %v641_v8 = vadd.s32 136, %v15663_v16  ;;  %s12460_s16 = sshll.u32 %s447_s19, 8 }
  0x9e   : > { %13808 = vmatmul.mubr.msk.bf16.gmra.mrb[16].mxu1 %vm590_vm2, %v4218_v7  ;;  %v16247_v7 = vmul.f32 %v16174_v38, %v908_v58  ;;  %622 = vst.msk [vmem:[#allocation2 + $0x109] sm:$0xff] %vm590_vm2, %v589_v37  ;;  %vm787_vm10 = vcmp.lt.s32.totalorder %v659_v51, 15  ;;  %v18829_v37 = vld [vmem:[#allocation42_spill] sm:$0xff]  ;;  %v18830_v58 = vld [vmem:[#allocation35_spill] sm:$0xff]  ;;  %v663_v3 = vand.u32 15, %v18837_v39  ;;  %s18469_s28 = scalar_lea.vmem [#allocation4], %s12460_s16 }
  0x9f   : > { %13813 = vmatprep.mubr.msk.bf16.mxu1 %vm590_vm2, %v4317_v24  ;;  %v16252_v24 = vsel %vm785_vm9, 1.0, %v18785_v49  ;;  %v4420_v38 = vmul.f32 %v18830_v58, %v18829_v37  ;;  %v16289_v51 = vsel %vm787_vm10, 1.0, %v18785_v49  ;;  %v18839_v39 = vld [vmem:[#allocation43_spill] sm:$0xff]  ;;  %s12358_s15 = sshll.u32 %s18469_s28, 4  ;;  %s15246_s16 = smov [#allocation4]   ;;  %s18535_s15 = int_to_ptr.vmem [resolvable:$true] %s12358_s15 }
  0xa0   : > { %18822 = vst [vmem:[#allocation64_spill] sm:$0xff] %v16247_v7  ;;  %18823 = vst [vmem:[#allocation65_spill] sm:$0xff] %v16252_v24  ;;  %v1469_v31 = vmul.f32 %v16252_v24, %v1437_v13  ;;  %v633_v13 = vadd.s32 72, %v15663_v16  ;;  %v4421_v48 = vmul.f32 %v18840_v17, %v18839_v39  ;;  %vm791_vm12 = vcmp.lt.s32.totalorder %v663_v3, 15  ;;  %v16330_v3 = vld [vmem:[#allocation2 + $0x3a] sm:$0xff]  ;;  %v16339_v7 = vld [vmem:[#allocation2 + $0x164] sm:$0xff] }
  0xa1   : > { %18832 = vst [vmem:[#allocation36_spill] sm:$0xff] %v16289_v51  ;;  %v16328_v53 = vsel %vm791_vm12, 1.0, %v18785_v49  ;;  %vm15245_vm12 = vmmov 0   ;;  %s15180_s26 = scalar_lea.vmem %s18535_s15, 4096 }
  0xa2   : > { %p15181_p11 = scmp.ne.s32.totalorder %s18535_s15, %s15180_s26 }
  0xa4   : > { %13526 = vmatmul.mubr.msk.bf16.gmra.mrb[24].mxu0 %vm590_vm2, %v957_v46  ;;  %v18828_v46 = vld [vmem:[#allocation34_spill] sm:$0xff]  ;;  %p15182_p12 = pnand %p15181_p11, %p15352_p5 }
  0xa5   : > { %13529 = vmatprep.mubr.msk.bf16.mxu0 %vm590_vm2, %v958_v23  ;;  %v4419_v23 = vmul.f32 %v18828_v46, %v18827_v28  ;;  %v18834_v28 = vld [vmem:[#allocation16_spill] sm:$0xff] }
  0xa6   : > { %13814 = vmatmul.mubr.msk.bf16.vlgmr.msra.gmra.mrb[12].mxu1 %vm590_vm2, %v4318_v21  ;;  %v16286_v21 = vmul.f32 %v16207_v9, %v910_v59  ;;  %v4320_v1 = vpack.c.bf16 %v16276_v27, %v18834_v28  ;;  %18835 = vst [vmem:[#allocation16_spill] sm:$0xff] %v16296_v26  ;;  %v16307_v28 = vld [vmem:[#allocation2 + $0x12] sm:$0xff]  ;;  %p15183_p13 = pneg %p15182_p12 }
  0xa7   : > { %13817 = vmatprep.mubr.msk.bf16.mxu1 %vm590_vm2, %v4319_v36  ;;  %13822 = vmatpush3.bf16.msra.mxu1 %v4446_v42  ;;  %v1500_v36 = vpack.c.bf16 %v1469_v31, %v1436_v56  ;;  %v16291_v42 = vld [vmem:[#allocation2 + $0x1a] sm:$0xff]  ;;  %v4427_v9 = vpack.c.bf16 %v4420_v38, %v4419_v23  ;;  %v665_v31 = vand.u32 15, %v633_v13  ;;  %18838 = vst [vmem:[#allocation17_spill] sm:$0xff] %v16307_v28  ;;  %v18841_v59 = vld [vmem:[#allocation46_spill] sm:$0xff]  ;;  %v18842_v38 = vld [vmem:[#allocation41_spill] sm:$0xff] }
  0xa8   : > { %15111 = vmatprep.subr.msk.bf16.mxu1 %vm1059_vm0, %v12699_v43  ;;  %18831 = vst [vmem:[#allocation9_spill] sm:$0xff] %v16286_v21  ;;  %18833 = vst [vmem:[#allocation42_spill] sm:$0xff] %v16291_v42  ;;  %v1471_v56 = vmul.f32 %v16289_v51, %v16291_v42  ;;  %v4422_v23 = vmul.f32 %v18842_v38, %v18841_v59  ;;  %v16316_v13 = vld [vmem:[#allocation2 + $0x22] sm:$0xff]  ;;  %v16335_v42 = vld [vmem:[#allocation2 + $0x4a] sm:$0xff] }
  0xa9   : > { %18843 = vst [vmem:[#allocation43_spill] sm:$0xff] %v16316_v13  ;;  %vm793_vm13 = vcmp.lt.s32.totalorder %v665_v31, 15  ;;  %v1502_v51 = vpack.c.bf16 %v1473_v0, %v16316_v13  ;;  %18848 = vst [vmem:[#allocation46_spill] sm:$0xff] %v16328_v53  ;;  %v1893_v31 = vsel %vm1059_vm0, %v18852_v44, 0  ;;  %v16344_v0 = vld [vmem:[%s18587_s4 + $0x8] sm:$0x3] }
  0xaa   : > { %v1501_v26 = vpack.c.bf16 %v1471_v56, %v16307_v28  ;;  %v4428_v24 = vpack.c.bf16 %v4422_v23, %v4421_v48  ;;  %18851 = vst [vmem:[#allocation67_spill] sm:$0xff] %v16335_v42  ;;  %v1475_v48 = vmul.f32 %v16328_v53, %v16330_v3  ;;  %v4556_v23 = vsel %vm1059_vm0, %v12699_v43, 0  ;;  %v18854_v44 = vld [vmem:[#allocation53_spill] sm:$0xff]  ;;  %v18856_v53 = vld [vmem:[#allocation51_spill] sm:$0xff] }
  0xab   : > { %v4426_v43 = vmul.f32 %v18856_v53, %v16339_v7  ;;  %v16363_v13 = vld [vmem:[#allocation2 + $0x42] sm:$0xff] }
  0xac   : > { %13530 = vmatmul.mubr.msk.bf16.gmra.mrb[28].mxu0 %vm590_vm2, %v959_v35  ;;  %v635_v35 = vadd.s32 88, %v15663_v16  ;;  %18857 = vst [vmem:[#allocation53_spill] sm:$0xff] %v16363_v13 }
  0xad   : > { %13535 = vmatprep.mubr.msk.bf16.mxu0 %vm590_vm2, %v1500_v36  ;;  %v18844_v36 = vld [vmem:[#allocation47_spill] sm:$0xff] }
  0xae   : > { %13818 = vmatmul.mubr.msk.bf16.gmra.mrb[16].mxu1 %vm590_vm2, %v4320_v1  ;;  %v4423_v22 = vmul.f32 %v18845_v40, %v18844_v36  ;;  %v637_v1 = vadd.s32 104, %v15663_v16  ;;  %18849 = vst [vmem:[#allocation47_spill] sm:$0xff] %v16330_v3  ;;  %v667_v21 = vand.u32 15, %v635_v35  ;;  %v16351_v35 = vld [vmem:[#allocation2 + $0x32] sm:$0xff] }
  0xaf   : > { %13823 = vmatprep.mubr.msk.bf16.mxu1 %vm590_vm2, %v4427_v9  ;;  %v16333_v9 = vsel %vm793_vm13, 1.0, %v18785_v49  ;;  %18853 = vst [vmem:[#allocation38_spill] sm:$0xff] %v16351_v35  ;;  %v18861_v3 = vld [vmem:[#allocation14_spill] sm:$0xff]  ;;  %v1503_v18 = vpack.c.bf16 %v1475_v48, %v16351_v35  ;;  %vm4885_vm13 = vcmask 1043456  }
  0xb0   : > { %18850 = vst [vmem:[#allocation52_spill] sm:$0xff] %v16333_v9  ;;  %v4429_v45 = vpack.c.bf16 %v4424_v15, %v4423_v22  ;;  %v669_v56 = vand.u32 15, %v637_v1  ;;  %v1477_v15 = vmul.f32 %v16333_v9, %v16335_v42  ;;  %v12704_v22 = vld [vmem:[%s18587_s4 + $0x20] sm:$0x3]  ;;  %vm795_vm14 = vcmp.lt.s32.totalorder %v667_v21, 15  ;;  %v18859_v9 = vld [vmem:[#allocation13_spill] sm:$0xff] }
  0xb1   : > { %v18860_v42 = vld [vmem:[#allocation24_spill] sm:$0xff]  ;;  %v16378_v32 = vsel %vm795_vm14, 1.0, %v18785_v49 }
  0xb2   : > { %v4530_v28 = vmul.f32 %v18861_v3, %v18860_v42  ;;  %vm797_vm15 = vcmp.lt.s32.totalorder %v669_v56, 15  ;;  %v1504_v21 = vpack.c.bf16 %v1477_v15, %v16363_v13  ;;  %v673_v3 = vand.u32 15, %v641_v8  ;;  %v16391_v15 = vld [vmem:[#allocation2 + $0x52] sm:$0xff]  ;;  %v18867_v13 = vld [vmem:[#allocation20_spill] sm:$0xff] }
  0xb4   : > { %13536 = vmatmul.mubr.msk.bf16.vlgmr.msra.gmra.mrb[0].mxu0 %vm590_vm2, %v1501_v26  ;;  %v18855_v26 = vld [vmem:[#allocation49_spill] sm:$0xff]  ;;  %vm801_vm4 = vcmp.lt.s32.totalorder %v673_v3, 15 }
  0xb5   : > { %13539 = vmatprep.mubr.msk.bf16.mxu0 %vm590_vm2, %v1502_v51  ;;  %13568 = vmatpush3.bf16.msra.mxu0 %v1893_v31  ;;  %v4425_v1 = vmul.f32 %v18855_v26, %v18854_v44  ;;  %v639_v51 = vadd.s32 120, %v15663_v16  ;;  %v18858_v31 = vld [vmem:[#allocation23_spill] sm:$0xff]  ;;  %v4528_v3 = vld [vmem:[#allocation2 + $0x16a] sm:$0xff] }
  0xb6   : > { %13824 = vmatmul.mubr.msk.bf16.vlgmr.msra.gmra.mrb[12].mxu1 %vm590_vm2, %v4428_v24  ;;  %15100 = vmatprep.subr.msk.bf16.mxu0 %vm1059_vm0, %v16344_v0  ;;  %v4529_v24 = vmul.f32 %v18859_v9, %v18858_v31  ;;  %18862 = vst [vmem:[#allocation23_spill] sm:$0xff] %v16378_v32  ;;  %v16383_v31 = vsel %vm797_vm15, 1.0, %v18785_v49  ;;  %v16385_v9 = vld [vmem:[#allocation2 + $0x6a] sm:$0xff] }
  0xb7   : > { %13827 = vmatprep.mubr.msk.bf16.mxu1 %vm590_vm2, %v4429_v45  ;;  %13832 = vmatpush3.bf16.msra.mxu1 %v4556_v23  ;;  %v16380_v45 = vld [vmem:[#allocation2 + $0x5a] sm:$0xff]  ;;  %v4430_v23 = vpack.c.bf16 %v4426_v43, %v4425_v1  ;;  %18864 = vst [vmem:[#allocation68_spill] sm:$0xff] %v16383_v31  ;;  %18865 = vst [vmem:[#allocation69_spill] sm:$0xff] %v16385_v9  ;;  %v671_v42 = vand.u32 15, %v639_v51  ;;  %v1481_v1 = vmul.f32 %v16383_v31, %v16385_v9  ;;  %v18873_v31 = vld [vmem:[#allocation26_spill] sm:$0xff] }
  0xb8   : > { %15112 = vmatprep.subr.msk.bf16.mxu1 %vm1059_vm0, %v12704_v22  ;;  %18863 = vst [vmem:[#allocation24_spill] sm:$0xff] %v16380_v45  ;;  %v4537_v56 = vpack.c.bf16 %v4530_v28, %v4529_v24  ;;  %v1479_v48 = vmul.f32 %v16378_v32, %v16380_v45  ;;  %v18866_v43 = vld [vmem:[#allocation27_spill] sm:$0xff]  ;;  %v18868_v51 = vld [vmem:[#allocation28_spill] sm:$0xff]  ;;  %v18869_v28 = vld [vmem:[#allocation22_spill] sm:$0xff]  ;;  %v4534_v9 = vmul.f32 %v18873_v31, %v15878_v50 }
  0xb9   : > { %v4531_v35 = vmul.f32 %v18867_v13, %v18866_v43  ;;  %v4532_v8 = vmul.f32 %v18869_v28, %v18868_v51  ;;  %v16400_v24 = vld [vmem:[#allocation2 + $0x62] sm:$0xff]  ;;  %vm799_vm3 = vcmp.lt.s32.totalorder %v671_v42, 15  ;;  %v16414_v42 = vld [vmem:[#allocation2 + $0x7a] sm:$0xff] }
  0xba   : > { %18870 = vst [vmem:[#allocation27_spill] sm:$0xff] %v16400_v24  ;;  %v18872_v32 = vld [vmem:[#allocation25_spill] sm:$0xff]  ;;  %v1505_v43 = vpack.c.bf16 %v1479_v48, %v16391_v15  ;;  %v1506_v51 = vpack.c.bf16 %v1481_v1, %v16400_v24  ;;  %v16412_v13 = vsel %vm799_vm3, 1.0, %v18785_v49  ;;  %v4658_v1 = vsel %vm1059_vm0, %v12704_v22, 0  ;;  %v16426_v24 = vld [vmem:[#allocation2 + $0x72] sm:$0xff] }
  0xbb   : > { %v4538_v28 = vpack.c.bf16 %v4532_v8, %v4531_v35  ;;  %v1483_v48 = vmul.f32 %v16412_v13, %v16414_v42  ;;  %v647_v22 = vadd.s32 184, %v15663_v16 }
  0xbc   : > { %13540 = vmatmul.mubr.msk.bf16.gmra.mrb[4].mxu0 %vm590_vm2, %v1503_v18  ;;  %v643_v18 = vadd.s32 152, %v15663_v16 }
  0xbd   : > { %13543 = vmatprep.mubr.msk.bf16.mxu0 %vm590_vm2, %v1504_v21  ;;  %v18871_v21 = vld [vmem:[#allocation33_spill] sm:$0xff] }
  0xbe   : > { %13828 = vmatmul.mubr.msk.bf16.gmra.mrb[16].mxu1 %vm590_vm2, %v4430_v23  ;;  %v4533_v45 = vmul.f32 %v18872_v32, %v18871_v21  ;;  %v645_v23 = vadd.s32 168, %v15663_v16  ;;  %v16419_v21 = vld [vmem:[#allocation2 + $0x8a] sm:$0xff]  ;;  %v675_v32 = vand.u32 15, %v643_v18  ;;  %v18876_v18 = vld [vmem:[#allocation32_spill] sm:$0xff] }
  0xbf   : > { %13833 = vmatprep.mubr.msk.bf16.mxu1 %vm590_vm2, %v4537_v56  ;;  %v16417_v56 = vsel %vm801_vm4, 1.0, %v18785_v49 }
  0xc0   : > { %18874 = vst [vmem:[#allocation28_spill] sm:$0xff] %v16417_v56  ;;  %v4539_v50 = vpack.c.bf16 %v4534_v9, %v4533_v45  ;;  %v677_v31 = vand.u32 15, %v645_v23  ;;  %v1485_v35 = vmul.f32 %v16417_v56, %v16419_v21  ;;  %v12709_v9 = vld [vmem:[%s18587_s4 + $0x22] sm:$0x3]  ;;  %v18875_v45 = vld [vmem:[#allocation31_spill] sm:$0xff]  ;;  %v4536_v23 = vmul.f32 %v18876_v18, %v4528_v3 }
  0xc1   : > { %v4535_v8 = vmul.f32 %v18875_v45, %v16114_v63  ;;  %vm803_vm5 = vcmp.lt.s32.totalorder %v675_v32, 15  ;;  %v1507_v56 = vpack.c.bf16 %v1483_v48, %v16426_v24  ;;  %v16448_v3 = vld [vmem:[#allocation2 + $0x9a] sm:$0xff] }
  0xc2   : > { %vm805_vm6 = vcmp.lt.s32.totalorder %v677_v31, 15  ;;  %v16446_v63 = vsel %vm803_vm5, 1.0, %v18785_v49  ;;  %v679_v31 = vand.u32 15, %v647_v22  ;;  %v18883_v22 = vld [vmem:[#allocation10_spill] sm:$0xff]  ;;  %vm8563_vm5 = vcmask 27648  }
  0xc3   : > { %18878 = vst [vmem:[#allocation70_spill] sm:$0xff] %v16446_v63  ;;  %v4540_v32 = vpack.c.bf16 %v4536_v23, %v4535_v8  ;;  %v16451_v45 = vsel %vm805_vm6, 1.0, %v18785_v49  ;;  %v1487_v48 = vmul.f32 %v16446_v63, %v16448_v3  ;;  %v16464_v8 = vld [vmem:[#allocation2 + $0xa2] sm:$0xff]  ;;  %v651_v23 = vadd.s32 216, %v15663_v16 }
  0xc4   : > { %13544 = vmatmul.mubr.msk.bf16.gmra.mrb[8].mxu0 %vm590_vm2, %v1505_v43  ;;  %v16437_v43 = vld [vmem:[#allocation2 + $0x82] sm:$0xff]  ;;  %18879 = vst [vmem:[#allocation71_spill] sm:$0xff] %v16451_v45  ;;  %18882 = vst [vmem:[#allocation74_spill] sm:$0xff] %v16464_v8  ;;  %vm807_vm7 = vcmp.lt.s32.totalorder %v679_v31, 15  ;;  %v16480_v31 = vld [vmem:[#allocation2 + $0xca] sm:$0xff] }
  0xc5   : > { %13547 = vmatprep.mubr.msk.bf16.mxu0 %vm590_vm2, %v1506_v51  ;;  %18877 = vst [vmem:[#allocation33_spill] sm:$0xff] %v16437_v43  ;;  %v649_v51 = vadd.s32 200, %v15663_v16  ;;  %v16473_v63 = vsel %vm807_vm7, 1.0, %v18785_v49 }
  0xc6   : > { %13834 = vmatmul.mubr.msk.bf16.vlgmr.msra.gmra.mrb[12].mxu1 %vm590_vm2, %v4538_v28  ;;  %v1508_v28 = vpack.c.bf16 %v1485_v35, %v16437_v43  ;;  %v16459_v35 = vld [vmem:[#allocation2 + $0x92] sm:$0xff] }
  0xc7   : > { %13837 = vmatprep.mubr.msk.bf16.mxu1 %vm590_vm2, %v4539_v50  ;;  %13842 = vmatpush3.bf16.msra.mxu1 %v4658_v1  ;;  %v16453_v50 = vld [vmem:[#allocation2 + $0xaa] sm:$0xff]  ;;  %v681_v1 = vand.u32 15, %v649_v51  ;;  %18881 = vst [vmem:[#allocation73_spill] sm:$0xff] %v16459_v35  ;;  %v1509_v51 = vpack.c.bf16 %v1487_v48, %v16459_v35  ;;  %v4768_v48 = vsel %vm1059_vm0, %v12709_v9, 0  ;;  %v16493_v35 = vld [vmem:[#allocation2 + $0xc2] sm:$0xff] }
  0xc8   : > { %15113 = vmatprep.subr.msk.bf16.mxu1 %vm1059_vm0, %v12709_v9  ;;  %18880 = vst [vmem:[#allocation72_spill] sm:$0xff] %v16453_v50  ;;  %v1489_v18 = vmul.f32 %v16451_v45, %v16453_v50  ;;  %v16475_v45 = vld [vmem:[#allocation2 + $0xba] sm:$0xff]  ;;  %v683_v50 = vand.u32 15, %v651_v23  ;;  %v655_v23 = vadd.s32 248, %v15663_v16  ;;  %v4741_v9 = vmul.f32 %v18828_v46, %v18829_v37  ;;  %v16514_v37 = vld [vmem:[#allocation2 + $0xea] sm:$0xff] }
  0xc9   : > { %vm809_vm8 = vcmp.lt.s32.totalorder %v681_v1, 15  ;;  %v1491_v1 = vmul.f32 %v16473_v63, %v16475_v45 }
  0xca   : > { %vm811_vm9 = vcmp.lt.s32.totalorder %v683_v50, 15 }
  0xcc   : > { %13548 = vmatmul.mubr.msk.bf16.gmra.mrb[12].mxu0 %vm590_vm2, %v1507_v56  ;;  %v653_v56 = vadd.s32 232, %v15663_v16  ;;  %v16508_v16 = vld [vmem:[#allocation2 + $0xda] sm:$0xff] }
  0xcd   : > { %13551 = vmatprep.mubr.msk.bf16.mxu0 %vm590_vm2, %v1508_v28  ;;  %v1510_v28 = vpack.c.bf16 %v1489_v18, %v16464_v8  ;;  %v16487_v18 = vld [vmem:[#allocation2 + $0xb2] sm:$0xff]  ;;  %v18885_v8 = vld [vmem:[#allocation12_spill] sm:$0xff] }
  0xce   : > { %13838 = vmatmul.mubr.msk.bf16.gmra.mrb[16].mxu1 %vm590_vm2, %v4540_v32  ;;  %v16478_v32 = vsel %vm809_vm8, 1.0, %v18785_v49  ;;  %v685_v43 = vand.u32 15, %v653_v56  ;;  %v18886_v56 = vld [vmem:[#allocation19_spill] sm:$0xff]  ;;  %vm9043_vm8 = vcmask 60416  }
  0xcf   : > { %13843 = vmatprep.mubr.msk.bf16.mxu1 %vm590_vm2, %v18883_v22  ;;  %18884 = vst [vmem:[#allocation10_spill] sm:$0xff] %v16478_v32  ;;  %v1493_v22 = vmul.f32 %v16478_v32, %v16480_v31  ;;  %v1511_v32 = vpack.c.bf16 %v1491_v1, %v16487_v18 }
  0xd0   : > { %vm813_vm10 = vcmp.lt.s32.totalorder %v685_v43, 15 }
  0xd1   : > { %v1512_v50 = vpack.c.bf16 %v1493_v22, %v16493_v35  ;;  %v16520_v22 = vld [vmem:[#allocation2 + $0xd2] sm:$0xff] }
  0xd4   : > { %13552 = vmatmul.mubr.msk.bf16.gmra.mrb[16].mxu0 %vm590_vm2, %v1509_v51  ;;  %v4638_v51 = vld [vmem:[#allocation2 + $0x16b] sm:$0xff] }
  0xd5   : > { %13555 = vmatprep.mubr.msk.bf16.mxu0 %vm590_vm2, %v1510_v28  ;;  %v4742_v28 = vmul.f32 %v18830_v58, %v18839_v39  ;;  %v687_v39 = vand.u32 15, %v655_v23  ;;  %v4744_v23 = vmul.f32 %v18842_v38, %v18844_v36  ;;  %v4740_v38 = vld [vmem:[#allocation2 + $0x16c] sm:$0xff] }
  0xd6   : > { %13844 = vmatmul.mubr.msk.bf16.vlgmr.msra.gmra.mrb[12].mxu1 %vm590_vm2, %v18885_v8  ;;  %v16506_v8 = vsel %vm811_vm9, 1.0, %v18785_v49  ;;  %vm9051_vm9 = vcmask 1040384  }
  0xd7   : > { %13847 = vmatprep.mubr.msk.bf16.mxu1 %vm590_vm2, %v18886_v56  ;;  %13852 = vmatpush3.bf16.msra.mxu1 %v4768_v48  ;;  %v4642_v48 = vpack.c.bf16 %v4638_v51, %v16276_v27  ;;  %v16512_v56 = vsel %vm813_vm10, 1.0, %v18785_v49  ;;  %v4749_v43 = vpack.c.bf16 %v4742_v28, %v4741_v9  ;;  %v1495_v1 = vmul.f32 %v16506_v8, %v16508_v16  ;;  %v16529_v51 = vld [vmem:[#allocation2 + $0xe2] sm:$0xff] }
  0xd8   : > { %13861 = vmatprep.subr.bf16.mxu1 %v18785_v49  ;;  %v1497_v46 = vmul.f32 %v16512_v56, %v16514_v37  ;;  %v4743_v27 = vmul.f32 %v18840_v17, %v18841_v59  ;;  %vm815_vm11 = vcmp.lt.s32.totalorder %v687_v39, 15  ;;  %v4746_v9 = vmul.f32 %v18847_v20, %v18854_v44  ;;  %v1762_v17 = vld [vmem:[#allocation2 + $0x10] sm:$0xff]  ;;  %v18919_v20 = vld [vmem:[#allocation17_spill] sm:$0xff] }
  0xd9   : > { %v1513_v28 = vpack.c.bf16 %v1495_v1, %v16520_v22  ;;  %v16539_v59 = vsel %vm815_vm11, 1.0, %v18785_v49  ;;  %v16547_v44 = vld [vmem:[#allocation2 + $0xf2] sm:$0xff]  ;;  %v4747_v1 = vmul.f32 %v18855_v26, %v16339_v7  ;;  %v12584_v7 = vld [vmem:[%s18587_s4 + $0xa] sm:$0x3]  ;;  %vm9047_vm10 = vcmask 15360  }
  0xda   : > { %v4750_v36 = vpack.c.bf16 %v4744_v23, %v4743_v27  ;;  %v4748_v27 = vmul.f32 %v18856_v53, %v4740_v38  ;;  %v1763_v23 = vld [vmem:[#allocation2 + $0x18] sm:$0xff]  ;;  %v18888_v38 = vpack.c.bf16 %v15832_v61, %v16144_v54  ;;  %v18892_v61 = vpack.c.bf16 %v16020_v6, %v16180_v11 }
  0xdb   : > { %v18893_v54 = vpack.c.bf16 %v16062_v4, %v16190_v30  ;;  %v18897_v6 = vpack.c.bf16 %v16132_v34, %v16212_v62  ;;  %v18898_v4 = vpack.c.bf16 %v16148_v19, %v16215_v2  ;;  %v18902_v30 = vld [vmem:[#allocation61_spill] sm:$0xff]  ;;  %v18906_v62 = vld [vmem:[#allocation15_spill] sm:$0xff] }
  0xdc   : > { %13556 = vmatmul.mubr.msk.bf16.gmra.mrb[20].mxu0 %vm590_vm2, %v1511_v32  ;;  %v4745_v32 = vmul.f32 %v18845_v40, %v18846_v10  ;;  %v18907_v2 = vld [vmem:[#allocation9_spill] sm:$0xff] }
  0xdd   : > { %13559 = vmatprep.mubr.msk.bf16.mxu0 %vm590_vm2, %v1512_v50  ;;  %v1514_v50 = vpack.c.bf16 %v1497_v46, %v16529_v51 }
  0xde   : > { %13848 = vmatmul.mubr.msk.bf16.gmra.mrb[16].mxu1 %vm590_vm2, %v4642_v48  ;;  %v16541_v48 = vld [vmem:[#allocation2 + $0xfa] sm:$0xff]  ;;  %v4751_v39 = vpack.c.bf16 %v4746_v9, %v4745_v32 }
  0xdf   : > { %13853 = vmatprep.mubr.msk.bf16.mxu1 %vm590_vm2, %v4749_v43  ;;  %v1499_v10 = vmul.f32 %v16539_v59, %v16541_v48  ;;  %v18887_v43 = vld [vmem:[#allocation11_spill] sm:$0xff] }
  0xe0   : > { %v1794_v46 = vmul.f32 %v18887_v43, %v1762_v17  ;;  %v2187_v17 = vsel %vm1059_vm0, %v16344_v0, 0  ;;  %v18890_v0 = vpack.c.bf16 %v15913_v47, %v16164_v41  ;;  %v18894_v47 = vpack.c.bf16 %v16074_v12, %v16196_v29  ;;  %v18899_v12 = vld [vmem:[#allocation60_spill] sm:$0xff] }
  0xe1   : > { %v1515_v32 = vpack.c.bf16 %v1499_v10, %v16547_v44  ;;  %v18903_v29 = vld [vmem:[#allocation64_spill] sm:$0xff]  ;;  %v16633_v10 = vld [vmem:[#allocation2 + $0x108] sm:$0xff] }
  0xe2   : > { %v1826_v9 = vpack.c.bf16 %v1763_v23, %v1794_v46  ;;  %v18904_v19 = vpack.c.bf16 %v18902_v30, %v18903_v29  ;;  %v2088_v46 = vld [vmem:[#allocation2 + $0x11] sm:$0xff] }
  0xe3   : > { %v2096_v30 = vld [vmem:[#allocation2 + $0x51] sm:$0xff] }
  0xe4   : > { %13560 = vmatmul.mubr.msk.bf16.gmra.mrb[24].mxu0 %vm590_vm2, %v1513_v28  ;;  %v4752_v28 = vpack.c.bf16 %v4748_v27, %v4747_v1  ;;  %v2089_v1 = vld [vmem:[#allocation2 + $0x19] sm:$0xff] }
  0xe5   : > { %13563 = vmatprep.mubr.msk.bf16.mxu0 %vm590_vm2, %v1514_v50  ;;  %v18889_v50 = vpack.c.bf16 %v15898_v5, %v16157_v52  ;;  %v18895_v5 = vpack.c.bf16 %v16100_v60, %v16200_v14  ;;  %v18900_v52 = vld [vmem:[#allocation62_spill] sm:$0xff]  ;;  %v18905_v14 = vld [vmem:[#allocation63_spill] sm:$0xff] }
  0xe6   : > { %13854 = vmatmul.mubr.msk.bf16.vlgmr.msra.gmra.mrb[12].mxu1 %vm590_vm2, %v4750_v36  ;;  %v18891_v36 = vpack.c.bf16 %v16011_v33, %v16168_v25  ;;  %v18896_v33 = vpack.c.bf16 %v16109_v55, %v16204_v57  ;;  %v18901_v60 = vpack.c.bf16 %v18899_v12, %v18900_v52  ;;  %v16615_v55 = vld [vmem:[#allocation2 + $0x100] sm:$0xff] }
  0xe7   : > { %13857 = vmatprep.mubr.msk.bf16.mxu1 %vm590_vm2, %v4751_v39  ;;  %v1824_v57 = vmul.f32 %v18905_v14, %v16615_v55  ;;  %v18908_v39 = vpack.c.bf16 %v18906_v62, %v18907_v2  ;;  %v2094_v52 = vld [vmem:[#allocation2 + $0x41] sm:$0xff]  ;;  %v2099_v62 = vld [vmem:[#allocation2 + $0x69] sm:$0xff]  ;;  %v2100_v2 = vld [vmem:[#allocation2 + $0x71] sm:$0xff] }
  0xe9   : > { %v1841_v27 = vpack.c.bf16 %v16633_v10, %v1824_v57  ;;  %v2098_v57 = vld [vmem:[#allocation2 + $0x61] sm:$0xff] }
  0xec   : > { %13564 = vmatmul.mubr.msk.bf16.gmra.mrb[28].mxu0 %vm590_vm2, %v1515_v32  ;;  %v2120_v32 = vpack.c.bf16 %v2089_v1, %v2088_v46  ;;  %v16678_v46 = vpack.c.bf16 %v2099_v62, %v2098_v57  ;;  %v2110_v62 = vld [vmem:[#allocation2 + $0xc1] sm:$0xff] }
  0xed   : > { %13569 = vmatprep.mubr.msk.bf16.mxu0 %vm590_vm2, %v1826_v9 }
  0xee   : > { %13858 = vmatmul.mubr.msk.bf16.gmra.mrb[16].mxu1 %vm590_vm2, %v4752_v28 }
  0xef   : > { %13863 = vmatprep.mubr.msk.bf16.mxu1 %vm15245_vm12, %v18785_v49 }
  0xf4   : > { %13570 = vmatmul.mubr.msk.bf16.vlgmr.msra.gmra.mrb[0].mxu0 %vm590_vm2, %v18888_v38  ;;  %v2090_v38 = vld [vmem:[#allocation2 + $0x21] sm:$0xff] }
  0xf5   : > { %13573 = vmatprep.mubr.msk.bf16.mxu0 %vm590_vm2, %v18889_v50  ;;  %13602 = vmatpush3.bf16.msra.mxu0 %v2187_v17  ;;  %v2091_v50 = vld [vmem:[#allocation2 + $0x29] sm:$0xff] }
  0xf6   : > { %15101 = vmatprep.subr.msk.bf16.mxu0 %vm1059_vm0, %v12584_v7 }
  0xfc   : > { %13574 = vmatmul.mubr.msk.bf16.gmra.mrb[4].mxu0 %vm590_vm2, %v18890_v0  ;;  %v2092_v0 = vld [vmem:[#allocation2 + $0x31] sm:$0xff] }
  0xfd   : > { %13577 = vmatprep.mubr.msk.bf16.mxu0 %vm590_vm2, %v18891_v36  ;;  %v2093_v36 = vld [vmem:[#allocation2 + $0x39] sm:$0xff] }
 0x104   : > { %13578 = vmatmul.mubr.msk.bf16.gmra.mrb[8].mxu0 %vm590_vm2, %v18892_v61  ;;  %v16646_v61 = vpack.c.bf16 %v2091_v50, %v2090_v38  ;;  %v2104_v38 = vld [vmem:[#allocation2 + $0x91] sm:$0xff]  ;;  %v2105_v50 = vld [vmem:[#allocation2 + $0x99] sm:$0xff] }
 0x105   : > { %13581 = vmatprep.mubr.msk.bf16.mxu0 %vm590_vm2, %v18893_v54 }
 0x10c   : > { %13582 = vmatmul.mubr.msk.bf16.gmra.mrb[12].mxu0 %vm590_vm2, %v18894_v47  ;;  %v16650_v47 = vpack.c.bf16 %v2093_v36, %v2092_v0  ;;  %v16688_v36 = vpack.c.bf16 %v2105_v50, %v2104_v38  ;;  %v2114_v50 = vld [vmem:[#allocation2 + $0xe1] sm:$0xff] }
 0x10d   : > { %13585 = vmatprep.mubr.msk.bf16.mxu0 %vm590_vm2, %v18895_v5 }
 0x114   : > { %13586 = vmatmul.mubr.msk.bf16.gmra.mrb[16].mxu0 %vm590_vm2, %v18896_v33  ;;  %v2513_v33 = vsel %vm1059_vm0, %v12584_v7, 0  ;;  %v2097_v7 = vld [vmem:[#allocation2 + $0x59] sm:$0xff] }
 0x115   : > { %13589 = vmatprep.mubr.msk.bf16.mxu0 %vm590_vm2, %v18897_v6 }
 0x11c   : > { %13590 = vmatmul.mubr.msk.bf16.gmra.mrb[20].mxu0 %vm590_vm2, %v18898_v4  ;;  %v16660_v4 = vld [vmem:[%s18587_s4 + $0xc] sm:$0x3] }
 0x11d   : > { %13593 = vmatprep.mubr.msk.bf16.mxu0 %vm590_vm2, %v18901_v60  ;;  %v2095_v60 = vld [vmem:[#allocation2 + $0x49] sm:$0xff] }
 0x11e   : > { %v16670_v29 = vpack.c.bf16 %v2095_v60, %v2094_v52  ;;  %v2107_v52 = vld [vmem:[#allocation2 + $0xa9] sm:$0xff]  ;;  %v2108_v60 = vld [vmem:[#allocation2 + $0xb1] sm:$0xff] }
 0x121   : > { %v16613_v41 = vpop.f32.mrb[0].mxu1 }
 0x122   : > { %v16617_v25 = vpop.f32.mrb[1].mxu1 }
 0x123   : > { %v16619_v11 = vpop.f32.mrb[2].mxu1 }
 0x124   : > { %v16621_v34 = vpop.f32.mrb[3].mxu1  ;;  %13594 = vmatmul.mubr.msk.bf16.gmra.mrb[24].mxu0 %vm590_vm2, %v18904_v19  ;;  %v16672_v19 = vpack.c.bf16 %v2097_v7, %v2096_v30  ;;  %v2109_v30 = vld [vmem:[#allocation2 + $0xb9] sm:$0xff] }
 0x125   : > { %13597 = vmatprep.mubr.msk.bf16.mxu0 %vm590_vm2, %v18908_v39  ;;  %v2101_v39 = vld [vmem:[#allocation2 + $0x79] sm:$0xff]  ;;  %v16698_v57 = vpack.c.bf16 %v2109_v30, %v2108_v60 }
 0x126   : > { %v16680_v1 = vpack.c.bf16 %v2101_v39, %v2100_v2  ;;  %v2111_v2 = vld [vmem:[#allocation2 + $0xc9] sm:$0xff]  ;;  %v2112_v39 = vld [vmem:[#allocation2 + $0xd1] sm:$0xff]  ;;  %v2117_v60 = vld [vmem:[#allocation2 + $0xf9] sm:$0xff] }
 0x129   : > { %v16636_v23 = vpop.f32.mrb[4].mxu1 }
 0x12a   : > { %18909 = vst [vmem:[#allocation12_spill] sm:$0xff] %v16636_v23  ;;  %v16638_v9 = vpop.f32.mrb[5].mxu1 }
 0x12b   : > { %18910 = vst [vmem:[#allocation19_spill] sm:$0xff] %v16638_v9  ;;  %v16640_v28 = vpop.f32.mrb[6].mxu1  ;;  %v18934_v9 = vld [vmem:[#allocation27_spill] sm:$0xff] }
 0x12c   : > { %18911 = vst [vmem:[#allocation11_spill] sm:$0xff] %v16640_v28  ;;  %v16642_v17 = vpop.f32.mrb[7].mxu1  ;;  %13598 = vmatmul.mubr.msk.bf16.gmra.mrb[28].mxu0 %vm590_vm2, %v1841_v27  ;;  %v2102_v27 = vld [vmem:[#allocation2 + $0x81] sm:$0xff] }
 0x12d   : > { %18912 = vst [vmem:[#allocation60_spill] sm:$0xff] %v16642_v17  ;;  %13603 = vmatprep.mubr.msk.bf16.mxu0 %vm590_vm2, %v2120_v32  ;;  %v2103_v32 = vld [vmem:[#allocation2 + $0x89] sm:$0xff] }
 0x12e   : > { %v16686_v0 = vpack.c.bf16 %v2103_v32, %v2102_v27  ;;  %v2113_v27 = vld [vmem:[#allocation2 + $0xd9] sm:$0xff]  ;;  %v16704_v32 = vpack.c.bf16 %v2111_v2, %v2110_v62  ;;  %v2118_v62 = vld [vmem:[#allocation2 + $0x101] sm:$0xff]  ;;  %v2119_v2 = vld [vmem:[#allocation2 + $0x109] sm:$0xff] }
 0x12f   : > { %v16706_v38 = vpack.c.bf16 %v2113_v27, %v2112_v39  ;;  %v18917_v39 = vld [vmem:[#allocation42_spill] sm:$0xff]  ;;  %v18918_v27 = vld [vmem:[#allocation65_spill] sm:$0xff]  ;;  %v16722_v40 = vpack.c.bf16 %v2119_v2, %v2118_v62  ;;  %v2839_v62 = vsel %vm1059_vm0, %v16660_v4, 0 }
 0x130   : > { %v2415_v53 = vmul.f32 %v18918_v27, %v18917_v39  ;;  %v18925_v17 = vld [vmem:[#allocation38_spill] sm:$0xff] }
 0x131   : > { %v16648_v54 = vpop.f32.mrb[8].mxu1  ;;  %v18927_v2 = vld [vmem:[#allocation46_spill] sm:$0xff] }
 0x132   : > { %18913 = vst [vmem:[#allocation62_spill] sm:$0xff] %v16648_v54  ;;  %v16652_v5 = vpop.f32.mrb[9].mxu1  ;;  %v2446_v58 = vpack.c.bf16 %v2415_v53, %v18919_v20  ;;  %v12618_v20 = vld [vmem:[%s18587_s4 + $0xe] sm:$0x3]  ;;  %v18926_v53 = vld [vmem:[#allocation67_spill] sm:$0xff] }
 0x133   : > { %18914 = vst [vmem:[#allocation61_spill] sm:$0xff] %v16652_v5  ;;  %v16655_v6 = vpop.f32.mrb[10].mxu1  ;;  %v18924_v5 = vld [vmem:[#allocation43_spill] sm:$0xff]  ;;  %v2421_v39 = vmul.f32 %v18927_v2, %v18926_v53  ;;  %v18933_v53 = vld [vmem:[#allocation68_spill] sm:$0xff] }
 0x134   : > { %18915 = vst [vmem:[#allocation64_spill] sm:$0xff] %v16655_v6  ;;  %v16662_v12 = vpop.f32.mrb[11].mxu1  ;;  %13604 = vmatmul.mubr.msk.bf16.vlgmr.msra.gmra.mrb[0].mxu0 %vm590_vm2, %v16646_v61 }
 0x135   : > { %18916 = vst [vmem:[#allocation63_spill] sm:$0xff] %v16662_v12  ;;  %13607 = vmatprep.mubr.msk.bf16.mxu0 %vm590_vm2, %v16650_v47  ;;  %13636 = vmatpush3.bf16.msra.mxu0 %v2513_v33  ;;  %v2106_v33 = vld [vmem:[#allocation2 + $0xa1] sm:$0xff] }
 0x136   : > { %15102 = vmatprep.subr.msk.bf16.mxu0 %vm1059_vm0, %v16660_v4  ;;  %v16696_v7 = vpack.c.bf16 %v2107_v52, %v2106_v33  ;;  %v2115_v33 = vld [vmem:[#allocation2 + $0xe9] sm:$0xff]  ;;  %v2116_v52 = vld [vmem:[#allocation2 + $0xf1] sm:$0xff]  ;;  %v18923_v12 = vld [vmem:[#allocation16_spill] sm:$0xff] }
 0x137   : > { %v16712_v30 = vpack.c.bf16 %v2115_v33, %v2114_v50  ;;  %v16714_v26 = vpack.c.bf16 %v2117_v60, %v2116_v52  ;;  %v18920_v50 = vld [vmem:[#allocation66_spill] sm:$0xff]  ;;  %v18921_v33 = vld [vmem:[#allocation36_spill] sm:$0xff]  ;;  %v18922_v60 = vld [vmem:[#allocation47_spill] sm:$0xff] }
 0x138   : > { %v2417_v52 = vmul.f32 %v18921_v33, %v18920_v50  ;;  %v2419_v6 = vmul.f32 %v18923_v12, %v18922_v60  ;;  %v18929_v50 = vld [vmem:[#allocation52_spill] sm:$0xff]  ;;  %v18931_v4 = vld [vmem:[#allocation69_spill] sm:$0xff] }
 0x13a   : > { %v2447_v54 = vpack.c.bf16 %v2417_v52, %v18924_v5  ;;  %v2448_v28 = vpack.c.bf16 %v2419_v6, %v18925_v17  ;;  %v18930_v17 = vld [vmem:[#allocation53_spill] sm:$0xff]  ;;  %v18932_v52 = vld [vmem:[#allocation23_spill] sm:$0xff] }
 0x13b   : > { %v2449_v5 = vpack.c.bf16 %v2421_v39, %v18930_v17  ;;  %v2429_v39 = vmul.f32 %v16412_v13, %v16419_v21  ;;  %v18941_v21 = vld [vmem:[#allocation74_spill] sm:$0xff] }
 0x13c   : > { %13608 = vmatmul.mubr.msk.bf16.gmra.mrb[4].mxu0 %vm590_vm2, %v16670_v29 }
 0x13d   : > { %13611 = vmatprep.mubr.msk.bf16.mxu0 %vm590_vm2, %v16672_v19 }
 0x144   : > { %13612 = vmatmul.mubr.msk.bf16.gmra.mrb[8].mxu0 %vm590_vm2, %v16678_v46 }
 0x145   : > { %13615 = vmatprep.mubr.msk.bf16.mxu0 %vm590_vm2, %v16680_v1 }
 0x14c   : > { %13616 = vmatmul.mubr.msk.bf16.gmra.mrb[12].mxu0 %vm590_vm2, %v16686_v0 }
 0x14d   : > { %13619 = vmatprep.mubr.msk.bf16.mxu0 %vm590_vm2, %v16688_v36 }
 0x154   : > { %13620 = vmatmul.mubr.msk.bf16.gmra.mrb[16].mxu0 %vm590_vm2, %v16696_v7 }
 0x155   : > { %13623 = vmatprep.mubr.msk.bf16.mxu0 %vm590_vm2, %v16698_v57 }
 0x15c   : > { %13624 = vmatmul.mubr.msk.bf16.gmra.mrb[20].mxu0 %vm590_vm2, %v16704_v32 }
 0x15d   : > { %13627 = vmatprep.mubr.msk.bf16.mxu0 %vm590_vm2, %v16706_v38 }
 0x164   : > { %13628 = vmatmul.mubr.msk.bf16.gmra.mrb[24].mxu0 %vm590_vm2, %v16712_v30 }
 0x165   : > { %13631 = vmatprep.mubr.msk.bf16.mxu0 %vm590_vm2, %v16714_v26 }
 0x16c   : > { %13632 = vmatmul.mubr.msk.bf16.gmra.mrb[28].mxu0 %vm590_vm2, %v16722_v40 }
 0x16d   : > { %13637 = vmatprep.mubr.msk.bf16.mxu0 %vm590_vm2, %v2446_v58  ;;  %v18928_v58 = vld [vmem:[#allocation24_spill] sm:$0xff] }
 0x16e   : > { %v2423_v60 = vmul.f32 %v18929_v50, %v18928_v58 }
 0x170   : > { %v2450_v6 = vpack.c.bf16 %v2423_v60, %v16391_v15  ;;  %v18935_v15 = vld [vmem:[#allocation28_spill] sm:$0xff]  ;;  %v18936_v60 = vld [vmem:[#allocation33_spill] sm:$0xff] }
 0x171   : > { %v2431_v58 = vmul.f32 %v18935_v15, %v16448_v3  ;;  %v2453_v17 = vpack.c.bf16 %v2429_v39, %v18936_v60  ;;  %v2437_v3 = vmul.f32 %v16473_v63, %v16480_v31 }
 0x174   : > { %13638 = vmatmul.mubr.msk.bf16.vlgmr.msra.gmra.mrb[0].mxu0 %vm590_vm2, %v2447_v54  ;;  %v2425_v54 = vmul.f32 %v18932_v52, %v18931_v4 }
 0x175   : > { %13641 = vmatprep.mubr.msk.bf16.mxu0 %vm590_vm2, %v2448_v28  ;;  %13670 = vmatpush3.bf16.msra.mxu0 %v2839_v62  ;;  %v2427_v28 = vmul.f32 %v18933_v53, %v16414_v42  ;;  %v18938_v42 = vld [vmem:[#allocation72_spill] sm:$0xff] }
 0x176   : > { %15103 = vmatprep.subr.msk.bf16.mxu0 %vm1059_vm0, %v12618_v20  ;;  %v2451_v23 = vpack.c.bf16 %v2425_v54, %v18934_v9  ;;  %v18939_v9 = vld [vmem:[#allocation70_spill] sm:$0xff] }
 0x177   : > { %v2452_v62 = vpack.c.bf16 %v2427_v28, %v16426_v24  ;;  %v2433_v4 = vmul.f32 %v18939_v9, %v18938_v42  ;;  %v18940_v24 = vld [vmem:[#allocation71_spill] sm:$0xff]  ;;  %v2710_v42 = vld [vmem:[#allocation2 + $0x30] sm:$0xff] }
 0x179   : > { %v2455_v54 = vpack.c.bf16 %v2433_v4, %v18941_v21  ;;  %v18943_v4 = vld [vmem:[#allocation18_spill] sm:$0xff]  ;;  %v2711_v21 = vld [vmem:[#allocation2 + $0x38] sm:$0xff] }
 0x17c   : > { %13642 = vmatmul.mubr.msk.bf16.gmra.mrb[4].mxu0 %vm590_vm2, %v2449_v5  ;;  %v18937_v5 = vld [vmem:[#allocation73_spill] sm:$0xff] }
 0x17d   : > { %13645 = vmatprep.mubr.msk.bf16.mxu0 %vm590_vm2, %v2450_v6  ;;  %v2454_v6 = vpack.c.bf16 %v2431_v58, %v18937_v5  ;;  %v2457_v58 = vpack.c.bf16 %v2437_v3, %v16493_v35  ;;  %v16788_v5 = vld [vmem:[#allocation2 + $0x10a] sm:$0xff] }
 0x17e   : > { %v2445_v35 = vmul.f32 %v16539_v59, %v16788_v5  ;;  %v2713_v3 = vld [vmem:[#allocation2 + $0x48] sm:$0xff] }
 0x184   : > { %13646 = vmatmul.mubr.msk.bf16.gmra.mrb[8].mxu0 %vm590_vm2, %v2451_v23  ;;  %v2435_v23 = vmul.f32 %v18940_v24, %v16475_v45  ;;  %v2441_v45 = vmul.f32 %v16506_v8, %v16514_v37  ;;  %v16794_v37 = vld [vmem:[#allocation2 + $0x102] sm:$0xff] }
 0x185   : > { %13649 = vmatprep.mubr.msk.bf16.mxu0 %vm590_vm2, %v2452_v62  ;;  %v18942_v62 = vld [vmem:[#allocation10_spill] sm:$0xff] }
 0x186   : > { %v2456_v28 = vpack.c.bf16 %v2435_v23, %v16487_v18  ;;  %v2439_v39 = vmul.f32 %v18942_v62, %v16508_v16  ;;  %v2443_v18 = vmul.f32 %v16512_v56, %v16541_v48  ;;  %v2459_v31 = vpack.c.bf16 %v2441_v45, %v16529_v51  ;;  %v2708_v16 = vld [vmem:[#allocation2 + $0x20] sm:$0xff] }
 0x187   : > { %v2461_v48 = vpack.c.bf16 %v2445_v35, %v16794_v37  ;;  %v2742_v23 = vmul.f32 %v18943_v4, %v2710_v42  ;;  %v3133_v45 = vsel %vm1059_vm0, %v12618_v20, 0  ;;  %v18946_v35 = vld [vmem:[#allocation30_spill] sm:$0xff]  ;;  %v12715_v20 = vld [vmem:[%s18589_s6 + $0x1] ss:$0 sm:$0xff] }
 0x188   : > { %v2458_v60 = vpack.c.bf16 %v2439_v39, %v16520_v22  ;;  %v2740_v22 = vmul.f32 %v18887_v43, %v2708_v16  ;;  %v2716_v43 = vld [vmem:[#allocation2 + $0x60] sm:$0xff]  ;;  %v2715_v16 = vld [vmem:[#allocation2 + $0x58] sm:$0xff] }
 0x189   : > { %v2773_v39 = vpack.c.bf16 %v2711_v21, %v2742_v23  ;;  %v2720_v21 = vld [vmem:[#allocation2 + $0x80] sm:$0xff] }
 0x18c   : > { %13650 = vmatmul.mubr.msk.bf16.gmra.mrb[12].mxu0 %vm590_vm2, %v2453_v17  ;;  %v2460_v17 = vpack.c.bf16 %v2443_v18, %v16547_v44  ;;  %v2712_v44 = vld [vmem:[#allocation2 + $0x40] sm:$0xff]  ;;  %v16806_v18 = vld [vmem:[%s18587_s4 + $0x10] sm:$0x3] }
 0x18d   : > { %13653 = vmatprep.mubr.msk.bf16.mxu0 %vm590_vm2, %v2454_v6  ;;  %v2709_v6 = vld [vmem:[#allocation2 + $0x28] sm:$0xff] }
 0x18e   : > { %v2772_v51 = vpack.c.bf16 %v2709_v6, %v2740_v22  ;;  %v2748_v22 = vmul.f32 %v18946_v35, %v2716_v43  ;;  %v2717_v6 = vld [vmem:[#allocation2 + $0x68] sm:$0xff] }
 0x190   : > { %v2776_v42 = vpack.c.bf16 %v2717_v6, %v2748_v22  ;;  %v2721_v6 = vld [vmem:[#allocation2 + $0x88] sm:$0xff] }
 0x194   : > { %13654 = vmatmul.mubr.msk.bf16.gmra.mrb[16].mxu0 %vm590_vm2, %v2455_v54  ;;  %v18944_v54 = vld [vmem:[#allocation21_spill] sm:$0xff] }
 0x195   : > { %13657 = vmatprep.mubr.msk.bf16.mxu0 %vm590_vm2, %v2456_v28  ;;  %v2744_v28 = vmul.f32 %v18944_v54, %v2712_v44  ;;  %v2718_v44 = vld [vmem:[#allocation2 + $0x70] sm:$0xff] }
 0x19c   : > { %13658 = vmatmul.mubr.msk.bf16.gmra.mrb[20].mxu0 %vm590_vm2, %v2457_v58  ;;  %v2774_v58 = vpack.c.bf16 %v2713_v3, %v2744_v28 }
 0x19d   : > { %13661 = vmatprep.mubr.msk.bf16.mxu0 %vm590_vm2, %v2458_v60  ;;  %v2714_v60 = vld [vmem:[#allocation2 + $0x50] sm:$0xff] }
 0x1a4   : > { %13662 = vmatmul.mubr.msk.bf16.gmra.mrb[24].mxu0 %vm590_vm2, %v2459_v31  ;;  %v18945_v31 = vld [vmem:[#allocation29_spill] sm:$0xff] }
 0x1a5   : > { %13665 = vmatprep.mubr.msk.bf16.mxu0 %vm590_vm2, %v2460_v17  ;;  %v2746_v17 = vmul.f32 %v18945_v31, %v2714_v60  ;;  %v18947_v60 = vld [vmem:[#allocation37_spill] sm:$0xff] }
 0x1a6   : > { %v2750_v43 = vmul.f32 %v18947_v60, %v2718_v44 }
 0x1ac   : > { %13666 = vmatmul.mubr.msk.bf16.gmra.mrb[28].mxu0 %vm590_vm2, %v2461_v48  ;;  %v2775_v48 = vpack.c.bf16 %v2715_v16, %v2746_v17  ;;  %v2719_v17 = vld [vmem:[#allocation2 + $0x78] sm:$0xff] }
 0x1ad   : > { %13671 = vmatprep.mubr.msk.bf16.mxu0 %vm590_vm2, %v2772_v51  ;;  %v18948_v16 = vld [vmem:[#allocation39_spill] sm:$0xff] }
 0x1ae   : > { %v2752_v35 = vmul.f32 %v18948_v16, %v2720_v21  ;;  %v18950_v16 = vld [vmem:[#allocation50_spill] sm:$0xff] }
 0x1b0   : > { %v2778_v44 = vpack.c.bf16 %v2721_v6, %v2752_v35  ;;  %v2723_v35 = vld [vmem:[#allocation2 + $0x98] sm:$0xff]  ;;  %v2725_v6 = vld [vmem:[#allocation2 + $0xa8] sm:$0xff] }
 0x1b4   : > { %13672 = vmatmul.mubr.msk.bf16.vlgmr.msra.gmra.mrb[0].mxu0 %vm590_vm2, %v2773_v39 }
 0x1b5   : > { %13675 = vmatprep.mubr.msk.bf16.mxu0 %vm590_vm2, %v2774_v58  ;;  %13704 = vmatpush3.bf16.msra.mxu0 %v3133_v45 }
 0x1b6   : > { %15104 = vmatprep.subr.msk.bf16.mxu0 %vm1059_vm0, %v16806_v18 }
 0x1b9   : > { %v13855_v51 = vpop.f32.mrb[12].mxu1 }
 0x1ba   : > { %v4853_v4 = vadd.f32 %v13855_v51, %v12715_v20  ;;  %v4804_v23 = vpop.f32.mrb[13].mxu1 }
 0x1bb   : > { %v4851_v54 = vadd.f32 %v12715_v20, %v4804_v23  ;;  %v13856_v28 = vpop.f32.mrb[14].mxu1  ;;  %v2722_v23 = vld [vmem:[#allocation2 + $0x90] sm:$0xff] }
 0x1bc   : > { %v4861_v3 = vmax.f32 %v4853_v4, 0.0  ;;  %v4854_v39 = vadd.f32 %v13856_v28, %v12715_v20  ;;  %v4807_v58 = vpop.f32.mrb[15].mxu1  ;;  %13676 = vmatmul.mubr.msk.bf16.gmra.mrb[4].mxu0 %vm590_vm2, %v2775_v48  ;;  %v2777_v4 = vpack.c.bf16 %v2719_v17, %v2750_v43 }
 0x1bd   : > { %v4859_v45 = vmax.f32 %v4851_v54, 0.0  ;;  %v4852_v31 = vadd.f32 %v12715_v20, %v4807_v58  ;;  %13679 = vmatprep.mubr.msk.bf16.mxu0 %vm590_vm2, %v2776_v42  ;;  %v2724_v54 = vld [vmem:[#allocation2 + $0xa0] sm:$0xff] }
 0x1be   : > { %4869 = vst.msk [vmem:[#allocation2 + $0x13b] sm:$0xff] %vm470_vm1, %v4861_v3  ;;  %v4862_v22 = vmax.f32 %v4854_v39, 0.0  ;;  %v2756_v43 = vmul.f32 %v18950_v16, %v2724_v54 }
 0x1bf   : > { %4867 = vst.msk [vmem:[#allocation2 + $0x12b] sm:$0xff] %vm470_vm1, %v4859_v45  ;;  %v4860_v51 = vmax.f32 %v4852_v31, 0.0  ;;  %v18949_v45 = vld [vmem:[#allocation48_spill] sm:$0xff] }
 0x1c0   : > { %4870 = vst.msk [vmem:[#allocation2 + $0x143] sm:$0xff] %vm470_vm1, %v4862_v22  ;;  %v2754_v31 = vmul.f32 %v18949_v45, %v2722_v23  ;;  %v5773_v45 = vld [vmem:[%s464_s18 + $0x8] sm:$0xff] }
 0x1c1   : > { %4868 = vst.msk [vmem:[#allocation2 + $0x133] sm:$0xff] %vm470_vm1, %v4860_v51  ;;  %v13859_v48 = vpop.f32.mrb[16].mxu1 }
 0x1c2   : > { %v4857_v42 = vadd.f32 %v13859_v48, %v12715_v20  ;;  %v4820_v28 = vpop.f32.mrb[17].mxu1  ;;  %5775 = vst.msk [vmem:[#allocation2 + $0x181] sm:$0xff] %vm590_vm2, %v5773_v45  ;;  %v2732_v45 = vld [vmem:[#allocation2 + $0xe0] sm:$0xff] }
 0x1c3   : > { %v4855_v21 = vadd.f32 %v12715_v20, %v4820_v28  ;;  %v13860_v58 = vpop.f32.mrb[18].mxu1  ;;  %v5772_v28 = vld [vmem:[%s464_s18] sm:$0xff]  ;;  %s468_s18 = scalar_lea.vmem %s18586_s3, %s12467_s29  ;;  %s12969_s29 = sshll.u32 %s15335_s25, 12 }
 0x1c4   : > { %v4865_v3 = vmax.f32 %v4857_v42, 0.0  ;;  %v4858_v39 = vadd.f32 %v13860_v58, %v12715_v20  ;;  %v4823_v60 = vpop.f32.mrb[19].mxu1  ;;  %13680 = vmatmul.mubr.msk.bf16.gmra.mrb[8].mxu0 %vm590_vm2, %v2777_v4  ;;  %v2780_v42 = vpack.c.bf16 %v2725_v6, %v2756_v43  ;;  %5774 = vst.msk [vmem:[#allocation2 + $0x179] sm:$0xff] %vm590_vm2, %v5772_v28  ;;  %v2727_v6 = vld [vmem:[#allocation2 + $0xb8] sm:$0xff]  ;;  %s18533_s20 = scalar_lea.hbm %s18595_s12, %s12969_s29  ;;  %s18542_s25 = scalar_lea.sflag [#allocation5], %s447_s19 }
 0x1c5   : > { %v4863_v17 = vmax.f32 %v4855_v21, 0.0  ;;  %v4856_v22 = vadd.f32 %v12715_v20, %v4823_v60  ;;  %13683 = vmatprep.mubr.msk.bf16.mxu0 %vm590_vm2, %v2778_v44  ;;  %v2779_v20 = vpack.c.bf16 %v2723_v35, %v2754_v31  ;;  %v16839_v44 = vld [vmem:[%s18590_s7] sm:$0xff]   ;;  %s15184_s29 = sshll.u32 %s15246_s16, 4  ;;  %s15185_s29 = int_to_ptr.vmem [resolvable:$false] %s15184_s29 }
 0x1c6   : > { %4873 = vst.msk [vmem:[#allocation2 + $0x15b] sm:$0xff] %vm470_vm1, %v4865_v3  ;;  %v4866_v51 = vmax.f32 %v4858_v39, 0.0  ;;  %v4875_v48 = vld [vmem:[#allocation2 + $0x12b] sm:$0xff]  ;;  %v2728_v31 = vld [vmem:[#allocation2 + $0xc0] sm:$0xff]  ;;  %s15186_s17 = scalar_lea.vmem %s15185_s29, 8192  ;;  %p15187_p0 = scmp.lt.s32.totalorder %s18535_s15, %s15185_s29 }
 0x1c7   : > { %4871 = vst.msk [vmem:[#allocation2 + $0x14b] sm:$0xff] %vm470_vm1, %v4863_v17  ;;  %v4864_v4 = vmax.f32 %v4856_v22, 0.0  ;;  %v4876_v23 = vpack.c.bf16 %v4875_v48, %v4875_v48  ;;  %v4938_v58 = vmul.f32 0.75, %v4875_v48  ;;  %v2726_v39 = vld [vmem:[#allocation2 + $0xb0] sm:$0xff]  ;;  %v4994_v43 = vmul.f32 0.25, %v4875_v48  ;;  %v5049_v28 = vld [vmem:[#allocation2 + $0x13b] sm:$0xff]  ;;  %p15188_p1 = scmp.lt.s32.totalorder %s15186_s17, %s15180_s26 }
 0x1c8   : > { %4874 = vst.msk [vmem:[#allocation2 + $0x163] sm:$0xff] %vm470_vm1, %v4866_v51  ;;  %v4937_v54 = vld [vmem:[#allocation2 + $0x133] sm:$0xff] }
 0x1c9   : > { %4872 = vst.msk [vmem:[#allocation2 + $0x153] sm:$0xff] %vm470_vm1, %v4864_v4  ;;  %v4887_v21 = vsel %vm4885_vm13, %v4876_v23, 0  ;;  %v4939_v3 = vmul.f32 0.25, %v4937_v54  ;;  %v4995_v60 = vmul.f32 0.75, %v4937_v54  ;;  %v18951_v17 = vld [vmem:[#allocation54_spill] sm:$0xff]  ;;  %v18952_v4 = vld [vmem:[#allocation55_spill] sm:$0xff]  ;;  %p15189_p2 = por %p15188_p1, %p15187_p0 }
 0x1ca   : > { %13862 = vmatpush3.bf16.msra.mxu1 %v4887_v21  ;;  %v2758_v22 = vmul.f32 %v18951_v17, %v2726_v39  ;;  %v2760_v23 = vmul.f32 %v18952_v4, %v2728_v31  ;;  %v2729_v54 = vld [vmem:[#allocation2 + $0xc8] sm:$0xff]  ;;  %v2730_v39 = vld [vmem:[#allocation2 + $0xd0] sm:$0xff]  ;;  %v2731_v17 = vld [vmem:[#allocation2 + $0xd8] sm:$0xff] }
 0x1cb   : > { %13867 = vmatprep.subr.bf16.mxu1 %v18785_v49  ;;  %v4940_v16 = vadd.f32 %v4939_v3, %v4938_v58  ;;  %v4996_v51 = vadd.f32 %v4995_v60, %v4994_v43  ;;  %p15190_p3 = pnand %p15189_p2, %p15183_p13 }
 0x1cc   : > { %13684 = vmatmul.mubr.msk.bf16.gmra.mrb[12].mxu0 %vm590_vm2, %v2779_v20  ;;  %v2781_v20 = vpack.c.bf16 %v2727_v6, %v2758_v22  ;;  %v2782_v58 = vpack.c.bf16 %v2729_v54, %v2760_v23 }
 0x1cd   : > { %13864 = vmatmul.mubr.msk.bf16.vlgmr.msra.gmra.mrb[20].mxu1 %vm470_vm1, %v16839_v44  ;;  %v4941_v35 = vpack.c.bf16 %v4940_v16, %v4940_v16  ;;  %13687 = vmatprep.mubr.msk.bf16.mxu0 %vm590_vm2, %v2780_v42  ;;  %v4997_v21 = vpack.c.bf16 %v4996_v51, %v4996_v51  ;;  %v5051_v42 = vmul.f32 0.25, %v5049_v28  ;;  %v18953_v16 = vld [vmem:[#allocation56_spill] sm:$0xff]  ;;  %v2733_v51 = vld [vmem:[#allocation2 + $0xe8] sm:$0xff] }
 0x1ce   : > { %13869 = vmatprep.mubr.msk.bf16.mxu1 %vm15245_vm12, %v18785_v49  ;;  %v2762_v31 = vmul.f32 %v18953_v16, %v2730_v39  ;;  %v2735_v39 = vld [vmem:[#allocation2 + $0xf8] sm:$0xff] }
 0x1cf   : > { %v4943_v48 = vsel %vm4885_vm13, %v4941_v35, 0  ;;  %v4999_v43 = vsel %vm4885_vm13, %v4997_v21, 0  ;;  %v5052_v22 = vadd.f32 %v5051_v42, %v4995_v60  ;;  %v18954_v35 = vld [vmem:[#allocation57_spill] sm:$0xff]  ;;  %v18955_v21 = vld [vmem:[#allocation58_spill] sm:$0xff]  ;;  %v18956_v16 = vld [vmem:[#allocation59_spill] sm:$0xff] }
 0x1d0   : > { %13868 = vmatpush3.bf16.msra.mxu1 %v4943_v48  ;;  %v2764_v6 = vmul.f32 %v18954_v35, %v2732_v45  ;;  %v2783_v4 = vpack.c.bf16 %v2731_v17, %v2762_v31  ;;  %v2734_v48 = vld [vmem:[#allocation2 + $0xf0] sm:$0xff]  ;;  %v2768_v31 = vmul.f32 %v18956_v16, %v16615_v55 }
 0x1d1   : > { %13873 = vmatprep.subr.bf16.mxu1 %v18785_v49  ;;  %v5053_v23 = vpack.c.bf16 %v5052_v22, %v5052_v22  ;;  %v2738_v35 = vld [vmem:[#allocation2 + $0x110] sm:$0xff] }
 0x1d2   : > { %v2784_v54 = vpack.c.bf16 %v2733_v51, %v2764_v6  ;;  %v2786_v22 = vpack.c.bf16 %v16633_v10, %v2768_v31  ;;  %v2739_v51 = vld [vmem:[#allocation2 + $0x118] sm:$0xff] }
 0x1d3   : > { %v5055_v60 = vsel %vm4885_vm13, %v5053_v23, 0 }
 0x1d4   : > { %13688 = vmatmul.mubr.msk.bf16.gmra.mrb[16].mxu0 %vm590_vm2, %v2781_v20  ;;  %v5107_v20 = vmul.f32 0.75, %v5049_v28  ;;  %v5161_v28 = vld [vmem:[#allocation2 + $0x143] sm:$0xff] }
 0x1d5   : > { %13870 = vmatmul.mubr.msk.bf16.vlgmr.msra.gmra.mrb[24].mxu1 %vm470_vm1, %v16839_v44  ;;  %13691 = vmatprep.mubr.msk.bf16.mxu0 %vm590_vm2, %v2782_v58  ;;  %v2766_v58 = vmul.f32 %v18955_v21, %v2734_v48  ;;  %v5163_v6 = vmul.f32 0.25, %v5161_v28 }
 0x1d6   : > { %13874 = vmatpush3.bf16.msra.mxu1 %v4999_v43  ;;  %13875 = vmatprep.mubr.msk.bf16.mxu1 %vm15245_vm12, %v18785_v49  ;;  %v5108_v45 = vadd.f32 %v5107_v20, %v4939_v3  ;;  %v2770_v3 = vmul.f32 %v18905_v14, %v2738_v35 }
 0x1d7   : > { %13879 = vmatprep.subr.bf16.mxu1 %v18785_v49  ;;  %v2785_v43 = vpack.c.bf16 %v2735_v39, %v2766_v58 }
 0x1d8   : > { %v5109_v17 = vpack.c.bf16 %v5108_v45, %v5108_v45  ;;  %v2787_v10 = vpack.c.bf16 %v2739_v51, %v2770_v3  ;;  %v5385_v45 = vld [vmem:[#allocation2 + $0x153] sm:$0xff] }
 0x1d9   : > { %v5387_v31 = vmul.f32 0.25, %v5385_v45 }
 0x1da   : > { %v5111_v55 = vsel %vm4885_vm13, %v5109_v17, 0  ;;  %v5497_v17 = vld [vmem:[#allocation2 + $0x15b] sm:$0xff] }
 0x1db   : > { %v5499_v35 = vmul.f32 0.25, %v5497_v17  ;;  %v5555_v3 = vmul.f32 0.75, %v5497_v17  ;;  %v3339_v17 = vld [vmem:[#allocation2 + $0x7a] sm:$0xff] }
 0x1dc   : > { %13692 = vmatmul.mubr.msk.bf16.gmra.mrb[20].mxu0 %vm590_vm2, %v2783_v4  ;;  %v5164_v4 = vadd.f32 %v5163_v6, %v5107_v20  ;;  %v5273_v20 = vld [vmem:[#allocation2 + $0x14b] sm:$0xff] }
 0x1dd   : > { %13876 = vmatmul.mubr.msk.bf16.vlgmr.msra.gmra.mrb[28].mxu1 %vm470_vm1, %v16839_v44  ;;  %13695 = vmatprep.mubr.msk.bf16.mxu0 %vm590_vm2, %v2784_v54  ;;  %v5219_v54 = vmul.f32 0.75, %v5161_v28  ;;  %v5275_v58 = vmul.f32 0.25, %v5273_v20 }
 0x1de   : > { %13880 = vmatpush3.bf16.msra.mxu1 %v5055_v60  ;;  %13881 = vmatprep.mubr.msk.bf16.mxu1 %vm15245_vm12, %v18785_v49  ;;  %v5165_v23 = vpack.c.bf16 %v5164_v4, %v5164_v4  ;;  %v3459_v60 = vsel %vm1059_vm0, %v16806_v18, 0  ;;  %v5331_v18 = vmul.f32 0.75, %v5273_v20 }
 0x1df   : > { %13885 = vmatprep.subr.bf16.mxu1 %v18785_v49  ;;  %v5220_v48 = vadd.f32 %v5219_v54, %v5051_v42  ;;  %v5276_v42 = vadd.f32 %v5275_v58, %v5219_v54 }
 0x1e0   : > { %v5167_v14 = vsel %vm4885_vm13, %v5165_v23, 0  ;;  %v5332_v39 = vadd.f32 %v5331_v18, %v5163_v6  ;;  %v3065_v23 = vld [vmem:[#allocation2 + $0x119] sm:$0xff] }
 0x1e1   : > { %v5221_v21 = vpack.c.bf16 %v5220_v48, %v5220_v48  ;;  %v3328_v48 = vld [vmem:[#allocation2 + $0x22] sm:$0xff] }
 0x1e2   : > { %v5333_v16 = vpack.c.bf16 %v5332_v39, %v5332_v39 }
 0x1e4   : > { %13696 = vmatmul.mubr.msk.bf16.gmra.mrb[24].mxu0 %vm590_vm2, %v2785_v43  ;;  %v5443_v43 = vmul.f32 0.75, %v5385_v45 }
 0x1e5   : > { %13882 = vmatmul.mubr.msk.bf16.vlgmr.msra.gmra.mrb[32].mxu1 %vm470_vm1, %v16839_v44  ;;  %13699 = vmatprep.mubr.msk.bf16.mxu0 %vm590_vm2, %v2786_v22 }
 0x1e6   : > { %13886 = vmatpush3.bf16.msra.mxu1 %v5111_v55  ;;  %13887 = vmatprep.mubr.msk.bf16.mxu1 %vm15245_vm12, %v18785_v49  ;;  %v5609_v55 = vld [vmem:[#allocation2 + $0x163] sm:$0xff] }
 0x1e7   : > { %13891 = vmatprep.subr.bf16.mxu1 %v18785_v49  ;;  %v5611_v4 = vmul.f32 0.25, %v5609_v55 }
 0x1e9   : > { %v5612_v54 = vadd.f32 %v5611_v4, %v5555_v3  ;;  %v18957_v4 = vld [vmem:[#allocation7_spill] sm:$0xff] }
 0x1eb   : > { %v5613_v20 = vpack.c.bf16 %v5612_v54, %v5612_v54 }
 0x1ec   : > { %13700 = vmatmul.mubr.msk.bf16.gmra.mrb[28].mxu0 %vm590_vm2, %v2787_v10  ;;  %v3329_v10 = vld [vmem:[#allocation2 + $0x2a] sm:$0xff] }
 0x1ed   : > { %13888 = vmatmul.mubr.msk.bf16.vlgmr.msra.gmra.mrb[36].mxu1 %vm470_vm1, %v16839_v44  ;;  %13705 = vmatprep.mubr.msk.bf16.mxu0 %vm590_vm2, %v16646_v61  ;;  %v5223_v61 = vsel %vm4885_vm13, %v5221_v21, 0 }
 0x1ee   : > { %13892 = vmatpush3.bf16.msra.mxu1 %v5167_v14  ;;  %13893 = vmatprep.mubr.msk.bf16.mxu1 %vm15245_vm12, %v18785_v49  ;;  %v3361_v14 = vmul.f32 %v18918_v27, %v3329_v10  ;;  %v5615_v27 = vsel %vm4885_vm13, %v5613_v20, 0  ;;  %v5776_v10 = vand.u32 3, %v18957_v4 }
 0x1ef   : > { %13897 = vmatprep.subr.bf16.mxu1 %v18785_v49 }
 0x1f0   : > { %v3392_v21 = vpack.c.bf16 %v3361_v14, %v3328_v48  ;;  %v5797_v14 = vld [vmem:[#allocation2 + $0x175] sm:$0xff]  ;;  %v17014_v48 = vld [vmem:[#allocation2 + $0x17d] sm:$0xff]  ;;  %vm5778_vm14 = vcmp.gt.s32.totalorder %v5776_v10, 0  ;;  %vm5784_vm3 = vcmp.lt.s32.totalorder %v5776_v10, 3 }
 0x1f1   : > { %v5799_v20 = vpack.c.bf16 %v17014_v48, %v5797_v14  ;;  %v3359_v14 = vld [vmem:[#allocation2 + $0x11a] sm:$0xff] }
 0x1f4   : > { %13706 = vmatmul.mubr.msk.bf16.vlgmr.msra.gmra.mrb[0].mxu0 %vm590_vm2, %v16650_v47  ;;  %v5277_v47 = vpack.c.bf16 %v5276_v42, %v5276_v42  ;;  %v3330_v42 = vld [vmem:[#allocation2 + $0x32] sm:$0xff] }
 0x1f5   : > { %13894 = vmatmul.mubr.msk.bf16.vlgmr.msra.gmra.mrb[40].mxu1 %vm470_vm1, %v16839_v44  ;;  %13709 = vmatprep.mubr.msk.bf16.mxu0 %vm590_vm2, %v16670_v29 }
 0x1f6   : > { %13898 = vmatpush3.bf16.msra.mxu1 %v5223_v61  ;;  %13899 = vmatprep.mubr.msk.bf16.mxu1 %vm15245_vm12, %v18785_v49  ;;  %v5279_v29 = vsel %vm4885_vm13, %v5277_v47, 0  ;;  %v3333_v61 = vld [vmem:[#allocation2 + $0x4a] sm:$0xff] }
 0x1f7   : > { %13903 = vmatprep.subr.bf16.mxu1 %v18785_v49  ;;  %13738 = vmatpush3.bf16.msra.mxu0 %v3459_v60  ;;  %v5667_v60 = vmul.f32 0.75, %v5609_v55 }
 0x1f8   : > { %14167 = vmatprep.subr.bf16.mxu0 %v18785_v49 }
 0x1f9   : > { %v5668_v47 = vadd.f32 %v5667_v60, %v5499_v35 }
 0x1fc   : > { %13710 = vmatmul.mubr.msk.bf16.gmra.mrb[4].mxu0 %vm590_vm2, %v16672_v19  ;;  %v5335_v19 = vsel %vm4885_vm13, %v5333_v16, 0  ;;  %v3335_v16 = vld [vmem:[#allocation2 + $0x5a] sm:$0xff] }
 0x1fd   : > { %13900 = vmatmul.mubr.msk.bf16.vlgmr.msra.gmra.mrb[44].mxu1 %vm470_vm1, %v16839_v44  ;;  %13713 = vmatprep.mubr.msk.bf16.mxu0 %vm590_vm2, %v16678_v46  ;;  %v5388_v46 = vadd.f32 %v5387_v31, %v5331_v18  ;;  %v3365_v18 = vmul.f32 %v18923_v12, %v3333_v61  ;;  %v5790_v61 = vld [vmem:[#allocation2 + $0x174] sm:$0xff] }
 0x1fe   : > { %13904 = vmatpush3.bf16.msra.mxu1 %v5279_v29  ;;  %13905 = vmatprep.mubr.msk.bf16.mxu1 %vm15245_vm12, %v18785_v49  ;;  %v3332_v29 = vld [vmem:[#allocation2 + $0x42] sm:$0xff] }
 0x1ff   : > { %13909 = vmatprep.subr.bf16.mxu1 %v18785_v49  ;;  %v5389_v28 = vpack.c.bf16 %v5388_v46, %v5388_v46  ;;  %v3394_v45 = vpack.c.bf16 %v3365_v18, %v3332_v29  ;;  %v3334_v46 = vld [vmem:[#allocation2 + $0x52] sm:$0xff] }
 0x200   : > { %v3346_v18 = vld [vmem:[#allocation2 + $0xb2] sm:$0xff] }
 0x204   : > { %13714 = vmatmul.mubr.msk.bf16.gmra.mrb[8].mxu0 %vm590_vm2, %v16680_v1  ;;  %v5391_v1 = vsel %vm4885_vm13, %v5389_v28, 0 }
 0x205   : > { %13906 = vmatmul.mubr.msk.bf16.vlgmr.msra.gmra.mrb[48].mxu1 %vm470_vm1, %v16839_v44  ;;  %13717 = vmatprep.mubr.msk.bf16.mxu0 %vm590_vm2, %v16686_v0  ;;  %v5444_v0 = vadd.f32 %v5443_v43, %v5275_v58  ;;  %v3331_v58 = vld [vmem:[#allocation2 + $0x3a] sm:$0xff] }
 0x206   : > { %13910 = vmatpush3.bf16.msra.mxu1 %v5335_v19  ;;  %13911 = vmatprep.mubr.msk.bf16.mxu1 %vm15245_vm12, %v18785_v49  ;;  %v3367_v19 = vmul.f32 %v18927_v2, %v3335_v16  ;;  %v12741_v16 = vld [vmem:[%s18587_s4 + $0x28] sm:$0x3] }
 0x207   : > { %13915 = vmatprep.subr.bf16.mxu1 %v18785_v49  ;;  %v5445_v22 = vpack.c.bf16 %v5444_v0, %v5444_v0  ;;  %v5721_v0 = vpack.c.bf16 %v5609_v55, %v5609_v55  ;;  %v3345_v55 = vld [vmem:[#allocation2 + $0xaa] sm:$0xff] }
 0x208   : > { %v3377_v54 = vmul.f32 %v18935_v15, %v3345_v55 }
 0x20c   : > { %13718 = vmatmul.mubr.msk.bf16.gmra.mrb[12].mxu0 %vm590_vm2, %v16688_v36  ;;  %v5447_v36 = vsel %vm4885_vm13, %v5445_v22, 0  ;;  %v3341_v22 = vld [vmem:[#allocation2 + $0x8a] sm:$0xff] }
 0x20d   : > { %13912 = vmatmul.mubr.msk.bf16.vlgmr.msra.gmra.mrb[52].mxu1 %vm470_vm1, %v16839_v44  ;;  %13721 = vmatprep.mubr.msk.bf16.mxu0 %vm590_vm2, %v16696_v7  ;;  %v5500_v7 = vadd.f32 %v5499_v35, %v5443_v43  ;;  %v3336_v43 = vld [vmem:[#allocation2 + $0x62] sm:$0xff]  ;;  %v3371_v35 = vmul.f32 %v18932_v52, %v3339_v17  ;;  %v3350_v17 = vld [vmem:[#allocation2 + $0xd2] sm:$0xff] }
 0x20e   : > { %13916 = vmatpush3.bf16.msra.mxu1 %v5391_v1  ;;  %13917 = vmatprep.mubr.msk.bf16.mxu1 %vm15245_vm12, %v18785_v49  ;;  %v3395_v1 = vpack.c.bf16 %v3367_v19, %v3334_v46  ;;  %v12738_v52 = vld [vmem:[%s18587_s4 + $0x26] sm:$0x3]  ;;  %v17045_v46 = vsel %vm5784_vm3, 1.0, %v18785_v49 }
 0x20f   : > { %13921 = vmatprep.subr.bf16.mxu1 %v18785_v49  ;;  %v5501_v6 = vpack.c.bf16 %v5500_v7, %v5500_v7  ;;  %v3373_v7 = vmul.f32 %v18933_v53, %v3341_v22  ;;  %v18958_v53 = vld [vmem:[#allocation8_spill] sm:$0xff] }
 0x214   : > { %13722 = vmatmul.mubr.msk.bf16.gmra.mrb[16].mxu0 %vm590_vm2, %v16698_v57  ;;  %v5503_v57 = vsel %vm4885_vm13, %v5501_v6, 0  ;;  %v3340_v6 = vld [vmem:[#allocation2 + $0x82] sm:$0xff] }
 0x215   : > { %13918 = vmatmul.mubr.msk.bf16.vlgmr.msra.gmra.mrb[56].mxu1 %vm470_vm1, %v16839_v44  ;;  %13725 = vmatprep.mubr.msk.bf16.mxu0 %vm590_vm2, %v16704_v32  ;;  %v5556_v32 = vadd.f32 %v5555_v3, %v5387_v31  ;;  %v3337_v31 = vld [vmem:[#allocation2 + $0x6a] sm:$0xff] }
 0x216   : > { %13922 = vmatpush3.bf16.msra.mxu1 %v5447_v36  ;;  %13923 = vmatprep.mubr.msk.bf16.mxu1 %vm15245_vm12, %v18785_v49  ;;  %v3369_v28 = vmul.f32 %v18929_v50, %v3337_v31  ;;  %v5723_v50 = vsel %vm4885_vm13, %v5721_v0, 0  ;;  %v3338_v36 = vld [vmem:[#allocation2 + $0x72] sm:$0xff]  ;;  %v5907_v0 = vsel %vm1059_vm0, %v12741_v16, 0 }
 0x217   : > { %13927 = vmatprep.subr.bf16.mxu1 %v18785_v49  ;;  %v5557_v51 = vpack.c.bf16 %v5556_v32, %v5556_v32  ;;  %v3397_v3 = vpack.c.bf16 %v3371_v35, %v3338_v36  ;;  %v3343_v32 = vld [vmem:[#allocation2 + $0x9a] sm:$0xff]  ;;  %v3352_v36 = vld [vmem:[#allocation2 + $0xe2] sm:$0xff] }
 0x218   : > { %v3396_v2 = vpack.c.bf16 %v3369_v28, %v3336_v43  ;;  %v5896_v28 = vld [vmem:[#allocation2 + $0x176] sm:$0xff]  ;;  %v17050_v43 = vld [vmem:[#allocation2 + $0x17e] sm:$0xff] }
 0x219   : > { %v5898_v22 = vmul.f32 %v17045_v46, %v5896_v28  ;;  %v6229_v28 = vld [vmem:[#allocation2 + $0x186] sm:$0xff] }
 0x21c   : > { %13726 = vmatmul.mubr.msk.bf16.gmra.mrb[20].mxu0 %vm590_vm2, %v16706_v38  ;;  %v5559_v38 = vsel %vm4885_vm13, %v5557_v51, 0  ;;  %v5806_v51 = vsel %vm1059_vm0, %v12738_v52, 0  ;;  %v3355_v52 = vld [vmem:[#allocation2 + $0xfa] sm:$0xff] }
 0x21d   : > { %13924 = vmatmul.mubr.msk.bf16.vlgmr.msra.gmra.mrb[60].mxu1 %vm470_vm1, %v16839_v44  ;;  %13729 = vmatprep.mubr.msk.bf16.mxu0 %vm590_vm2, %v16712_v30  ;;  %v3064_v30 = vld [vmem:[#allocation2 + $0x111] sm:$0xff] }
 0x21e   : > { %13928 = vmatpush3.bf16.msra.mxu1 %v5503_v57  ;;  %13929 = vmatprep.mubr.msk.bf16.mxu1 %vm15245_vm12, %v18785_v49  ;;  %v3398_v57 = vpack.c.bf16 %v3373_v7, %v3340_v6  ;;  %v12743_v7 = vld [vmem:[%s18587_s4 + $0x2a] sm:$0x3] }
 0x21f   : > { %13933 = vmatprep.subr.bf16.mxu1 %v18785_v49  ;;  %v5963_v55 = vsel %vm1059_vm0, %v12743_v7, 0 }
 0x224   : > { %13730 = vmatmul.mubr.msk.bf16.gmra.mrb[24].mxu0 %vm590_vm2, %v16714_v26  ;;  %v3081_v26 = vpack.c.bf16 %v3065_v23, %v3064_v30  ;;  %v3375_v30 = vmul.f32 %v16412_v13, %v3343_v32  ;;  %v3342_v23 = vld [vmem:[#allocation2 + $0x92] sm:$0xff]  ;;  %v5953_v32 = vld [vmem:[#allocation2 + $0x180] sm:$0xff] }
 0x225   : > { %13930 = vmatmul.mubr.msk.bf16.vlgmr.msra.gmra.mrb[64].mxu1 %vm470_vm1, %v16839_v44  ;;  %13733 = vmatprep.mubr.msk.bf16.mxu0 %vm590_vm2, %v16722_v40  ;;  %v3363_v40 = vmul.f32 %v18921_v33, %v3331_v58  ;;  %v5669_v33 = vpack.c.bf16 %v5668_v47, %v5668_v47  ;;  %v17022_v58 = vsel %vm5778_vm14, 1.0, %v18785_v49 }
 0x226   : > { %13934 = vmatpush3.bf16.msra.mxu1 %v5559_v38  ;;  %13935 = vmatprep.mubr.msk.bf16.mxu1 %vm15245_vm12, %v18785_v49  ;;  %v5777_v38 = vand.u32 3, %v18958_v53  ;;  %v3399_v13 = vpack.c.bf16 %v3375_v30, %v3342_v23  ;;  %v5792_v29 = vmul.f32 %v17022_v58, %v5790_v61 }
 0x227   : > { %13939 = vmatprep.subr.bf16.mxu1 %v18785_v49  ;;  %v3393_v39 = vpack.c.bf16 %v3363_v40, %v3330_v42  ;;  %v5671_v12 = vsel %vm4885_vm13, %v5669_v33, 0  ;;  %v17027_v40 = vld [vmem:[#allocation2 + $0x17c] sm:$0xff] }
 0x228   : > { %vm5779_vm15 = vcmp.gt.s32.totalorder %v5777_v38, 0  ;;  %vm5785_vm4 = vcmp.lt.s32.totalorder %v5777_v38, 3  ;;  %v3389_v38 = vmul.f32 %v16512_v56, %v16788_v5  ;;  %v3391_v56 = vmul.f32 %v16539_v59, %v3359_v14  ;;  %v3358_v5 = vld [vmem:[#allocation2 + $0x112] sm:$0xff]  ;;  %v6062_v59 = vld [vmem:[#allocation2 + $0x17a] sm:$0xff] }
 0x229   : > { %v17025_v60 = vsel %vm5779_vm15, 1.0, %v18785_v49 }
 0x22a   : > { %v5955_v53 = vmul.f32 %v17025_v60, %v5953_v32 }
 0x22c   : > { %13734 = vmatmul.mubr.msk.bf16.gmra.mrb[28].mxu0 %vm590_vm2, %v3081_v26  ;;  %v3344_v26 = vld [vmem:[#allocation2 + $0xa2] sm:$0xff] }
 0x22d   : > { %13936 = vmatmul.mubr.msk.bf16.vlgmr.msra.gmra.mrb[68].mxu1 %vm470_vm1, %v16839_v44  ;;  %13739 = vmatprep.mubr.msk.bf16.mxu0 %vm590_vm2, %v3392_v21  ;;  %v3400_v15 = vpack.c.bf16 %v3377_v54, %v3344_v26  ;;  %v3347_v21 = vld [vmem:[#allocation2 + $0xba] sm:$0xff]  ;;  %v3406_v54 = vpack.c.bf16 %v3389_v38, %v16794_v37  ;;  %v3407_v37 = vpack.c.bf16 %v3391_v56, %v3358_v5 }
 0x22e   : > { %13940 = vmatpush3.bf16.msra.mxu1 %v5615_v27  ;;  %13941 = vmatprep.mubr.msk.bf16.mxu1 %vm15245_vm12, %v18785_v49  ;;  %v3349_v27 = vld [vmem:[#allocation2 + $0xca] sm:$0xff]  ;;  %v3379_v47 = vmul.f32 %v18939_v9, %v3347_v21  ;;  %v6063_v21 = vld [vmem:[#allocation2 + $0x182] sm:$0xff] }
 0x22f   : > { %13945 = vmatprep.subr.bf16.mxu1 %v18785_v49  ;;  %v3381_v33 = vmul.f32 %v18940_v24, %v3349_v27  ;;  %v17048_v24 = vsel %vm5785_vm4, 1.0, %v18785_v49  ;;  %v6064_v27 = vmul.f32 %v17045_v46, %v6062_v59 }
 0x230   : > { %v3401_v9 = vpack.c.bf16 %v3379_v47, %v3346_v18  ;;  %v5899_v35 = vmul.f32 %v17048_v24, %v17050_v43  ;;  %v12749_v47 = vld [vmem:[%s18587_s4 + $0x30] sm:$0x3] }
 0x232   : > { %v5900_v6 = vpack.c.bf16 %v5899_v35, %v5898_v22 }
 0x234   : > { %13740 = vmatmul.mubr.msk.bf16.vlgmr.msra.gmra.mrb[0].mxu0 %vm590_vm2, %v3393_v39  ;;  %v5793_v39 = vmul.f32 %v17025_v60, %v17027_v40 }
 0x235   : > { %13942 = vmatmul.mubr.msk.bf16.vlgmr.msra.gmra.mrb[72].mxu1 %vm470_vm1, %v16839_v44  ;;  %13743 = vmatprep.mubr.msk.bf16.mxu0 %vm590_vm2, %v3394_v45  ;;  %v3348_v45 = vld [vmem:[#allocation2 + $0xc2] sm:$0xff] }
 0x236   : > { %13946 = vmatpush3.bf16.msra.mxu1 %v5671_v12  ;;  %13947 = vmatprep.mubr.msk.bf16.mxu1 %vm15245_vm12, %v18785_v49  ;;  %v5794_v31 = vpack.c.bf16 %v5793_v39, %v5792_v29  ;;  %v3402_v19 = vpack.c.bf16 %v3381_v33, %v3348_v45  ;;  %v3351_v12 = vld [vmem:[#allocation2 + $0xda] sm:$0xff]  ;;  %v6119_v29 = vld [vmem:[#allocation2 + $0x184] sm:$0xff]  ;;  %v6129_v39 = vsel %vm1059_vm0, %v12749_v47, 0  ;;  %v6120_v33 = vmul.f32 %v17022_v58, %v17027_v40 }
 0x237   : > { %13951 = vmatprep.subr.bf16.mxu1 %v18785_v49  ;;  %v6121_v45 = vmul.f32 %v17025_v60, %v6119_v29  ;;  %v6175_v40 = vld [vmem:[#allocation2 + $0x185] sm:$0xff] }
 0x239   : > { %v6122_v16 = vpack.c.bf16 %v6121_v45, %v6120_v33 }
 0x23c   : > { %13744 = vmatmul.mubr.msk.bf16.gmra.mrb[4].mxu0 %vm590_vm2, %v3395_v1  ;;  %v3353_v1 = vld [vmem:[#allocation2 + $0xea] sm:$0xff] }
 0x23d   : > { %13948 = vmatmul.mubr.msk.bf16.vlgmr.msra.gmra.mrb[76].mxu1 %vm470_vm1, %v16839_v44  ;;  %13747 = vmatprep.mubr.msk.bf16.mxu0 %vm590_vm2, %v3396_v2  ;;  %v3383_v2 = vmul.f32 %v16473_v63, %v3351_v12  ;;  %v6176_v12 = vpack.c.bf16 %v6175_v40, %v17014_v48 }
 0x23e   : > { %13952 = vmatpush3.bf16.msra.mxu1 %v5723_v50  ;;  %13953 = vmatprep.mubr.msk.bf16.mxu1 %vm15245_vm12, %v18785_v49  ;;  %v3385_v50 = vmul.f32 %v18942_v62, %v3353_v1  ;;  %v3387_v62 = vmul.f32 %v16506_v8, %v3355_v52  ;;  %v12745_v8 = vld [vmem:[%s18587_s4 + $0x2c] sm:$0x3] }
 0x23f   : > { %13957 = vmatprep.subr.bf16.mxu1 %v18785_v49  ;;  %v3403_v63 = vpack.c.bf16 %v3383_v2, %v3350_v17  ;;  %v6017_v26 = vsel %vm1059_vm0, %v12745_v8, 0  ;;  %v6231_v2 = vmul.f32 %v17048_v24, %v6229_v28 }
 0x244   : > { %13748 = vmatmul.mubr.msk.bf16.gmra.mrb[8].mxu0 %vm590_vm2, %v3397_v3  ;;  %v3404_v3 = vpack.c.bf16 %v3385_v50, %v3352_v36 }
 0x245   : > { %13954 = vmatmul.mubr.msk.bf16.vlgmr.msra.gmra.mrb[80].mxu1 %vm470_vm1, %v16839_v44  ;;  %13751 = vmatprep.mubr.msk.bf16.mxu0 %vm590_vm2, %v3398_v57  ;;  %v12737_v44 = vld [vmem:[%s18587_s4 + $0x24] sm:$0x3]  ;;  %v5952_v57 = vld [vmem:[#allocation2 + $0x178] sm:$0xff] }
 0x246   : > { %13958 = vmatpush3.bf16.msra.mxu1 %v5806_v51  ;;  %13959 = vmatprep.mubr.msk.bf16.mxu1 %vm15245_vm12, %v18785_v49  ;;  %v5853_v42 = vsel %vm1059_vm0, %v12737_v44, 0  ;;  %v3354_v51 = vld [vmem:[#allocation2 + $0xf2] sm:$0xff]  ;;  %v5954_v10 = vmul.f32 %v17022_v58, %v5952_v57  ;;  %v6009_v44 = vld [vmem:[#allocation2 + $0x181] sm:$0xff] }
 0x247   : > { %13963 = vmatprep.subr.bf16.mxu1 %v18785_v49  ;;  %v3405_v30 = vpack.c.bf16 %v3387_v62, %v3354_v51 }
 0x248   : > { %v5956_v23 = vpack.c.bf16 %v5955_v53, %v5954_v10 }
 0x24c   : > { %13752 = vmatmul.mubr.msk.bf16.gmra.mrb[12].mxu0 %vm590_vm2, %v3399_v13  ;;  %v6008_v13 = vld [vmem:[#allocation2 + $0x179] sm:$0xff] }
 0x24d   : > { %13960 = vmatmul.mubr.msk.bf16.vlgmr.msra.gmra.mrb[84].mxu1 %vm590_vm2, %v5799_v20  ;;  %13755 = vmatprep.mubr.msk.bf16.mxu0 %vm590_vm2, %v3400_v15  ;;  %v12747_v20 = vld [vmem:[%s18587_s4 + $0x2e] sm:$0x3]  ;;  %v6010_v15 = vpack.c.bf16 %v6009_v44, %v6008_v13 }
 0x24e   : > { %13964 = vmatpush3.bf16.msra.mxu1 %v5853_v42  ;;  %13965 = vmatprep.mubr.msk.bf16.mxu1 %vm15245_vm12, %v18785_v49  ;;  %v6073_v61 = vsel %vm1059_vm0, %v12747_v20, 0  ;;  %v6065_v42 = vmul.f32 %v17048_v24, %v6063_v21 }
 0x24f   : > { %13969 = vmatprep.subr.bf16.mxu1 %v18785_v49 }
 0x250   : > { %v6066_v18 = vpack.c.bf16 %v6065_v42, %v6064_v27 }
 0x254   : > { %13756 = vmatmul.mubr.msk.bf16.gmra.mrb[16].mxu0 %vm590_vm2, %v3401_v9  ;;  %v12751_v9 = vld [vmem:[%s18587_s4 + $0x32] sm:$0x3] }
 0x255   : > { %13966 = vmatmul.mubr.msk.bf16.vlgmr.msra.gmra.mrb[88].mxu1 %vm590_vm2, %v5794_v31  ;;  %13759 = vmatprep.mubr.msk.bf16.mxu0 %vm590_vm2, %v3402_v19  ;;  %v6183_v31 = vsel %vm1059_vm0, %v12751_v9, 0  ;;  %v12753_v19 = vld [vmem:[%s18587_s4 + $0x34] sm:$0x3] }
 0x256   : > { %13970 = vmatpush3.bf16.msra.mxu1 %v5907_v0  ;;  %13971 = vmatprep.mubr.msk.bf16.mxu1 %vm15245_vm12, %v18785_v49  ;;  %v6239_v1 = vsel %vm1059_vm0, %v12753_v19, 0  ;;  %v6230_v0 = vmul.f32 %v17045_v46, %v17050_v43 }
 0x257   : > { %13975 = vmatprep.subr.bf16.mxu1 %v18785_v49 }
 0x258   : > { %v6232_v17 = vpack.c.bf16 %v6231_v2, %v6230_v0  ;;  %v17193_v2 = vld [vmem:[%s18589_s6] ss:$0 sm:$0xff] }
 0x25c   : > { %13760 = vmatmul.mubr.msk.bf16.gmra.mrb[20].mxu0 %vm590_vm2, %v3403_v63 }
 0x25d   : > { %13972 = vmatmul.mubr.msk.bf16.vlgmr.msra.gmra.mrb[92].mxu1 %vm590_vm2, %v5900_v6  ;;  %13763 = vmatprep.mubr.msk.bf16.mxu0 %vm590_vm2, %v3404_v3 }
 0x25e   : > { %13976 = vmatpush3.bf16.msra.mxu1 %v5963_v55  ;;  %13977 = vmatprep.mubr.msk.bf16.mxu1 %vm15245_vm12, %v18785_v49 }
 0x25f   : > { %13981 = vmatprep.subr.bf16.mxu1 %v18785_v49 }
 0x264   : > { %13764 = vmatmul.mubr.msk.bf16.gmra.mrb[24].mxu0 %vm590_vm2, %v3405_v30 }
 0x265   : > { %13978 = vmatmul.mubr.msk.bf16.vlgmr.msra.gmra.mrb[96].mxu1 %vm590_vm2, %v5956_v23  ;;  %13767 = vmatprep.mubr.msk.bf16.mxu0 %vm590_vm2, %v3406_v54 }
 0x266   : > { %13982 = vmatpush3.bf16.msra.mxu1 %v6017_v26  ;;  %13983 = vmatprep.mubr.msk.bf16.mxu1 %vm15245_vm12, %v18785_v49 }
 0x267   : > { %13987 = vmatprep.subr.bf16.mxu1 %v18785_v49 }
 0x26c   : > { %13768 = vmatmul.mubr.msk.bf16.gmra.mrb[28].mxu0 %vm590_vm2, %v3407_v37 }
 0x26d   : > { %13984 = vmatmul.mubr.msk.bf16.vlgmr.msra.gmra.mrb[100].mxu1 %vm590_vm2, %v6010_v15  ;;  %14169 = vmatprep.mubr.msk.bf16.mxu0 %vm15245_vm12, %v18785_v49 }
 0x26e   : > { %13988 = vmatpush3.bf16.msra.mxu1 %v6073_v61  ;;  %13989 = vmatprep.mubr.msk.bf16.mxu1 %vm15245_vm12, %v18785_v49 }
 0x26f   : > { %13993 = vmatprep.subr.bf16.mxu1 %v18785_v49 }
 0x275   : > { %13990 = vmatmul.mubr.msk.bf16.vlgmr.msra.gmra.mrb[104].mxu1 %vm590_vm2, %v6066_v18 }
 0x276   : > { %13994 = vmatpush3.bf16.msra.mxu1 %v6129_v39  ;;  %13995 = vmatprep.mubr.msk.bf16.mxu1 %vm15245_vm12, %v18785_v49 }
 0x277   : > { %13999 = vmatprep.subr.bf16.mxu1 %v18785_v49 }
 0x27d   : > { %13996 = vmatmul.mubr.msk.bf16.vlgmr.msra.gmra.mrb[108].mxu1 %vm590_vm2, %v6122_v16 }
 0x27e   : > { %14000 = vmatpush3.bf16.msra.mxu1 %v6183_v31  ;;  %14001 = vmatprep.mubr.msk.bf16.mxu1 %vm15245_vm12, %v18785_v49 }
 0x27f   : > { %14005 = vmatprep.subr.bf16.mxu1 %v18785_v49 }
 0x285   : > { %14002 = vmatmul.mubr.msk.bf16.vlgmr.msra.gmra.mrb[112].mxu1 %vm590_vm2, %v6176_v12 }
 0x286   : > { %14006 = vmatpush3.bf16.msra.mxu1 %v6239_v1  ;;  %14007 = vmatprep.mubr.msk.bf16.mxu1 %vm15245_vm12, %v18785_v49 }
 0x287   : > { %14011 = vmatprep.subr.bf16.mxu1 %v18785_v49 }
 0x28d   : > { %14008 = vmatmul.mubr.msk.bf16.vlgmr.msra.gmra.mrb[116].mxu1 %vm590_vm2, %v6232_v17 }
 0x28e   : > { %14013 = vmatprep.mubr.msk.bf16.mxu1 %vm15245_vm12, %v18785_v49 }
 0x2a0   : > { %v17138_v48 = vpop.f32.mrb[20].mxu1 }
 0x2a1   : > { %v13865_v22 = vpop.f32.mrb[21].mxu1 }
 0x2a2   : > { %v17140_v35 = vpop.f32.mrb[22].mxu1 }
 0x2a3   : > { %v13866_v43 = vpop.f32.mrb[23].mxu1 }
 0x2a8   : > { %v17142_v50 = vpop.f32.mrb[24].mxu1 }
 0x2a9   : > { %v13871_v36 = vpop.f32.mrb[25].mxu1 }
 0x2aa   : > { %v17144_v63 = vpop.f32.mrb[26].mxu1 }
 0x2ab   : > { %v13872_v7 = vpop.f32.mrb[27].mxu1 }
 0x2ac   : > { %v3727_v7 = vld [vmem:[#allocation3 + $0x10] sm:$0xff] }
 0x2b0   : > { %v17146_v6 = vpop.f32.mrb[28].mxu1 }
 0x2b1   : > { %v13877_v3 = vpop.f32.mrb[29].mxu1 }
 0x2b2   : > { %v17148_v52 = vpop.f32.mrb[30].mxu1 }
 0x2b3   : > { %v13878_v57 = vpop.f32.mrb[31].mxu1 }
 0x2b8   : > { %v17150_v32 = vpop.f32.mrb[32].mxu1 }
 0x2b9   : > { %v13883_v55 = vpop.f32.mrb[33].mxu1 }
 0x2ba   : > { %v17152_v62 = vpop.f32.mrb[34].mxu1 }
 0x2bb   : > { %v13884_v51 = vpop.f32.mrb[35].mxu1 }
 0x2c0   : > { %v17154_v10 = vpop.f32.mrb[36].mxu1 }
 0x2c1   : > { %v13889_v53 = vpop.f32.mrb[37].mxu1 }
 0x2c2   : > { %v17156_v38 = vpop.f32.mrb[38].mxu1  ;;  %v3725_v53 = vld [vmem:[#allocation3] sm:$0xff] }
 0x2c3   : > { %v13890_v30 = vpop.f32.mrb[39].mxu1 }
 0x2c8   : > { %v17158_v8 = vpop.f32.mrb[40].mxu1 }
 0x2c9   : > { %v13895_v23 = vpop.f32.mrb[41].mxu1 }
 0x2ca   : > { %v17160_v54 = vpop.f32.mrb[42].mxu1 }
 0x2cb   : > { %v13896_v14 = vpop.f32.mrb[43].mxu1 }
 0x2d0   : > { %v17162_v26 = vpop.f32.mrb[44].mxu1 }
 0x2d1   : > { %v13901_v56 = vpop.f32.mrb[45].mxu1 }
 0x2d2   : > { %v17164_v5 = vpop.f32.mrb[46].mxu1 }
 0x2d3   : > { %v13902_v13 = vpop.f32.mrb[47].mxu1 }
 0x2d4   : > { %v3728_v13 = vld [vmem:[#allocation3 + $0x18] sm:$0xff] }
 0x2d8   : > { %v17166_v44 = vpop.f32.mrb[48].mxu1 }
 0x2d9   : > { %v13907_v37 = vpop.f32.mrb[49].mxu1 }
 0x2da   : > { %v17168_v20 = vpop.f32.mrb[50].mxu1 }
 0x2db   : > { %v13908_v15 = vpop.f32.mrb[51].mxu1 }
 0x2e0   : > { %v17170_v59 = vpop.f32.mrb[52].mxu1 }
 0x2e1   : > { %v13913_v21 = vpop.f32.mrb[53].mxu1 }
 0x2e2   : > { %v17172_v61 = vpop.f32.mrb[54].mxu1 }
 0x2e3   : > { %v13914_v27 = vpop.f32.mrb[55].mxu1 }
 0x2e8   : > { %v17174_v42 = vpop.f32.mrb[56].mxu1 }
 0x2e9   : > { %v13919_v47 = vpop.f32.mrb[57].mxu1 }
 0x2ea   : > { %v17176_v18 = vpop.f32.mrb[58].mxu1  ;;  %v3726_v47 = vld [vmem:[#allocation3 + $0x8] sm:$0xff] }
 0x2eb   : > { %v13920_v29 = vpop.f32.mrb[59].mxu1 }
 0x2f0   : > { %v17178_v39 = vpop.f32.mrb[60].mxu1 }
 0x2f1   : > { %v13925_v33 = vpop.f32.mrb[61].mxu1 }
 0x2f2   : > { %v17180_v45 = vpop.f32.mrb[62].mxu1 }
 0x2f3   : > { %v13926_v9 = vpop.f32.mrb[63].mxu1 }
 0x2f8   : > { %v17182_v16 = vpop.f32.mrb[64].mxu1 }
 0x2f9   : > { %v13931_v31 = vpop.f32.mrb[65].mxu1 }
 0x2fa   : > { %v17184_v40 = vpop.f32.mrb[66].mxu1 }
 0x2fb   : > { %v13932_v19 = vpop.f32.mrb[67].mxu1 }
 0x300   : > { %v17186_v12 = vpop.f32.mrb[68].mxu1 }
 0x301   : > { %v13937_v28 = vpop.f32.mrb[69].mxu1 }
 0x302   : > { %v17188_v1 = vpop.f32.mrb[70].mxu1 }
 0x303   : > { %v13938_v0 = vpop.f32.mrb[71].mxu1 }
 0x307   : > { %v13741_v17 = vpop.f32.mrb[0].mxu0 }
 0x308   : > { %v3663_v22 = vadd.f32 %v13741_v17, %v17193_v2  ;;  %v17196_v43 = vpop.f32.mrb[72].mxu1  ;;  %v3495_v36 = vpop.f32.mrb[1].mxu0 }
 0x309   : > { %v3661_v3 = vadd.f32 %v17193_v2, %v3495_v36  ;;  %v13943_v57 = vpop.f32.mrb[73].mxu1  ;;  %v13742_v55 = vpop.f32.mrb[2].mxu0 }
 0x30a   : > { %v3695_v51 = vmax.f32 %v3663_v22, 0.0  ;;  %v3664_v30 = vadd.f32 %v13742_v55, %v17193_v2  ;;  %v17200_v23 = vpop.f32.mrb[74].mxu1  ;;  %v3498_v14 = vpop.f32.mrb[3].mxu0  ;;  %v3731_v22 = vld [vmem:[#allocation3 + $0x30] sm:$0xff]  ;;  %v3729_v55 = vld [vmem:[#allocation3 + $0x20] sm:$0xff] }
 0x30b   : > { %v3693_v56 = vmax.f32 %v3661_v3, 0.0  ;;  %v3662_v37 = vadd.f32 %v17193_v2, %v3498_v14  ;;  %v13944_v15 = vpop.f32.mrb[75].mxu1 }
 0x30c   : > { %v3759_v21 = vadd.f32 %v3727_v7, %v3695_v51  ;;  %v3696_v27 = vmax.f32 %v3664_v30, 0.0 }
 0x30d   : > { %v3757_v29 = vadd.f32 %v3725_v53, %v3693_v56  ;;  %v3694_v33 = vmax.f32 %v3662_v37, 0.0  ;;  %v3732_v56 = vld [vmem:[#allocation3 + $0x38] sm:$0xff] }
 0x30e   : > { %3791 = vst.msk [vmem:[#allocation3 + $0x10] sm:$0xff] %vm470_vm1, %v3759_v21  ;;  %v3760_v9 = vadd.f32 %v3728_v13, %v3696_v27  ;;  %v3730_v27 = vld [vmem:[#allocation3 + $0x28] sm:$0xff] }
 0x30f   : > { %3789 = vst.msk [vmem:[#allocation3] sm:$0xff] %vm470_vm1, %v3757_v29  ;;  %v3758_v31 = vadd.f32 %v3726_v47, %v3694_v33  ;;  %v13745_v19 = vpop.f32.mrb[4].mxu0 }
 0x310   : > { %3792 = vst.msk [vmem:[#allocation3 + $0x18] sm:$0xff] %vm470_vm1, %v3760_v9  ;;  %v3667_v28 = vadd.f32 %v13745_v19, %v17193_v2  ;;  %v17207_v0 = vpop.f32.mrb[76].mxu1  ;;  %v3511_v17 = vpop.f32.mrb[5].mxu0 }
 0x311   : > { %3790 = vst.msk [vmem:[#allocation3 + $0x8] sm:$0xff] %vm470_vm1, %v3758_v31  ;;  %v3665_v36 = vadd.f32 %v17193_v2, %v3511_v17  ;;  %v13949_v7 = vpop.f32.mrb[77].mxu1  ;;  %v13746_v3 = vpop.f32.mrb[6].mxu0 }
 0x312   : > { %v3699_v57 = vmax.f32 %v3667_v28, 0.0  ;;  %v3668_v51 = vadd.f32 %v13746_v3, %v17193_v2  ;;  %v17212_v53 = vpop.f32.mrb[78].mxu1  ;;  %v3514_v30 = vpop.f32.mrb[7].mxu0 }
 0x313   : > { %v3697_v14 = vmax.f32 %v3665_v36, 0.0  ;;  %v3666_v13 = vadd.f32 %v17193_v2, %v3514_v30  ;;  %v13950_v37 = vpop.f32.mrb[79].mxu1 }
 0x314   : > { %v3763_v15 = vadd.f32 %v3731_v22, %v3699_v57  ;;  %v3700_v21 = vmax.f32 %v3668_v51, 0.0  ;;  %v3733_v37 = vld [vmem:[#allocation3 + $0x40] sm:$0xff] }
 0x315   : > { %v3761_v47 = vadd.f32 %v3729_v55, %v3697_v14  ;;  %v3698_v29 = vmax.f32 %v3666_v13, 0.0  ;;  %v4986_v33 = vld [vmem:[#allocation3 + $0x10] sm:$0xff] }
 0x316   : > { %3795 = vst.msk [vmem:[#allocation3 + $0x30] sm:$0xff] %vm470_vm1, %v3763_v15  ;;  %v3764_v9 = vadd.f32 %v3732_v56, %v3700_v21  ;;  %v4930_v31 = vld [vmem:[#allocation3] sm:$0xff]  ;;  %v4988_v19 = vadd.f32 %v4986_v33, %v17142_v50  ;;  %v3735_v50 = vld [vmem:[#allocation3 + $0x50] sm:$0xff] }
 0x317   : > { %3793 = vst.msk [vmem:[#allocation3 + $0x20] sm:$0xff] %vm470_vm1, %v3761_v47  ;;  %v3762_v28 = vadd.f32 %v3730_v27, %v3698_v29  ;;  %v13749_v17 = vpop.f32.mrb[8].mxu0  ;;  %v4932_v36 = vadd.f32 %v4930_v31, %v17138_v48  ;;  %v4987_v7 = vld [vmem:[#allocation3 + $0x18] sm:$0xff] }
 0x318   : > { %3796 = vst.msk [vmem:[#allocation3 + $0x38] sm:$0xff] %vm470_vm1, %v3764_v9  ;;  %v3671_v22 = vadd.f32 %v13749_v17, %v17193_v2  ;;  %v17221_v3 = vpop.f32.mrb[80].mxu1  ;;  %v3527_v57 = vpop.f32.mrb[9].mxu0  ;;  %v4931_v55 = vld [vmem:[#allocation3 + $0x8] sm:$0xff]  ;;  %4990 = vst.msk [vmem:[#allocation3 + $0x10] sm:$0xff] %vm470_vm1, %v4988_v19  ;;  %v4989_v51 = vadd.f32 %v4987_v7, %v17144_v63  ;;  %v3736_v47 = vld [vmem:[#allocation3 + $0x58] sm:$0xff] }
 0x319   : > { %3794 = vst.msk [vmem:[#allocation3 + $0x28] sm:$0xff] %vm470_vm1, %v3762_v28  ;;  %v3669_v30 = vadd.f32 %v17193_v2, %v3527_v57  ;;  %v13955_v14 = vpop.f32.mrb[81].mxu1  ;;  %v13750_v48 = vpop.f32.mrb[10].mxu0  ;;  %4934 = vst.msk [vmem:[#allocation3] sm:$0xff] %vm470_vm1, %v4932_v36  ;;  %v4933_v56 = vadd.f32 %v4931_v55, %v17140_v35  ;;  %v3734_v19 = vld [vmem:[#allocation3 + $0x48] sm:$0xff] }
 0x31a   : > { %v3703_v13 = vmax.f32 %v3671_v22, 0.0  ;;  %v3672_v15 = vadd.f32 %v13750_v48, %v17193_v2  ;;  %v17230_v21 = vpop.f32.mrb[82].mxu1  ;;  %v3530_v27 = vpop.f32.mrb[11].mxu0  ;;  %4991 = vst.msk [vmem:[#allocation3 + $0x18] sm:$0xff] %vm470_vm1, %v4989_v51 }
 0x31b   : > { %v3701_v63 = vmax.f32 %v3669_v30, 0.0  ;;  %v3670_v29 = vadd.f32 %v17193_v2, %v3530_v27  ;;  %v13956_v33 = vpop.f32.mrb[83].mxu1  ;;  %4935 = vst.msk [vmem:[#allocation3 + $0x8] sm:$0xff] %vm470_vm1, %v4933_v56 }
 0x31c   : > { %v3767_v9 = vadd.f32 %v3735_v50, %v3703_v13  ;;  %v3704_v31 = vmax.f32 %v3672_v15, 0.0 }
 0x31d   : > { %v3765_v35 = vadd.f32 %v3733_v37, %v3701_v63  ;;  %v3702_v28 = vmax.f32 %v3670_v29, 0.0  ;;  %v5098_v17 = vld [vmem:[#allocation3 + $0x30] sm:$0xff] }
 0x31e   : > { %3799 = vst.msk [vmem:[#allocation3 + $0x50] sm:$0xff] %vm470_vm1, %v3767_v9  ;;  %v3768_v36 = vadd.f32 %v3736_v47, %v3704_v31  ;;  %v5100_v7 = vadd.f32 %v5098_v17, %v17150_v32  ;;  %v5042_v22 = vld [vmem:[#allocation3 + $0x20] sm:$0xff]  ;;  %v3739_v32 = vld [vmem:[#allocation3 + $0x70] sm:$0xff]  ;;  %v3740_v31 = vld [vmem:[#allocation3 + $0x78] sm:$0xff] }
 0x31f   : > { %3797 = vst.msk [vmem:[#allocation3 + $0x40] sm:$0xff] %vm470_vm1, %v3765_v35  ;;  %v3766_v57 = vadd.f32 %v3734_v19, %v3702_v28  ;;  %v13753_v55 = vpop.f32.mrb[12].mxu0  ;;  %v5099_v51 = vld [vmem:[#allocation3 + $0x38] sm:$0xff]  ;;  %v5044_v30 = vadd.f32 %v5042_v22, %v17146_v6  ;;  %v3737_v47 = vld [vmem:[#allocation3 + $0x60] sm:$0xff] }
 0x320   : > { %3800 = vst.msk [vmem:[#allocation3 + $0x58] sm:$0xff] %vm470_vm1, %v3768_v36  ;;  %v3675_v50 = vadd.f32 %v13753_v55, %v17193_v2  ;;  %v5842_v14 = vpop.f32.mrb[84].mxu1  ;;  %v3543_v48 = vpop.f32.mrb[13].mxu0  ;;  %5102 = vst.msk [vmem:[#allocation3 + $0x30] sm:$0xff] %vm470_vm1, %v5100_v7  ;;  %v5101_v56 = vadd.f32 %v5099_v51, %v17152_v62  ;;  %v5043_v13 = vld [vmem:[#allocation3 + $0x28] sm:$0xff] }
 0x321   : > { %3798 = vst.msk [vmem:[#allocation3 + $0x48] sm:$0xff] %vm470_vm1, %v3766_v57  ;;  %v3673_v37 = vadd.f32 %v17193_v2, %v3543_v48  ;;  %v13961_v15 = vpop.f32.mrb[85].mxu1  ;;  %v13754_v27 = vpop.f32.mrb[14].mxu0  ;;  %5046 = vst.msk [vmem:[#allocation3 + $0x20] sm:$0xff] %vm470_vm1, %v5044_v30  ;;  %v5045_v6 = vadd.f32 %v5043_v13, %v17148_v52  ;;  %v3738_v36 = vld [vmem:[#allocation3 + $0x68] sm:$0xff] }
 0x322   : > { %v3707_v63 = vmax.f32 %v3675_v50, 0.0  ;;  %v3676_v29 = vadd.f32 %v13754_v27, %v17193_v2  ;;  %v5845_v33 = vpop.f32.mrb[86].mxu1  ;;  %v3546_v9 = vpop.f32.mrb[15].mxu0  ;;  %5103 = vst.msk [vmem:[#allocation3 + $0x38] sm:$0xff] %vm470_vm1, %v5101_v56 }
 0x323   : > { %v3705_v62 = vmax.f32 %v3673_v37, 0.0  ;;  %v3674_v19 = vadd.f32 %v17193_v2, %v3546_v9  ;;  %v13962_v35 = vpop.f32.mrb[87].mxu1  ;;  %5047 = vst.msk [vmem:[#allocation3 + $0x28] sm:$0xff] %vm470_vm1, %v5045_v6 }
 0x324   : > { %v3771_v28 = vadd.f32 %v3739_v32, %v3707_v63  ;;  %v3708_v17 = vmax.f32 %v3676_v29, 0.0 }
 0x325   : > { %v3769_v7 = vadd.f32 %v3737_v47, %v3705_v62  ;;  %v3706_v52 = vmax.f32 %v3674_v19, 0.0  ;;  %v5210_v22 = vld [vmem:[#allocation3 + $0x50] sm:$0xff]  ;;  %v3741_v62 = vld [vmem:[#allocation3 + $0x80] sm:$0xff] }
 0x326   : > { %3803 = vst.msk [vmem:[#allocation3 + $0x70] sm:$0xff] %vm470_vm1, %v3771_v28  ;;  %v3772_v57 = vadd.f32 %v3740_v31, %v3708_v17  ;;  %v5212_v55 = vadd.f32 %v5210_v22, %v17158_v8  ;;  %v5154_v51 = vld [vmem:[#allocation3 + $0x40] sm:$0xff]  ;;  %v3743_v8 = vld [vmem:[#allocation3 + $0x90] sm:$0xff]  ;;  %v3744_v28 = vld [vmem:[#allocation3 + $0x98] sm:$0xff] }
 0x327   : > { %3801 = vst.msk [vmem:[#allocation3 + $0x60] sm:$0xff] %vm470_vm1, %v3769_v7  ;;  %v3770_v30 = vadd.f32 %v3738_v36, %v3706_v52  ;;  %v13757_v50 = vpop.f32.mrb[16].mxu0  ;;  %v5211_v48 = vld [vmem:[#allocation3 + $0x58] sm:$0xff]  ;;  %v5156_v56 = vadd.f32 %v5154_v51, %v17154_v10  ;;  %v3742_v22 = vld [vmem:[#allocation3 + $0x88] sm:$0xff] }
 0x328   : > { %3804 = vst.msk [vmem:[#allocation3 + $0x78] sm:$0xff] %vm470_vm1, %v3772_v57  ;;  %v3679_v13 = vadd.f32 %v13757_v50, %v17193_v2  ;;  %v5889_v32 = vpop.f32.mrb[88].mxu1  ;;  %v3559_v37 = vpop.f32.mrb[17].mxu0  ;;  %5214 = vst.msk [vmem:[#allocation3 + $0x50] sm:$0xff] %vm470_vm1, %v5212_v55  ;;  %v5213_v15 = vadd.f32 %v5211_v48, %v17160_v54  ;;  %v5155_v27 = vld [vmem:[#allocation3 + $0x48] sm:$0xff] }
 0x329   : > { %3802 = vst.msk [vmem:[#allocation3 + $0x68] sm:$0xff] %vm470_vm1, %v3770_v30  ;;  %v5890_v6 = vadd.f32 %v5889_v32, %v5842_v14  ;;  %v3677_v63 = vadd.f32 %v17193_v2, %v3559_v37  ;;  %v13967_v47 = vpop.f32.mrb[89].mxu1  ;;  %v13758_v29 = vpop.f32.mrb[18].mxu0  ;;  %5158 = vst.msk [vmem:[#allocation3 + $0x40] sm:$0xff] %vm470_vm1, %v5156_v56  ;;  %v5157_v10 = vadd.f32 %v5155_v27, %v17156_v38 }
 0x32a   : > { %v3711_v9 = vmax.f32 %v3679_v13, 0.0  ;;  %v3680_v31 = vadd.f32 %v13758_v29, %v17193_v2  ;;  %v5892_v19 = vpop.f32.mrb[90].mxu1  ;;  %v3562_v35 = vpop.f32.mrb[19].mxu0  ;;  %5215 = vst.msk [vmem:[#allocation3 + $0x58] sm:$0xff] %vm470_vm1, %v5213_v15 }
 0x32b   : > { %v3709_v54 = vmax.f32 %v3677_v63, 0.0  ;;  %v5893_v17 = vadd.f32 %v5892_v19, %v5845_v33  ;;  %v3678_v14 = vadd.f32 %v17193_v2, %v3562_v35  ;;  %v13968_v36 = vpop.f32.mrb[91].mxu1  ;;  %5159 = vst.msk [vmem:[#allocation3 + $0x48] sm:$0xff] %vm470_vm1, %v5157_v10 }
 0x32c   : > { %v3775_v7 = vadd.f32 %v3743_v8, %v3711_v9  ;;  %v3712_v52 = vmax.f32 %v3680_v31, 0.0 }
 0x32d   : > { %v3773_v38 = vadd.f32 %v3741_v62, %v3709_v54  ;;  %v3710_v57 = vmax.f32 %v3678_v14, 0.0  ;;  %v5322_v55 = vld [vmem:[#allocation3 + $0x70] sm:$0xff]  ;;  %v3745_v54 = vld [vmem:[#allocation3 + $0xa0] sm:$0xff]  ;;  %v3748_v14 = vld [vmem:[#allocation3 + $0xb8] sm:$0xff] }
 0x32e   : > { %3807 = vst.msk [vmem:[#allocation3 + $0x90] sm:$0xff] %vm470_vm1, %v3775_v7  ;;  %v3776_v51 = vadd.f32 %v3744_v28, %v3712_v52  ;;  %v5324_v30 = vadd.f32 %v5322_v55, %v17166_v44  ;;  %v5266_v50 = vld [vmem:[#allocation3 + $0x60] sm:$0xff] }
 0x32f   : > { %3805 = vst.msk [vmem:[#allocation3 + $0x80] sm:$0xff] %vm470_vm1, %v3773_v38  ;;  %v3774_v33 = vadd.f32 %v3742_v22, %v3710_v57  ;;  %v13761_v48 = vpop.f32.mrb[20].mxu0  ;;  %v5323_v56 = vld [vmem:[#allocation3 + $0x78] sm:$0xff]  ;;  %v5268_v13 = vadd.f32 %v5266_v50, %v17162_v26  ;;  %v3746_v22 = vld [vmem:[#allocation3 + $0xa8] sm:$0xff] }
 0x330   : > { %3808 = vst.msk [vmem:[#allocation3 + $0x98] sm:$0xff] %vm470_vm1, %v3776_v51  ;;  %v14647_v32 = vadd.f32 %v13761_v48, %v16613_v41  ;;  %v5943_v37 = vpop.f32.mrb[92].mxu1  ;;  %v3575_v15 = vpop.f32.mrb[21].mxu0  ;;  %5326 = vst.msk [vmem:[#allocation3 + $0x70] sm:$0xff] %vm470_vm1, %v5324_v30  ;;  %v5325_v27 = vadd.f32 %v5323_v56, %v17168_v20  ;;  %v5267_v8 = vld [vmem:[#allocation3 + $0x68] sm:$0xff]  ;;  %v3747_v20 = vld [vmem:[#allocation3 + $0xb0] sm:$0xff] }
 0x331   : > { %3806 = vst.msk [vmem:[#allocation3 + $0x88] sm:$0xff] %vm470_vm1, %v3774_v33  ;;  %v5950_v44 = vadd.f32 %v5943_v37, %v5890_v6  ;;  %v14648_v63 = vadd.f32 %v3575_v15, %v16617_v25  ;;  %v13973_v47 = vpop.f32.mrb[93].mxu1  ;;  %v13762_v29 = vpop.f32.mrb[22].mxu0  ;;  %5270 = vst.msk [vmem:[#allocation3 + $0x60] sm:$0xff] %vm470_vm1, %v5268_v13  ;;  %v5269_v26 = vadd.f32 %v5267_v8, %v17164_v5  ;;  %v18959_v33 = vld [vmem:[#allocation12_spill] sm:$0xff] }
 0x332   : > { %v3683_v41 = vadd.f32 %v14647_v32, %v17193_v2  ;;  %v14649_v10 = vadd.f32 %v13762_v29, %v16619_v11  ;;  %v5946_v9 = vpop.f32.mrb[94].mxu1  ;;  %v3578_v62 = vpop.f32.mrb[23].mxu0  ;;  %5327 = vst.msk [vmem:[#allocation3 + $0x78] sm:$0xff] %vm470_vm1, %v5325_v27  ;;  %v18960_v27 = vld [vmem:[#allocation19_spill] sm:$0xff] }
 0x333   : > { %v3681_v31 = vadd.f32 %v14648_v63, %v17193_v2  ;;  %v5951_v6 = vadd.f32 %v5946_v9, %v5893_v17  ;;  %v14650_v25 = vadd.f32 %v3578_v62, %v16621_v34  ;;  %v13974_v19 = vpop.f32.mrb[95].mxu1  ;;  %5271 = vst.msk [vmem:[#allocation3 + $0x68] sm:$0xff] %vm470_vm1, %v5269_v26  ;;  %v18961_v26 = vld [vmem:[#allocation11_spill] sm:$0xff] }
 0x334   : > { %v3715_v35 = vmax.f32 %v3683_v41, 0.0  ;;  %v3684_v5 = vadd.f32 %v14649_v10, %v17193_v2  ;;  %v3749_v19 = vld [vmem:[#allocation3 + $0xc0] sm:$0xff] }
 0x335   : > { %v3713_v28 = vmax.f32 %v3681_v31, 0.0  ;;  %v3682_v11 = vadd.f32 %v14650_v25, %v17193_v2  ;;  %v5434_v36 = vld [vmem:[#allocation3 + $0x90] sm:$0xff] }
 0x336   : > { %v3779_v7 = vadd.f32 %v3747_v20, %v3715_v35  ;;  %v3716_v52 = vmax.f32 %v3684_v5, 0.0  ;;  %v5436_v38 = vadd.f32 %v5434_v36, %v17174_v42  ;;  %v5378_v17 = vld [vmem:[#allocation3 + $0x80] sm:$0xff]  ;;  %v18962_v20 = vld [vmem:[#allocation60_spill] sm:$0xff]  ;;  %v3752_v5 = vld [vmem:[#allocation3 + $0xd8] sm:$0xff] }
 0x337   : > { %v3777_v57 = vadd.f32 %v3745_v54, %v3713_v28  ;;  %v3714_v34 = vmax.f32 %v3682_v11, 0.0  ;;  %v13765_v55 = vpop.f32.mrb[24].mxu0  ;;  %v5435_v51 = vld [vmem:[#allocation3 + $0x98] sm:$0xff]  ;;  %v5380_v30 = vadd.f32 %v5378_v17, %v17170_v59  ;;  %v3750_v36 = vld [vmem:[#allocation3 + $0xc8] sm:$0xff] }
 0x338   : > { %3811 = vst.msk [vmem:[#allocation3 + $0xb0] sm:$0xff] %vm470_vm1, %v3779_v7  ;;  %v3780_v50 = vadd.f32 %v3748_v14, %v3716_v52  ;;  %v14651_v48 = vadd.f32 %v13765_v55, %v18959_v33  ;;  %v5999_v56 = vpop.f32.mrb[96].mxu1  ;;  %v3591_v13 = vpop.f32.mrb[25].mxu0  ;;  %5438 = vst.msk [vmem:[#allocation3 + $0x90] sm:$0xff] %vm470_vm1, %v5436_v38  ;;  %v5437_v32 = vadd.f32 %v5435_v51, %v17176_v18  ;;  %v5379_v37 = vld [vmem:[#allocation3 + $0x88] sm:$0xff]  ;;  %v18963_v17 = vld [vmem:[#allocation62_spill] sm:$0xff] }
 0x339   : > { %3809 = vst.msk [vmem:[#allocation3 + $0xa0] sm:$0xff] %vm470_vm1, %v3777_v57  ;;  %v3778_v42 = vadd.f32 %v3746_v22, %v3714_v34  ;;  %v6006_v15 = vadd.f32 %v5999_v56, %v5950_v44  ;;  %v14652_v8 = vadd.f32 %v3591_v13, %v18960_v27  ;;  %v13979_v63 = vpop.f32.mrb[97].mxu1  ;;  %v13766_v59 = vpop.f32.mrb[26].mxu0  ;;  %5382 = vst.msk [vmem:[#allocation3 + $0x80] sm:$0xff] %vm470_vm1, %v5380_v30  ;;  %v3751_v44 = vld [vmem:[#allocation3 + $0xd0] sm:$0xff] }
 0x33a   : > { %v5381_v47 = vadd.f32 %v5379_v37, %v17172_v61  ;;  %3812 = vst.msk [vmem:[#allocation3 + $0xb8] sm:$0xff] %vm470_vm1, %v3780_v50  ;;  %v3687_v29 = vadd.f32 %v14651_v48, %v17193_v2  ;;  %v14653_v41 = vadd.f32 %v13766_v59, %v18961_v26  ;;  %v6002_v18 = vpop.f32.mrb[98].mxu1  ;;  %v3594_v10 = vpop.f32.mrb[27].mxu0  ;;  %5439 = vst.msk [vmem:[#allocation3 + $0x98] sm:$0xff] %vm470_vm1, %v5437_v32  ;;  %v18964_v48 = vld [vmem:[#allocation61_spill] sm:$0xff] }
 0x33b   : > { %3810 = vst.msk [vmem:[#allocation3 + $0xa8] sm:$0xff] %vm470_vm1, %v3778_v42  ;;  %v3685_v9 = vadd.f32 %v14652_v8, %v17193_v2  ;;  %v6007_v62 = vadd.f32 %v6002_v18, %v5951_v6  ;;  %v14654_v31 = vadd.f32 %v3594_v10, %v18962_v20  ;;  %v13980_v25 = vpop.f32.mrb[99].mxu1  ;;  %v18965_v8 = vld [vmem:[#allocation64_spill] sm:$0xff]  ;;  %v3753_v20 = vld [vmem:[#allocation3 + $0xe0] sm:$0xff] }
 0x33c   : > { %5383 = vst.msk [vmem:[#allocation3 + $0x88] sm:$0xff] %vm470_vm1, %v5381_v47  ;;  %v3719_v61 = vmax.f32 %v3687_v29, 0.0  ;;  %v3688_v35 = vadd.f32 %v14653_v41, %v17193_v2  ;;  %v3755_v29 = vld [vmem:[#allocation3 + $0xf0] sm:$0xff]  ;;  %v3756_v25 = vld [vmem:[#allocation3 + $0xf8] sm:$0xff] }
 0x33d   : > { %v3717_v54 = vmax.f32 %v3685_v9, 0.0  ;;  %v3686_v28 = vadd.f32 %v14654_v31, %v17193_v2 }
 0x33e   : > { %v3783_v14 = vadd.f32 %v3751_v44, %v3719_v61  ;;  %v3720_v11 = vmax.f32 %v3688_v35, 0.0  ;;  %v3754_v35 = vld [vmem:[#allocation3 + $0xe8] sm:$0xff] }
 0x33f   : > { %v3781_v7 = vadd.f32 %v3749_v19, %v3717_v54  ;;  %v3718_v52 = vmax.f32 %v3686_v28, 0.0  ;;  %v13769_v22 = vpop.f32.mrb[28].mxu0  ;;  %v5546_v6 = vld [vmem:[#allocation3 + $0xb0] sm:$0xff] }
 0x340   : > { %3815 = vst.msk [vmem:[#allocation3 + $0xd0] sm:$0xff] %vm470_vm1, %v3783_v14  ;;  %v3784_v38 = vadd.f32 %v3752_v5, %v3720_v11  ;;  %v14655_v57 = vadd.f32 %v13769_v22, %v18963_v17  ;;  %v6053_v34 = vpop.f32.mrb[100].mxu1  ;;  %v3607_v55 = vpop.f32.mrb[29].mxu0  ;;  %v5548_v51 = vadd.f32 %v5546_v6, %v17182_v16  ;;  %v5490_v30 = vld [vmem:[#allocation3 + $0xa0] sm:$0xff] }
 0x341   : > { %3813 = vst.msk [vmem:[#allocation3 + $0xc0] sm:$0xff] %vm470_vm1, %v3781_v7  ;;  %v3782_v50 = vadd.f32 %v3750_v36, %v3718_v52  ;;  %v6060_v33 = vadd.f32 %v6053_v34, %v6006_v15  ;;  %v14656_v56 = vadd.f32 %v3607_v55, %v18964_v48  ;;  %v13985_v13 = vpop.f32.mrb[101].mxu1  ;;  %v13770_v32 = vpop.f32.mrb[30].mxu0  ;;  %v5547_v37 = vld [vmem:[#allocation3 + $0xb8] sm:$0xff]  ;;  %v5492_v42 = vadd.f32 %v5490_v30, %v17178_v39  ;;  %v18966_v39 = vld [vmem:[#allocation63_spill] sm:$0xff] }
 0x342   : > { %3816 = vst.msk [vmem:[#allocation3 + $0xd8] sm:$0xff] %vm470_vm1, %v3784_v38  ;;  %v3691_v27 = vadd.f32 %v14655_v57, %v17193_v2  ;;  %v14657_v63 = vadd.f32 %v13770_v32, %v18965_v8  ;;  %v6056_v59 = vpop.f32.mrb[102].mxu1  ;;  %v3610_v16 = vpop.f32.mrb[31].mxu0  ;;  %5550 = vst.msk [vmem:[#allocation3 + $0xb0] sm:$0xff] %vm470_vm1, %v5548_v51  ;;  %v5549_v47 = vadd.f32 %v5547_v37, %v17184_v40  ;;  %v5491_v15 = vld [vmem:[#allocation3 + $0xa8] sm:$0xff] }
 0x343   : > { %3814 = vst.msk [vmem:[#allocation3 + $0xc8] sm:$0xff] %vm470_vm1, %v3782_v50  ;;  %v3689_v26 = vadd.f32 %v14656_v56, %v17193_v2  ;;  %v6061_v41 = vadd.f32 %v6056_v59, %v6007_v62  ;;  %v14658_v18 = vadd.f32 %v3610_v16, %v18966_v39  ;;  %v13986_v10 = vpop.f32.mrb[103].mxu1  ;;  %5494 = vst.msk [vmem:[#allocation3 + $0xa0] sm:$0xff] %vm470_vm1, %v5492_v42 }
 0x344   : > { %v5493_v44 = vadd.f32 %v5491_v15, %v17180_v45  ;;  %v3723_v9 = vmax.f32 %v3691_v27, 0.0  ;;  %v3692_v31 = vadd.f32 %v14657_v63, %v17193_v2  ;;  %5551 = vst.msk [vmem:[#allocation3 + $0xb8] sm:$0xff] %vm470_vm1, %v5549_v47 }
 0x345   : > { %v3721_v40 = vmax.f32 %v3689_v26, 0.0  ;;  %v3690_v61 = vadd.f32 %v14658_v18, %v17193_v2 }
 0x346   : > { %5495 = vst.msk [vmem:[#allocation3 + $0xa8] sm:$0xff] %vm470_vm1, %v5493_v44  ;;  %v3787_v62 = vadd.f32 %v3755_v29, %v3723_v9  ;;  %v3724_v19 = vmax.f32 %v3692_v31, 0.0 }
 0x347   : > { %v3785_v54 = vadd.f32 %v3753_v20, %v3721_v40  ;;  %v3722_v5 = vmax.f32 %v3690_v61, 0.0  ;;  %v5658_v28 = vld [vmem:[#allocation3 + $0xd0] sm:$0xff] }
 0x348   : > { %3819 = vst.msk [vmem:[#allocation3 + $0xf0] sm:$0xff] %vm470_vm1, %v3787_v62  ;;  %v3788_v45 = vadd.f32 %v3756_v25, %v3724_v19  ;;  %v6109_v14 = vpop.f32.mrb[104].mxu1  ;;  %v5660_v11 = vadd.f32 %v5658_v28, %v17196_v43  ;;  %v5602_v36 = vld [vmem:[#allocation3 + $0xc0] sm:$0xff] }
 0x349   : > { %3817 = vst.msk [vmem:[#allocation3 + $0xe0] sm:$0xff] %vm470_vm1, %v3785_v54  ;;  %v3786_v7 = vadd.f32 %v3754_v35, %v3722_v5  ;;  %v6116_v52 = vadd.f32 %v6109_v14, %v6060_v33  ;;  %v13991_v2 = vpop.f32.mrb[105].mxu1  ;;  %v5659_v22 = vld [vmem:[#allocation3 + $0xd8] sm:$0xff]  ;;  %v5604_v6 = vadd.f32 %v5602_v36, %v17186_v12 }
 0x34a   : > { %3820 = vst.msk [vmem:[#allocation3 + $0xf8] sm:$0xff] %vm470_vm1, %v3788_v45  ;;  %v6112_v38 = vpop.f32.mrb[106].mxu1  ;;  %5662 = vst.msk [vmem:[#allocation3 + $0xd0] sm:$0xff] %vm470_vm1, %v5660_v11  ;;  %v5661_v17 = vadd.f32 %v5659_v22, %v17200_v23  ;;  %v5603_v57 = vld [vmem:[#allocation3 + $0xc8] sm:$0xff] }
 0x34b   : > { %3818 = vst.msk [vmem:[#allocation3 + $0xe8] sm:$0xff] %vm470_vm1, %v3786_v7  ;;  %v6117_v43 = vadd.f32 %v6112_v38, %v6061_v41  ;;  %v13992_v34 = vpop.f32.mrb[107].mxu1  ;;  %5606 = vst.msk [vmem:[#allocation3 + $0xc0] sm:$0xff] %vm470_vm1, %v5604_v6  ;;  %v5605_v55 = vadd.f32 %v5603_v57, %v17188_v1  ;;  %v17356_v45 = vld [vmem:[%s18591_s8] sm:$0xf] }
 0x34c   : > { %5663 = vst.msk [vmem:[#allocation3 + $0xd8] sm:$0xff] %vm470_vm1, %v5661_v17 }
 0x34d   : > { %5607 = vst.msk [vmem:[#allocation3 + $0xc8] sm:$0xff] %vm470_vm1, %v5605_v55 }
 0x34f   : > { %v5766_v12 = vld [vmem:[#allocation3 + $0xf0] sm:$0xff] }
 0x350   : > { %v6165_v51 = vpop.f32.mrb[108].mxu1  ;;  %v5768_v30 = vadd.f32 %v5766_v12, %v17221_v3  ;;  %v5714_v50 = vld [vmem:[#allocation3 + $0xe0] sm:$0xff] }
 0x351   : > { %v6172_v33 = vadd.f32 %v6165_v51, %v6116_v52  ;;  %v13997_v23 = vpop.f32.mrb[109].mxu1  ;;  %v5767_v48 = vld [vmem:[#allocation3 + $0xf8] sm:$0xff]  ;;  %v5716_v56 = vadd.f32 %v5714_v50, %v17207_v0 }
 0x352   : > { %v6168_v13 = vpop.f32.mrb[110].mxu1  ;;  %5770 = vst.msk [vmem:[#allocation3 + $0xf0] sm:$0xff] %vm470_vm1, %v5768_v30  ;;  %v5769_v32 = vadd.f32 %v5767_v48, %v17230_v21  ;;  %v5715_v1 = vld [vmem:[#allocation3 + $0xe8] sm:$0xff] }
 0x353   : > { %v6173_v37 = vadd.f32 %v6168_v13, %v6117_v43  ;;  %v13998_v42 = vpop.f32.mrb[111].mxu1  ;;  %5718 = vst.msk [vmem:[#allocation3 + $0xe0] sm:$0xff] %vm470_vm1, %v5716_v56  ;;  %v5717_v27 = vadd.f32 %v5715_v1, %v17212_v53  ;;  %v12756_v21 = vld [vmem:[%s18589_s6 + $0x2] ss:$0 sm:$0xff] }
 0x354   : > { %5771 = vst.msk [vmem:[#allocation3 + $0xf8] sm:$0xff] %vm470_vm1, %v5769_v32 }
 0x355   : > { %5719 = vst.msk [vmem:[#allocation3 + $0xe8] sm:$0xff] %vm470_vm1, %v5717_v27 }
 0x358   : > { %v6219_v3 = vpop.f32.mrb[112].mxu1 }
 0x359   : > { %v6226_v8 = vadd.f32 %v6219_v3, %v6172_v33  ;;  %v14003_v63 = vpop.f32.mrb[113].mxu1 }
 0x35a   : > { %v6222_v0 = vpop.f32.mrb[114].mxu1 }
 0x35b   : > { %v6227_v59 = vadd.f32 %v6222_v0, %v6173_v37  ;;  %v14004_v16 = vpop.f32.mrb[115].mxu1 }
 0x360   : > { %v6275_v47 = vpop.f32.mrb[116].mxu1 }
 0x361   : > { %v6282_v15 = vadd.f32 %v6275_v47, %v6226_v8  ;;  %v14009_v29 = vpop.f32.mrb[117].mxu1 }
 0x362   : > { %v6278_v26 = vpop.f32.mrb[118].mxu1 }
 0x363   : > { %v6292_v41 = vadd.f32 %v12756_v21, %v6282_v15  ;;  %v6283_v53 = vadd.f32 %v6278_v26, %v6227_v59  ;;  %v14010_v39 = vpop.f32.mrb[119].mxu1  ;;  %v12765_v15 = vld [vmem:[%s18588_s5 + $0x4] sm:$0xf]  ;;  %v6713_v26 = vld [vmem:[%s18588_s5] sm:$0xf] }
 0x364   : > { %v6741_v29 = vsel %vm4885_vm13, %v12765_v15, 0 }
 0x365   : > { %v6294_v18 = vmax.f32 %v6292_v41, 0.0  ;;  %v6293_v10 = vadd.f32 %v12756_v21, %v6283_v53 }
 0x367   : > { %6296 = vst.msk [vmem:[#allocation2 + $0x179] sm:$0xff] %vm470_vm1, %v6294_v18  ;;  %v6295_v44 = vmax.f32 %v6293_v10, 0.0  ;;  %v6714_v10 = vld [vmem:[#allocation2 + $0x123] sm:$0xff] }
 0x369   : > { %6297 = vst.msk [vmem:[#allocation2 + $0x181] sm:$0xff] %vm470_vm1, %v6295_v44 }
 0x36e   : > { %v6298_v9 = vld [vmem:[#allocation2 + $0x179] sm:$0xf]  ;;  %v6348_v31 = vld [vmem:[#allocation2 + $0x17d] sm:$0xf] }
 0x36f   : > { %v6347_v20 = vld [vmem:[#allocation2 + $0x179] sm:$0xf]  ;;  %v6299_v40 = vpack.c.bf16 %v6298_v9, %v6298_v9  ;;  %v6350_v61 = vmul.f32 0.25, %v6348_v31  ;;  %v6398_v19 = vld [vmem:[#allocation2 + $0x17d] sm:$0xf] }
 0x370   : > { %v6349_v25 = vmul.f32 0.75, %v6347_v20  ;;  %v6397_v62 = vld [vmem:[#allocation2 + $0x179] sm:$0xf]  ;;  %v6400_v28 = vmul.f32 0.75, %v6398_v19  ;;  %v6448_v7 = vld [vmem:[#allocation2 + $0x181] sm:$0xf] }
 0x371   : > { %v6304_v35 = vsel %vm1059_vm0, %v6299_v40, 0  ;;  %v6399_v5 = vmul.f32 0.25, %v6397_v62  ;;  %v6447_v52 = vld [vmem:[#allocation2 + $0x17d] sm:$0xf]  ;;  %v6450_v22 = vmul.f32 0.25, %v6448_v7 }
 0x372   : > { %v6351_v54 = vadd.f32 %v6350_v61, %v6349_v25  ;;  %14012 = vmatpush3.bf16.msra.mxu1 %v6304_v35  ;;  %v6449_v6 = vmul.f32 0.75, %v6447_v52  ;;  %v6498_v57 = vld [vmem:[#allocation2 + $0x181] sm:$0xf]  ;;  %v6497_v43 = vld [vmem:[#allocation2 + $0x17d] sm:$0xf] }
 0x373   : > { %14017 = vmatprep.subr.bf16.mxu1 %v18785_v49  ;;  %v6401_v36 = vadd.f32 %v6400_v28, %v6399_v5  ;;  %v6500_v55 = vmul.f32 0.75, %v6498_v57  ;;  %v6499_v12 = vmul.f32 0.25, %v6497_v43  ;;  %v6547_v50 = vld [vmem:[#allocation2 + $0x181] sm:$0xf]  ;;  %v6548_v33 = vld [vmem:[#allocation2 + $0x185] sm:$0xf] }
 0x374   : > { %v6352_v14 = vpack.c.bf16 %v6351_v54, %v6351_v54  ;;  %v6451_v17 = vadd.f32 %v6450_v22, %v6449_v6  ;;  %v6549_v48 = vmul.f32 0.75, %v6547_v50  ;;  %v6550_v56 = vmul.f32 0.25, %v6548_v33  ;;  %v6597_v1 = vld [vmem:[#allocation2 + $0x181] sm:$0xf]  ;;  %v6598_v37 = vld [vmem:[#allocation2 + $0x185] sm:$0xf] }
 0x375   : > { %14014 = vmatmul.mubr.msk.bf16.vlgmr.msra.gmra.mrb[120].mxu1 %vm590_vm2, %v17356_v45  ;;  %v6402_v2 = vpack.c.bf16 %v6401_v36, %v6401_v36  ;;  %v6501_v30 = vadd.f32 %v6500_v55, %v6499_v12  ;;  %v6599_v27 = vmul.f32 0.25, %v6597_v1  ;;  %v6600_v3 = vmul.f32 0.75, %v6598_v37  ;;  %v6647_v16 = vld [vmem:[#allocation2 + $0x185] sm:$0xf]  ;;  %v18968_v1 = vld [vmem:[#allocation14_spill] sm:$0xff] }
 0x376   : > { %v6354_v11 = vsel %vm1059_vm0, %v6352_v14, 0  ;;  %14019 = vmatprep.mubr.msk.bf16.mxu1 %vm15245_vm12, %v18785_v49  ;;  %v6452_v34 = vpack.c.bf16 %v6451_v17, %v6451_v17  ;;  %v6551_v32 = vadd.f32 %v6550_v56, %v6549_v48  ;;  %v6648_v47 = vpack.c.bf16 %v6647_v16, %v6647_v16  ;;  %v12774_v7 = vld [vmem:[%s18588_s5 + $0x8] sm:$0xf] }
 0x377   : > { %14018 = vmatpush3.bf16.msra.mxu1 %v6354_v11  ;;  %v6404_v38 = vsel %vm1059_vm0, %v6402_v2, 0  ;;  %v6502_v23 = vpack.c.bf16 %v6501_v30, %v6501_v30  ;;  %v6601_v63 = vadd.f32 %v6600_v3, %v6599_v27  ;;  %v6821_v11 = vsel %vm4885_vm13, %v6713_v26, 0  ;;  %v6693_v48 = vld [vmem:[#allocation2 + $0x122] sm:$0xff] }
 0x378   : > { %14023 = vmatprep.subr.bf16.mxu1 %v18785_v49  ;;  %v6454_v51 = vsel %vm1059_vm0, %v6452_v34, 0  ;;  %v6552_v42 = vpack.c.bf16 %v6551_v32, %v6551_v32  ;;  %v6650_v21 = vsel %vm1059_vm0, %v6648_v47, 0 }
 0x379   : > { %v6504_v13 = vsel %vm1059_vm0, %v6502_v23, 0  ;;  %v6602_v0 = vpack.c.bf16 %v6601_v63, %v6601_v63 }
 0x37a   : > { %v6554_v8 = vsel %vm1059_vm0, %v6552_v42, 0 }
 0x37b   : > { %v6604_v59 = vsel %vm1059_vm0, %v6602_v0, 0 }
 0x37d   : > { %14020 = vmatmul.mubr.msk.bf16.vlgmr.msra.gmra.mrb[124].mxu1 %vm590_vm2, %v17356_v45 }
 0x37e   : > { %14024 = vmatpush3.bf16.msra.mxu1 %v6404_v38  ;;  %14025 = vmatprep.mubr.msk.bf16.mxu1 %vm15245_vm12, %v18785_v49 }
 0x37f   : > { %14029 = vmatprep.subr.bf16.mxu1 %v18785_v49 }
 0x385   : > { %14026 = vmatmul.mubr.msk.bf16.vlgmr.msra.gmra.mrb[128].mxu1 %vm590_vm2, %v17356_v45 }
 0x386   : > { %14030 = vmatpush3.bf16.msra.mxu1 %v6454_v51  ;;  %14031 = vmatprep.mubr.msk.bf16.mxu1 %vm15245_vm12, %v18785_v49 }
 0x387   : > { %14035 = vmatprep.subr.bf16.mxu1 %v18785_v49 }
 0x38d   : > { %14032 = vmatmul.mubr.msk.bf16.vlgmr.msra.gmra.mrb[132].mxu1 %vm590_vm2, %v17356_v45 }
 0x38e   : > { %14036 = vmatpush3.bf16.msra.mxu1 %v6504_v13  ;;  %14037 = vmatprep.mubr.msk.bf16.mxu1 %vm15245_vm12, %v18785_v49  ;;  %v18967_v13 = vld [vmem:[#allocation13_spill] sm:$0xff] }
 0x38f   : > { %14041 = vmatprep.subr.bf16.mxu1 %v18785_v49  ;;  %v6701_v32 = vmul.f32 %v18967_v13, %v6693_v48 }
 0x395   : > { %14038 = vmatmul.mubr.msk.bf16.vlgmr.msra.gmra.mrb[136].mxu1 %vm590_vm2, %v17356_v45 }
 0x396   : > { %14042 = vmatpush3.bf16.msra.mxu1 %v6554_v8  ;;  %14043 = vmatprep.mubr.msk.bf16.mxu1 %vm15245_vm12, %v18785_v49 }
 0x397   : > { %14047 = vmatprep.subr.bf16.mxu1 %v18785_v49 }
 0x39d   : > { %14044 = vmatmul.mubr.msk.bf16.vlgmr.msra.gmra.mrb[140].mxu1 %vm590_vm2, %v17356_v45 }
 0x39e   : > { %14048 = vmatpush3.bf16.msra.mxu1 %v6604_v59  ;;  %14049 = vmatprep.mubr.msk.bf16.mxu1 %vm15245_vm12, %v18785_v49 }
 0x39f   : > { %14053 = vmatprep.subr.bf16.mxu1 %v18785_v49 }
 0x3a5   : > { %14050 = vmatmul.mubr.msk.bf16.vlgmr.msra.gmra.mrb[144].mxu1 %vm590_vm2, %v17356_v45 }
 0x3a6   : > { %14054 = vmatpush3.bf16.msra.mxu1 %v6650_v21  ;;  %14055 = vmatprep.mubr.msk.bf16.mxu1 %vm15245_vm12, %v18785_v49 }
 0x3a7   : > { %15114 = vmatprep.subr.msk.bf16.mxu1 %vm4885_vm13, %v12765_v15 }
 0x3ad   : > { %14056 = vmatmul.mubr.msk.bf16.vlgmr.msra.gmra.mrb[148].mxu1 %vm590_vm2, %v17356_v45 }
 0x3ae   : > { %14060 = vmatpush3.bf16.msra.mxu1 %v6741_v29  ;;  %v18969_v29 = vld [vmem:[#allocation22_spill] sm:$0xff] }
 0x3af   : > { %15115 = vmatprep.subr.msk.bf16.mxu1 %vm4885_vm13, %v6713_v26 }
 0x448   : > { %v6340_v41 = vpop.f32.mrb[120].mxu1 }
 0x449   : > { %6346 = vst.msk [vmem:[#allocation2 + $0x12b] sm:$0xff] %vm470_vm1, %v6340_v41  ;;  %v14015_v53 = vpop.f32.mrb[121].mxu1 }
 0x44a   : > { %v6343_v39 = vpop.f32.mrb[122].mxu1  ;;  %v18970_v53 = vld [vmem:[#allocation26_spill] sm:$0xff] }
 0x44b   : > { %v14016_v18 = vpop.f32.mrb[123].mxu1 }
 0x44c   : > { %v18971_v18 = vld [vmem:[#allocation20_spill] sm:$0xff] }
 0x450   : > { %v6390_v44 = vpop.f32.mrb[124].mxu1  ;;  %v17412_v9 = vld [vmem:[#allocation2 + $0x12b] sm:$0xff] }
 0x451   : > { %6396 = vst.msk [vmem:[#allocation2 + $0x133] sm:$0xff] %vm470_vm1, %v6390_v44  ;;  %v14021_v20 = vpop.f32.mrb[125].mxu1  ;;  %v6722_v31 = vpack.c.bf16 %v17412_v9, %v6714_v10  ;;  %v17447_v56 = vld [vmem:[#allocation2 + $0x12a] sm:$0xff] }
 0x452   : > { %v6393_v40 = vpop.f32.mrb[126].mxu1  ;;  %v6702_v37 = vmul.f32 %v18968_v1, %v17447_v56  ;;  %v18972_v44 = vld [vmem:[#allocation25_spill] sm:$0xff] }
 0x453   : > { %v14022_v25 = vpop.f32.mrb[127].mxu1  ;;  %14061 = vmatprep.mubr.msk.bf16.mxu1 %vm470_vm1, %v6722_v31  ;;  %v6923_v40 = vsel %vm4885_vm13, %v12774_v7, 0 }
 0x454   : > { %v6709_v0 = vpack.c.bf16 %v6702_v37, %v6701_v32  ;;  %v18979_v32 = vld [vmem:[#allocation40_spill] sm:$0xff] }
 0x458   : > { %v6440_v61 = vpop.f32.mrb[128].mxu1  ;;  %v17418_v5 = vld [vmem:[#allocation2 + $0x133] sm:$0xff] }
 0x459   : > { %6446 = vst.msk [vmem:[#allocation2 + $0x13b] sm:$0xff] %vm470_vm1, %v6440_v61  ;;  %v14027_v62 = vpop.f32.mrb[129].mxu1  ;;  %v17468_v15 = vld [vmem:[#allocation2 + $0x132] sm:$0xff] }
 0x45a   : > { %v6443_v19 = vpop.f32.mrb[130].mxu1  ;;  %v6703_v10 = vmul.f32 %v18971_v18, %v17468_v15  ;;  %v12779_v62 = vld [vmem:[%s18588_s5 + $0xc] sm:$0xf] }
 0x45b   : > { %v14028_v35 = vpop.f32.mrb[131].mxu1  ;;  %v17487_v19 = vld [vmem:[#allocation2 + $0x12c] sm:$0xff] }
 0x460   : > { %v6490_v54 = vpop.f32.mrb[132].mxu1  ;;  %v17420_v28 = vld [vmem:[#allocation2 + $0x13b] sm:$0xff] }
 0x461   : > { %6496 = vst.msk [vmem:[#allocation2 + $0x143] sm:$0xff] %vm470_vm1, %v6490_v54  ;;  %v14033_v45 = vpop.f32.mrb[133].mxu1  ;;  %v17425_v14 = vpack.c.bf16 %v17420_v28, %v17418_v5  ;;  %v17461_v59 = vld [vmem:[#allocation2 + $0x13a] sm:$0xff] }
 0x462   : > { %v6493_v36 = vpop.f32.mrb[134].mxu1  ;;  %v6704_v26 = vmul.f32 %v18969_v29, %v17461_v59  ;;  %v18973_v54 = vld [vmem:[#allocation32_spill] sm:$0xff] }
 0x463   : > { %v14034_v52 = vpop.f32.mrb[135].mxu1  ;;  %14062 = vmatmul.mubr.msk.bf16.vlgmr.msra.gmra.mrb[152].mxu1 %vm470_vm1, %v17425_v14  ;;  %v18974_v36 = vld [vmem:[#allocation35_spill] sm:$0xff] }
 0x464   : > { %14070 = vmatpush3.bf16.msra.mxu1 %v6821_v11  ;;  %v6710_v31 = vpack.c.bf16 %v6704_v26, %v6703_v10  ;;  %v6888_v11 = vld [vmem:[#allocation2 + $0x124] sm:$0xff]  ;;  %v18975_v52 = vld [vmem:[#allocation31_spill] sm:$0xff] }
 0x465   : > { %15116 = vmatprep.subr.msk.bf16.mxu1 %vm4885_vm13, %v12774_v7  ;;  %v6897_v7 = vmul.f32 %v18974_v36, %v17487_v19 }
 0x468   : > { %v6540_v2 = vpop.f32.mrb[136].mxu1  ;;  %v17435_v57 = vld [vmem:[#allocation2 + $0x143] sm:$0xff] }
 0x469   : > { %6546 = vst.msk [vmem:[#allocation2 + $0x14b] sm:$0xff] %vm470_vm1, %v6540_v2  ;;  %v14039_v22 = vpop.f32.mrb[137].mxu1  ;;  %v17472_v41 = vld [vmem:[#allocation2 + $0x142] sm:$0xff] }
 0x46a   : > { %v6543_v6 = vpop.f32.mrb[138].mxu1  ;;  %v6705_v20 = vmul.f32 %v18972_v44, %v17472_v41  ;;  %v18976_v22 = vld [vmem:[#allocation34_spill] sm:$0xff] }
 0x46b   : > { %v14040_v38 = vpop.f32.mrb[139].mxu1  ;;  %v6896_v6 = vmul.f32 %v18976_v22, %v6888_v11 }
 0x470   : > { %v6590_v17 = vpop.f32.mrb[140].mxu1  ;;  %v17437_v43 = vld [vmem:[#allocation2 + $0x14b] sm:$0xff] }
 0x471   : > { %6596 = vst.msk [vmem:[#allocation2 + $0x153] sm:$0xff] %vm470_vm1, %v6590_v17  ;;  %v14045_v34 = vpop.f32.mrb[141].mxu1  ;;  %v17442_v55 = vpack.c.bf16 %v17437_v43, %v17435_v57  ;;  %v17465_v47 = vld [vmem:[#allocation2 + $0x14a] sm:$0xff]  ;;  %v6904_v17 = vpack.c.bf16 %v6897_v7, %v6896_v6 }
 0x472   : > { %v6593_v12 = vpop.f32.mrb[142].mxu1  ;;  %v6706_v39 = vmul.f32 %v18970_v53, %v17465_v47  ;;  %v17500_v34 = vld [vmem:[#allocation2 + $0x13c] sm:$0xff] }
 0x473   : > { %v14046_v51 = vpop.f32.mrb[143].mxu1  ;;  %14065 = vmatprep.mubr.msk.bf16.mxu1 %vm470_vm1, %v17442_v55 }
 0x474   : > { %v6711_v25 = vpack.c.bf16 %v6706_v39, %v6705_v20  ;;  %v17506_v51 = vld [vmem:[#allocation2 + $0x134] sm:$0xff]  ;;  %v12784_v39 = vld [vmem:[%s18588_s5 + $0x10] sm:$0xf] }
 0x475   : > { %v6898_v37 = vmul.f32 %v18979_v32, %v17506_v51  ;;  %v18981_v20 = vld [vmem:[#allocation51_spill] sm:$0xff] }
 0x478   : > { %v6640_v30 = vpop.f32.mrb[144].mxu1  ;;  %v17452_v27 = vld [vmem:[#allocation2 + $0x153] sm:$0xff] }
 0x479   : > { %6646 = vst.msk [vmem:[#allocation2 + $0x15b] sm:$0xff] %vm470_vm1, %v6640_v30  ;;  %v14051_v50 = vpop.f32.mrb[145].mxu1  ;;  %v17490_v35 = vld [vmem:[#allocation2 + $0x152] sm:$0xff]  ;;  %v18977_v30 = vld [vmem:[#allocation41_spill] sm:$0xff] }
 0x47a   : > { %v6643_v33 = vpop.f32.mrb[146].mxu1  ;;  %v6707_v2 = vmul.f32 %v18975_v52, %v17490_v35  ;;  %v17503_v12 = vld [vmem:[#allocation2 + $0x14c] sm:$0xff]  ;;  %v6899_v50 = vmul.f32 %v18977_v30, %v17500_v34  ;;  %v7011_v6 = vmul.f32 %v18970_v53, %v17490_v35 }
 0x47b   : > { %v14052_v23 = vpop.f32.mrb[147].mxu1  ;;  %v17510_v33 = vld [vmem:[#allocation2 + $0x144] sm:$0xff] }
 0x47c   : > { %v18978_v23 = vld [vmem:[#allocation45_spill] sm:$0xff] }
 0x47d   : > { %v6901_v48 = vmul.f32 %v18978_v23, %v17503_v12 }
 0x480   : > { %v6686_v42 = vpop.f32.mrb[148].mxu1  ;;  %v17454_v3 = vld [vmem:[#allocation2 + $0x15b] sm:$0xff] }
 0x481   : > { %6692 = vst.msk [vmem:[#allocation2 + $0x163] sm:$0xff] %vm470_vm1, %v6686_v42  ;;  %v17459_v8 = vpack.c.bf16 %v17454_v3, %v17452_v27  ;;  %v14057_v63 = vpop.f32.mrb[149].mxu1  ;;  %v17481_v61 = vld [vmem:[#allocation2 + $0x15a] sm:$0xff] }
 0x482   : > { %v6689_v16 = vpop.f32.mrb[150].mxu1  ;;  %v6708_v45 = vmul.f32 %v18973_v54, %v17481_v61  ;;  %v18980_v42 = vld [vmem:[#allocation44_spill] sm:$0xff]  ;;  %v17526_v10 = vld [vmem:[#allocation2 + $0x154] sm:$0xff] }
 0x483   : > { %14066 = vmatmul.mubr.msk.bf16.gmra.mrb[156].mxu1 %vm470_vm1, %v17459_v8  ;;  %v14058_v21 = vpop.f32.mrb[151].mxu1  ;;  %v6900_v63 = vmul.f32 %v18980_v42, %v17510_v33  ;;  %v7033_v16 = vsel %vm4885_vm13, %v12779_v62, 0 }
 0x484   : > { %14071 = vmatprep.mubr.msk.bf16.mxu1 %vm470_vm1, %v6709_v0  ;;  %v6712_v38 = vpack.c.bf16 %v6708_v45, %v6707_v2  ;;  %v6905_v0 = vpack.c.bf16 %v6899_v50, %v6898_v37  ;;  %v7006_v45 = vmul.f32 %v18967_v13, %v17447_v56  ;;  %v7009_v2 = vmul.f32 %v18969_v29, %v17472_v41 }
 0x485   : > { %v6906_v21 = vpack.c.bf16 %v6901_v48, %v6900_v63  ;;  %v7135_v56 = vsel %vm4885_vm13, %v12784_v39, 0  ;;  %v12789_v63 = vld [vmem:[%s18588_s5 + $0x14] sm:$0xf] }
 0x488   : > { %v17519_v26 = vld [vmem:[#allocation2 + $0x15c] sm:$0xff] }
 0x489   : > { %v7005_v37 = vld [vmem:[#allocation2 + $0x162] sm:$0xff] }
 0x48b   : > { %14072 = vmatmul.mubr.msk.bf16.vlgmr.msra.gmra.mrb[152].mxu1 %vm470_vm1, %v6710_v31  ;;  %v6903_v31 = vmul.f32 %v18981_v20, %v17519_v26 }
 0x48c   : > { %14075 = vmatprep.mubr.msk.bf16.mxu1 %vm470_vm1, %v6711_v25  ;;  %14080 = vmatpush3.bf16.msra.mxu1 %v6923_v40  ;;  %v7007_v40 = vmul.f32 %v18968_v1, %v17468_v15  ;;  %v18982_v25 = vld [vmem:[#allocation49_spill] sm:$0xff] }
 0x48d   : > { %15117 = vmatprep.subr.msk.bf16.mxu1 %vm4885_vm13, %v12779_v62  ;;  %v6902_v62 = vmul.f32 %v18982_v25, %v17526_v10 }
 0x48e   : > { %v7014_v7 = vpack.c.bf16 %v7007_v40, %v7006_v45  ;;  %v7245_v40 = vsel %vm4885_vm13, %v12789_v63, 0  ;;  %v12794_v45 = vld [vmem:[%s18588_s5 + $0x18] sm:$0xf] }
 0x48f   : > { %v6907_v11 = vpack.c.bf16 %v6903_v31, %v6902_v62  ;;  %v7117_v31 = vpack.c.bf16 %v17435_v57, %v17420_v28  ;;  %v7118_v62 = vpack.c.bf16 %v17452_v27, %v17437_v43  ;;  %v7218_v28 = vmul.f32 %v18976_v22, %v17487_v19 }
 0x490   : > { %v7221_v27 = vmul.f32 %v18977_v30, %v17510_v33 }
 0x493   : > { %14076 = vmatmul.mubr.msk.bf16.gmra.mrb[156].mxu1 %vm470_vm1, %v6712_v38  ;;  %v7008_v38 = vmul.f32 %v18971_v18, %v17461_v59 }
 0x494   : > { %14081 = vmatprep.mubr.msk.bf16.mxu1 %vm470_vm1, %v6904_v17  ;;  %v7010_v17 = vmul.f32 %v18972_v44, %v17465_v47 }
 0x495   : > { %v7015_v50 = vpack.c.bf16 %v7009_v2, %v7008_v38  ;;  %v7222_v2 = vmul.f32 %v18980_v42, %v17503_v12  ;;  %v7217_v38 = vld [vmem:[#allocation2 + $0x164] sm:$0xff] }
 0x496   : > { %v7016_v48 = vpack.c.bf16 %v7011_v6, %v7010_v17  ;;  %v12799_v17 = vld [vmem:[%s18588_s5 + $0x1c] sm:$0xf] }
 0x49b   : > { %14082 = vmatmul.mubr.msk.bf16.vlgmr.msra.gmra.mrb[152].mxu1 %vm470_vm1, %v6905_v0  ;;  %v7013_v0 = vmul.f32 %v18973_v54, %v7005_v37 }
 0x49c   : > { %14085 = vmatprep.mubr.msk.bf16.mxu1 %vm470_vm1, %v6906_v21  ;;  %14090 = vmatpush3.bf16.msra.mxu1 %v7033_v16  ;;  %v7012_v16 = vmul.f32 %v18975_v52, %v17481_v61 }
 0x49d   : > { %15118 = vmatprep.subr.msk.bf16.mxu1 %vm4885_vm13, %v12784_v39  ;;  %v7116_v39 = vpack.c.bf16 %v17418_v5, %v17412_v9  ;;  %v7115_v9 = vld [vmem:[#allocation2 + $0x163] sm:$0xff]  ;;  %v7219_v5 = vmul.f32 %v18974_v36, %v17506_v51 }
 0x49e   : > { %v7017_v21 = vpack.c.bf16 %v7013_v0, %v7012_v16  ;;  %v7119_v57 = vpack.c.bf16 %v7115_v9, %v17454_v3  ;;  %v7355_v3 = vsel %vm4885_vm13, %v12794_v45, 0 }
 0x49f   : > { %v7226_v43 = vpack.c.bf16 %v7219_v5, %v7218_v28  ;;  %v12804_v5 = vld [vmem:[%s18588_s5 + $0x20] sm:$0xf]  ;;  %v7541_v28 = vmul.f32 %v18974_v36, %v17500_v34 }
 0x4a3   : > { %14086 = vmatmul.mubr.msk.bf16.gmra.mrb[156].mxu1 %vm470_vm1, %v6907_v11  ;;  %v7223_v11 = vmul.f32 %v18978_v23, %v17526_v10 }
 0x4a4   : > { %14091 = vmatprep.mubr.msk.bf16.mxu1 %vm470_vm1, %v7014_v7  ;;  %v7220_v7 = vmul.f32 %v18979_v32, %v17500_v34  ;;  %v7544_v34 = vmul.f32 %v18980_v42, %v17526_v10 }
 0x4a5   : > { %v7228_v6 = vpack.c.bf16 %v7223_v11, %v7222_v2  ;;  %v7539_v11 = vld [vmem:[#allocation2 + $0x16c] sm:$0xff] }
 0x4a6   : > { %v7227_v19 = vpack.c.bf16 %v7221_v27, %v7220_v7  ;;  %v7542_v27 = vmul.f32 %v18979_v32, %v17510_v33  ;;  %v7546_v7 = vmul.f32 %v18982_v25, %v7217_v38  ;;  %v8562_v33 = vld [vmem:[%s468_s18] sm:$0xf] }
 0x4a7   : > { %8564 = vst.msk [vmem:[#allocation2 + $0x191] sm:$0xf] %vm8563_vm5, %v8562_v33  ;;  %v17673_v33 = vld [vmem:[%s18590_s7] sm:$0xff]  }
 0x4ab   : > { %14092 = vmatmul.mubr.msk.bf16.vlgmr.msra.gmra.mrb[152].mxu1 %vm470_vm1, %v7015_v50  ;;  %v7224_v50 = vmul.f32 %v18982_v25, %v17519_v26 }
 0x4ac   : > { %14095 = vmatprep.mubr.msk.bf16.mxu1 %vm470_vm1, %v7016_v48  ;;  %14100 = vmatpush3.bf16.msra.mxu1 %v7135_v56  ;;  %v7225_v56 = vmul.f32 %v18981_v20, %v7217_v38  ;;  %v7329_v48 = vmul.f32 %v18968_v1, %v17461_v59  ;;  %v7332_v59 = vmul.f32 %v18972_v44, %v17490_v35  ;;  %v7567_v35 = vsel %vm4885_vm13, %v12804_v5, 0 }
 0x4ad   : > { %15119 = vmatprep.subr.msk.bf16.mxu1 %vm4885_vm13, %v12789_v63  ;;  %v7328_v63 = vmul.f32 %v18967_v13, %v17468_v15  ;;  %v7457_v15 = vsel %vm4885_vm13, %v12799_v17, 0 }
 0x4ae   : > { %v7229_v0 = vpack.c.bf16 %v7225_v56, %v7224_v50 }
 0x4af   : > { %v7336_v16 = vpack.c.bf16 %v7329_v48, %v7328_v63 }
 0x4b3   : > { %14096 = vmatmul.mubr.msk.bf16.gmra.mrb[156].mxu1 %vm470_vm1, %v7017_v21  ;;  %v7331_v21 = vmul.f32 %v18969_v29, %v17465_v47  ;;  %v7334_v47 = vmul.f32 %v18975_v52, %v7005_v37  ;;  %v7437_v37 = vld [vmem:[#allocation2 + $0x16b] sm:$0xff] }
 0x4b4   : > { %14101 = vmatprep.mubr.msk.bf16.mxu1 %vm470_vm1, %v7116_v39  ;;  %v7333_v39 = vmul.f32 %v18970_v53, %v17481_v61 }
 0x4bb   : > { %14102 = vmatmul.mubr.msk.bf16.vlgmr.msra.gmra.mrb[152].mxu1 %vm470_vm1, %v7117_v31  ;;  %v7330_v31 = vmul.f32 %v18971_v18, %v17472_v41 }
 0x4bc   : > { %14105 = vmatprep.mubr.msk.bf16.mxu1 %vm470_vm1, %v7118_v62  ;;  %14110 = vmatpush3.bf16.msra.mxu1 %v7245_v40  ;;  %v7338_v62 = vpack.c.bf16 %v7333_v39, %v7332_v59 }
 0x4bd   : > { %15120 = vmatprep.subr.msk.bf16.mxu1 %vm4885_vm13, %v12794_v45  ;;  %v7337_v40 = vpack.c.bf16 %v7331_v21, %v7330_v31  ;;  %v7327_v45 = vld [vmem:[#allocation2 + $0x16a] sm:$0xff] }
 0x4be   : > { %v7335_v41 = vmul.f32 %v18973_v54, %v7327_v45 }
 0x4c0   : > { %v7339_v61 = vpack.c.bf16 %v7335_v41, %v7334_v47 }
 0x4c3   : > { %14106 = vmatmul.mubr.msk.bf16.gmra.mrb[156].mxu1 %vm470_vm1, %v7119_v57  ;;  %v7540_v57 = vmul.f32 %v18976_v22, %v17506_v51 }
 0x4c4   : > { %14111 = vmatprep.mubr.msk.bf16.mxu1 %vm470_vm1, %v7226_v43  ;;  %v7441_v43 = vpack.c.bf16 %v7437_v37, %v7115_v9 }
 0x4cb   : > { %14112 = vmatmul.mubr.msk.bf16.vlgmr.msra.gmra.mrb[152].mxu1 %vm470_vm1, %v7227_v19 }
 0x4cc   : > { %14115 = vmatprep.mubr.msk.bf16.mxu1 %vm470_vm1, %v7228_v6  ;;  %14120 = vmatpush3.bf16.msra.mxu1 %v7355_v3 }
 0x4cd   : > { %15121 = vmatprep.subr.msk.bf16.mxu1 %vm4885_vm13, %v12799_v17 }
 0x4d3   : > { %14116 = vmatmul.mubr.msk.bf16.gmra.mrb[156].mxu1 %vm470_vm1, %v7229_v0 }
 0x4d4   : > { %14121 = vmatprep.mubr.msk.bf16.mxu1 %vm470_vm1, %v7336_v16 }
 0x4db   : > { %14122 = vmatmul.mubr.msk.bf16.vlgmr.msra.gmra.mrb[152].mxu1 %vm470_vm1, %v7337_v40 }
 0x4dc   : > { %14125 = vmatprep.mubr.msk.bf16.mxu1 %vm470_vm1, %v7338_v62  ;;  %14130 = vmatpush3.bf16.msra.mxu1 %v7457_v15 }
 0x4dd   : > { %15122 = vmatprep.subr.msk.bf16.mxu1 %vm4885_vm13, %v12804_v5 }
 0x4e3   : > { %14126 = vmatmul.mubr.msk.bf16.gmra.mrb[156].mxu1 %vm470_vm1, %v7339_v61 }
 0x4e4   : > { %14131 = vmatprep.mubr.msk.bf16.mxu1 %vm470_vm1, %v17425_v14  ;;  %v7548_v14 = vpack.c.bf16 %v7541_v28, %v7540_v57 }
 0x4eb   : > { %14132 = vmatmul.mubr.msk.bf16.vlgmr.msra.gmra.mrb[152].mxu1 %vm470_vm1, %v17442_v55  ;;  %v7543_v55 = vmul.f32 %v18977_v30, %v17503_v12  ;;  %v7547_v12 = vmul.f32 %v18981_v20, %v7539_v11 }
 0x4ec   : > { %14135 = vmatprep.mubr.msk.bf16.mxu1 %vm470_vm1, %v17459_v8  ;;  %14140 = vmatpush3.bf16.msra.mxu1 %v7567_v35  ;;  %v7545_v8 = vmul.f32 %v18978_v23, %v17519_v26  ;;  %v12810_v26 = vld [vmem:[%s18589_s6 + $0x3] ss:$0 sm:$0xff] }
 0x4ed   : > { %14149 = vmatprep.subr.bf16.mxu1 %v18785_v49  ;;  %v7549_v51 = vpack.c.bf16 %v7543_v55, %v7542_v27  ;;  %v7551_v2 = vpack.c.bf16 %v7547_v12, %v7546_v7 }
 0x4ee   : > { %v7550_v9 = vpack.c.bf16 %v7545_v8, %v7544_v34 }
 0x4f3   : > { %14136 = vmatmul.mubr.msk.bf16.gmra.mrb[156].mxu1 %vm470_vm1, %v7441_v43 }
 0x4f4   : > { %14141 = vmatprep.mubr.msk.bf16.mxu1 %vm470_vm1, %v7548_v14 }
 0x4fb   : > { %14142 = vmatmul.mubr.msk.bf16.vlgmr.msra.gmra.mrb[152].mxu1 %vm470_vm1, %v7549_v51 }
 0x4fc   : > { %14145 = vmatprep.mubr.msk.bf16.mxu1 %vm470_vm1, %v7550_v9 }
 0x503   : > { %14146 = vmatmul.mubr.msk.bf16.gmra.mrb[156].mxu1 %vm470_vm1, %v7551_v2 }
 0x504   : > { %14151 = vmatprep.mubr.msk.bf16.mxu1 %vm15245_vm12, %v18785_v49 }
 0x5ce   : > { %v14143_v10 = vpop.f32.mrb[152].mxu1 }
 0x5cf   : > { %v7652_v19 = vadd.f32 %v14143_v10, %v12810_v26  ;;  %v7603_v3 = vpop.f32.mrb[153].mxu1 }
 0x5d0   : > { %v7650_v6 = vadd.f32 %v12810_v26, %v7603_v3  ;;  %v14144_v38 = vpop.f32.mrb[154].mxu1 }
 0x5d1   : > { %v7660_v17 = vmax.f32 %v7652_v19, 0.0  ;;  %v7653_v50 = vadd.f32 %v14144_v38, %v12810_v26  ;;  %v7606_v56 = vpop.f32.mrb[155].mxu1 }
 0x5d2   : > { %v7658_v48 = vmax.f32 %v7650_v6, 0.0  ;;  %v7651_v63 = vadd.f32 %v12810_v26, %v7606_v56 }
 0x5d3   : > { %7668 = vst.msk [vmem:[#allocation2 + $0x13b] sm:$0xff] %vm470_vm1, %v7660_v17  ;;  %v7661_v0 = vmax.f32 %v7653_v50, 0.0 }
 0x5d4   : > { %7666 = vst.msk [vmem:[#allocation2 + $0x12b] sm:$0xff] %vm470_vm1, %v7658_v48  ;;  %v7659_v16 = vmax.f32 %v7651_v63, 0.0 }
 0x5d5   : > { %7669 = vst.msk [vmem:[#allocation2 + $0x143] sm:$0xff] %vm470_vm1, %v7661_v0 }
 0x5d6   : > { %7667 = vst.msk [vmem:[#allocation2 + $0x133] sm:$0xff] %vm470_vm1, %v7659_v16  ;;  %v14147_v21 = vpop.f32.mrb[156].mxu1 }
 0x5d7   : > { %v7656_v39 = vadd.f32 %v14147_v21, %v12810_v26  ;;  %v7619_v31 = vpop.f32.mrb[157].mxu1 }
 0x5d8   : > { %v7654_v59 = vadd.f32 %v12810_v26, %v7619_v31  ;;  %v14148_v40 = vpop.f32.mrb[158].mxu1 }
 0x5d9   : > { %v7664_v15 = vmax.f32 %v7656_v39, 0.0  ;;  %v7657_v62 = vadd.f32 %v14148_v40, %v12810_v26  ;;  %v7622_v45 = vpop.f32.mrb[159].mxu1 }
 0x5da   : > { %v7662_v5 = vmax.f32 %v7654_v59, 0.0  ;;  %v7655_v47 = vadd.f32 %v12810_v26, %v7622_v45  ;;  %v7839_v41 = vld [vmem:[#allocation2 + $0x13b] sm:$0xff] }
 0x5db   : > { %7672 = vst.msk [vmem:[#allocation2 + $0x15b] sm:$0xff] %vm470_vm1, %v7664_v15  ;;  %v7665_v61 = vmax.f32 %v7657_v62, 0.0  ;;  %v7674_v35 = vld [vmem:[#allocation2 + $0x12b] sm:$0xff]  ;;  %v7841_v14 = vmul.f32 0.25, %v7839_v41  ;;  %v7952_v55 = vmul.f32 0.75, %v7839_v41 }
 0x5dc   : > { %7670 = vst.msk [vmem:[#allocation2 + $0x14b] sm:$0xff] %vm470_vm1, %v7662_v5  ;;  %v7663_v37 = vmax.f32 %v7655_v47, 0.0  ;;  %v7675_v28 = vpack.c.bf16 %v7674_v35, %v7674_v35  ;;  %v7951_v57 = vld [vmem:[#allocation2 + $0x143] sm:$0xff]  ;;  %v7728_v34 = vmul.f32 0.75, %v7674_v35  ;;  %v7784_v2 = vmul.f32 0.25, %v7674_v35 }
 0x5dd   : > { %7673 = vst.msk [vmem:[#allocation2 + $0x163] sm:$0xff] %vm470_vm1, %v7665_v61  ;;  %v7727_v43 = vld [vmem:[#allocation2 + $0x133] sm:$0xff]  ;;  %v17664_v8 = vmul.f32 0.25, %v7951_v57  ;;  %v8064_v48 = vmul.f32 0.75, %v7951_v57 }
 0x5de   : > { %7671 = vst.msk [vmem:[#allocation2 + $0x153] sm:$0xff] %vm470_vm1, %v7663_v37  ;;  %v7677_v27 = vsel %vm4885_vm13, %v7675_v28, 0  ;;  %v7729_v51 = vmul.f32 0.25, %v7727_v43  ;;  %v7840_v9 = vmul.f32 0.75, %v7727_v43 }
 0x5df   : > { %14150 = vmatpush3.bf16.msra.mxu1 %v7677_v27  ;;  %v7954_v12 = vadd.f32 %v17664_v8, %v7952_v55  ;;  %v8010_v47 = vadd.f32 %v8064_v48, %v7841_v14 }
 0x5e0   : > { %14155 = vmatprep.subr.bf16.mxu1 %v18785_v49  ;;  %v7730_v11 = vadd.f32 %v7729_v51, %v7728_v34  ;;  %v7842_v7 = vadd.f32 %v7841_v14, %v7840_v9  ;;  %v7786_v19 = vadd.f32 %v7840_v9, %v7784_v2  ;;  %v7898_v39 = vadd.f32 %v7952_v55, %v7729_v51 }
 0x5e1   : > { %v7955_v17 = vpack.c.bf16 %v7954_v12, %v7954_v12  ;;  %v8011_v37 = vpack.c.bf16 %v8010_v47, %v8010_v47  ;;  %v8673_v47 = vld [vmem:[#allocation2 + $0x190] sm:$0xf] }
 0x5e2   : > { %14152 = vmatmul.mubr.msk.bf16.vlgmr.msra.gmra.mrb[160].mxu1 %vm470_vm1, %v17673_v33  ;;  %v7731_v26 = vpack.c.bf16 %v7730_v11, %v7730_v11  ;;  %v7843_v10 = vpack.c.bf16 %v7842_v7, %v7842_v7  ;;  %v7787_v56 = vpack.c.bf16 %v7786_v19, %v7786_v19  ;;  %v7899_v40 = vpack.c.bf16 %v7898_v39, %v7898_v39  ;;  %v8287_v41 = vld [vmem:[#allocation2 + $0x15b] sm:$0xff] }
 0x5e3   : > { %14157 = vmatprep.mubr.msk.bf16.mxu1 %vm15245_vm12, %v18785_v49  ;;  %v8063_v3 = vld [vmem:[#allocation2 + $0x14b] sm:$0xff]  ;;  %v7957_v63 = vsel %vm4885_vm13, %v7955_v17, 0  ;;  %v8289_v28 = vmul.f32 0.25, %v8287_v41  ;;  %v8013_v55 = vsel %vm4885_vm13, %v8011_v37, 0  ;;  %v8400_v11 = vmul.f32 0.75, %v8287_v41 }
 0x5e4   : > { %v7733_v6 = vsel %vm4885_vm13, %v7731_v26, 0  ;;  %v7845_v38 = vsel %vm4885_vm13, %v7843_v10, 0  ;;  %v17681_v50 = vmul.f32 0.25, %v8063_v3  ;;  %v7789_v21 = vsel %vm4885_vm13, %v7787_v56, 0  ;;  %v8399_v14 = vld [vmem:[#allocation2 + $0x163] sm:$0xff] }
 0x5e5   : > { %14156 = vmatpush3.bf16.msra.mxu1 %v7733_v6  ;;  %14168 = vmatpush3.bf16.msra.mxu0 %v7845_v38  ;;  %v8175_v16 = vld [vmem:[#allocation2 + $0x153] sm:$0xff]  ;;  %v8176_v15 = vmul.f32 0.75, %v8063_v3  ;;  %v7901_v5 = vsel %vm4885_vm13, %v7899_v40, 0  ;;  %v8401_v51 = vmul.f32 0.25, %v8399_v14  ;;  %v8511_v38 = vpack.c.bf16 %v8399_v14, %v8399_v14  ;;  %v12839_v37 = vld [vmem:[%s18587_s4 + $0x40] sm:$0x3] }
 0x5e6   : > { %14179 = vmatprep.subr.bf16.mxu0 %v18785_v49  ;;  %14161 = vmatprep.subr.bf16.mxu1 %v18785_v49  ;;  %v8066_v0 = vadd.f32 %v17681_v50, %v8064_v48  ;;  %v8177_v59 = vmul.f32 0.25, %v8175_v16  ;;  %v8288_v35 = vmul.f32 0.75, %v8175_v16  ;;  %v8565_v56 = vand.u32 1, %v18957_v4  ;;  %v12829_v4 = vld [vmem:[%s18587_s4 + $0x36] sm:$0x3] }
 0x5e7   : > { %v8122_v27 = vadd.f32 %v8176_v15, %v17664_v8  ;;  %v8402_v12 = vadd.f32 %v8401_v51, %v8400_v11  ;;  %v8513_v48 = vsel %vm4885_vm13, %v8511_v38, 0 }
 0x5e8   : > { %14170 = vmatmul.mubr.msk.bf16.vlgmr.msra.gmra.mrb[32].mxu0 %vm470_vm1, %v17673_v33  ;;  %v8067_v31 = vpack.c.bf16 %v8066_v0, %v8066_v0  ;;  %v8178_v45 = vadd.f32 %v8177_v59, %v8176_v15  ;;  %v8290_v43 = vadd.f32 %v8289_v28, %v8288_v35  ;;  %v8234_v2 = vadd.f32 %v8288_v35, %v17681_v50  ;;  %v12835_v15 = vld [vmem:[%s18587_s4 + $0x3c] sm:$0x3]  ;;  %v8577_v35 = vld [vmem:[#allocation2 + $0x18f] sm:$0xf] }
 0x5e9   : > { %14180 = vmatpush3.bf16.msra.mxu0 %v7957_v63  ;;  %14181 = vmatprep.mubr.msk.bf16.mxu0 %vm15245_vm12, %v18785_v49  ;;  %v8123_v9 = vpack.c.bf16 %v8122_v27, %v8122_v27  ;;  %v8403_v26 = vpack.c.bf16 %v8402_v12, %v8402_v12  ;;  %v8346_v6 = vadd.f32 %v8400_v11, %v8177_v59  ;;  %v8457_v50 = vmul.f32 0.75, %v8399_v14 }
 0x5ea   : > { %14158 = vmatmul.mubr.msk.bf16.vlgmr.msra.gmra.mrb[164].mxu1 %vm470_vm1, %v17673_v33  ;;  %14191 = vmatprep.subr.bf16.mxu0 %v18785_v49  ;;  %v8069_v62 = vsel %vm4885_vm13, %v8067_v31, 0  ;;  %v8179_v61 = vpack.c.bf16 %v8178_v45, %v8178_v45  ;;  %v8291_v34 = vpack.c.bf16 %v8290_v43, %v8290_v43  ;;  %v8235_v10 = vpack.c.bf16 %v8234_v2, %v8234_v2  ;;  %v12830_v45 = vld [vmem:[%s18587_s4 + $0x38] sm:$0x3] }
 0x5eb   : > { %14162 = vmatpush3.bf16.msra.mxu1 %v7789_v21  ;;  %14163 = vmatprep.mubr.msk.bf16.mxu1 %vm15245_vm12, %v18785_v49  ;;  %v8125_v8 = vsel %vm4885_vm13, %v8123_v9, 0  ;;  %v8405_v19 = vsel %vm4885_vm13, %v8403_v26, 0  ;;  %v8347_v17 = vpack.c.bf16 %v8346_v6, %v8346_v6  ;;  %v8458_v0 = vadd.f32 %v8457_v50, %v8289_v28  ;;  %v8572_v21 = vld [vmem:[#allocation2 + $0x18e] sm:$0xf]  ;;  %v12843_v9 = vld [vmem:[%s18587_s4 + $0x44] sm:$0x3] }
 0x5ec   : > { %14173 = vmatprep.subr.bf16.mxu1 %v18785_v49  ;;  %v8181_v57 = vsel %vm4885_vm13, %v8179_v61, 0  ;;  %v8293_v7 = vsel %vm4885_vm13, %v8291_v34, 0  ;;  %v8237_v3 = vsel %vm4885_vm13, %v8235_v10, 0  ;;  %vm8566_vm6 = vcmp.gt.s32.totalorder %v8565_v56, 0  ;;  %v8930_v26 = vld [vmem:[#allocation2 + $0x193] sm:$0xf] }
 0x5ed   : > { %v8349_v63 = vsel %vm4885_vm13, %v8347_v17, 0  ;;  %v17765_v16 = vsel %vm8566_vm6, 1.0, %v18785_v49  ;;  %v8459_v39 = vpack.c.bf16 %v8458_v0, %v8458_v0  ;;  %v8631_v31 = vsel %vm1059_vm0, %v12829_v4, 0  ;;  %v8776_v10 = vld [vmem:[#allocation2 + $0x191] sm:$0xf] }
 0x5ee   : > { %v8573_v59 = vmul.f32 %v17765_v16, %v8572_v21  ;;  %v8585_v41 = vsel %vm1059_vm0, %v12830_v45, 0  ;;  %v8725_v61 = vmul.f32 %v17765_v16, %v8673_v47  ;;  %vm8569_vm7 = vcmp.lt.s32.totalorder %v8565_v56, 1  ;;  %v12845_v50 = vld [vmem:[%s18587_s4 + $0x46] sm:$0x3]  ;;  %v7720_v21 = vld [vmem:[#allocation3] sm:$0xff] }
 0x5ef   : > { %v8461_v40 = vsel %vm4885_vm13, %v8459_v39, 0  ;;  %v8578_v43 = vpack.c.bf16 %v8577_v35, %v8577_v35  ;;  %v8836_v14 = vsel %vm1059_vm0, %v12839_v37, 0  ;;  %v8777_v6 = vpack.c.bf16 %v8776_v10, %v8776_v10  ;;  %v7776_v35 = vld [vmem:[#allocation3 + $0x10] sm:$0xff]  ;;  %v8001_v10 = vld [vmem:[#allocation3 + $0x58] sm:$0xff] }
 0x5f0   : > { %14182 = vmatmul.mubr.msk.bf16.vlgmr.msra.gmra.mrb[36].mxu0 %vm470_vm1, %v17673_v33  ;;  %v8726_v28 = vpack.c.bf16 %v8725_v61, %v8725_v61 }
 0x5f1   : > { %14192 = vmatpush3.bf16.msra.mxu0 %v8069_v62  ;;  %14193 = vmatprep.mubr.msk.bf16.mxu0 %vm15245_vm12, %v18785_v49  ;;  %v8574_v62 = vpack.c.bf16 %v8573_v59, %v8573_v59 }
 0x5f2   : > { %14164 = vmatmul.mubr.msk.bf16.vlgmr.msra.gmra.mrb[168].mxu1 %vm470_vm1, %v17673_v33  ;;  %14203 = vmatprep.subr.bf16.mxu0 %v18785_v49 }
 0x5f3   : > { %14174 = vmatpush3.bf16.msra.mxu1 %v7901_v5  ;;  %14175 = vmatprep.mubr.msk.bf16.mxu1 %vm15245_vm12, %v18785_v49  ;;  %v8733_v5 = vsel %vm1059_vm0, %v12835_v15, 0 }
 0x5f4   : > { %14185 = vmatprep.subr.bf16.mxu1 %v18785_v49 }
 0x5f8   : > { %14194 = vmatmul.mubr.msk.bf16.vlgmr.msra.gmra.mrb[40].mxu0 %vm470_vm1, %v17673_v33 }
 0x5f9   : > { %14204 = vmatpush3.bf16.msra.mxu0 %v8181_v57  ;;  %14205 = vmatprep.mubr.msk.bf16.mxu0 %vm15245_vm12, %v18785_v49  ;;  %v12833_v57 = vld [vmem:[%s18587_s4 + $0x3a] sm:$0x3] }
 0x5fa   : > { %14176 = vmatmul.mubr.msk.bf16.vlgmr.msra.gmra.mrb[172].mxu1 %vm470_vm1, %v17673_v33  ;;  %14215 = vmatprep.subr.bf16.mxu0 %v18785_v49  ;;  %v8682_v27 = vsel %vm1059_vm0, %v12833_v57, 0 }
 0x5fb   : > { %14186 = vmatpush3.bf16.msra.mxu1 %v8013_v55  ;;  %14187 = vmatprep.mubr.msk.bf16.mxu1 %vm15245_vm12, %v18785_v49  ;;  %v12828_v55 = vsel %vm8569_vm7, 1.0, %v18785_v49 }
 0x5fc   : > { %14197 = vmatprep.subr.bf16.mxu1 %v18785_v49  ;;  %v8674_v51 = vmul.f32 %v12828_v55, %v8673_v47 }
 0x5fe   : > { %v8675_v12 = vpack.c.bf16 %v8674_v51, %v8674_v51 }
 0x600   : > { %14206 = vmatmul.mubr.msk.bf16.vlgmr.msra.gmra.mrb[44].mxu0 %vm470_vm1, %v17673_v33 }
 0x601   : > { %14216 = vmatpush3.bf16.msra.mxu0 %v8293_v7  ;;  %14217 = vmatprep.mubr.msk.bf16.mxu0 %vm15245_vm12, %v18785_v49  ;;  %v12837_v7 = vld [vmem:[%s18587_s4 + $0x3e] sm:$0x3] }
 0x602   : > { %14188 = vmatmul.mubr.msk.bf16.vlgmr.msra.gmra.mrb[176].mxu1 %vm470_vm1, %v17673_v33  ;;  %14227 = vmatprep.subr.bf16.mxu0 %v18785_v49  ;;  %v8784_v2 = vsel %vm1059_vm0, %v12837_v7, 0 }
 0x603   : > { %14198 = vmatpush3.bf16.msra.mxu1 %v8125_v8  ;;  %14199 = vmatprep.mubr.msk.bf16.mxu1 %vm15245_vm12, %v18785_v49  ;;  %v8938_v8 = vsel %vm1059_vm0, %v12843_v9, 0 }
 0x604   : > { %14209 = vmatprep.subr.bf16.mxu1 %v18785_v49 }
 0x608   : > { %14218 = vmatmul.mubr.msk.bf16.vlgmr.msra.gmra.mrb[48].mxu0 %vm470_vm1, %v17673_v33 }
 0x609   : > { %14228 = vmatpush3.bf16.msra.mxu0 %v8405_v19  ;;  %14229 = vmatprep.mubr.msk.bf16.mxu0 %vm15245_vm12, %v18785_v49  ;;  %v8931_v19 = vpack.c.bf16 %v8930_v26, %v8930_v26 }
 0x60a   : > { %14200 = vmatmul.mubr.msk.bf16.vlgmr.msra.gmra.mrb[180].mxu1 %vm470_vm1, %v17673_v33  ;;  %14239 = vmatprep.subr.bf16.mxu0 %v18785_v49 }
 0x60b   : > { %14210 = vmatpush3.bf16.msra.mxu1 %v8237_v3  ;;  %14211 = vmatprep.mubr.msk.bf16.mxu1 %vm15245_vm12, %v18785_v49  ;;  %v12841_v3 = vld [vmem:[%s18587_s4 + $0x42] sm:$0x3] }
 0x60c   : > { %14221 = vmatprep.subr.bf16.mxu1 %v18785_v49  ;;  %v8887_v38 = vsel %vm1059_vm0, %v12841_v3, 0 }
 0x610   : > { %14230 = vmatmul.mubr.msk.bf16.vlgmr.msra.gmra.mrb[52].mxu0 %vm470_vm1, %v17673_v33 }
 0x611   : > { %14240 = vmatpush3.bf16.msra.mxu0 %v8513_v48  ;;  %14241 = vmatprep.mubr.msk.bf16.mxu0 %vm15245_vm12, %v18785_v49  ;;  %v8981_v48 = vld [vmem:[#allocation2 + $0x194] sm:$0xf] }
 0x612   : > { %14212 = vmatmul.mubr.msk.bf16.vlgmr.msra.gmra.mrb[184].mxu1 %vm470_vm1, %v17673_v33  ;;  %14251 = vmatprep.subr.bf16.mxu0 %v18785_v49  ;;  %v8982_v0 = vmul.f32 %v12828_v55, %v8981_v48 }
 0x613   : > { %14222 = vmatpush3.bf16.msra.mxu1 %v8349_v63  ;;  %14223 = vmatprep.mubr.msk.bf16.mxu1 %vm15245_vm12, %v18785_v49  ;;  %v8990_v63 = vsel %vm1059_vm0, %v12845_v50, 0  ;;  %v7833_v50 = vld [vmem:[#allocation3 + $0x28] sm:$0xff] }
 0x614   : > { %14233 = vmatprep.subr.bf16.mxu1 %v18785_v49  ;;  %v8983_v4 = vpack.c.bf16 %v8982_v0, %v8982_v0  ;;  %v8112_v0 = vld [vmem:[#allocation3 + $0x70] sm:$0xff] }
 0x618   : > { %14242 = vmatmul.mubr.msk.bf16.vlgmr.msra.gmra.mrb[56].mxu0 %vm470_vm1, %v17673_v33 }
 0x619   : > { %14252 = vmatpush3.bf16.msra.mxu0 %v8631_v31  ;;  %14253 = vmatprep.mubr.msk.bf16.mxu0 %vm15245_vm12, %v18785_v49 }
 0x61a   : > { %14224 = vmatmul.mubr.msk.bf16.vlgmr.msra.gmra.mrb[188].mxu1 %vm470_vm1, %v17673_v33  ;;  %14263 = vmatprep.subr.bf16.mxu0 %v18785_v49 }
 0x61b   : > { %14234 = vmatpush3.bf16.msra.mxu1 %v8461_v40  ;;  %14235 = vmatprep.mubr.msk.bf16.mxu1 %vm15245_vm12, %v18785_v49  ;;  %v7721_v40 = vld [vmem:[#allocation3 + $0x8] sm:$0xff] }
 0x61c   : > { %14245 = vmatprep.subr.bf16.mxu1 %v18785_v49 }
 0x620   : > { %14254 = vmatmul.mubr.msk.bf16.vlgmr.msra.gmra.mrb[60].mxu0 %vm590_vm2, %v8574_v62 }
 0x621   : > { %14264 = vmatpush3.bf16.msra.mxu0 %v8733_v5  ;;  %14265 = vmatprep.mubr.msk.bf16.mxu0 %vm15245_vm12, %v18785_v49  ;;  %v7888_v5 = vld [vmem:[#allocation3 + $0x30] sm:$0xff] }
 0x622   : > { %14236 = vmatmul.mubr.msk.bf16.vlgmr.msra.gmra.mrb[192].mxu1 %vm470_vm1, %v17673_v33  ;;  %14275 = vmatprep.subr.bf16.mxu0 %v18785_v49  ;;  %v8827_v33 = vld [vmem:[#allocation2 + $0x192] sm:$0xf] }
 0x623   : > { %14246 = vmatpush3.bf16.msra.mxu1 %v8585_v41  ;;  %14247 = vmatprep.mubr.msk.bf16.mxu1 %vm15245_vm12, %v18785_v49  ;;  %v8828_v34 = vmul.f32 %v12828_v55, %v8827_v33  ;;  %v8879_v17 = vmul.f32 %v17765_v16, %v8827_v33 }
 0x624   : > { %14257 = vmatprep.subr.bf16.mxu1 %v18785_v49 }
 0x625   : > { %v8829_v11 = vpack.c.bf16 %v8828_v34, %v8828_v34  ;;  %v8880_v56 = vpack.c.bf16 %v8879_v17, %v8879_v17 }
 0x628   : > { %14266 = vmatmul.mubr.msk.bf16.vlgmr.msra.gmra.mrb[64].mxu0 %vm590_vm2, %v8726_v28  ;;  %v7889_v28 = vld [vmem:[#allocation3 + $0x38] sm:$0xff] }
 0x629   : > { %14276 = vmatpush3.bf16.msra.mxu0 %v8836_v14  ;;  %14277 = vmatprep.mubr.msk.bf16.mxu0 %vm15245_vm12, %v18785_v49 }
 0x62a   : > { %14248 = vmatmul.mubr.msk.bf16.vlgmr.msra.gmra.mrb[196].mxu1 %vm590_vm2, %v8578_v43  ;;  %14287 = vmatprep.subr.bf16.mxu0 %v18785_v49 }
 0x62b   : > { %14258 = vmatpush3.bf16.msra.mxu1 %v8682_v27  ;;  %14259 = vmatprep.mubr.msk.bf16.mxu1 %vm15245_vm12, %v18785_v49  ;;  %v7777_v27 = vld [vmem:[#allocation3 + $0x18] sm:$0xff] }
 0x62c   : > { %14269 = vmatprep.subr.bf16.mxu1 %v18785_v49 }
 0x630   : > { %14278 = vmatmul.mubr.msk.bf16.vlgmr.msra.gmra.mrb[68].mxu0 %vm590_vm2, %v8829_v11  ;;  %v8000_v11 = vld [vmem:[#allocation3 + $0x50] sm:$0xff] }
 0x631   : > { %14288 = vmatpush3.bf16.msra.mxu0 %v8938_v8  ;;  %14289 = vmatprep.mubr.msk.bf16.mxu0 %vm15245_vm12, %v18785_v49 }
 0x632   : > { %14260 = vmatmul.mubr.msk.bf16.vlgmr.msra.gmra.mrb[200].mxu1 %vm590_vm2, %v8675_v12  ;;  %14299 = vmatprep.subr.bf16.mxu0 %v18785_v49 }
 0x633   : > { %14270 = vmatpush3.bf16.msra.mxu1 %v8784_v2  ;;  %14271 = vmatprep.mubr.msk.bf16.mxu1 %vm15245_vm12, %v18785_v49  ;;  %v7832_v2 = vld [vmem:[#allocation3 + $0x20] sm:$0xff] }
 0x634   : > { %14281 = vmatprep.subr.bf16.mxu1 %v18785_v49 }
 0x638   : > { %14290 = vmatmul.mubr.msk.bf16.vlgmr.msra.gmra.mrb[72].mxu0 %vm590_vm2, %v8931_v19 }
 0x639   : > { %14301 = vmatprep.mubr.msk.bf16.mxu0 %vm15245_vm12, %v18785_v49 }
 0x63a   : > { %14272 = vmatmul.mubr.msk.bf16.vlgmr.msra.gmra.mrb[204].mxu1 %vm590_vm2, %v8777_v6 }
 0x63b   : > { %14282 = vmatpush3.bf16.msra.mxu1 %v8887_v38  ;;  %14283 = vmatprep.mubr.msk.bf16.mxu1 %vm15245_vm12, %v18785_v49 }
 0x63c   : > { %14293 = vmatprep.subr.bf16.mxu1 %v18785_v49 }
 0x642   : > { %14284 = vmatmul.mubr.msk.bf16.vlgmr.msra.gmra.mrb[208].mxu1 %vm590_vm2, %v8880_v56 }
 0x643   : > { %14294 = vmatpush3.bf16.msra.mxu1 %v8990_v63  ;;  %14295 = vmatprep.mubr.msk.bf16.mxu1 %vm15245_vm12, %v18785_v49 }
 0x644   : > { %14305 = vmatprep.subr.bf16.mxu1 %v18785_v49 }
 0x64a   : > { %14296 = vmatmul.mubr.msk.bf16.vlgmr.msra.gmra.mrb[212].mxu1 %vm590_vm2, %v8983_v4 }
 0x64b   : > { %14307 = vmatprep.mubr.msk.bf16.mxu1 %vm15245_vm12, %v18785_v49 }
 0x6b5   : > { %v7713_v16 = vpop.f32.mrb[160].mxu1 }
 0x6b6   : > { %v7722_v39 = vadd.f32 %v7720_v21, %v7713_v16  ;;  %v14153_v31 = vpop.f32.mrb[161].mxu1 }
 0x6b7   : > { %v7716_v59 = vpop.f32.mrb[162].mxu1 }
 0x6b8   : > { %7724 = vst.msk [vmem:[#allocation3] sm:$0xff] %vm470_vm1, %v7722_v39  ;;  %v7723_v15 = vadd.f32 %v7721_v40, %v7716_v59  ;;  %v14154_v62 = vpop.f32.mrb[163].mxu1  ;;  %v7944_v39 = vld [vmem:[#allocation3 + $0x40] sm:$0xff]  ;;  %v8113_v59 = vld [vmem:[#allocation3 + $0x78] sm:$0xff] }
 0x6ba   : > { %7725 = vst.msk [vmem:[#allocation3 + $0x8] sm:$0xff] %vm470_vm1, %v7723_v15 }
 0x6bb   : > { %v7881_v45 = vpop.f32.mrb[32].mxu0 }
 0x6bc   : > { %v7890_v47 = vadd.f32 %v7888_v5, %v7881_v45  ;;  %v14171_v41 = vpop.f32.mrb[33].mxu0 }
 0x6bd   : > { %v7769_v61 = vpop.f32.mrb[164].mxu1  ;;  %v7884_v37 = vpop.f32.mrb[34].mxu0 }
 0x6be   : > { %7892 = vst.msk [vmem:[#allocation3 + $0x30] sm:$0xff] %vm470_vm1, %v7890_v47  ;;  %v7778_v57 = vadd.f32 %v7776_v35, %v7769_v61  ;;  %v7891_v33 = vadd.f32 %v7889_v28, %v7884_v37  ;;  %v14159_v43 = vpop.f32.mrb[165].mxu1  ;;  %v14172_v14 = vpop.f32.mrb[35].mxu0  ;;  %v7945_v47 = vld [vmem:[#allocation3 + $0x48] sm:$0xff]  ;;  %v8224_v37 = vld [vmem:[#allocation3 + $0x90] sm:$0xff] }
 0x6bf   : > { %v7772_v55 = vpop.f32.mrb[166].mxu1  ;;  %v8056_v43 = vld [vmem:[#allocation3 + $0x60] sm:$0xff] }
 0x6c0   : > { %7780 = vst.msk [vmem:[#allocation3 + $0x10] sm:$0xff] %vm470_vm1, %v7778_v57  ;;  %7893 = vst.msk [vmem:[#allocation3 + $0x38] sm:$0xff] %vm470_vm1, %v7891_v33  ;;  %v7779_v34 = vadd.f32 %v7777_v27, %v7772_v55  ;;  %v14160_v51 = vpop.f32.mrb[167].mxu1  ;;  %v8225_v55 = vld [vmem:[#allocation3 + $0x98] sm:$0xff] }
 0x6c2   : > { %7781 = vst.msk [vmem:[#allocation3 + $0x18] sm:$0xff] %vm470_vm1, %v7779_v34 }
 0x6c3   : > { %v7993_v9 = vpop.f32.mrb[36].mxu0 }
 0x6c4   : > { %v8002_v7 = vadd.f32 %v8000_v11, %v7993_v9  ;;  %v14183_v12 = vpop.f32.mrb[37].mxu0 }
 0x6c5   : > { %v7825_v8 = vpop.f32.mrb[168].mxu1  ;;  %v7996_v26 = vpop.f32.mrb[38].mxu0 }
 0x6c6   : > { %8004 = vst.msk [vmem:[#allocation3 + $0x50] sm:$0xff] %vm470_vm1, %v8002_v7  ;;  %v7834_v19 = vadd.f32 %v7832_v2, %v7825_v8  ;;  %v8003_v3 = vadd.f32 %v8001_v10, %v7996_v26  ;;  %v14165_v6 = vpop.f32.mrb[169].mxu1  ;;  %v14184_v38 = vpop.f32.mrb[39].mxu0  ;;  %v8057_v7 = vld [vmem:[#allocation3 + $0x68] sm:$0xff]  ;;  %v8336_v26 = vld [vmem:[#allocation3 + $0xb0] sm:$0xff] }
 0x6c7   : > { %v7828_v17 = vpop.f32.mrb[170].mxu1  ;;  %v8168_v6 = vld [vmem:[#allocation3 + $0x80] sm:$0xff] }
 0x6c8   : > { %7836 = vst.msk [vmem:[#allocation3 + $0x20] sm:$0xff] %vm470_vm1, %v7834_v19  ;;  %8005 = vst.msk [vmem:[#allocation3 + $0x58] sm:$0xff] %vm470_vm1, %v8003_v3  ;;  %v7835_v56 = vadd.f32 %v7833_v50, %v7828_v17  ;;  %v14166_v48 = vpop.f32.mrb[171].mxu1  ;;  %v8337_v17 = vld [vmem:[#allocation3 + $0xb8] sm:$0xff] }
 0x6ca   : > { %7837 = vst.msk [vmem:[#allocation3 + $0x28] sm:$0xff] %vm470_vm1, %v7835_v56 }
 0x6cb   : > { %v8105_v63 = vpop.f32.mrb[40].mxu0 }
 0x6cc   : > { %v8114_v4 = vadd.f32 %v8112_v0, %v8105_v63  ;;  %v14195_v16 = vpop.f32.mrb[41].mxu0 }
 0x6cd   : > { %v7937_v21 = vpop.f32.mrb[172].mxu1  ;;  %v8108_v31 = vpop.f32.mrb[42].mxu0 }
 0x6ce   : > { %8116 = vst.msk [vmem:[#allocation3 + $0x70] sm:$0xff] %vm470_vm1, %v8114_v4  ;;  %v7946_v40 = vadd.f32 %v7944_v39, %v7937_v21  ;;  %v8115_v15 = vadd.f32 %v8113_v59, %v8108_v31  ;;  %v14177_v62 = vpop.f32.mrb[173].mxu1  ;;  %v14196_v45 = vpop.f32.mrb[43].mxu0  ;;  %v8169_v4 = vld [vmem:[#allocation3 + $0x88] sm:$0xff]  ;;  %v8448_v31 = vld [vmem:[#allocation3 + $0xd0] sm:$0xff] }
 0x6cf   : > { %v7940_v5 = vpop.f32.mrb[174].mxu1  ;;  %v8280_v62 = vld [vmem:[#allocation3 + $0xa0] sm:$0xff] }
 0x6d0   : > { %7948 = vst.msk [vmem:[#allocation3 + $0x40] sm:$0xff] %vm470_vm1, %v7946_v40  ;;  %8117 = vst.msk [vmem:[#allocation3 + $0x78] sm:$0xff] %vm470_vm1, %v8115_v15  ;;  %v7947_v41 = vadd.f32 %v7945_v47, %v7940_v5  ;;  %v14178_v61 = vpop.f32.mrb[175].mxu1  ;;  %v8449_v5 = vld [vmem:[#allocation3 + $0xd8] sm:$0xff] }
 0x6d2   : > { %7949 = vst.msk [vmem:[#allocation3 + $0x48] sm:$0xff] %vm470_vm1, %v7947_v41 }
 0x6d3   : > { %v8217_v35 = vpop.f32.mrb[44].mxu0 }
 0x6d4   : > { %v8226_v28 = vadd.f32 %v8224_v37, %v8217_v35  ;;  %v14207_v57 = vpop.f32.mrb[45].mxu0 }
 0x6d5   : > { %v8049_v33 = vpop.f32.mrb[176].mxu1  ;;  %v8220_v14 = vpop.f32.mrb[46].mxu0 }
 0x6d6   : > { %8228 = vst.msk [vmem:[#allocation3 + $0x90] sm:$0xff] %vm470_vm1, %v8226_v28  ;;  %v8058_v27 = vadd.f32 %v8056_v43, %v8049_v33  ;;  %v8227_v34 = vadd.f32 %v8225_v55, %v8220_v14  ;;  %v14189_v51 = vpop.f32.mrb[177].mxu1  ;;  %v14208_v9 = vpop.f32.mrb[47].mxu0  ;;  %v8281_v28 = vld [vmem:[#allocation3 + $0xa8] sm:$0xff]  ;;  %v8556_v14 = vld [vmem:[#allocation3 + $0xf0] sm:$0xff] }
 0x6d7   : > { %v8052_v11 = vpop.f32.mrb[178].mxu1  ;;  %v8392_v51 = vld [vmem:[#allocation3 + $0xc0] sm:$0xff] }
 0x6d8   : > { %8060 = vst.msk [vmem:[#allocation3 + $0x60] sm:$0xff] %vm470_vm1, %v8058_v27  ;;  %8229 = vst.msk [vmem:[#allocation3 + $0x98] sm:$0xff] %vm470_vm1, %v8227_v34  ;;  %v8059_v12 = vadd.f32 %v8057_v7, %v8052_v11  ;;  %v14190_v8 = vpop.f32.mrb[179].mxu1  ;;  %v8557_v11 = vld [vmem:[#allocation3 + $0xf8] sm:$0xff] }
 0x6da   : > { %8061 = vst.msk [vmem:[#allocation3 + $0x68] sm:$0xff] %vm470_vm1, %v8059_v12 }
 0x6db   : > { %v8329_v2 = vpop.f32.mrb[48].mxu0 }
 0x6dc   : > { %v8338_v10 = vadd.f32 %v8336_v26, %v8329_v2  ;;  %v14219_v19 = vpop.f32.mrb[49].mxu0 }
 0x6dd   : > { %v8161_v3 = vpop.f32.mrb[180].mxu1  ;;  %v8332_v38 = vpop.f32.mrb[50].mxu0 }
 0x6de   : > { %8340 = vst.msk [vmem:[#allocation3 + $0xb0] sm:$0xff] %vm470_vm1, %v8338_v10  ;;  %v8170_v50 = vadd.f32 %v8168_v6, %v8161_v3  ;;  %v8339_v56 = vadd.f32 %v8337_v17, %v8332_v38  ;;  %v14201_v48 = vpop.f32.mrb[181].mxu1  ;;  %v14220_v63 = vpop.f32.mrb[51].mxu0  ;;  %v8393_v10 = vld [vmem:[#allocation3 + $0xc8] sm:$0xff] }
 0x6df   : > { %v8164_v0 = vpop.f32.mrb[182].mxu1 }
 0x6e0   : > { %8172 = vst.msk [vmem:[#allocation3 + $0x80] sm:$0xff] %vm470_vm1, %v8170_v50  ;;  %8341 = vst.msk [vmem:[#allocation3 + $0xb8] sm:$0xff] %vm470_vm1, %v8339_v56  ;;  %v8171_v16 = vadd.f32 %v8169_v4, %v8164_v0  ;;  %v14202_v21 = vpop.f32.mrb[183].mxu1  ;;  %v8504_v50 = vld [vmem:[#allocation3 + $0xe0] sm:$0xff] }
 0x6e2   : > { %8173 = vst.msk [vmem:[#allocation3 + $0x88] sm:$0xff] %vm470_vm1, %v8171_v16  ;;  %v8505_v16 = vld [vmem:[#allocation3 + $0xe8] sm:$0xff] }
 0x6e3   : > { %v8441_v39 = vpop.f32.mrb[52].mxu0 }
 0x6e4   : > { %v8450_v59 = vadd.f32 %v8448_v31, %v8441_v39  ;;  %v14231_v40 = vpop.f32.mrb[53].mxu0 }
 0x6e5   : > { %v8273_v15 = vpop.f32.mrb[184].mxu1  ;;  %v8444_v45 = vpop.f32.mrb[54].mxu0 }
 0x6e6   : > { %8452 = vst.msk [vmem:[#allocation3 + $0xd0] sm:$0xff] %vm470_vm1, %v8450_v59  ;;  %v8282_v47 = vadd.f32 %v8280_v62, %v8273_v15  ;;  %v8451_v41 = vadd.f32 %v8449_v5, %v8444_v45  ;;  %v14213_v61 = vpop.f32.mrb[185].mxu1  ;;  %v14232_v35 = vpop.f32.mrb[55].mxu0 }
 0x6e7   : > { %v8276_v37 = vpop.f32.mrb[186].mxu1 }
 0x6e8   : > { %8284 = vst.msk [vmem:[#allocation3 + $0xa0] sm:$0xff] %vm470_vm1, %v8282_v47  ;;  %8453 = vst.msk [vmem:[#allocation3 + $0xd8] sm:$0xff] %vm470_vm1, %v8451_v41  ;;  %v8283_v57 = vadd.f32 %v8281_v28, %v8276_v37  ;;  %v14214_v33 = vpop.f32.mrb[187].mxu1 }
 0x6ea   : > { %8285 = vst.msk [vmem:[#allocation3 + $0xa8] sm:$0xff] %vm470_vm1, %v8283_v57 }
 0x6eb   : > { %v8549_v43 = vpop.f32.mrb[56].mxu0 }
 0x6ec   : > { %v8558_v55 = vadd.f32 %v8556_v14, %v8549_v43  ;;  %v14243_v27 = vpop.f32.mrb[57].mxu0 }
 0x6ed   : > { %v8385_v34 = vpop.f32.mrb[188].mxu1  ;;  %v8552_v9 = vpop.f32.mrb[58].mxu0 }
 0x6ee   : > { %8560 = vst.msk [vmem:[#allocation3 + $0xf0] sm:$0xff] %vm470_vm1, %v8558_v55  ;;  %v8394_v7 = vadd.f32 %v8392_v51, %v8385_v34  ;;  %v8559_v12 = vadd.f32 %v8557_v11, %v8552_v9  ;;  %v14225_v8 = vpop.f32.mrb[189].mxu1  ;;  %v14244_v2 = vpop.f32.mrb[59].mxu0 }
 0x6ef   : > { %v8388_v26 = vpop.f32.mrb[190].mxu1 }
 0x6f0   : > { %8396 = vst.msk [vmem:[#allocation3 + $0xc0] sm:$0xff] %vm470_vm1, %v8394_v7  ;;  %8561 = vst.msk [vmem:[#allocation3 + $0xf8] sm:$0xff] %vm470_vm1, %v8559_v12  ;;  %v8395_v19 = vadd.f32 %v8393_v10, %v8388_v26  ;;  %v14226_v3 = vpop.f32.mrb[191].mxu1 }
 0x6f2   : > { %8397 = vst.msk [vmem:[#allocation3 + $0xc8] sm:$0xff] %vm470_vm1, %v8395_v19 }
 0x6f3   : > { %v8667_v6 = vpop.f32.mrb[60].mxu0 }
 0x6f4   : > { %v14255_v38 = vpop.f32.mrb[61].mxu0 }
 0x6f5   : > { %v8497_v17 = vpop.f32.mrb[192].mxu1  ;;  %v8670_v56 = vpop.f32.mrb[62].mxu0 }
 0x6f6   : > { %v8506_v48 = vadd.f32 %v8504_v50, %v8497_v17  ;;  %v14237_v63 = vpop.f32.mrb[193].mxu1  ;;  %v14256_v0 = vpop.f32.mrb[63].mxu0 }
 0x6f7   : > { %v8500_v4 = vpop.f32.mrb[194].mxu1 }
 0x6f8   : > { %8508 = vst.msk [vmem:[#allocation3 + $0xe0] sm:$0xff] %vm470_vm1, %v8506_v48  ;;  %v8507_v21 = vadd.f32 %v8505_v16, %v8500_v4  ;;  %v14238_v39 = vpop.f32.mrb[195].mxu1  ;;  %v12848_v48 = vld [vmem:[%s18589_s6 + $0x4] ss:$0 sm:$0xff] }
 0x6fa   : > { %8509 = vst.msk [vmem:[#allocation3 + $0xe8] sm:$0xff] %vm470_vm1, %v8507_v21 }
 0x6fb   : > { %v8769_v31 = vpop.f32.mrb[64].mxu0 }
 0x6fc   : > { %v14267_v59 = vpop.f32.mrb[65].mxu0 }
 0x6fd   : > { %v8621_v40 = vpop.f32.mrb[196].mxu1  ;;  %v8772_v15 = vpop.f32.mrb[66].mxu0 }
 0x6fe   : > { %v14249_v62 = vpop.f32.mrb[197].mxu1  ;;  %v8668_v45 = vadd.f32 %v8667_v6, %v8621_v40  ;;  %v14268_v5 = vpop.f32.mrb[67].mxu0 }
 0x6ff   : > { %v8624_v47 = vpop.f32.mrb[198].mxu1 }
 0x700   : > { %v14250_v41 = vpop.f32.mrb[199].mxu1 }
 0x703   : > { %v8872_v61 = vpop.f32.mrb[68].mxu0 }
 0x704   : > { %v14279_v35 = vpop.f32.mrb[69].mxu0 }
 0x705   : > { %v8718_v37 = vpop.f32.mrb[200].mxu1  ;;  %v8875_v28 = vpop.f32.mrb[70].mxu0 }
 0x706   : > { %v8724_v57 = vadd.f32 %v8718_v37, %v8668_v45  ;;  %v14261_v33 = vpop.f32.mrb[201].mxu1  ;;  %v14280_v43 = vpop.f32.mrb[71].mxu0  ;;  %v557_v28 = vld [vmem:[%s18592_s9] sm:$0x3] }
 0x707   : > { %v8721_v14 = vpop.f32.mrb[202].mxu1 }
 0x708   : > { %v8775_v55 = vadd.f32 %v8769_v31, %v8724_v57  ;;  %v14262_v27 = vpop.f32.mrb[203].mxu1 }
 0x70b   : > { %v8974_v34 = vpop.f32.mrb[72].mxu0 }
 0x70c   : > { %v14291_v51 = vpop.f32.mrb[73].mxu0 }
 0x70d   : > { %v8820_v9 = vpop.f32.mrb[204].mxu1  ;;  %v8977_v11 = vpop.f32.mrb[74].mxu0 }
 0x70e   : > { %v8826_v7 = vadd.f32 %v8820_v9, %v8775_v55  ;;  %v14273_v12 = vpop.f32.mrb[205].mxu1  ;;  %v14292_v8 = vpop.f32.mrb[75].mxu0  ;;  %v12854_v9 = vld [vmem:[%s18588_s5 + $0x28] sm:$0xf] }
 0x70f   : > { %v8823_v2 = vpop.f32.mrb[206].mxu1  ;;  %v9258_v11 = vsel %vm4885_vm13, %v12854_v9, 0 }
 0x710   : > { %v8878_v26 = vadd.f32 %v8872_v61, %v8826_v7  ;;  %v14274_v10 = vpop.f32.mrb[207].mxu1  ;;  %v12853_v7 = vld [vmem:[%s18588_s5 + $0x24] sm:$0xf] }
 0x711   : > { %v9305_v12 = vsel %vm4885_vm13, %v12853_v7, 0 }
 0x715   : > { %v8923_v19 = vpop.f32.mrb[208].mxu1 }
 0x716   : > { %v8929_v3 = vadd.f32 %v8923_v19, %v8878_v26  ;;  %v14285_v6 = vpop.f32.mrb[209].mxu1 }
 0x717   : > { %v8926_v38 = vpop.f32.mrb[210].mxu1 }
 0x718   : > { %v8980_v17 = vadd.f32 %v8974_v34, %v8929_v3  ;;  %v14286_v50 = vpop.f32.mrb[211].mxu1 }
 0x71d   : > { %v9026_v56 = vpop.f32.mrb[212].mxu1 }
 0x71e   : > { %v9032_v63 = vadd.f32 %v9026_v56, %v8980_v17  ;;  %v14297_v0 = vpop.f32.mrb[213].mxu1 }
 0x71f   : > { %v9029_v4 = vpop.f32.mrb[214].mxu1 }
 0x720   : > { %v9041_v16 = vadd.f32 %v12848_v48, %v9032_v63  ;;  %v14298_v21 = vpop.f32.mrb[215].mxu1  ;;  %v12857_v4 = vld [vmem:[%s18588_s5 + $0x2c] sm:$0xf] }
 0x722   : > { %v9042_v39 = vmax.f32 %v9041_v16, 0.0 }
 0x724   : > { %9044 = vst.msk [vmem:[#allocation2 + $0x191] sm:$0xf] %vm9043_vm8, %v9042_v39  ;;  %v12859_v39 = vld [vmem:[%s18588_s5 + $0x30] sm:$0xf] }
 0x72b   : > { %v9045_v31 = vld [vmem:[#allocation2 + $0x191] sm:$0x3]  ;;  %v9097_v40 = vld [vmem:[#allocation2 + $0x193] sm:$0x3] }
 0x72c   : > { %v9096_v59 = vld [vmem:[#allocation2 + $0x191] sm:$0x3]  ;;  %v9046_v15 = vpack.c.bf16 %v9045_v31, %v9045_v31  ;;  %v9099_v45 = vmul.f32 0.25, %v9097_v40  ;;  %v9147_v47 = vld [vmem:[#allocation2 + $0x193] sm:$0x3] }
 0x72d   : > { %v9098_v62 = vmul.f32 0.75, %v9096_v59  ;;  %v9146_v5 = vld [vmem:[#allocation2 + $0x191] sm:$0x3]  ;;  %v9149_v61 = vmul.f32 0.75, %v9147_v47  ;;  %v9196_v33 = vld [vmem:[#allocation2 + $0x193] sm:$0x3] }
 0x72e   : > { %v9148_v41 = vmul.f32 0.25, %v9146_v5  ;;  %v9053_v35 = vsel %vm9051_vm9, %v9046_v15, 0  ;;  %v9197_v27 = vpack.c.bf16 %v9196_v33, %v9196_v33  ;;  %v12861_v33 = vld [vmem:[%s18588_s5 + $0x34] sm:$0xf] }
 0x72f   : > { %v9100_v37 = vadd.f32 %v9099_v45, %v9098_v62  ;;  %14300 = vmatpush3.bf16.msra.mxu0 %v9053_v35  ;;  %v9359_v45 = vsel %vm4885_vm13, %v12857_v4, 0 }
 0x730   : > { %v9150_v57 = vadd.f32 %v9149_v61, %v9148_v41  ;;  %14311 = vmatprep.subr.bf16.mxu0 %v18785_v49  ;;  %v9199_v51 = vsel %vm9051_vm9, %v9197_v27, 0  ;;  %v9415_v61 = vsel %vm4885_vm13, %v12859_v39, 0  ;;  %v12863_v27 = vld [vmem:[%s18588_s5 + $0x38] sm:$0xf] }
 0x731   : > { %v9101_v43 = vpack.c.bf16 %v9100_v37, %v9100_v37  ;;  %v9525_v7 = vsel %vm4885_vm13, %v12863_v27, 0 }
 0x732   : > { %v9151_v14 = vpack.c.bf16 %v9150_v57, %v9150_v57  ;;  %14302 = vmatmul.mubr.msk.bf16.vlgmr.msra.gmra.mrb[76].mxu0 %vm9047_vm10, %v557_v28 }
 0x733   : > { %v9103_v55 = vsel %vm9051_vm9, %v9101_v43, 0  ;;  %14313 = vmatprep.mubr.msk.bf16.mxu0 %vm15245_vm12, %v18785_v49 }
 0x734   : > { %14306 = vmatpush3.bf16.msra.mxu1 %v9103_v55  ;;  %v9153_v34 = vsel %vm9051_vm9, %v9151_v14, 0 }
 0x735   : > { %14312 = vmatpush3.bf16.msra.mxu0 %v9153_v34  ;;  %14317 = vmatprep.subr.bf16.mxu1 %v18785_v49 }
 0x736   : > { %14323 = vmatprep.subr.bf16.mxu0 %v18785_v49 }
 0x737   : > { %14308 = vmatmul.mubr.msk.bf16.vlgmr.msra.gmra.mrb[216].mxu1 %vm9047_vm10, %v557_v28 }
 0x738   : > { %14318 = vmatpush3.bf16.msra.mxu1 %v9199_v51  ;;  %14319 = vmatprep.mubr.msk.bf16.mxu1 %vm15245_vm12, %v18785_v49  ;;  %v9469_v51 = vsel %vm4885_vm13, %v12861_v33, 0 }
 0x739   : > { %14329 = vmatprep.subr.bf16.mxu1 %v18785_v49 }
 0x73a   : > { %14314 = vmatmul.mubr.msk.bf16.vlgmr.msra.gmra.mrb[80].mxu0 %vm9047_vm10, %v557_v28 }
 0x73b   : > { %14325 = vmatprep.mubr.msk.bf16.mxu0 %vm15245_vm12, %v18785_v49  ;;  %14324 = vmatpush3.bf16.msra.mxu0 %v9258_v11 }
 0x73c   : > { %14335 = vmatprep.subr.bf16.mxu0 %v18785_v49 }
 0x73f   : > { %14320 = vmatmul.mubr.msk.bf16.vlgmr.msra.gmra.mrb[220].mxu1 %vm9047_vm10, %v557_v28 }
 0x740   : > { %14331 = vmatprep.mubr.msk.bf16.mxu1 %vm15245_vm12, %v18785_v49  ;;  %14330 = vmatpush3.bf16.msra.mxu1 %v9305_v12 }
 0x741   : > { %14341 = vmatprep.subr.bf16.mxu1 %v18785_v49 }
 0x805   : > { %v9089_v8 = vpop.f32.mrb[76].mxu0 }
 0x806   : > { %9095 = vst.msk [vmem:[#allocation2 + $0x179] sm:$0xf] %vm9043_vm8, %v9089_v8  ;;  %v14303_v2 = vpop.f32.mrb[77].mxu0 }
 0x807   : > { %v9092_v26 = vpop.f32.mrb[78].mxu0  ;;  %v12865_v2 = vld [vmem:[%s18588_s5 + $0x3c] sm:$0xf] }
 0x808   : > { %v14304_v10 = vpop.f32.mrb[79].mxu0 }
 0x80a   : > { %v9139_v19 = vpop.f32.mrb[216].mxu1 }
 0x80b   : > { %9145 = vst.msk [vmem:[#allocation2 + $0x17d] sm:$0xf] %vm9043_vm8, %v9139_v19  ;;  %v14309_v3 = vpop.f32.mrb[217].mxu1 }
 0x80c   : > { %v9142_v6 = vpop.f32.mrb[218].mxu1  ;;  %v12867_v3 = vld [vmem:[%s18588_s5 + $0x40] sm:$0xf] }
 0x80d   : > { %v14310_v38 = vpop.f32.mrb[219].mxu1  ;;  %v9189_v17 = vpop.f32.mrb[80].mxu0  ;;  %v9242_v16 = vld [vmem:[#allocation2 + $0x174] sm:$0xff] }
 0x80e   : > { %9195 = vst.msk [vmem:[#allocation2 + $0x181] sm:$0xf] %vm9043_vm8, %v9189_v17  ;;  %v14315_v50 = vpop.f32.mrb[81].mxu0  ;;  %v9249_v59 = vld [vmem:[#allocation2 + $0x175] sm:$0xff]  ;;  %v9244_v5 = vmul.f32 %v17022_v58, %v9242_v16  ;;  %v9581_v38 = vsel %vm4885_vm13, %v12865_v2, 0 }
 0x80f   : > { %v9192_v56 = vpop.f32.mrb[82].mxu0 }
 0x810   : > { %v14316_v48 = vpop.f32.mrb[83].mxu0 }
 0x811   : > { %v9635_v48 = vsel %vm4885_vm13, %v12867_v3, 0 }
 0x812   : > { %v9235_v63 = vpop.f32.mrb[220].mxu1  ;;  %v9348_v35 = vld [vmem:[#allocation2 + $0x176] sm:$0xff] }
 0x813   : > { %9241 = vst.msk [vmem:[#allocation2 + $0x185] sm:$0xf] %vm9043_vm8, %v9235_v63  ;;  %v14321_v0 = vpop.f32.mrb[221].mxu1  ;;  %v9404_v43 = vld [vmem:[#allocation2 + $0x178] sm:$0xff]  ;;  %v9350_v14 = vmul.f32 %v17045_v46, %v9348_v35 }
 0x814   : > { %v9238_v21 = vpop.f32.mrb[222].mxu1  ;;  %v9406_v9 = vmul.f32 %v17022_v58, %v9404_v43  ;;  %v9460_v19 = vld [vmem:[#allocation2 + $0x179] sm:$0xff]  ;;  %v12869_v0 = vld [vmem:[%s18588_s5 + $0x44] sm:$0xf] }
 0x815   : > { %v14322_v31 = vpop.f32.mrb[223].mxu1  ;;  %v17933_v40 = vld [vmem:[#allocation2 + $0x17d] sm:$0xff]  ;;  %v9691_v39 = vsel %vm4885_vm13, %v12869_v0, 0 }
 0x816   : > { %v9243_v15 = vld [vmem:[#allocation2 + $0x17c] sm:$0xff]  ;;  %v9251_v62 = vpack.c.bf16 %v17933_v40, %v9249_v59 }
 0x817   : > { %v9245_v47 = vmul.f32 %v17025_v60, %v9243_v15  ;;  %v9514_v26 = vld [vmem:[#allocation2 + $0x17a] sm:$0xff]  ;;  %v9572_v4 = vmul.f32 %v17022_v58, %v9243_v15 }
 0x818   : > { %14326 = vmatmul.mubr.msk.bf16.vlgmr.msra.gmra.mrb[84].mxu0 %vm470_vm1, %v9251_v62  ;;  %v9516_v17 = vmul.f32 %v17045_v46, %v9514_v26 }
 0x819   : > { %v9246_v41 = vpack.c.bf16 %v9245_v47, %v9244_v5  ;;  %14336 = vmatpush3.bf16.msra.mxu0 %v9359_v45  ;;  %14337 = vmatprep.mubr.msk.bf16.mxu0 %vm15245_vm12, %v18785_v49 }
 0x81a   : > { %v9349_v37 = vld [vmem:[#allocation2 + $0x17e] sm:$0xff]  ;;  %14347 = vmatprep.subr.bf16.mxu0 %v18785_v49  ;;  %v9681_v31 = vld [vmem:[#allocation2 + $0x186] sm:$0xff] }
 0x81b   : > { %v9405_v28 = vld [vmem:[#allocation2 + $0x180] sm:$0xff]  ;;  %14332 = vmatmul.mubr.msk.bf16.vlgmr.msra.gmra.mrb[224].mxu1 %vm470_vm1, %v9246_v41  ;;  %v9351_v57 = vmul.f32 %v17048_v24, %v9349_v37  ;;  %v9682_v59 = vmul.f32 %v17045_v46, %v9349_v37  ;;  %v9683_v58 = vmul.f32 %v17048_v24, %v9681_v31 }
 0x81c   : > { %14342 = vmatpush3.bf16.msra.mxu1 %v9415_v61  ;;  %14343 = vmatprep.mubr.msk.bf16.mxu1 %vm15245_vm12, %v18785_v49  ;;  %v9407_v55 = vmul.f32 %v17025_v60, %v9405_v28  ;;  %v9515_v12 = vld [vmem:[#allocation2 + $0x182] sm:$0xff] }
 0x81d   : > { %14353 = vmatprep.subr.bf16.mxu1 %v18785_v49  ;;  %v9352_v34 = vpack.c.bf16 %v9351_v57, %v9350_v14  ;;  %v9461_v8 = vld [vmem:[#allocation2 + $0x181] sm:$0xff]  ;;  %v9517_v10 = vmul.f32 %v17048_v24, %v9515_v12  ;;  %v9684_v15 = vpack.c.bf16 %v9683_v58, %v9682_v59 }
 0x81e   : > { %v9408_v11 = vpack.c.bf16 %v9407_v55, %v9406_v9  ;;  %v9462_v6 = vpack.c.bf16 %v9461_v8, %v9460_v19  ;;  %v9571_v50 = vld [vmem:[#allocation2 + $0x184] sm:$0xff] }
 0x81f   : > { %v9518_v56 = vpack.c.bf16 %v9517_v10, %v9516_v17  ;;  %v9573_v63 = vmul.f32 %v17025_v60, %v9571_v50  ;;  %v9627_v16 = vld [vmem:[#allocation2 + $0x185] sm:$0xff] }
 0x820   : > { %14338 = vmatmul.mubr.msk.bf16.vlgmr.msra.gmra.mrb[88].mxu0 %vm470_vm1, %v9352_v34  ;;  %v9628_v60 = vpack.c.bf16 %v9627_v16, %v17933_v40 }
 0x821   : > { %14348 = vmatpush3.bf16.msra.mxu0 %v9469_v51  ;;  %14349 = vmatprep.mubr.msk.bf16.mxu0 %vm15245_vm12, %v18785_v49  ;;  %v9574_v21 = vpack.c.bf16 %v9573_v63, %v9572_v4 }
 0x822   : > { %14359 = vmatprep.subr.bf16.mxu0 %v18785_v49 }
 0x823   : > { %14344 = vmatmul.mubr.msk.bf16.vlgmr.msra.gmra.mrb[228].mxu1 %vm470_vm1, %v9408_v11 }
 0x824   : > { %14354 = vmatpush3.bf16.msra.mxu1 %v9525_v7  ;;  %14355 = vmatprep.mubr.msk.bf16.mxu1 %vm15245_vm12, %v18785_v49 }
 0x825   : > { %14365 = vmatprep.subr.bf16.mxu1 %v18785_v49 }
 0x828   : > { %14350 = vmatmul.mubr.msk.bf16.vlgmr.msra.gmra.mrb[92].mxu0 %vm470_vm1, %v9462_v6 }
 0x829   : > { %14360 = vmatpush3.bf16.msra.mxu0 %v9581_v38  ;;  %14361 = vmatprep.mubr.msk.bf16.mxu0 %vm15245_vm12, %v18785_v49 }
 0x82a   : > { %14371 = vmatprep.subr.bf16.mxu0 %v18785_v49 }
 0x82b   : > { %14356 = vmatmul.mubr.msk.bf16.vlgmr.msra.gmra.mrb[232].mxu1 %vm470_vm1, %v9518_v56 }
 0x82c   : > { %14366 = vmatpush3.bf16.msra.mxu1 %v9635_v48  ;;  %14367 = vmatprep.mubr.msk.bf16.mxu1 %vm15245_vm12, %v18785_v49 }
 0x82d   : > { %14377 = vmatprep.subr.bf16.mxu1 %v18785_v49 }
 0x830   : > { %14362 = vmatmul.mubr.msk.bf16.vlgmr.msra.gmra.mrb[96].mxu0 %vm470_vm1, %v9574_v21 }
 0x831   : > { %14372 = vmatpush3.bf16.msra.mxu0 %v9691_v39  ;;  %14373 = vmatprep.mubr.msk.bf16.mxu0 %vm15245_vm12, %v18785_v49 }
 0x832   : > { %14383 = vmatprep.subr.bf16.mxu0 %v18785_v49 }
 0x833   : > { %14368 = vmatmul.mubr.msk.bf16.vlgmr.msra.gmra.mrb[236].mxu1 %vm470_vm1, %v9628_v60 }
 0x834   : > { %14379 = vmatprep.mubr.msk.bf16.mxu1 %vm15245_vm12, %v18785_v49 }
 0x838   : > { %14374 = vmatmul.mubr.msk.bf16.vlgmr.msra.gmra.mrb[100].mxu0 %vm470_vm1, %v9684_v15 }
 0x839   : > { %14385 = vmatprep.mubr.msk.bf16.mxu0 %vm15245_vm12, %v18785_v49 }
 0x8eb   : > { %v9294_v40 = vpop.f32.mrb[84].mxu0 }
 0x8ec   : > { %v14327_v62 = vpop.f32.mrb[85].mxu0 }
 0x8ed   : > { %v9297_v45 = vpop.f32.mrb[86].mxu0 }
 0x8ee   : > { %v9341_v5 = vpop.f32.mrb[224].mxu1  ;;  %v14328_v41 = vpop.f32.mrb[87].mxu0 }
 0x8ef   : > { %v9342_v47 = vadd.f32 %v9341_v5, %v9294_v40  ;;  %v14333_v46 = vpop.f32.mrb[225].mxu1  ;;  %v12872_v40 = vld [vmem:[%s18589_s6 + $0x5] ss:$0 sm:$0xff] }
 0x8f0   : > { %v9344_v61 = vpop.f32.mrb[226].mxu1 }
 0x8f1   : > { %v9345_v24 = vadd.f32 %v9344_v61, %v9297_v45  ;;  %v14334_v35 = vpop.f32.mrb[227].mxu1 }
 0x8f3   : > { %v9395_v37 = vpop.f32.mrb[88].mxu0 }
 0x8f4   : > { %v9402_v28 = vadd.f32 %v9395_v37, %v9342_v47  ;;  %v14339_v57 = vpop.f32.mrb[89].mxu0 }
 0x8f5   : > { %v9398_v33 = vpop.f32.mrb[90].mxu0 }
 0x8f6   : > { %v9451_v43 = vpop.f32.mrb[228].mxu1  ;;  %v9403_v14 = vadd.f32 %v9398_v33, %v9345_v24  ;;  %v14340_v27 = vpop.f32.mrb[91].mxu0 }
 0x8f7   : > { %v9458_v55 = vadd.f32 %v9451_v43, %v9402_v28  ;;  %v14345_v34 = vpop.f32.mrb[229].mxu1 }
 0x8f8   : > { %v9454_v51 = vpop.f32.mrb[230].mxu1 }
 0x8f9   : > { %v9459_v9 = vadd.f32 %v9454_v51, %v9403_v14  ;;  %v14346_v11 = vpop.f32.mrb[231].mxu1 }
 0x8fb   : > { %v9505_v7 = vpop.f32.mrb[92].mxu0 }
 0x8fc   : > { %v9512_v12 = vadd.f32 %v9505_v7, %v9458_v55  ;;  %v14351_v8 = vpop.f32.mrb[93].mxu0 }
 0x8fd   : > { %v9508_v2 = vpop.f32.mrb[94].mxu0 }
 0x8fe   : > { %v9561_v26 = vpop.f32.mrb[232].mxu1  ;;  %v9513_v10 = vadd.f32 %v9508_v2, %v9459_v9  ;;  %v14352_v3 = vpop.f32.mrb[95].mxu0 }
 0x8ff   : > { %v9568_v19 = vadd.f32 %v9561_v26, %v9512_v12  ;;  %v14357_v6 = vpop.f32.mrb[233].mxu1 }
 0x900   : > { %v9564_v38 = vpop.f32.mrb[234].mxu1 }
 0x901   : > { %v9569_v17 = vadd.f32 %v9564_v38, %v9513_v10  ;;  %v14358_v50 = vpop.f32.mrb[235].mxu1 }
 0x903   : > { %v9617_v56 = vpop.f32.mrb[96].mxu0 }
 0x904   : > { %v9624_v48 = vadd.f32 %v9617_v56, %v9568_v19  ;;  %v14363_v63 = vpop.f32.mrb[97].mxu0 }
 0x905   : > { %v9620_v0 = vpop.f32.mrb[98].mxu0 }
 0x906   : > { %v9671_v4 = vpop.f32.mrb[236].mxu1  ;;  %v9625_v16 = vadd.f32 %v9620_v0, %v9569_v17  ;;  %v14364_v39 = vpop.f32.mrb[99].mxu0  ;;  %v15178_v0 = vld [vmem:[%s18591_s8] sm:$0xf] }
 0x907   : > { %v9678_v21 = vadd.f32 %v9671_v4, %v9624_v48  ;;  %v14369_v31 = vpop.f32.mrb[237].mxu1 }
 0x908   : > { %v9674_v60 = vpop.f32.mrb[238].mxu1 }
 0x909   : > { %v9679_v59 = vadd.f32 %v9674_v60, %v9625_v16  ;;  %v14370_v58 = vpop.f32.mrb[239].mxu1 }
 0x90b   : > { %v9727_v15 = vpop.f32.mrb[100].mxu0 }
 0x90c   : > { %v9734_v62 = vadd.f32 %v9727_v15, %v9678_v21  ;;  %v14375_v45 = vpop.f32.mrb[101].mxu0 }
 0x90d   : > { %v9730_v5 = vpop.f32.mrb[102].mxu0 }
 0x90e   : > { %v9744_v47 = vadd.f32 %v12872_v40, %v9734_v62  ;;  %v9735_v41 = vadd.f32 %v9730_v5, %v9679_v59  ;;  %v14376_v46 = vpop.f32.mrb[103].mxu0 }
 0x910   : > { %v9746_v61 = vmax.f32 %v9744_v47, 0.0  ;;  %v9745_v24 = vadd.f32 %v12872_v40, %v9735_v41 }
 0x912   : > { %9748 = vst.msk [vmem:[#allocation2 + $0x179] sm:$0xff] %vm470_vm1, %v9746_v61  ;;  %v9747_v35 = vmax.f32 %v9745_v24, 0.0 }
 0x914   : > { %9749 = vst.msk [vmem:[#allocation2 + $0x181] sm:$0xff] %vm470_vm1, %v9747_v35 }
 0x919   : > { %v9750_v37 = vld [vmem:[#allocation2 + $0x179] sm:$0xf]  ;;  %v9797_v57 = vld [vmem:[#allocation2 + $0x17d] sm:$0xf] }
 0x91a   : > { %v9796_v28 = vld [vmem:[#allocation2 + $0x179] sm:$0xf]  ;;  %v9751_v33 = vpack.c.bf16 %v9750_v37, %v9750_v37  ;;  %v9799_v14 = vmul.f32 0.25, %v9797_v57  ;;  %v9847_v27 = vld [vmem:[#allocation2 + $0x17d] sm:$0xf] }
 0x91b   : > { %v9798_v43 = vmul.f32 0.75, %v9796_v28  ;;  %v9846_v55 = vld [vmem:[#allocation2 + $0x179] sm:$0xf]  ;;  %v9849_v51 = vmul.f32 0.75, %v9847_v27  ;;  %v9896_v9 = vld [vmem:[#allocation2 + $0x17d] sm:$0xf] }
 0x91c   : > { %v9848_v34 = vmul.f32 0.25, %v9846_v55  ;;  %v9897_v11 = vld [vmem:[#allocation2 + $0x181] sm:$0xf]  ;;  %v9753_v7 = vsel %vm1059_vm0, %v9751_v33, 0  ;;  %v9898_v8 = vmul.f32 0.75, %v9896_v9 }
 0x91d   : > { %v9800_v12 = vadd.f32 %v9799_v14, %v9798_v43  ;;  %v9899_v2 = vmul.f32 0.25, %v9897_v11  ;;  %v9946_v26 = vld [vmem:[#allocation2 + $0x17d] sm:$0xf]  ;;  %14378 = vmatpush3.bf16.msra.mxu1 %v9753_v7  ;;  %v9947_v19 = vld [vmem:[#allocation2 + $0x181] sm:$0xf] }
 0x91e   : > { %v9850_v10 = vadd.f32 %v9849_v51, %v9848_v34  ;;  %v9996_v3 = vld [vmem:[#allocation2 + $0x181] sm:$0xf]  ;;  %14389 = vmatprep.subr.bf16.mxu1 %v18785_v49  ;;  %v9948_v17 = vmul.f32 0.25, %v9946_v26  ;;  %v9949_v50 = vmul.f32 0.75, %v9947_v19  ;;  %v9997_v56 = vld [vmem:[#allocation2 + $0x185] sm:$0xf] }
 0x91f   : > { %v9801_v6 = vpack.c.bf16 %v9800_v12, %v9800_v12  ;;  %v9900_v38 = vadd.f32 %v9899_v2, %v9898_v8  ;;  %v9998_v63 = vmul.f32 0.75, %v9996_v3  ;;  %v9999_v39 = vmul.f32 0.25, %v9997_v56  ;;  %v10046_v31 = vld [vmem:[#allocation2 + $0x181] sm:$0xf]  ;;  %v10047_v59 = vld [vmem:[#allocation2 + $0x185] sm:$0xf] }
 0x920   : > { %v9851_v48 = vpack.c.bf16 %v9850_v10, %v9850_v10  ;;  %14380 = vmatmul.mubr.msk.bf16.vlgmr.msra.gmra.mrb[240].mxu1 %vm590_vm2, %v15178_v0  ;;  %v9950_v21 = vadd.f32 %v9949_v50, %v9948_v17  ;;  %v10048_v58 = vmul.f32 0.25, %v10046_v31  ;;  %v10049_v45 = vmul.f32 0.75, %v10047_v59  ;;  %v10096_v24 = vld [vmem:[#allocation2 + $0x185] sm:$0xf]  ;;  %v12882_v57 = vld [vmem:[%s18588_s5 + $0x4c] sm:$0xf] }
 0x921   : > { %v9803_v4 = vsel %vm1059_vm0, %v9801_v6, 0  ;;  %v9901_v16 = vpack.c.bf16 %v9900_v38, %v9900_v38  ;;  %14391 = vmatprep.mubr.msk.bf16.mxu1 %vm15245_vm12, %v18785_v49  ;;  %v10000_v62 = vadd.f32 %v9999_v39, %v9998_v63  ;;  %v10097_v37 = vpack.c.bf16 %v10096_v24, %v10096_v24  ;;  %v12881_v43 = vld [vmem:[%s18588_s5 + $0x48] sm:$0xf]  ;;  %v12891_v39 = vld [vmem:[%s18588_s5 + $0x50] sm:$0xf] }
 0x922   : > { %14384 = vmatpush3.bf16.msra.mxu0 %v9803_v4  ;;  %v9853_v60 = vsel %vm1059_vm0, %v9851_v48, 0  ;;  %v9951_v40 = vpack.c.bf16 %v9950_v21, %v9950_v21  ;;  %v10050_v41 = vadd.f32 %v10049_v45, %v10048_v58  ;;  %v10191_v33 = vsel %vm4885_vm13, %v12882_v57, 0  ;;  %v10164_v7 = vld [vmem:[#allocation2 + $0x123] sm:$0xff] }
 0x923   : > { %14390 = vmatpush3.bf16.msra.mxu1 %v9853_v60  ;;  %14395 = vmatprep.subr.bf16.mxu0 %v18785_v49  ;;  %v9903_v15 = vsel %vm1059_vm0, %v9901_v16, 0  ;;  %v10001_v47 = vpack.c.bf16 %v10000_v62, %v10000_v62  ;;  %v10099_v28 = vsel %vm1059_vm0, %v10097_v37, 0  ;;  %v10271_v16 = vsel %vm4885_vm13, %v12881_v43, 0 }
 0x924   : > { %14401 = vmatprep.subr.bf16.mxu1 %v18785_v49  ;;  %v9953_v5 = vsel %vm1059_vm0, %v9951_v40, 0  ;;  %v10051_v61 = vpack.c.bf16 %v10050_v41, %v10050_v41 }
 0x925   : > { %14386 = vmatmul.mubr.msk.bf16.vlgmr.msra.gmra.mrb[104].mxu0 %vm590_vm2, %v15178_v0  ;;  %v10003_v46 = vsel %vm1059_vm0, %v10001_v47, 0 }
 0x926   : > { %14396 = vmatpush3.bf16.msra.mxu0 %v9903_v15  ;;  %14397 = vmatprep.mubr.msk.bf16.mxu0 %vm15245_vm12, %v18785_v49  ;;  %v10053_v35 = vsel %vm1059_vm0, %v10051_v61, 0 }
 0x927   : > { %14407 = vmatprep.subr.bf16.mxu0 %v18785_v49 }
 0x928   : > { %14392 = vmatmul.mubr.msk.bf16.vlgmr.msra.gmra.mrb[244].mxu1 %vm590_vm2, %v15178_v0 }
 0x929   : > { %14402 = vmatpush3.bf16.msra.mxu1 %v9953_v5  ;;  %14403 = vmatprep.mubr.msk.bf16.mxu1 %vm15245_vm12, %v18785_v49 }
 0x92a   : > { %14413 = vmatprep.subr.bf16.mxu1 %v18785_v49 }
 0x92d   : > { %14398 = vmatmul.mubr.msk.bf16.vlgmr.msra.gmra.mrb[108].mxu0 %vm590_vm2, %v15178_v0 }
 0x92e   : > { %14408 = vmatpush3.bf16.msra.mxu0 %v10003_v46  ;;  %14409 = vmatprep.mubr.msk.bf16.mxu0 %vm15245_vm12, %v18785_v49  ;;  %v10142_v46 = vld [vmem:[#allocation2 + $0x122] sm:$0xff] }
 0x92f   : > { %14419 = vmatprep.subr.bf16.mxu0 %v18785_v49 }
 0x930   : > { %14404 = vmatmul.mubr.msk.bf16.vlgmr.msra.gmra.mrb[248].mxu1 %vm590_vm2, %v15178_v0 }
 0x931   : > { %14414 = vmatpush3.bf16.msra.mxu1 %v10053_v35  ;;  %14415 = vmatprep.mubr.msk.bf16.mxu1 %vm15245_vm12, %v18785_v49 }
 0x932   : > { %15123 = vmatprep.subr.msk.bf16.mxu1 %vm4885_vm13, %v12882_v57 }
 0x935   : > { %14410 = vmatmul.mubr.msk.bf16.vlgmr.msra.gmra.mrb[112].mxu0 %vm590_vm2, %v15178_v0 }
 0x936   : > { %14420 = vmatpush3.bf16.msra.mxu0 %v10099_v28  ;;  %14421 = vmatprep.mubr.msk.bf16.mxu0 %vm15245_vm12, %v18785_v49  ;;  %v10150_v28 = vmul.f32 %v18967_v13, %v10142_v46 }
 0x937   : > { %14515 = vmatprep.subr.bf16.mxu0 %v18785_v49 }
 0x938   : > { %14416 = vmatmul.mubr.msk.bf16.vlgmr.msra.gmra.mrb[252].mxu1 %vm590_vm2, %v15178_v0 }
 0x939   : > { %14426 = vmatpush3.bf16.msra.mxu1 %v10191_v33 }
 0x93a   : > { %15124 = vmatprep.subr.msk.bf16.mxu1 %vm4885_vm13, %v12881_v43 }
 0x93d   : > { %14422 = vmatmul.mubr.msk.bf16.vlgmr.msra.gmra.mrb[116].mxu0 %vm590_vm2, %v15178_v0 }
 0x93e   : > { %14517 = vmatprep.mubr.msk.bf16.mxu0 %vm15245_vm12, %v18785_v49 }
 0x9f3   : > { %v9789_v14 = vpop.f32.mrb[240].mxu1 }
 0x9f4   : > { %9795 = vst.msk [vmem:[#allocation2 + $0x12b] sm:$0xff] %vm470_vm1, %v9789_v14  ;;  %v14381_v55 = vpop.f32.mrb[241].mxu1 }
 0x9f5   : > { %v9792_v27 = vpop.f32.mrb[242].mxu1 }
 0x9f6   : > { %v14382_v34 = vpop.f32.mrb[243].mxu1 }
 0x9f8   : > { %v9839_v51 = vpop.f32.mrb[104].mxu0 }
 0x9f9   : > { %9845 = vst.msk [vmem:[#allocation2 + $0x133] sm:$0xff] %vm470_vm1, %v9839_v51  ;;  %v14387_v9 = vpop.f32.mrb[105].mxu0 }
 0x9fa   : > { %v9842_v11 = vpop.f32.mrb[106].mxu0 }
 0x9fb   : > { %v14388_v12 = vpop.f32.mrb[107].mxu0  ;;  %v9889_v8 = vpop.f32.mrb[244].mxu1  ;;  %v18061_v2 = vld [vmem:[#allocation2 + $0x12b] sm:$0xff] }
 0x9fc   : > { %9895 = vst.msk [vmem:[#allocation2 + $0x13b] sm:$0xff] %vm470_vm1, %v9889_v8  ;;  %v14393_v26 = vpop.f32.mrb[245].mxu1  ;;  %v10172_v10 = vpack.c.bf16 %v18061_v2, %v10164_v7  ;;  %v18095_v61 = vld [vmem:[#allocation2 + $0x12a] sm:$0xff] }
 0x9fd   : > { %v9892_v19 = vpop.f32.mrb[246].mxu1  ;;  %v10151_v57 = vmul.f32 %v18968_v1, %v18095_v61 }
 0x9fe   : > { %v14394_v3 = vpop.f32.mrb[247].mxu1  ;;  %14427 = vmatprep.mubr.msk.bf16.mxu1 %vm470_vm1, %v10172_v10 }
 0x9ff   : > { %v10158_v34 = vpack.c.bf16 %v10151_v57, %v10150_v28  ;;  %v10373_v3 = vsel %vm4885_vm13, %v12891_v39, 0 }
 0xa00   : > { %v9939_v6 = vpop.f32.mrb[108].mxu0  ;;  %v18067_v48 = vld [vmem:[#allocation2 + $0x133] sm:$0xff] }
 0xa01   : > { %9945 = vst.msk [vmem:[#allocation2 + $0x143] sm:$0xff] %vm470_vm1, %v9939_v6  ;;  %v14399_v38 = vpop.f32.mrb[109].mxu0  ;;  %v18116_v11 = vld [vmem:[#allocation2 + $0x132] sm:$0xff] }
 0xa02   : > { %v9942_v17 = vpop.f32.mrb[110].mxu0  ;;  %v10152_v26 = vmul.f32 %v18971_v18, %v18116_v11 }
 0xa03   : > { %v14400_v50 = vpop.f32.mrb[111].mxu0  ;;  %v9989_v56 = vpop.f32.mrb[248].mxu1  ;;  %v18069_v63 = vld [vmem:[#allocation2 + $0x13b] sm:$0xff]  ;;  %v12896_v17 = vld [vmem:[%s18588_s5 + $0x54] sm:$0xf] }
 0xa04   : > { %9995 = vst.msk [vmem:[#allocation2 + $0x14b] sm:$0xff] %vm470_vm1, %v9989_v56  ;;  %v14405_v0 = vpop.f32.mrb[249].mxu1  ;;  %v18074_v4 = vpack.c.bf16 %v18069_v63, %v18067_v48  ;;  %v18109_v51 = vld [vmem:[#allocation2 + $0x13a] sm:$0xff]  ;;  %v18135_v50 = vld [vmem:[#allocation2 + $0x12c] sm:$0xff]  ;;  %v10483_v28 = vsel %vm4885_vm13, %v12896_v17, 0 }
 0xa05   : > { %v9992_v21 = vpop.f32.mrb[250].mxu1  ;;  %v10153_v7 = vmul.f32 %v18969_v29, %v18109_v51 }
 0xa06   : > { %v14406_v31 = vpop.f32.mrb[251].mxu1  ;;  %14428 = vmatmul.mubr.msk.bf16.vlgmr.msra.gmra.mrb[0].mxu1 %vm470_vm1, %v18074_v4  ;;  %v10347_v21 = vmul.f32 %v18974_v36, %v18135_v50 }
 0xa07   : > { %14436 = vmatpush3.bf16.msra.mxu1 %v10271_v16  ;;  %v10159_v19 = vpack.c.bf16 %v10153_v7, %v10152_v26  ;;  %v10338_v16 = vld [vmem:[#allocation2 + $0x124] sm:$0xff] }
 0xa08   : > { %v10039_v60 = vpop.f32.mrb[112].mxu0  ;;  %15125 = vmatprep.subr.msk.bf16.mxu1 %vm4885_vm13, %v12891_v39  ;;  %v18084_v62 = vld [vmem:[#allocation2 + $0x143] sm:$0xff]  ;;  %v10346_v31 = vmul.f32 %v18976_v22, %v10338_v16 }
 0xa09   : > { %10045 = vst.msk [vmem:[#allocation2 + $0x153] sm:$0xff] %vm470_vm1, %v10039_v60  ;;  %v14411_v59 = vpop.f32.mrb[113].mxu0  ;;  %v18120_v12 = vld [vmem:[#allocation2 + $0x142] sm:$0xff] }
 0xa0a   : > { %v10042_v58 = vpop.f32.mrb[114].mxu0  ;;  %v10154_v10 = vmul.f32 %v18972_v44, %v18120_v12  ;;  %v10354_v59 = vpack.c.bf16 %v10347_v21, %v10346_v31 }
 0xa0b   : > { %v14412_v15 = vpop.f32.mrb[115].mxu0  ;;  %v10089_v40 = vpop.f32.mrb[252].mxu1  ;;  %v18086_v45 = vld [vmem:[#allocation2 + $0x14b] sm:$0xff]  ;;  %v18148_v58 = vld [vmem:[#allocation2 + $0x13c] sm:$0xff] }
 0xa0c   : > { %10095 = vst.msk [vmem:[#allocation2 + $0x15b] sm:$0xff] %vm470_vm1, %v10089_v40  ;;  %v18091_v5 = vpack.c.bf16 %v18086_v45, %v18084_v62  ;;  %v14417_v47 = vpop.f32.mrb[253].mxu1  ;;  %v18113_v9 = vld [vmem:[#allocation2 + $0x14a] sm:$0xff]  ;;  %v18154_v40 = vld [vmem:[#allocation2 + $0x134] sm:$0xff] }
 0xa0d   : > { %v10092_v41 = vpop.f32.mrb[254].mxu1  ;;  %v10155_v8 = vmul.f32 %v18970_v53, %v18113_v9  ;;  %v10349_v47 = vmul.f32 %v18977_v30, %v18148_v58  ;;  %v10460_v16 = vmul.f32 %v18972_v44, %v18113_v9 }
 0xa0e   : > { %14431 = vmatprep.mubr.msk.bf16.mxu1 %vm470_vm1, %v18091_v5  ;;  %v14418_v24 = vpop.f32.mrb[255].mxu1  ;;  %v18158_v41 = vld [vmem:[#allocation2 + $0x144] sm:$0xff] }
 0xa0f   : > { %v10160_v6 = vpack.c.bf16 %v10155_v8, %v10154_v10  ;;  %v10348_v24 = vmul.f32 %v18979_v32, %v18154_v40  ;;  %v10457_v8 = vmul.f32 %v18968_v1, %v18116_v11  ;;  %v10456_v10 = vmul.f32 %v18967_v13, %v18095_v61 }
 0xa10   : > { %v10135_v35 = vpop.f32.mrb[116].mxu0  ;;  %v18101_v14 = vld [vmem:[#allocation2 + $0x153] sm:$0xff] }
 0xa11   : > { %10141 = vst.msk [vmem:[#allocation2 + $0x163] sm:$0xff] %vm470_vm1, %v10135_v35  ;;  %v14423_v37 = vpop.f32.mrb[117].mxu0  ;;  %v18138_v56 = vld [vmem:[#allocation2 + $0x152] sm:$0xff]  ;;  %v10350_v35 = vmul.f32 %v18980_v42, %v18158_v41 }
 0xa12   : > { %v10138_v33 = vpop.f32.mrb[118].mxu0  ;;  %v10156_v39 = vmul.f32 %v18975_v52, %v18138_v56  ;;  %v18151_v15 = vld [vmem:[#allocation2 + $0x14c] sm:$0xff]  ;;  %v10355_v37 = vpack.c.bf16 %v10349_v47, %v10348_v24  ;;  %v10566_v24 = vpack.c.bf16 %v18067_v48, %v18061_v2  ;;  %v10669_v48 = vmul.f32 %v18974_v36, %v18154_v40 }
 0xa13   : > { %v14424_v43 = vpop.f32.mrb[119].mxu0  ;;  %v18103_v55 = vld [vmem:[#allocation2 + $0x15b] sm:$0xff]  ;;  %v10351_v46 = vmul.f32 %v18978_v23, %v18151_v15 }
 0xa14   : > { %v18107_v27 = vpack.c.bf16 %v18103_v55, %v18101_v14  ;;  %v18129_v38 = vld [vmem:[#allocation2 + $0x15a] sm:$0xff] }
 0xa15   : > { %v10157_v0 = vmul.f32 %v18973_v54, %v18129_v38  ;;  %v10356_v57 = vpack.c.bf16 %v10351_v46, %v10350_v35  ;;  %v12901_v43 = vld [vmem:[%s18588_s5 + $0x58] sm:$0xf]  ;;  %v10462_v47 = vmul.f32 %v18975_v52, %v18129_v38  ;;  %v10567_v35 = vpack.c.bf16 %v18084_v62, %v18069_v63 }
 0xa16   : > { %14432 = vmatmul.mubr.msk.bf16.gmra.mrb[4].mxu1 %vm470_vm1, %v18107_v27  ;;  %v10585_v61 = vsel %vm4885_vm13, %v12901_v43, 0  ;;  %v10668_v63 = vmul.f32 %v18976_v22, %v18135_v50 }
 0xa17   : > { %14437 = vmatprep.mubr.msk.bf16.mxu1 %vm470_vm1, %v10158_v34  ;;  %v10161_v60 = vpack.c.bf16 %v10157_v0, %v10156_v39  ;;  %v18174_v34 = vld [vmem:[#allocation2 + $0x154] sm:$0xff]  ;;  %v10458_v0 = vmul.f32 %v18971_v18, %v18109_v51 }
 0xa18   : > { %v18167_v33 = vld [vmem:[#allocation2 + $0x15c] sm:$0xff]  ;;  %v10352_v26 = vmul.f32 %v18982_v25, %v18174_v34 }
 0xa19   : > { %v10353_v7 = vmul.f32 %v18981_v20, %v18167_v33  ;;  %v10455_v31 = vld [vmem:[#allocation2 + $0x162] sm:$0xff] }
 0xa1a   : > { %v10565_v2 = vld [vmem:[#allocation2 + $0x163] sm:$0xff] }
 0xa1b   : > { %v10569_v62 = vpack.c.bf16 %v10565_v2, %v18103_v55 }
 0xa1e   : > { %14438 = vmatmul.mubr.msk.bf16.vlgmr.msra.gmra.mrb[0].mxu1 %vm470_vm1, %v10159_v19  ;;  %v10357_v19 = vpack.c.bf16 %v10353_v7, %v10352_v26  ;;  %v10670_v7 = vmul.f32 %v18979_v32, %v18148_v58 }
 0xa1f   : > { %14441 = vmatprep.mubr.msk.bf16.mxu1 %vm470_vm1, %v10160_v6  ;;  %14446 = vmatpush3.bf16.msra.mxu1 %v10373_v3  ;;  %v10464_v3 = vpack.c.bf16 %v10457_v8, %v10456_v10  ;;  %v10459_v6 = vmul.f32 %v18969_v29, %v18120_v12  ;;  %v10672_v8 = vmul.f32 %v18980_v42, %v18151_v15  ;;  %v10667_v10 = vld [vmem:[#allocation2 + $0x164] sm:$0xff] }
 0xa20   : > { %15126 = vmatprep.subr.msk.bf16.mxu1 %vm4885_vm13, %v12896_v17  ;;  %v10461_v17 = vmul.f32 %v18970_v53, %v18138_v56 }
 0xa21   : > { %v10465_v21 = vpack.c.bf16 %v10459_v6, %v10458_v0  ;;  %v10675_v6 = vmul.f32 %v18981_v20, %v10667_v10  ;;  %v10778_v0 = vmul.f32 %v18967_v13, %v18116_v11 }
 0xa22   : > { %v10466_v39 = vpack.c.bf16 %v10461_v17, %v10460_v16  ;;  %v10779_v17 = vmul.f32 %v18968_v1, %v18109_v51  ;;  %v10782_v1 = vmul.f32 %v18972_v44, %v18138_v56 }
 0xa26   : > { %14442 = vmatmul.mubr.msk.bf16.gmra.mrb[4].mxu1 %vm470_vm1, %v10161_v60  ;;  %v12906_v60 = vld [vmem:[%s18588_s5 + $0x5c] sm:$0xf] }
 0xa27   : > { %14447 = vmatprep.mubr.msk.bf16.mxu1 %vm470_vm1, %v10354_v59  ;;  %v10463_v59 = vmul.f32 %v18973_v54, %v10455_v31 }
 0xa29   : > { %v10467_v46 = vpack.c.bf16 %v10463_v59, %v10462_v47  ;;  %v10777_v59 = vld [vmem:[#allocation2 + $0x16a] sm:$0xff] }
 0xa2a   : > { %v12921_v47 = vld [vmem:[%s18588_s5 + $0x68] sm:$0xf] }
 0xa2b   : > { %v11017_v44 = vsel %vm4885_vm13, %v12921_v47, 0 }
 0xa2e   : > { %14448 = vmatmul.mubr.msk.bf16.vlgmr.msra.gmra.mrb[0].mxu1 %vm470_vm1, %v10355_v37  ;;  %v10695_v37 = vsel %vm4885_vm13, %v12906_v60, 0 }
 0xa2f   : > { %14451 = vmatprep.mubr.msk.bf16.mxu1 %vm470_vm1, %v10356_v57  ;;  %14456 = vmatpush3.bf16.msra.mxu1 %v10483_v28  ;;  %v10568_v28 = vpack.c.bf16 %v18101_v14, %v18086_v45  ;;  %v12911_v57 = vld [vmem:[%s18588_s5 + $0x60] sm:$0xf]  ;;  %v10676_v45 = vpack.c.bf16 %v10669_v48, %v10668_v63  ;;  %v10671_v14 = vmul.f32 %v18977_v30, %v18158_v41 }
 0xa30   : > { %15127 = vmatprep.subr.msk.bf16.mxu1 %vm4885_vm13, %v12901_v43  ;;  %v10673_v43 = vmul.f32 %v18978_v23, %v18174_v34  ;;  %v10805_v55 = vsel %vm4885_vm13, %v12911_v57, 0 }
 0xa31   : > { %v10677_v50 = vpack.c.bf16 %v10671_v14, %v10670_v7 }
 0xa32   : > { %v10678_v26 = vpack.c.bf16 %v10673_v43, %v10672_v8 }
 0xa36   : > { %14452 = vmatmul.mubr.msk.bf16.gmra.mrb[4].mxu1 %vm470_vm1, %v10357_v19  ;;  %v12916_v19 = vld [vmem:[%s18588_s5 + $0x64] sm:$0xf] }
 0xa37   : > { %14457 = vmatprep.mubr.msk.bf16.mxu1 %vm470_vm1, %v10464_v3  ;;  %v10674_v3 = vmul.f32 %v18982_v25, %v18167_v33  ;;  %v10907_v13 = vsel %vm4885_vm13, %v12916_v19, 0 }
 0xa39   : > { %v10679_v16 = vpack.c.bf16 %v10675_v6, %v10674_v3 }
 0xa3e   : > { %14458 = vmatmul.mubr.msk.bf16.vlgmr.msra.gmra.mrb[0].mxu1 %vm470_vm1, %v10465_v21  ;;  %v10786_v21 = vpack.c.bf16 %v10779_v17, %v10778_v0 }
 0xa3f   : > { %14461 = vmatprep.mubr.msk.bf16.mxu1 %vm470_vm1, %v10466_v39  ;;  %14466 = vmatpush3.bf16.msra.mxu1 %v10585_v61  ;;  %v10781_v61 = vmul.f32 %v18969_v29, %v18113_v9  ;;  %v10783_v39 = vmul.f32 %v18970_v53, %v18129_v38  ;;  %v10784_v29 = vmul.f32 %v18975_v52, %v10455_v31  ;;  %v10887_v52 = vld [vmem:[#allocation2 + $0x16b] sm:$0xff] }
 0xa40   : > { %15128 = vmatprep.subr.msk.bf16.mxu1 %vm4885_vm13, %v12906_v60  ;;  %v10780_v60 = vmul.f32 %v18971_v18, %v18120_v12  ;;  %v10785_v53 = vmul.f32 %v18973_v54, %v10777_v59  ;;  %v10991_v54 = vmul.f32 %v18974_v36, %v18148_v58  ;;  %v10990_v9 = vmul.f32 %v18976_v22, %v18154_v40  ;;  %v10989_v58 = vld [vmem:[#allocation2 + $0x16c] sm:$0xff] }
 0xa41   : > { %v10788_v11 = vpack.c.bf16 %v10783_v39, %v10782_v1  ;;  %v10891_v12 = vpack.c.bf16 %v10887_v52, %v10565_v2  ;;  %v10994_v36 = vmul.f32 %v18980_v42, %v18174_v34  ;;  %v10996_v40 = vmul.f32 %v18982_v25, %v10667_v10 }
 0xa42   : > { %v10787_v51 = vpack.c.bf16 %v10781_v61, %v10780_v60  ;;  %v10789_v18 = vpack.c.bf16 %v10785_v53, %v10784_v29  ;;  %v10998_v38 = vpack.c.bf16 %v10991_v54, %v10990_v9 }
 0xa46   : > { %14462 = vmatmul.mubr.msk.bf16.gmra.mrb[4].mxu1 %vm470_vm1, %v10467_v46 }
 0xa47   : > { %14467 = vmatprep.mubr.msk.bf16.mxu1 %vm470_vm1, %v10566_v24 }
 0xa4e   : > { %14468 = vmatmul.mubr.msk.bf16.vlgmr.msra.gmra.mrb[0].mxu1 %vm470_vm1, %v10567_v35 }
 0xa4f   : > { %14471 = vmatprep.mubr.msk.bf16.mxu1 %vm470_vm1, %v10568_v28  ;;  %14476 = vmatpush3.bf16.msra.mxu1 %v10695_v37 }
 0xa50   : > { %15129 = vmatprep.subr.msk.bf16.mxu1 %vm4885_vm13, %v12911_v57 }
 0xa56   : > { %14472 = vmatmul.mubr.msk.bf16.gmra.mrb[4].mxu1 %vm470_vm1, %v10569_v62 }
 0xa57   : > { %14477 = vmatprep.mubr.msk.bf16.mxu1 %vm470_vm1, %v10676_v45 }
 0xa5e   : > { %14478 = vmatmul.mubr.msk.bf16.vlgmr.msra.gmra.mrb[0].mxu1 %vm470_vm1, %v10677_v50 }
 0xa5f   : > { %14481 = vmatprep.mubr.msk.bf16.mxu1 %vm470_vm1, %v10678_v26  ;;  %14486 = vmatpush3.bf16.msra.mxu1 %v10805_v55 }
 0xa60   : > { %15130 = vmatprep.subr.msk.bf16.mxu1 %vm4885_vm13, %v12916_v19 }
 0xa66   : > { %14482 = vmatmul.mubr.msk.bf16.gmra.mrb[4].mxu1 %vm470_vm1, %v10679_v16 }
 0xa67   : > { %14487 = vmatprep.mubr.msk.bf16.mxu1 %vm470_vm1, %v10786_v21  ;;  %v18311_v21 = vld [vmem:[%s18590_s7] sm:$0xff]  }
 0xa6e   : > { %14488 = vmatmul.mubr.msk.bf16.vlgmr.msra.gmra.mrb[0].mxu1 %vm470_vm1, %v10787_v51 }
 0xa6f   : > { %14491 = vmatprep.mubr.msk.bf16.mxu1 %vm470_vm1, %v10788_v11  ;;  %14496 = vmatpush3.bf16.msra.mxu1 %v10907_v13 }
 0xa70   : > { %15131 = vmatprep.subr.msk.bf16.mxu1 %vm4885_vm13, %v12921_v47 }
 0xa76   : > { %14492 = vmatmul.mubr.msk.bf16.gmra.mrb[4].mxu1 %vm470_vm1, %v10789_v18 }
 0xa77   : > { %14497 = vmatprep.mubr.msk.bf16.mxu1 %vm470_vm1, %v18074_v4  ;;  %v10993_v4 = vmul.f32 %v18977_v30, %v18151_v15  ;;  %v10997_v30 = vmul.f32 %v18981_v20, %v10989_v58 }
 0xa79   : > { %v11001_v15 = vpack.c.bf16 %v10997_v30, %v10996_v40 }
 0xa7e   : > { %14498 = vmatmul.mubr.msk.bf16.vlgmr.msra.gmra.mrb[0].mxu1 %vm470_vm1, %v18091_v5  ;;  %v10995_v5 = vmul.f32 %v18978_v23, %v18167_v33  ;;  %v12927_v23 = vld [vmem:[%s18589_s6 + $0x6] ss:$0 sm:$0xff] }
 0xa7f   : > { %14501 = vmatprep.mubr.msk.bf16.mxu1 %vm470_vm1, %v18107_v27  ;;  %14506 = vmatpush3.bf16.msra.mxu1 %v11017_v44  ;;  %v10992_v27 = vmul.f32 %v18979_v32, %v18158_v41 }
 0xa80   : > { %v11000_v22 = vpack.c.bf16 %v10995_v5, %v10994_v36 }
 0xa81   : > { %v10999_v56 = vpack.c.bf16 %v10993_v4, %v10992_v27 }
 0xa86   : > { %14502 = vmatmul.mubr.msk.bf16.gmra.mrb[4].mxu1 %vm470_vm1, %v10891_v12 }
 0xa87   : > { %14507 = vmatprep.mubr.msk.bf16.mxu1 %vm470_vm1, %v10998_v38 }
 0xa8e   : > { %14508 = vmatmul.mubr.msk.bf16.vlgmr.msra.gmra.mrb[0].mxu1 %vm470_vm1, %v10999_v56 }
 0xa8f   : > { %14511 = vmatprep.mubr.msk.bf16.mxu1 %vm470_vm1, %v11000_v22 }
 0xa96   : > { %14512 = vmatmul.mubr.msk.bf16.gmra.mrb[4].mxu1 %vm470_vm1, %v11001_v15 }
 0xb61   : > { %v14509_v32 = vpop.f32.mrb[0].mxu1 }
 0xb62   : > { %v11102_v42 = vadd.f32 %v14509_v32, %v12927_v23  ;;  %v11053_v41 = vpop.f32.mrb[1].mxu1 }
 0xb63   : > { %v11100_v33 = vadd.f32 %v12927_v23, %v11053_v41  ;;  %v14510_v34 = vpop.f32.mrb[2].mxu1 }
 0xb64   : > { %v11110_v31 = vmax.f32 %v11102_v42, 0.0  ;;  %v11103_v46 = vadd.f32 %v14510_v34, %v12927_v23  ;;  %v11056_v24 = vpop.f32.mrb[3].mxu1 }
 0xb65   : > { %v11108_v35 = vmax.f32 %v11100_v33, 0.0  ;;  %v11101_v37 = vadd.f32 %v12927_v23, %v11056_v24 }
 0xb66   : > { %11118 = vst.msk [vmem:[#allocation2 + $0x13b] sm:$0xff] %vm470_vm1, %v11110_v31  ;;  %v11111_v20 = vmax.f32 %v11103_v46, 0.0 }
 0xb67   : > { %11116 = vst.msk [vmem:[#allocation2 + $0x12b] sm:$0xff] %vm470_vm1, %v11108_v35  ;;  %v11109_v25 = vmax.f32 %v11101_v37, 0.0 }
 0xb68   : > { %11119 = vst.msk [vmem:[#allocation2 + $0x143] sm:$0xff] %vm470_vm1, %v11111_v20 }
 0xb69   : > { %11117 = vst.msk [vmem:[#allocation2 + $0x133] sm:$0xff] %vm470_vm1, %v11109_v25  ;;  %v14513_v28 = vpop.f32.mrb[4].mxu1 }
 0xb6a   : > { %v11106_v57 = vadd.f32 %v14513_v28, %v12927_v23  ;;  %v11069_v2 = vpop.f32.mrb[5].mxu1 }
 0xb6b   : > { %v11104_v48 = vadd.f32 %v12927_v23, %v11069_v2  ;;  %v14514_v63 = vpop.f32.mrb[6].mxu1 }
 0xb6c   : > { %v11114_v62 = vmax.f32 %v11106_v57, 0.0  ;;  %v11107_v45 = vadd.f32 %v14514_v63, %v12927_v23  ;;  %v11072_v14 = vpop.f32.mrb[7].mxu1 }
 0xb6d   : > { %v11112_v43 = vmax.f32 %v11104_v48, 0.0  ;;  %v11105_v7 = vadd.f32 %v12927_v23, %v11072_v14  ;;  %v11289_v1 = vld [vmem:[#allocation2 + $0x13b] sm:$0xff] }
 0xb6e   : > { %11122 = vst.msk [vmem:[#allocation2 + $0x15b] sm:$0xff] %vm470_vm1, %v11114_v62  ;;  %v11115_v8 = vmax.f32 %v11107_v45, 0.0  ;;  %v11124_v50 = vld [vmem:[#allocation2 + $0x12b] sm:$0xff]  ;;  %v11291_v13 = vmul.f32 0.25, %v11289_v1  ;;  %v11347_v29 = vmul.f32 0.75, %v11289_v1 }
 0xb6f   : > { %11120 = vst.msk [vmem:[#allocation2 + $0x14b] sm:$0xff] %vm470_vm1, %v11112_v43  ;;  %v11113_v55 = vmax.f32 %v11105_v7, 0.0  ;;  %v11125_v26 = vpack.c.bf16 %v11124_v50, %v11124_v50  ;;  %v11178_v3 = vmul.f32 0.75, %v11124_v50  ;;  %v11234_v16 = vmul.f32 0.25, %v11124_v50  ;;  %v11401_v44 = vld [vmem:[#allocation2 + $0x143] sm:$0xff] }
 0xb70   : > { %11123 = vst.msk [vmem:[#allocation2 + $0x163] sm:$0xff] %vm470_vm1, %v11115_v8  ;;  %v11177_v10 = vld [vmem:[#allocation2 + $0x133] sm:$0xff]  ;;  %v11403_v54 = vmul.f32 0.25, %v11401_v44  ;;  %v11459_v4 = vmul.f32 0.75, %v11401_v44 }
 0xb71   : > { %11121 = vst.msk [vmem:[#allocation2 + $0x153] sm:$0xff] %vm470_vm1, %v11113_v55  ;;  %v11127_v19 = vsel %vm4885_vm13, %v11125_v26, 0  ;;  %v11179_v6 = vmul.f32 0.25, %v11177_v10  ;;  %v11235_v17 = vmul.f32 0.75, %v11177_v10 }
 0xb72   : > { %14516 = vmatpush3.bf16.msra.mxu0 %v11127_v19  ;;  %v11404_v12 = vadd.f32 %v11403_v54, %v11347_v29  ;;  %v11460_v27 = vadd.f32 %v11459_v4, %v11291_v13 }
 0xb73   : > { %14521 = vmatprep.subr.bf16.mxu0 %v18785_v49  ;;  %v11180_v0 = vadd.f32 %v11179_v6, %v11178_v3  ;;  %v11236_v39 = vadd.f32 %v11235_v17, %v11234_v16  ;;  %v11292_v59 = vadd.f32 %v11291_v13, %v11235_v17  ;;  %v11348_v18 = vadd.f32 %v11347_v29, %v11179_v6  ;;  %v11226_v29 = vld [vmem:[#allocation3 + $0x10] sm:$0xff] }
 0xb74   : > { %v11405_v38 = vpack.c.bf16 %v11404_v12, %v11404_v12  ;;  %v11461_v56 = vpack.c.bf16 %v11460_v27, %v11460_v27 }
 0xb75   : > { %14518 = vmatmul.mubr.msk.bf16.vlgmr.msra.gmra.mrb[120].mxu0 %vm470_vm1, %v18311_v21  ;;  %v11181_v61 = vpack.c.bf16 %v11180_v0, %v11180_v0  ;;  %v11237_v51 = vpack.c.bf16 %v11236_v39, %v11236_v39  ;;  %v11293_v47 = vpack.c.bf16 %v11292_v59, %v11292_v59  ;;  %v11349_v52 = vpack.c.bf16 %v11348_v18, %v11348_v18  ;;  %v11737_v20 = vld [vmem:[#allocation2 + $0x15b] sm:$0xff] }
 0xb76   : > { %14523 = vmatprep.mubr.msk.bf16.mxu0 %vm15245_vm12, %v18785_v49  ;;  %v11407_v5 = vsel %vm4885_vm13, %v11405_v38, 0  ;;  %v11513_v36 = vld [vmem:[#allocation2 + $0x14b] sm:$0xff]  ;;  %v11463_v58 = vsel %vm4885_vm13, %v11461_v56, 0  ;;  %v11739_v28 = vmul.f32 0.25, %v11737_v20  ;;  %v11795_v63 = vmul.f32 0.75, %v11737_v20 }
 0xb77   : > { %v11183_v60 = vsel %vm4885_vm13, %v11181_v61, 0  ;;  %v11239_v11 = vsel %vm4885_vm13, %v11237_v51, 0  ;;  %v11295_v53 = vsel %vm4885_vm13, %v11293_v47, 0  ;;  %v11351_v9 = vsel %vm4885_vm13, %v11349_v52, 0  ;;  %v11849_v14 = vld [vmem:[#allocation2 + $0x163] sm:$0xff]  ;;  %v11227_v52 = vld [vmem:[#allocation3 + $0x18] sm:$0xff] }
 0xb78   : > { %14522 = vmatpush3.bf16.msra.mxu0 %v11183_v60  ;;  %v11515_v22 = vmul.f32 0.25, %v11513_v36  ;;  %v11571_v15 = vmul.f32 0.75, %v11513_v36  ;;  %v11625_v42 = vld [vmem:[#allocation2 + $0x153] sm:$0xff]  ;;  %v11851_v7 = vmul.f32 0.25, %v11849_v14  ;;  %v11907_v26 = vmul.f32 0.75, %v11849_v14 }
 0xb79   : > { %14527 = vmatprep.subr.bf16.mxu0 %v18785_v49  ;;  %v11627_v33 = vmul.f32 0.25, %v11625_v42  ;;  %v11683_v24 = vmul.f32 0.75, %v11625_v42  ;;  %v11961_v17 = vpack.c.bf16 %v11849_v14, %v11849_v14  ;;  %v12060_v0 = vld [vmem:[%s18593_s10] sm:$0xf]  ;;  %v11170_v60 = vld [vmem:[#allocation3] sm:$0xff]  ;;  %v11338_v42 = vld [vmem:[#allocation3 + $0x30] sm:$0xff] }
 0xb7a   : > { %v11516_v40 = vadd.f32 %v11515_v22, %v11459_v4  ;;  %v11572_v32 = vadd.f32 %v11571_v15, %v11403_v54  ;;  %v11852_v50 = vadd.f32 %v11851_v7, %v11795_v63  ;;  %v11908_v19 = vadd.f32 %v11907_v26, %v11739_v28 }
 0xb7b   : > { %v11628_v31 = vadd.f32 %v11627_v33, %v11571_v15  ;;  %v11684_v37 = vadd.f32 %v11683_v24, %v11515_v22  ;;  %v11740_v2 = vadd.f32 %v11739_v28, %v11683_v24  ;;  %v11796_v45 = vadd.f32 %v11795_v63, %v11627_v33  ;;  %v11283_v22 = vld [vmem:[#allocation3 + $0x28] sm:$0xff]  ;;  %v11394_v28 = vld [vmem:[#allocation3 + $0x40] sm:$0xff] }
 0xb7c   : > { %v11517_v30 = vpack.c.bf16 %v11516_v40, %v11516_v40  ;;  %v11573_v41 = vpack.c.bf16 %v11572_v32, %v11572_v32  ;;  %v11853_v55 = vpack.c.bf16 %v11852_v50, %v11852_v50  ;;  %v11909_v3 = vpack.c.bf16 %v11908_v19, %v11908_v19  ;;  %v11395_v63 = vld [vmem:[#allocation3 + $0x48] sm:$0xff]  ;;  %v11450_v50 = vld [vmem:[#allocation3 + $0x50] sm:$0xff]  ;;  %v11451_v19 = vld [vmem:[#allocation3 + $0x58] sm:$0xff] }
 0xb7d   : > { %14524 = vmatmul.mubr.msk.bf16.vlgmr.msra.gmra.mrb[124].mxu0 %vm470_vm1, %v18311_v21  ;;  %v11629_v46 = vpack.c.bf16 %v11628_v31, %v11628_v31  ;;  %v11685_v25 = vpack.c.bf16 %v11684_v37, %v11684_v37  ;;  %v11741_v48 = vpack.c.bf16 %v11740_v2, %v11740_v2  ;;  %v11797_v43 = vpack.c.bf16 %v11796_v45, %v11796_v45  ;;  %v11339_v31 = vld [vmem:[#allocation3 + $0x38] sm:$0xff] }
 0xb7e   : > { %14528 = vmatpush3.bf16.msra.mxu0 %v11239_v11  ;;  %14529 = vmatprep.mubr.msk.bf16.mxu0 %vm15245_vm12, %v18785_v49  ;;  %v11519_v23 = vsel %vm4885_vm13, %v11517_v30, 0  ;;  %v11575_v34 = vsel %vm4885_vm13, %v11573_v41, 0  ;;  %v11855_v10 = vsel %vm4885_vm13, %v11853_v55, 0  ;;  %v11911_v6 = vsel %vm4885_vm13, %v11909_v3, 0  ;;  %v11171_v11 = vld [vmem:[#allocation3 + $0x8] sm:$0xff] }
 0xb7f   : > { %14533 = vmatprep.subr.bf16.mxu0 %v18785_v49  ;;  %v11631_v35 = vsel %vm4885_vm13, %v11629_v46, 0  ;;  %v11687_v57 = vsel %vm4885_vm13, %v11685_v25, 0  ;;  %v11743_v62 = vsel %vm4885_vm13, %v11741_v48, 0  ;;  %v11799_v8 = vsel %vm4885_vm13, %v11797_v43, 0 }
 0xb80   : > { %v11963_v16 = vsel %vm4885_vm13, %v11961_v17, 0  ;;  %v12117_v61 = vsel %vm4885_vm13, %v12060_v0, 0 }
 0xb85   : > { %14530 = vmatmul.mubr.msk.bf16.vlgmr.msra.gmra.mrb[128].mxu0 %vm470_vm1, %v18311_v21 }
 0xb86   : > { %14534 = vmatpush3.bf16.msra.mxu0 %v11295_v53  ;;  %14535 = vmatprep.mubr.msk.bf16.mxu0 %vm15245_vm12, %v18785_v49 }
 0xb87   : > { %14539 = vmatprep.subr.bf16.mxu0 %v18785_v49 }
 0xb8d   : > { %14536 = vmatmul.mubr.msk.bf16.vlgmr.msra.gmra.mrb[132].mxu0 %vm470_vm1, %v18311_v21 }
 0xb8e   : > { %14540 = vmatpush3.bf16.msra.mxu0 %v11351_v9  ;;  %14541 = vmatprep.mubr.msk.bf16.mxu0 %vm15245_vm12, %v18785_v49 }
 0xb8f   : > { %14545 = vmatprep.subr.bf16.mxu0 %v18785_v49 }
 0xb95   : > { %14542 = vmatmul.mubr.msk.bf16.vlgmr.msra.gmra.mrb[136].mxu0 %vm470_vm1, %v18311_v21 }
 0xb96   : > { %14546 = vmatpush3.bf16.msra.mxu0 %v11407_v5  ;;  %14547 = vmatprep.mubr.msk.bf16.mxu0 %vm15245_vm12, %v18785_v49  ;;  %v11282_v5 = vld [vmem:[#allocation3 + $0x20] sm:$0xff] }
 0xb97   : > { %14551 = vmatprep.subr.bf16.mxu0 %v18785_v49 }
 0xb9d   : > { %14548 = vmatmul.mubr.msk.bf16.vlgmr.msra.gmra.mrb[140].mxu0 %vm470_vm1, %v18311_v21 }
 0xb9e   : > { %14552 = vmatpush3.bf16.msra.mxu0 %v11463_v58  ;;  %14553 = vmatprep.mubr.msk.bf16.mxu0 %vm15245_vm12, %v18785_v49 }
 0xb9f   : > { %14557 = vmatprep.subr.bf16.mxu0 %v18785_v49 }
 0xba5   : > { %14554 = vmatmul.mubr.msk.bf16.vlgmr.msra.gmra.mrb[144].mxu0 %vm470_vm1, %v18311_v21 }
 0xba6   : > { %14558 = vmatpush3.bf16.msra.mxu0 %v11519_v23  ;;  %14559 = vmatprep.mubr.msk.bf16.mxu0 %vm15245_vm12, %v18785_v49 }
 0xba7   : > { %14563 = vmatprep.subr.bf16.mxu0 %v18785_v49 }
 0xbad   : > { %14560 = vmatmul.mubr.msk.bf16.vlgmr.msra.gmra.mrb[148].mxu0 %vm470_vm1, %v18311_v21 }
 0xbae   : > { %14564 = vmatpush3.bf16.msra.mxu0 %v11575_v34  ;;  %14565 = vmatprep.mubr.msk.bf16.mxu0 %vm15245_vm12, %v18785_v49 }
 0xbaf   : > { %14569 = vmatprep.subr.bf16.mxu0 %v18785_v49 }
 0xbb5   : > { %14566 = vmatmul.mubr.msk.bf16.vlgmr.msra.gmra.mrb[152].mxu0 %vm470_vm1, %v18311_v21 }
 0xbb6   : > { %14570 = vmatpush3.bf16.msra.mxu0 %v11631_v35  ;;  %14571 = vmatprep.mubr.msk.bf16.mxu0 %vm15245_vm12, %v18785_v49 }
 0xbb7   : > { %14575 = vmatprep.subr.bf16.mxu0 %v18785_v49 }
 0xbbd   : > { %14572 = vmatmul.mubr.msk.bf16.vlgmr.msra.gmra.mrb[156].mxu0 %vm470_vm1, %v18311_v21 }
 0xbbe   : > { %14576 = vmatpush3.bf16.msra.mxu0 %v11687_v57  ;;  %14577 = vmatprep.mubr.msk.bf16.mxu0 %vm15245_vm12, %v18785_v49 }
 0xbbf   : > { %14581 = vmatprep.subr.bf16.mxu0 %v18785_v49 }
 0xbc5   : > { %14578 = vmatmul.mubr.msk.bf16.vlgmr.msra.gmra.mrb[160].mxu0 %vm470_vm1, %v18311_v21 }
 0xbc6   : > { %14582 = vmatpush3.bf16.msra.mxu0 %v11743_v62  ;;  %14583 = vmatprep.mubr.msk.bf16.mxu0 %vm15245_vm12, %v18785_v49 }
 0xbc7   : > { %14587 = vmatprep.subr.bf16.mxu0 %v18785_v49 }
 0xbcd   : > { %14584 = vmatmul.mubr.msk.bf16.vlgmr.msra.gmra.mrb[164].mxu0 %vm470_vm1, %v18311_v21 }
 0xbce   : > { %14588 = vmatpush3.bf16.msra.mxu0 %v11799_v8  ;;  %14589 = vmatprep.mubr.msk.bf16.mxu0 %vm15245_vm12, %v18785_v49 }
 0xbcf   : > { %14593 = vmatprep.subr.bf16.mxu0 %v18785_v49 }
 0xbd5   : > { %14590 = vmatmul.mubr.msk.bf16.vlgmr.msra.gmra.mrb[168].mxu0 %vm470_vm1, %v18311_v21 }
 0xbd6   : > { %14594 = vmatpush3.bf16.msra.mxu0 %v11855_v10  ;;  %14595 = vmatprep.mubr.msk.bf16.mxu0 %vm15245_vm12, %v18785_v49 }
 0xbd7   : > { %14599 = vmatprep.subr.bf16.mxu0 %v18785_v49 }
 0xbdd   : > { %14596 = vmatmul.mubr.msk.bf16.vlgmr.msra.gmra.mrb[172].mxu0 %vm470_vm1, %v18311_v21 }
 0xbde   : > { %14600 = vmatpush3.bf16.msra.mxu0 %v11911_v6  ;;  %14601 = vmatprep.mubr.msk.bf16.mxu0 %vm15245_vm12, %v18785_v49 }
 0xbdf   : > { %14605 = vmatprep.subr.bf16.mxu0 %v18785_v49 }
 0xbe5   : > { %14602 = vmatmul.mubr.msk.bf16.vlgmr.msra.gmra.mrb[176].mxu0 %vm470_vm1, %v18311_v21 }
 0xbe6   : > { %14606 = vmatpush3.bf16.msra.mxu0 %v11963_v16  ;;  %14607 = vmatprep.mubr.msk.bf16.mxu0 %vm15245_vm12, %v18785_v49 }
 0xbe7   : > { %15132 = vmatprep.subr.msk.bf16.mxu0 %vm4885_vm13, %v12060_v0 }
 0xbed   : > { %14608 = vmatmul.mubr.msk.bf16.vlgmr.msra.gmra.mrb[180].mxu0 %vm470_vm1, %v18311_v21 }
 0xbee   : > { %14612 = vmatpush3.bf16.msra.mxu0 %v12117_v61 }
 0xc48   : > { %v11163_v39 = vpop.f32.mrb[120].mxu0 }
 0xc49   : > { %v11172_v1 = vadd.f32 %v11170_v60, %v11163_v39  ;;  %v14519_v51 = vpop.f32.mrb[121].mxu0  ;;  %v11506_v39 = vld [vmem:[#allocation3 + $0x60] sm:$0xff] }
 0xc4a   : > { %v11166_v13 = vpop.f32.mrb[122].mxu0 }
 0xc4b   : > { %11174 = vst.msk [vmem:[#allocation3] sm:$0xff] %vm470_vm1, %v11172_v1  ;;  %v11173_v59 = vadd.f32 %v11171_v11, %v11166_v13  ;;  %v14520_v47 = vpop.f32.mrb[123].mxu0  ;;  %v11507_v13 = vld [vmem:[#allocation3 + $0x68] sm:$0xff] }
 0xc4d   : > { %11175 = vst.msk [vmem:[#allocation3 + $0x8] sm:$0xff] %vm470_vm1, %v11173_v59 }
 0xc50   : > { %v11219_v49 = vpop.f32.mrb[124].mxu0 }
 0xc51   : > { %v11228_v53 = vadd.f32 %v11226_v29, %v11219_v49  ;;  %v14525_v18 = vpop.f32.mrb[125].mxu0 }
 0xc52   : > { %v11222_v44 = vpop.f32.mrb[126].mxu0  ;;  %v12012_v9 = vld [vmem:[#allocation3] sm:$0xff]  ;;  %v11562_v18 = vld [vmem:[#allocation3 + $0x70] sm:$0xff] }
 0xc53   : > { %11230 = vst.msk [vmem:[#allocation3 + $0x10] sm:$0xff] %vm470_vm1, %v11228_v53  ;;  %v11229_v21 = vadd.f32 %v11227_v52, %v11222_v44  ;;  %v14526_v54 = vpop.f32.mrb[127].mxu0 }
 0xc54   : > { %v12013_v12 = vld [vmem:[#allocation3 + $0x8] sm:$0xff]  ;;  %v11563_v54 = vld [vmem:[#allocation3 + $0x78] sm:$0xff] }
 0xc55   : > { %11231 = vst.msk [vmem:[#allocation3 + $0x18] sm:$0xff] %vm470_vm1, %v11229_v21  ;;  %v12044_v38 = vpack.c.bf16 %v12013_v12, %v12012_v9 }
 0xc57   : > { %14613 = vmatprep.mubr.msk.bf16.mxu0 %vm470_vm1, %v12044_v38 }
 0xc58   : > { %v11275_v4 = vpop.f32.mrb[128].mxu0 }
 0xc59   : > { %v11284_v27 = vadd.f32 %v11282_v5, %v11275_v4  ;;  %v14531_v36 = vpop.f32.mrb[129].mxu0 }
 0xc5a   : > { %v11278_v56 = vpop.f32.mrb[130].mxu0  ;;  %v12014_v30 = vld [vmem:[#allocation3 + $0x10] sm:$0xff]  ;;  %v11618_v36 = vld [vmem:[#allocation3 + $0x80] sm:$0xff] }
 0xc5b   : > { %11286 = vst.msk [vmem:[#allocation3 + $0x20] sm:$0xff] %vm470_vm1, %v11284_v27  ;;  %v11285_v58 = vadd.f32 %v11283_v22, %v11278_v56  ;;  %v14532_v40 = vpop.f32.mrb[131].mxu0 }
 0xc5c   : > { %v12015_v15 = vld [vmem:[#allocation3 + $0x18] sm:$0xff]  ;;  %v11619_v40 = vld [vmem:[#allocation3 + $0x88] sm:$0xff] }
 0xc5d   : > { %11287 = vst.msk [vmem:[#allocation3 + $0x28] sm:$0xff] %vm470_vm1, %v11285_v58  ;;  %v12045_v23 = vpack.c.bf16 %v12015_v15, %v12014_v30 }
 0xc5f   : > { %14614 = vmatmul.mubr.msk.bf16.vlgmr.msra.gmra.mrb[184].mxu0 %vm470_vm1, %v12045_v23 }
 0xc60   : > { %v11331_v32 = vpop.f32.mrb[132].mxu0 }
 0xc61   : > { %v11340_v41 = vadd.f32 %v11338_v42, %v11331_v32  ;;  %v14537_v33 = vpop.f32.mrb[133].mxu0 }
 0xc62   : > { %v11334_v34 = vpop.f32.mrb[134].mxu0  ;;  %v12016_v35 = vld [vmem:[#allocation3 + $0x20] sm:$0xff]  ;;  %v11674_v33 = vld [vmem:[#allocation3 + $0x90] sm:$0xff] }
 0xc63   : > { %11342 = vst.msk [vmem:[#allocation3 + $0x30] sm:$0xff] %vm470_vm1, %v11340_v41  ;;  %v11341_v46 = vadd.f32 %v11339_v31, %v11334_v34  ;;  %v14538_v24 = vpop.f32.mrb[135].mxu0 }
 0xc64   : > { %v12017_v37 = vld [vmem:[#allocation3 + $0x28] sm:$0xff]  ;;  %v11675_v24 = vld [vmem:[#allocation3 + $0x98] sm:$0xff] }
 0xc65   : > { %11343 = vst.msk [vmem:[#allocation3 + $0x38] sm:$0xff] %vm470_vm1, %v11341_v46  ;;  %v12046_v20 = vpack.c.bf16 %v12017_v37, %v12016_v35 }
 0xc67   : > { %14617 = vmatprep.mubr.msk.bf16.mxu0 %vm470_vm1, %v12046_v20 }
 0xc68   : > { %v11387_v25 = vpop.f32.mrb[136].mxu0 }
 0xc69   : > { %v11396_v57 = vadd.f32 %v11394_v28, %v11387_v25  ;;  %v14543_v2 = vpop.f32.mrb[137].mxu0 }
 0xc6a   : > { %v11390_v48 = vpop.f32.mrb[138].mxu0  ;;  %v12018_v14 = vld [vmem:[#allocation3 + $0x30] sm:$0xff]  ;;  %v11730_v2 = vld [vmem:[#allocation3 + $0xa0] sm:$0xff] }
 0xc6b   : > { %11398 = vst.msk [vmem:[#allocation3 + $0x40] sm:$0xff] %vm470_vm1, %v11396_v57  ;;  %v11397_v62 = vadd.f32 %v11395_v63, %v11390_v48  ;;  %v14544_v45 = vpop.f32.mrb[139].mxu0 }
 0xc6c   : > { %v12019_v43 = vld [vmem:[#allocation3 + $0x38] sm:$0xff]  ;;  %v11731_v45 = vld [vmem:[#allocation3 + $0xa8] sm:$0xff] }
 0xc6d   : > { %11399 = vst.msk [vmem:[#allocation3 + $0x48] sm:$0xff] %vm470_vm1, %v11397_v62  ;;  %v12047_v7 = vpack.c.bf16 %v12019_v43, %v12018_v14 }
 0xc6f   : > { %14618 = vmatmul.mubr.msk.bf16.gmra.mrb[188].mxu0 %vm470_vm1, %v12047_v7 }
 0xc70   : > { %v11443_v8 = vpop.f32.mrb[140].mxu0 }
 0xc71   : > { %v11452_v55 = vadd.f32 %v11450_v50, %v11443_v8  ;;  %v14549_v26 = vpop.f32.mrb[141].mxu0 }
 0xc72   : > { %v11446_v10 = vpop.f32.mrb[142].mxu0  ;;  %v12020_v17 = vld [vmem:[#allocation3 + $0x40] sm:$0xff]  ;;  %v11786_v26 = vld [vmem:[#allocation3 + $0xb0] sm:$0xff] }
 0xc73   : > { %11454 = vst.msk [vmem:[#allocation3 + $0x50] sm:$0xff] %vm470_vm1, %v11452_v55  ;;  %v11453_v3 = vadd.f32 %v11451_v19, %v11446_v10  ;;  %v14550_v6 = vpop.f32.mrb[143].mxu0 }
 0xc74   : > { %v12021_v0 = vld [vmem:[#allocation3 + $0x48] sm:$0xff]  ;;  %v11787_v6 = vld [vmem:[#allocation3 + $0xb8] sm:$0xff] }
 0xc75   : > { %11455 = vst.msk [vmem:[#allocation3 + $0x58] sm:$0xff] %vm470_vm1, %v11453_v3  ;;  %v12048_v16 = vpack.c.bf16 %v12021_v0, %v12020_v17 }
 0xc77   : > { %14621 = vmatprep.mubr.msk.bf16.mxu0 %vm470_vm1, %v12048_v16 }
 0xc78   : > { %v11499_v61 = vpop.f32.mrb[144].mxu0 }
 0xc79   : > { %v11508_v60 = vadd.f32 %v11506_v39, %v11499_v61  ;;  %v14555_v1 = vpop.f32.mrb[145].mxu0 }
 0xc7a   : > { %v11502_v51 = vpop.f32.mrb[146].mxu0  ;;  %v12022_v47 = vld [vmem:[#allocation3 + $0x50] sm:$0xff]  ;;  %v11842_v1 = vld [vmem:[#allocation3 + $0xc0] sm:$0xff] }
 0xc7b   : > { %11510 = vst.msk [vmem:[#allocation3 + $0x60] sm:$0xff] %vm470_vm1, %v11508_v60  ;;  %v11509_v11 = vadd.f32 %v11507_v13, %v11502_v51  ;;  %v14556_v59 = vpop.f32.mrb[147].mxu0 }
 0xc7c   : > { %v12023_v49 = vld [vmem:[#allocation3 + $0x58] sm:$0xff]  ;;  %v11843_v59 = vld [vmem:[#allocation3 + $0xc8] sm:$0xff] }
 0xc7d   : > { %11511 = vst.msk [vmem:[#allocation3 + $0x68] sm:$0xff] %vm470_vm1, %v11509_v11  ;;  %v12049_v29 = vpack.c.bf16 %v12023_v49, %v12022_v47 }
 0xc7f   : > { %14622 = vmatmul.mubr.msk.bf16.gmra.mrb[192].mxu0 %vm470_vm1, %v12049_v29 }
 0xc80   : > { %v11555_v53 = vpop.f32.mrb[148].mxu0 }
 0xc81   : > { %v11564_v44 = vadd.f32 %v11562_v18, %v11555_v53  ;;  %v14561_v52 = vpop.f32.mrb[149].mxu0 }
 0xc82   : > { %v11558_v21 = vpop.f32.mrb[150].mxu0  ;;  %v12024_v38 = vld [vmem:[#allocation3 + $0x60] sm:$0xff]  ;;  %v11898_v52 = vld [vmem:[#allocation3 + $0xd0] sm:$0xff] }
 0xc83   : > { %11566 = vst.msk [vmem:[#allocation3 + $0x70] sm:$0xff] %vm470_vm1, %v11564_v44  ;;  %v11565_v9 = vadd.f32 %v11563_v54, %v11558_v21  ;;  %v14562_v12 = vpop.f32.mrb[151].mxu0 }
 0xc84   : > { %v12025_v4 = vld [vmem:[#allocation3 + $0x68] sm:$0xff]  ;;  %v11899_v12 = vld [vmem:[#allocation3 + $0xd8] sm:$0xff] }
 0xc85   : > { %11567 = vst.msk [vmem:[#allocation3 + $0x78] sm:$0xff] %vm470_vm1, %v11565_v9  ;;  %v12050_v5 = vpack.c.bf16 %v12025_v4, %v12024_v38 }
 0xc87   : > { %14625 = vmatprep.mubr.msk.bf16.mxu0 %vm470_vm1, %v12050_v5 }
 0xc88   : > { %v11611_v27 = vpop.f32.mrb[152].mxu0 }
 0xc89   : > { %v11620_v56 = vadd.f32 %v11618_v36, %v11611_v27  ;;  %v14567_v22 = vpop.f32.mrb[153].mxu0 }
 0xc8a   : > { %v11614_v58 = vpop.f32.mrb[154].mxu0  ;;  %v12026_v23 = vld [vmem:[#allocation3 + $0x70] sm:$0xff]  ;;  %v11954_v22 = vld [vmem:[#allocation3 + $0xe0] sm:$0xff] }
 0xc8b   : > { %11622 = vst.msk [vmem:[#allocation3 + $0x80] sm:$0xff] %vm470_vm1, %v11620_v56  ;;  %v11621_v30 = vadd.f32 %v11619_v40, %v11614_v58  ;;  %v14568_v15 = vpop.f32.mrb[155].mxu0 }
 0xc8c   : > { %v12027_v32 = vld [vmem:[#allocation3 + $0x78] sm:$0xff]  ;;  %v11955_v15 = vld [vmem:[#allocation3 + $0xe8] sm:$0xff] }
 0xc8d   : > { %11623 = vst.msk [vmem:[#allocation3 + $0x88] sm:$0xff] %vm470_vm1, %v11621_v30  ;;  %v12051_v42 = vpack.c.bf16 %v12027_v32, %v12026_v23 }
 0xc8f   : > { %14626 = vmatmul.mubr.msk.bf16.gmra.mrb[196].mxu0 %vm470_vm1, %v12051_v42 }
 0xc90   : > { %v11667_v41 = vpop.f32.mrb[156].mxu0 }
 0xc91   : > { %v11676_v34 = vadd.f32 %v11674_v33, %v11667_v41  ;;  %v14573_v31 = vpop.f32.mrb[157].mxu0 }
 0xc92   : > { %v11670_v46 = vpop.f32.mrb[158].mxu0  ;;  %v12028_v20 = vld [vmem:[#allocation3 + $0x80] sm:$0xff]  ;;  %v12006_v31 = vld [vmem:[#allocation3 + $0xf0] sm:$0xff] }
 0xc93   : > { %11678 = vst.msk [vmem:[#allocation3 + $0x90] sm:$0xff] %vm470_vm1, %v11676_v34  ;;  %v11677_v35 = vadd.f32 %v11675_v24, %v11670_v46  ;;  %v14574_v37 = vpop.f32.mrb[159].mxu0 }
 0xc94   : > { %v12029_v25 = vld [vmem:[#allocation3 + $0x88] sm:$0xff]  ;;  %v12007_v37 = vld [vmem:[#allocation3 + $0xf8] sm:$0xff] }
 0xc95   : > { %11679 = vst.msk [vmem:[#allocation3 + $0x98] sm:$0xff] %vm470_vm1, %v11677_v35  ;;  %v12052_v28 = vpack.c.bf16 %v12029_v25, %v12028_v20 }
 0xc97   : > { %14629 = vmatprep.mubr.msk.bf16.mxu0 %vm470_vm1, %v12052_v28 }
 0xc98   : > { %v11723_v57 = vpop.f32.mrb[160].mxu0 }
 0xc99   : > { %v11732_v48 = vadd.f32 %v11730_v2, %v11723_v57  ;;  %v14579_v63 = vpop.f32.mrb[161].mxu0 }
 0xc9a   : > { %v11726_v62 = vpop.f32.mrb[162].mxu0  ;;  %v12030_v7 = vld [vmem:[#allocation3 + $0x90] sm:$0xff] }
 0xc9b   : > { %11734 = vst.msk [vmem:[#allocation3 + $0xa0] sm:$0xff] %vm470_vm1, %v11732_v48  ;;  %v11733_v14 = vadd.f32 %v11731_v45, %v11726_v62  ;;  %v14580_v43 = vpop.f32.mrb[163].mxu0  ;;  %v18461_v45 = vld [vmem:[%s18594_s11] ss:$0 sm:$0xff] }
 0xc9c   : > { %v12031_v8 = vld [vmem:[#allocation3 + $0x98] sm:$0xff] }
 0xc9d   : > { %11735 = vst.msk [vmem:[#allocation3 + $0xa8] sm:$0xff] %vm470_vm1, %v11733_v14  ;;  %v12053_v50 = vpack.c.bf16 %v12031_v8, %v12030_v7 }
 0xc9f   : > { %14630 = vmatmul.mubr.msk.bf16.gmra.mrb[200].mxu0 %vm470_vm1, %v12053_v50 }
 0xca0   : > { %v11779_v55 = vpop.f32.mrb[164].mxu0 }
 0xca1   : > { %v11788_v10 = vadd.f32 %v11786_v26, %v11779_v55  ;;  %v14585_v19 = vpop.f32.mrb[165].mxu0 }
 0xca2   : > { %v11782_v3 = vpop.f32.mrb[166].mxu0  ;;  %v12032_v16 = vld [vmem:[#allocation3 + $0xa0] sm:$0xff] }
 0xca3   : > { %11790 = vst.msk [vmem:[#allocation3 + $0xb0] sm:$0xff] %vm470_vm1, %v11788_v10  ;;  %v11789_v17 = vadd.f32 %v11787_v6, %v11782_v3  ;;  %v14586_v0 = vpop.f32.mrb[167].mxu0 }
 0xca4   : > { %v12033_v61 = vld [vmem:[#allocation3 + $0xa8] sm:$0xff] }
 0xca5   : > { %11791 = vst.msk [vmem:[#allocation3 + $0xb8] sm:$0xff] %vm470_vm1, %v11789_v17  ;;  %v12054_v39 = vpack.c.bf16 %v12033_v61, %v12032_v16 }
 0xca7   : > { %14633 = vmatprep.mubr.msk.bf16.mxu0 %vm470_vm1, %v12054_v39 }
 0xca8   : > { %v11835_v60 = vpop.f32.mrb[168].mxu0 }
 0xca9   : > { %v11844_v51 = vadd.f32 %v11842_v1, %v11835_v60  ;;  %v14591_v13 = vpop.f32.mrb[169].mxu0 }
 0xcaa   : > { %v11838_v11 = vpop.f32.mrb[170].mxu0  ;;  %v12034_v29 = vld [vmem:[#allocation3 + $0xb0] sm:$0xff] }
 0xcab   : > { %11846 = vst.msk [vmem:[#allocation3 + $0xc0] sm:$0xff] %vm470_vm1, %v11844_v51  ;;  %v11845_v47 = vadd.f32 %v11843_v59, %v11838_v11  ;;  %v14592_v49 = vpop.f32.mrb[171].mxu0 }
 0xcac   : > { %v12035_v53 = vld [vmem:[#allocation3 + $0xb8] sm:$0xff] }
 0xcad   : > { %11847 = vst.msk [vmem:[#allocation3 + $0xc8] sm:$0xff] %vm470_vm1, %v11845_v47  ;;  %v12055_v18 = vpack.c.bf16 %v12035_v53, %v12034_v29 }
 0xcaf   : > { %14634 = vmatmul.mubr.msk.bf16.gmra.mrb[204].mxu0 %vm470_vm1, %v12055_v18 }
 0xcb0   : > { %v11891_v44 = vpop.f32.mrb[172].mxu0 }
 0xcb1   : > { %v11900_v21 = vadd.f32 %v11898_v52, %v11891_v44  ;;  %v14597_v54 = vpop.f32.mrb[173].mxu0 }
 0xcb2   : > { %v11894_v9 = vpop.f32.mrb[174].mxu0  ;;  %v12036_v5 = vld [vmem:[#allocation3 + $0xc0] sm:$0xff] }
 0xcb3   : > { %11902 = vst.msk [vmem:[#allocation3 + $0xd0] sm:$0xff] %vm470_vm1, %v11900_v21  ;;  %v11901_v38 = vadd.f32 %v11899_v12, %v11894_v9  ;;  %v14598_v4 = vpop.f32.mrb[175].mxu0 }
 0xcb4   : > { %v12037_v27 = vld [vmem:[#allocation3 + $0xc8] sm:$0xff] }
 0xcb5   : > { %11903 = vst.msk [vmem:[#allocation3 + $0xd8] sm:$0xff] %vm470_vm1, %v11901_v38  ;;  %v12056_v36 = vpack.c.bf16 %v12037_v27, %v12036_v5 }
 0xcb7   : > { %14637 = vmatprep.mubr.msk.bf16.mxu0 %vm470_vm1, %v12056_v36 }
 0xcb8   : > { %v11947_v56 = vpop.f32.mrb[176].mxu0 }
 0xcb9   : > { %v11956_v58 = vadd.f32 %v11954_v22, %v11947_v56  ;;  %v14603_v40 = vpop.f32.mrb[177].mxu0 }
 0xcba   : > { %v11950_v30 = vpop.f32.mrb[178].mxu0  ;;  %v12038_v42 = vld [vmem:[#allocation3 + $0xd0] sm:$0xff] }
 0xcbb   : > { %11958 = vst.msk [vmem:[#allocation3 + $0xe0] sm:$0xff] %vm470_vm1, %v11956_v58  ;;  %v11957_v23 = vadd.f32 %v11955_v15, %v11950_v30  ;;  %v14604_v32 = vpop.f32.mrb[179].mxu0 }
 0xcbc   : > { %v12039_v41 = vld [vmem:[#allocation3 + $0xd8] sm:$0xff] }
 0xcbd   : > { %11959 = vst.msk [vmem:[#allocation3 + $0xe8] sm:$0xff] %vm470_vm1, %v11957_v23  ;;  %v12057_v33 = vpack.c.bf16 %v12039_v41, %v12038_v42 }
 0xcbf   : > { %14638 = vmatmul.mubr.msk.bf16.gmra.mrb[208].mxu0 %vm470_vm1, %v12057_v33 }
 0xcc0   : > { %v11999_v34 = vpop.f32.mrb[180].mxu0 }
 0xcc1   : > { %v12008_v46 = vadd.f32 %v12006_v31, %v11999_v34  ;;  %v14609_v24 = vpop.f32.mrb[181].mxu0 }
 0xcc2   : > { %v12002_v35 = vpop.f32.mrb[182].mxu0  ;;  %v12040_v28 = vld [vmem:[#allocation3 + $0xe0] sm:$0xff] }
 0xcc3   : > { %12010 = vst.msk [vmem:[#allocation3 + $0xf0] sm:$0xff] %vm470_vm1, %v12008_v46  ;;  %v12009_v20 = vadd.f32 %v12007_v37, %v12002_v35  ;;  %v14610_v25 = vpop.f32.mrb[183].mxu0 }
 0xcc4   : > { %v12041_v57 = vld [vmem:[#allocation3 + $0xe8] sm:$0xff] }
 0xcc5   : > { %12011 = vst.msk [vmem:[#allocation3 + $0xf8] sm:$0xff] %vm470_vm1, %v12009_v20  ;;  %v12058_v2 = vpack.c.bf16 %v12041_v57, %v12040_v28 }
 0xcc7   : > { %14641 = vmatprep.mubr.msk.bf16.mxu0 %vm470_vm1, %v12058_v2 }
 0xcca   : > { %v12042_v48 = vld [vmem:[#allocation3 + $0xf0] sm:$0xff] }
 0xccc   : > { %v12043_v63 = vld [vmem:[#allocation3 + $0xf8] sm:$0xff] }
 0xccd   : > { %v12059_v62 = vpack.c.bf16 %v12043_v63, %v12042_v48 }
 0xccf   : > { %14642 = vmatmul.mubr.msk.bf16.gmra.mrb[212].mxu0 %vm470_vm1, %v12059_v62 }
 0xd32   : > { %v14615_v14 = vpop.f32.mrb[184].mxu0 }
 0xd33   : > { %v12162_v43 = vadd.f32 %v14615_v14, %v18461_v45  ;;  %v12153_v7 = vpop.f32.mrb[185].mxu0 }
 0xd34   : > { %v12154_v8 = vadd.f32 %v18461_v45, %v12153_v7  ;;  %v14616_v50 = vpop.f32.mrb[186].mxu0 }
 0xd35   : > { %v12282_v55 = vmax.f32 %v12162_v43, 0.0  ;;  %v12165_v26 = vadd.f32 %v14616_v50, %v18461_v45  ;;  %v12156_v10 = vpop.f32.mrb[187].mxu0 }
 0xd36   : > { %v12280_v19 = vmax.f32 %v12154_v8, 0.0  ;;  %v12157_v3 = vadd.f32 %v18461_v45, %v12156_v10 }
 0xd37   : > { %12314 = vst [vmem:[%s18469_s28 + $0x10] sm:$0xff] %v12282_v55  ;;  %v12283_v6 = vmax.f32 %v12165_v26, 0.0 }
 0xd38   : > { %12312 = vst [vmem:[%s18469_s28] sm:$0xff] %v12280_v19  ;;  %v12281_v17 = vmax.f32 %v12157_v3, 0.0 }
 0xd39   : > { %12315 = vst [vmem:[%s18469_s28 + $0x18] sm:$0xff] %v12283_v6 }
 0xd3a   : > { %12313 = vst [vmem:[%s18469_s28 + $0x8] sm:$0xff] %v12281_v17 }
 0xd42   : > { %v14619_v0 = vpop.f32.mrb[188].mxu0 }
 0xd43   : > { %v12178_v16 = vadd.f32 %v14619_v0, %v18461_v45  ;;  %v12169_v61 = vpop.f32.mrb[189].mxu0 }
 0xd44   : > { %v12170_v39 = vadd.f32 %v18461_v45, %v12169_v61  ;;  %v14620_v60 = vpop.f32.mrb[190].mxu0 }
 0xd45   : > { %v12286_v1 = vmax.f32 %v12178_v16, 0.0  ;;  %v12181_v51 = vadd.f32 %v14620_v60, %v18461_v45  ;;  %v12172_v13 = vpop.f32.mrb[191].mxu0 }
 0xd46   : > { %v12284_v11 = vmax.f32 %v12170_v39, 0.0  ;;  %v12173_v59 = vadd.f32 %v18461_v45, %v12172_v13 }
 0xd47   : > { %12318 = vst [vmem:[%s18469_s28 + $0x30] sm:$0xff] %v12286_v1  ;;  %v12287_v47 = vmax.f32 %v12181_v51, 0.0 }
 0xd48   : > { %12316 = vst [vmem:[%s18469_s28 + $0x20] sm:$0xff] %v12284_v11  ;;  %v12285_v49 = vmax.f32 %v12173_v59, 0.0 }
 0xd49   : > { %12319 = vst [vmem:[%s18469_s28 + $0x38] sm:$0xff] %v12287_v47 }
 0xd4a   : > { %12317 = vst [vmem:[%s18469_s28 + $0x28] sm:$0xff] %v12285_v49 }
 0xd52   : > { %v14623_v29 = vpop.f32.mrb[192].mxu0 }
 0xd53   : > { %v12194_v53 = vadd.f32 %v14623_v29, %v18461_v45  ;;  %v12185_v18 = vpop.f32.mrb[193].mxu0 }
 0xd54   : > { %v12186_v44 = vadd.f32 %v18461_v45, %v12185_v18  ;;  %v14624_v52 = vpop.f32.mrb[194].mxu0 }
 0xd55   : > { %v12290_v21 = vmax.f32 %v12194_v53, 0.0  ;;  %v12197_v54 = vadd.f32 %v14624_v52, %v18461_v45  ;;  %v12188_v9 = vpop.f32.mrb[195].mxu0 }
 0xd56   : > { %v12288_v12 = vmax.f32 %v12186_v44, 0.0  ;;  %v12189_v38 = vadd.f32 %v18461_v45, %v12188_v9 }
 0xd57   : > { %12322 = vst [vmem:[%s18469_s28 + $0x50] sm:$0xff] %v12290_v21  ;;  %v12291_v4 = vmax.f32 %v12197_v54, 0.0 }
 0xd58   : > { %12320 = vst [vmem:[%s18469_s28 + $0x40] sm:$0xff] %v12288_v12  ;;  %v12289_v5 = vmax.f32 %v12189_v38, 0.0 }
 0xd59   : > { %12323 = vst [vmem:[%s18469_s28 + $0x58] sm:$0xff] %v12291_v4 }
 0xd5a   : > { %12321 = vst [vmem:[%s18469_s28 + $0x48] sm:$0xff] %v12289_v5 }
 0xd62   : > { %v14627_v27 = vpop.f32.mrb[196].mxu0 }
 0xd63   : > { %v12210_v36 = vadd.f32 %v14627_v27, %v18461_v45  ;;  %v12201_v56 = vpop.f32.mrb[197].mxu0 }
 0xd64   : > { %v12202_v22 = vadd.f32 %v18461_v45, %v12201_v56  ;;  %v14628_v58 = vpop.f32.mrb[198].mxu0 }
 0xd65   : > { %v12294_v40 = vmax.f32 %v12210_v36, 0.0  ;;  %v12213_v30 = vadd.f32 %v14628_v58, %v18461_v45  ;;  %v12204_v15 = vpop.f32.mrb[199].mxu0 }
 0xd66   : > { %v12292_v23 = vmax.f32 %v12202_v22, 0.0  ;;  %v12205_v32 = vadd.f32 %v18461_v45, %v12204_v15 }
 0xd67   : > { %12326 = vst [vmem:[%s18469_s28 + $0x70] sm:$0xff] %v12294_v40  ;;  %v12295_v42 = vmax.f32 %v12213_v30, 0.0 }
 0xd68   : > { %12324 = vst [vmem:[%s18469_s28 + $0x60] sm:$0xff] %v12292_v23  ;;  %v12293_v41 = vmax.f32 %v12205_v32, 0.0 }
 0xd69   : > { %12327 = vst [vmem:[%s18469_s28 + $0x78] sm:$0xff] %v12295_v42 }
 0xd6a   : > { %12325 = vst [vmem:[%s18469_s28 + $0x68] sm:$0xff] %v12293_v41 }
 0xd72   : > { %v14631_v33 = vpop.f32.mrb[200].mxu0 }
 0xd73   : > { %v12226_v34 = vadd.f32 %v14631_v33, %v18461_v45  ;;  %v12217_v31 = vpop.f32.mrb[201].mxu0 }
 0xd74   : > { %v12218_v46 = vadd.f32 %v18461_v45, %v12217_v31  ;;  %v14632_v24 = vpop.f32.mrb[202].mxu0 }
 0xd75   : > { %v12298_v35 = vmax.f32 %v12226_v34, 0.0  ;;  %v12229_v37 = vadd.f32 %v14632_v24, %v18461_v45  ;;  %v12220_v20 = vpop.f32.mrb[203].mxu0 }
 0xd76   : > { %v12296_v25 = vmax.f32 %v12218_v46, 0.0  ;;  %v12221_v28 = vadd.f32 %v18461_v45, %v12220_v20 }
 0xd77   : > { %12330 = vst [vmem:[%s18469_s28 + $0x90] sm:$0xff] %v12298_v35  ;;  %v12299_v57 = vmax.f32 %v12229_v37, 0.0 }
 0xd78   : > { %12328 = vst [vmem:[%s18469_s28 + $0x80] sm:$0xff] %v12296_v25  ;;  %v12297_v2 = vmax.f32 %v12221_v28, 0.0 }
 0xd79   : > { %12331 = vst [vmem:[%s18469_s28 + $0x98] sm:$0xff] %v12299_v57 }
 0xd7a   : > { %12329 = vst [vmem:[%s18469_s28 + $0x88] sm:$0xff] %v12297_v2 }
 0xd82   : > { %v14635_v48 = vpop.f32.mrb[204].mxu0 }
 0xd83   : > { %v12242_v63 = vadd.f32 %v14635_v48, %v18461_v45  ;;  %v12233_v62 = vpop.f32.mrb[205].mxu0 }
 0xd84   : > { %v12234_v14 = vadd.f32 %v18461_v45, %v12233_v62  ;;  %v14636_v43 = vpop.f32.mrb[206].mxu0 }
 0xd85   : > { %v12302_v7 = vmax.f32 %v12242_v63, 0.0  ;;  %v12245_v8 = vadd.f32 %v14636_v43, %v18461_v45  ;;  %v12236_v50 = vpop.f32.mrb[207].mxu0 }
 0xd86   : > { %v12300_v55 = vmax.f32 %v12234_v14, 0.0  ;;  %v12237_v26 = vadd.f32 %v18461_v45, %v12236_v50 }
 0xd87   : > { %12334 = vst [vmem:[%s18469_s28 + $0xb0] sm:$0xff] %v12302_v7  ;;  %v12303_v10 = vmax.f32 %v12245_v8, 0.0 }
 0xd88   : > { %12332 = vst [vmem:[%s18469_s28 + $0xa0] sm:$0xff] %v12300_v55  ;;  %v12301_v19 = vmax.f32 %v12237_v26, 0.0 }
 0xd89   : > { %12335 = vst [vmem:[%s18469_s28 + $0xb8] sm:$0xff] %v12303_v10 }
 0xd8a   : > { %12333 = vst [vmem:[%s18469_s28 + $0xa8] sm:$0xff] %v12301_v19 }
 0xd92   : > { %v14639_v3 = vpop.f32.mrb[208].mxu0 }
 0xd93   : > { %v12258_v6 = vadd.f32 %v14639_v3, %v18461_v45  ;;  %v12249_v17 = vpop.f32.mrb[209].mxu0 }
 0xd94   : > { %v12250_v0 = vadd.f32 %v18461_v45, %v12249_v17  ;;  %v14640_v16 = vpop.f32.mrb[210].mxu0 }
 0xd95   : > { %v12306_v61 = vmax.f32 %v12258_v6, 0.0  ;;  %v12261_v39 = vadd.f32 %v14640_v16, %v18461_v45  ;;  %v12252_v60 = vpop.f32.mrb[211].mxu0 }
 0xd96   : > { %v12304_v1 = vmax.f32 %v12250_v0, 0.0  ;;  %v12253_v51 = vadd.f32 %v18461_v45, %v12252_v60 }
 0xd97   : > { %12338 = vst [vmem:[%s18469_s28 + $0xd0] sm:$0xff] %v12306_v61  ;;  %v12307_v13 = vmax.f32 %v12261_v39, 0.0 }
 0xd98   : > { %12336 = vst [vmem:[%s18469_s28 + $0xc0] sm:$0xff] %v12304_v1  ;;  %v12305_v11 = vmax.f32 %v12253_v51, 0.0 }
 0xd99   : > { %12339 = vst [vmem:[%s18469_s28 + $0xd8] sm:$0xff] %v12307_v13 }
 0xd9a   : > { %12337 = vst [vmem:[%s18469_s28 + $0xc8] sm:$0xff] %v12305_v11 }
 0xda2   : > { %v14643_v59 = vpop.f32.mrb[212].mxu0 }
 0xda3   : > { %v12274_v47 = vadd.f32 %v14643_v59, %v18461_v45  ;;  %v12265_v49 = vpop.f32.mrb[213].mxu0 }
 0xda4   : > { %v12266_v29 = vadd.f32 %v18461_v45, %v12265_v49  ;;  %v14644_v53 = vpop.f32.mrb[214].mxu0 }
 0xda5   : > { %v12310_v18 = vmax.f32 %v12274_v47, 0.0  ;;  %v12277_v44 = vadd.f32 %v14644_v53, %v18461_v45  ;;  %v12268_v52 = vpop.f32.mrb[215].mxu0 }
 0xda6   : > { %v12308_v21 = vmax.f32 %v12266_v29, 0.0  ;;  %v12269_v54 = vadd.f32 %v18461_v45, %v12268_v52 }
 0xda7   : > { %12342 = vst [vmem:[%s18469_s28 + $0xf0] sm:$0xff] %v12310_v18  ;;  %v12311_v9 = vmax.f32 %v12277_v44, 0.0 }
 0xda8   : > { %12340 = vst [vmem:[%s18469_s28 + $0xe0] sm:$0xff] %v12308_v21  ;;  %v12309_v12 = vmax.f32 %v12269_v54, 0.0 }
 0xda9   : > { %12343 = vst [vmem:[%s18469_s28 + $0xf8] sm:$0xff] %v12311_v9 }
 0xdaa   : > { %12341 = vst [vmem:[%s18469_s28 + $0xe8] sm:$0xff] %v12309_v12 }
 0xdab   : > { %15193 = shalt.err (!%p15190_p3)
}
 0xdac   : > { %s15194_s19 = scalar_lea.hbm %s18533_s20, 4096  ;;  %s15198_s16 = scalar_lea.hbm %s18595_s12, 8192 }
 0xdad   : > { %p15195_p4 = scmp.ne.s32.totalorder %s18533_s20, %s15194_s19  ;;  %p15199_p9 = scmp.lt.u32.totalorder %s18533_s20, %s18595_s12 }
 0xdae   : > { %p15200_p10 = scmp.lt.u32.totalorder %s15198_s16, %s15194_s19  ;;  %p15202_p12 = scmp.lt.u32.totalorder %s15194_s19, %s18533_s20 }
 0xdaf   : > { %p15196_p7 = pnand %p15195_p4, %p15352_p5 }
 0xdb0   : > { %p15201_p11 = por %p15200_p10, %p15199_p9 }
 0xdb1   : > { %p15197_p8 = pneg %p15196_p7 }
 0xdb2   : > { %p15203_p13 = por %p15202_p12, %p15201_p11 }
 0xdb4   : > { %p15204_p0 = pnand %p15203_p13, %p15197_p8 }
 0xdb6   : > { %15207 = shalt.err (!%p15204_p0)
}
 0xdb7   : > { %s15247_s26 = smov 128   ;;  %s15248_s17 = smov 8  }
 0xdb8   : > { %15133 = dma.vmem_to_hbm [thread:$0]  (%p15352_p5), %s18535_s15, 4096, %s18533_s20, %s18542_s25, %s15247_s26, %s15247_s26, %s15248_s17  }
 0xdb9 PF: > { %p15139_p1 = scmp.ge.s32.totalorder %s15242_s24, 2  ;;  %s12373_s0 = sand.u32 1, %s15230_s21  }
 0xdba   : > { %s12374_s19 = scalar_lea.sflag [#allocation5], %s12373_s0 }
 0xdbb   : > { %p15136_p2 = pnand %p15139_p1, %p15356_p6 }
 0xdbd   : > { %15225 = dma.done.wait (!%p15136_p2), %s12374_s19, 4096  }
 0xdbe   : > { %15227 = vsyncadd (!%p15136_p2), %s12374_s19, 4294963200  ;;  %p22_p3 = scmp.ge.s32.totalorder %s15339_s27, 4   ;;  %s18983_s21 = smov %s15234_s22 }
 0xdbf   : > { %s18984_s22 = smov %s15238_s23  ;;  %s18985_s23 = smov %s15350_s30 }
 0xdc0   : > { %s18986_s24 = smov %s15339_s27  ;;  %24 = sbr.rel (!%p22_p3) target bundleno = 5 (0x5), region = 179 }
 0xdc7   :  { %12379 = vsyncpa [#allocation5], 1 }
 0xdc8   :  { %12381 = vsyncpa [#allocation5 + $0x1], 1 }

</bundles_post_ra>
